<compile_context>
chip_gen: v5e
topology: v5e:2x2
jax: 0.10.0
libtpu: 0.0.40
codegen_flags: <defaults>
</compile_context>

<pallas_src>
import functools

import jax
import jax.numpy as jnp
from jax.experimental import pallas as pl
from jax.experimental.pallas import tpu as pltpu


# ----------------------------------------------------------------------------
# Fused Pallas kernel:
#   conv1+bn1+relu -> maxpool -> layer1 (3 BasicBlocks) -> conv2+bn2
# ----------------------------------------------------------------------------

def _fused_encoder_kernel(x1_ref, w1_ref, sb1_ref, wl_ref, sbl_ref, w2_ref,
                          sb2_ref, skipc_ref, skipl_ref, lat_ref,
                          pad_c_ref, pad_l_ref, *,
                          B, Ho, Wo, Hp, Wp, Cmid, Clat):
    f32 = jnp.float32
    M = B * Hp * Wp

    # ---- conv1 (single im2col matmul) + bn1 + relu -------------------------
    h = jnp.dot(x1_ref[...], w1_ref[...], preferred_element_type=f32)  # (B*Ho*Wo, Cmid)
    sb1 = sb1_ref[...]
    h = jnp.maximum(h * sb1[0:1, :] + sb1[1:2, :], 0.0)
    skipc_ref[...] = h                                   # skip['conv'] (flat NHWC rows)

    # ---- maxpool 3x3 stride 2 pad 1 : (Ho,Wo) -> (Hp,Wp) --------------------
    # Zero padding is equivalent to -inf padding here: h = relu(...) >= 0 and
    # every pooling window contains at least one real element.
    pad_c_ref[...] = jnp.zeros_like(pad_c_ref)
    pad_c_ref[:, 1:Ho + 1, 1:Wo + 1, :] = h.reshape(B, Ho, Wo, Cmid)
    pad_l_ref[...] = jnp.zeros_like(pad_l_ref)           # zero border for 3x3 convs
    for i in range(Hp):
        rows = jnp.max(pad_c_ref[:, 2 * i:2 * i + 3, :, :], axis=1)   # (B, Wo+2, Cmid)
        for j in range(Wp):
            v = jnp.maximum(jnp.maximum(rows[:, 2 * j, :], rows[:, 2 * j + 1, :]),
                            rows[:, 2 * j + 2, :])
            pad_l_ref[:, 1 + i, 1 + j, :] = v             # pooled act -> layer1 input

    # ---- helpers for 3x3 stride-1, pad-1 convs on the (B,Hp,Wp,Cmid) act ---
    def conv3x3(w_at, cout):
        """Input read from pad_l_ref (zero-padded). Returns (M, cout) f32."""
        xpad = pad_l_ref[...]                             # (B, Hp+2, Wp+2, Cmid) f32
        acc = jnp.zeros((M, cout), f32)
        for t in range(9):
            kh, kw = divmod(t, 3)
            tap = xpad[:, kh:kh + Hp, kw:kw + Wp, :].reshape(M, Cmid)
            acc = acc + jnp.dot(tap.astype(jnp.bfloat16), w_at(t),
                                preferred_element_type=f32)
        return acc

    def bn_epilogue(acc, sb, *, relu, residual=None):
        y = acc * sb[0:1, :] + sb[1:2, :]                 # folded BN (eval mode), f32
        if residual is not None:
            y = y + residual
        if relu:
            y = jnp.maximum(y, 0.0)
        return y

    def store_act(y):
        pad_l_ref[:, 1:Hp + 1, 1:Wp + 1, :] = y.reshape(B, Hp, Wp, Cmid)

    def load_act():
        return pad_l_ref[:, 1:Hp + 1, 1:Wp + 1, :].reshape(M, Cmid)

    # ---- layer1: BasicBlocks (64ch, stride 1, no downsample) ---------------
    n_convs = wl_ref.shape[0]                             # 2 convs per block
    for c in range(0, n_convs, 2):
        identity = load_act()
        y = bn_epilogue(conv3x3(lambda t, c=c: wl_ref[c, t], Cmid),
                        sbl_ref[c], relu=True)
        store_act(y)
        y = bn_epilogue(conv3x3(lambda t, c=c: wl_ref[c + 1, t], Cmid),
                        sbl_ref[c + 1], relu=True, residual=identity)
        store_act(y)

    skipl_ref[...] = load_act()                           # skip['layer1']

    # ---- conv2 + bn2 (NO relu in the UNet variant) --------------------------
    lat_ref[...] = bn_epilogue(conv3x3(lambda t: w2_ref[t], Clat),
                               sb2_ref[...], relu=False)


# ----------------------------------------------------------------------------
# Host-side wrapper (weight layout + im2col prep + single pallas_call)
# ----------------------------------------------------------------------------

def _fold_bn(bn_params, eps=1e-5):
    gamma, beta, mean, var = bn_params
    scale = gamma / jnp.sqrt(var + eps)
    bias = beta - mean * scale
    return jnp.stack([scale, bias]).astype(jnp.float32)        # (2, C)


def _conv_w_taps(w_oihw):
    """(Cout, Cin, K, K) -> (K*K, Cin, Cout) bf16, tap-major (kh outer, kw inner)."""
    cout, cin, k, _ = w_oihw.shape
    return (jnp.transpose(w_oihw, (2, 3, 1, 0))
            .reshape(k * k, cin, cout).astype(jnp.bfloat16))


def resnet_unet_encoder_forward(x_nchw, params):
    """x: (B, C, H, W) NCHW float -> (latent NCHW, {'conv':..., 'layer1':...})."""
    # TODO(synk): self.transform (get_data_transform) undefined upstream; identity.
    x = jnp.transpose(x_nchw, (0, 2, 3, 1)).astype(jnp.float32)   # NCHW -> NHWC
    B, H, W, Cin = x.shape
    Cmid = params["conv1_w"].shape[0]                   # 64
    Clat = params["conv2_w"].shape[0]                   # latent_dim

    K1, S1, P1 = 7, 2, 3
    Ho = (H + 2 * P1 - K1) // S1 + 1                    # conv1 output spatial (8)
    Wo = (W + 2 * P1 - K1) // S1 + 1
    Hp = (Ho + 2 - 3) // 2 + 1                          # maxpool output spatial (4)
    Wp = (Wo + 2 - 3) // 2 + 1

    # conv1 as im2col (host-side layout glue only; one MXU matmul in-kernel).
    xp = jnp.pad(x, ((0, 0), (P1, P1), (P1, P1), (0, 0)))
    cols = [xp[:, kh:kh + S1 * (Ho - 1) + 1:S1, kw:kw + S1 * (Wo - 1) + 1:S1, :]
            for kh in range(K1) for kw in range(K1)]
    Kc = K1 * K1 * Cin
    im2col = jnp.concatenate(cols, axis=-1).reshape(B * Ho * Wo, Kc)
    Kpad = -(-Kc // 128) * 128                          # pad contraction to 256
    im2col = jnp.pad(im2col, ((0, 0), (0, Kpad - Kc))).astype(jnp.bfloat16)

    w1 = jnp.transpose(params["conv1_w"], (2, 3, 1, 0)).reshape(Kc, Cmid)
    w1 = jnp.pad(w1, ((0, Kpad - Kc), (0, 0))).astype(jnp.bfloat16)
    sb1 = _fold_bn(params["bn1"])

    # layer1 weights / folded BN, stacked conv-index major.
    wl = jnp.stack([_conv_w_taps(blk[name])
                    for blk in params["layer1"] for name in ("conv1_w", "conv2_w")])
    sbl = jnp.stack([_fold_bn(blk[name])
                     for blk in params["layer1"] for name in ("bn1", "bn2")])

    w2 = _conv_w_taps(params["conv2_w"])                # (9, Cmid, Clat)
    sb2 = _fold_bn(params["bn2"])

    kern = functools.partial(_fused_encoder_kernel, B=B, Ho=Ho, Wo=Wo,
                             Hp=Hp, Wp=Wp, Cmid=Cmid, Clat=Clat)
    skipc, skipl, lat = pl.pallas_call(
        kern,
        out_shape=(
            jax.ShapeDtypeStruct((B * Ho * Wo, Cmid), jnp.float32),   # skip['conv']
            jax.ShapeDtypeStruct((B * Hp * Wp, Cmid), jnp.float32),   # skip['layer1']
            jax.ShapeDtypeStruct((B * Hp * Wp, Clat), jnp.float32),   # latent
        ),
        scratch_shapes=[
            pltpu.VMEM((B, Ho + 2, Wo + 2, Cmid), jnp.float32),  # padded conv1 act
            pltpu.VMEM((B, Hp + 2, Wp + 2, Cmid), jnp.float32),  # padded layer1 act
        ],
    )(im2col, w1, sb1, wl, sbl, w2, sb2)

    to_nchw = lambda a: jnp.transpose(a, (0, 3, 1, 2)).astype(jnp.float32)
    skip = {"conv": to_nchw(skipc.reshape(B, Ho, Wo, Cmid)),
            "layer1": to_nchw(skipl.reshape(B, Hp, Wp, Cmid))}
    latent = to_nchw(lat.reshape(B, Hp, Wp, Clat))
    return latent, skip


# ----------------------------------------------------------------------------
# Parameter init (deterministic, synthetic)
# ----------------------------------------------------------------------------

def init_params(key, in_channels, latent_dim, num_blocks_layer1=3):
    keys = iter(jax.random.split(key, 64))

    def conv_w(cout, cin, k):
        fan_in = cin * k * k
        return (jax.random.normal(next(keys), (cout, cin, k, k), jnp.float32)
                * (2.0 / fan_in) ** 0.5)

    def bn(c):
        g = 1.0 + 0.05 * jax.random.normal(next(keys), (c,), jnp.float32)
        b = 0.05 * jax.random.normal(next(keys), (c,), jnp.float32)
        m = 0.05 * jax.random.normal(next(keys), (c,), jnp.float32)
        v = 1.0 + 0.05 * jax.random.uniform(next(keys), (c,), jnp.float32)
        return (g, b, m, v)

    layer1 = []
    for _ in range(num_blocks_layer1):   # resnet34 layer1 = 3 BasicBlocks of 64ch
        layer1.append({
            "conv1_w": conv_w(64, 64, 3), "bn1": bn(64),
            "conv2_w": conv_w(64, 64, 3), "bn2": bn(64),
        })

    return {
        "conv1_w": conv_w(64, in_channels, 7), "bn1": bn(64),
        "layer1": layer1,
        "conv2_w": conv_w(latent_dim, 64, 3), "bn2": bn(latent_dim),
    }


if __name__ == "__main__":
    key = jax.random.PRNGKey(0)
    k_x, k_p = jax.random.split(key)

    B, C, H, W = 2, 4, 16, 16
    LATENT = 32
    x = jax.random.normal(k_x, (B, C, H, W), jnp.float32)
    params = init_params(k_p, in_channels=C, latent_dim=LATENT)

    fwd = jax.jit(resnet_unet_encoder_forward)
    latent, skips = fwd(x, params)
    jax.block_until_ready((latent, skips))

    assert latent.shape == (B, LATENT, 4, 4), latent.shape
    assert latent.dtype == jnp.float32
    assert skips["conv"].shape == (B, 64, 8, 8), skips["conv"].shape
    assert skips["layer1"].shape == (B, 64, 4, 4), skips["layer1"].shape
    assert bool(jnp.all(jnp.isfinite(latent)))
    assert bool(jnp.all(jnp.isfinite(skips["conv"])))
    assert bool(jnp.all(jnp.isfinite(skips["layer1"])))

    print("KERNEL_OK")
</pallas_src>

<mosaic_0001>
module attributes {stable_mosaic.version = 11 : i64} {
  func.func @_fused_encoder_kernel(%arg0: memref<128x256xbf16, #tpu.memory_space<vmem>>, %arg1: memref<256x64xbf16, #tpu.memory_space<vmem>>, %arg2: memref<2x64xf32, #tpu.memory_space<vmem>>, %arg3: memref<6x9x64x64xbf16, #tpu.memory_space<vmem>>, %arg4: memref<6x2x64xf32, #tpu.memory_space<vmem>>, %arg5: memref<9x64x32xbf16, #tpu.memory_space<vmem>>, %arg6: memref<2x32xf32, #tpu.memory_space<vmem>>, %arg7: memref<128x64xf32, #tpu.memory_space<vmem>>, %arg8: memref<32x64xf32, #tpu.memory_space<vmem>>, %arg9: memref<32x32xf32, #tpu.memory_space<vmem>>, %arg10: memref<2x10x10x64xf32, #tpu.memory_space<vmem>>, %arg11: memref<2x6x6x64xf32, #tpu.memory_space<vmem>>) attributes {dimension_semantics = [], scalar_prefetch = 0 : i64, scratch_operands = 2 : i64, tpu.core_type = #tpu.core_type<tc>} {
    %c0 = arith.constant 0 : index
    %c0_0 = arith.constant 0 : index
    %0 = vector.load %arg0[%c0, %c0_0] : memref<128x256xbf16, #tpu.memory_space<vmem>>, vector<128x256xbf16>
    %c0_1 = arith.constant 0 : index
    %c0_2 = arith.constant 0 : index
    %1 = vector.load %arg1[%c0_1, %c0_2] : memref<256x64xbf16, #tpu.memory_space<vmem>>, vector<256x64xbf16>
    %cst = arith.constant dense<0.000000e+00> : vector<128x64xf32>
    %2 = tpu.matmul %0, %1, %cst {dimension_numbers = #tpu.dot_dimension_numbers<[1], [0], [0], [1], [0, 0, 1, 1], [], []>} : vector<128x256xbf16>, vector<256x64xbf16>, vector<128x64xf32> -> vector<128x64xf32>
    %c0_3 = arith.constant 0 : index
    %c0_4 = arith.constant 0 : index
    %3 = vector.load %arg2[%c0_3, %c0_4] : memref<2x64xf32, #tpu.memory_space<vmem>>, vector<2x64xf32>
    %4 = vector.extract_strided_slice %3 {offsets = [0, 0], sizes = [1, 64], strides = [1, 1]} : vector<2x64xf32> to vector<1x64xf32>
    %5 = vector.broadcast %4 : vector<1x64xf32> to vector<128x64xf32>
    %6 = arith.mulf %2, %5 : vector<128x64xf32>
    %7 = vector.extract_strided_slice %3 {offsets = [1, 0], sizes = [1, 64], strides = [1, 1]} : vector<2x64xf32> to vector<1x64xf32>
    %8 = vector.broadcast %7 : vector<1x64xf32> to vector<128x64xf32>
    %9 = arith.addf %6, %8 : vector<128x64xf32>
    %cst_5 = arith.constant 0.000000e+00 : f32
    %10 = vector.broadcast %cst_5 : f32 to vector<128x64xf32>
    %11 = arith.maximumf %9, %10 : vector<128x64xf32>
    %c0_6 = arith.constant 0 : index
    %c0_7 = arith.constant 0 : index
    %12 = vector.load %arg7[%c0_6, %c0_7] : memref<128x64xf32, #tpu.memory_space<vmem>>, vector<128x64xf32>
    tpu.vector_store %arg7[%c0_6, %c0_7], %11 {strides = array<i32>} : memref<128x64xf32, #tpu.memory_space<vmem>>, vector<128x64xf32>,
    %cst_8 = arith.constant 0.000000e+00 : f32
    %13 = vector.broadcast %cst_8 : f32 to vector<2x10x10x64xf32>
    %c0_9 = arith.constant 0 : index
    %c0_10 = arith.constant 0 : index
    %c0_11 = arith.constant 0 : index
    %c0_12 = arith.constant 0 : index
    %14 = vector.load %arg10[%c0_9, %c0_10, %c0_11, %c0_12] : memref<2x10x10x64xf32, #tpu.memory_space<vmem>>, vector<2x10x10x64xf32>
    tpu.vector_store %arg10[%c0_9, %c0_10, %c0_11, %c0_12], %13 {strides = array<i32>} : memref<2x10x10x64xf32, #tpu.memory_space<vmem>>, vector<2x10x10x64xf32>,
    %15 = vector.shape_cast %11 : vector<128x64xf32> to vector<2x8x8x64xf32>
    %c0_13 = arith.constant 0 : index
    %c1 = arith.constant 1 : index
    %c1_14 = arith.constant 1 : index
    %c0_15 = arith.constant 0 : index
    %16 = vector.load %arg10[%c0_13, %c1, %c1_14, %c0_15] : memref<2x10x10x64xf32, #tpu.memory_space<vmem>>, vector<2x8x8x64xf32>
    tpu.vector_store %arg10[%c0_13, %c1, %c1_14, %c0_15], %15 {strides = array<i32>} : memref<2x10x10x64xf32, #tpu.memory_space<vmem>>, vector<2x8x8x64xf32>,
    %cst_16 = arith.constant 0.000000e+00 : f32
    %17 = vector.broadcast %cst_16 : f32 to vector<2x6x6x64xf32>
    %c0_17 = arith.constant 0 : index
    %c0_18 = arith.constant 0 : index
    %c0_19 = arith.constant 0 : index
    %c0_20 = arith.constant 0 : index
    %18 = vector.load %arg11[%c0_17, %c0_18, %c0_19, %c0_20] : memref<2x6x6x64xf32, #tpu.memory_space<vmem>>, vector<2x6x6x64xf32>
    tpu.vector_store %arg11[%c0_17, %c0_18, %c0_19, %c0_20], %17 {strides = array<i32>} : memref<2x6x6x64xf32, #tpu.memory_space<vmem>>, vector<2x6x6x64xf32>,
    %c0_21 = arith.constant 0 : index
    %c0_22 = arith.constant 0 : index
    %c0_23 = arith.constant 0 : index
    %c0_24 = arith.constant 0 : index
    %19 = vector.load %arg10[%c0_21, %c0_22, %c0_23, %c0_24] : memref<2x10x10x64xf32, #tpu.memory_space<vmem>>, vector<2x3x10x64xf32>
    %cst_25 = arith.constant dense<0xFF800000> : vector<2x10x64xf32>
    %20 = vector.multi_reduction <maximumf>, %19, %cst_25 [1] : vector<2x3x10x64xf32> to vector<2x10x64xf32>
    %21 = vector.extract_strided_slice %20 {offsets = [0, 0, 0], sizes = [2, 1, 64], strides = [1, 1, 1]} : vector<2x10x64xf32> to vector<2x1x64xf32>
    %22 = vector.shape_cast %21 : vector<2x1x64xf32> to vector<2x64xf32>
    %23 = vector.extract_strided_slice %20 {offsets = [0, 1, 0], sizes = [2, 1, 64], strides = [1, 1, 1]} : vector<2x10x64xf32> to vector<2x1x64xf32>
    %24 = vector.shape_cast %23 : vector<2x1x64xf32> to vector<2x64xf32>
    %25 = arith.maximumf %22, %24 : vector<2x64xf32>
    %26 = vector.extract_strided_slice %20 {offsets = [0, 2, 0], sizes = [2, 1, 64], strides = [1, 1, 1]} : vector<2x10x64xf32> to vector<2x1x64xf32>
    %27 = vector.shape_cast %26 : vector<2x1x64xf32> to vector<2x64xf32>
    %28 = arith.maximumf %25, %27 : vector<2x64xf32>
    %c0_26 = arith.constant 0 : index
    %c1_27 = arith.constant 1 : index
    %c1_28 = arith.constant 1 : index
    %c0_29 = arith.constant 0 : index
    %29 = vector.load %arg11[%c0_26, %c1_27, %c1_28, %c0_29] : memref<2x6x6x64xf32, #tpu.memory_space<vmem>>, vector<2x1x1x64xf32>
    %30 = vector.shape_cast %29 : vector<2x1x1x64xf32> to vector<2x64xf32>
    %31 = vector.shape_cast %28 : vector<2x64xf32> to vector<2x1x1x64xf32>
    tpu.vector_store %arg11[%c0_26, %c1_27, %c1_28, %c0_29], %31 {strides = array<i32>} : memref<2x6x6x64xf32, #tpu.memory_space<vmem>>, vector<2x1x1x64xf32>,
    %32 = vector.extract_strided_slice %20 {offsets = [0, 2, 0], sizes = [2, 1, 64], strides = [1, 1, 1]} : vector<2x10x64xf32> to vector<2x1x64xf32>
    %33 = vector.shape_cast %32 : vector<2x1x64xf32> to vector<2x64xf32>
    %34 = vector.extract_strided_slice %20 {offsets = [0, 3, 0], sizes = [2, 1, 64], strides = [1, 1, 1]} : vector<2x10x64xf32> to vector<2x1x64xf32>
    %35 = vector.shape_cast %34 : vector<2x1x64xf32> to vector<2x64xf32>
    %36 = arith.maximumf %33, %35 : vector<2x64xf32>
    %37 = vector.extract_strided_slice %20 {offsets = [0, 4, 0], sizes = [2, 1, 64], strides = [1, 1, 1]} : vector<2x10x64xf32> to vector<2x1x64xf32>
    %38 = vector.shape_cast %37 : vector<2x1x64xf32> to vector<2x64xf32>
    %39 = arith.maximumf %36, %38 : vector<2x64xf32>
    %c0_30 = arith.constant 0 : index
    %c1_31 = arith.constant 1 : index
    %c2 = arith.constant 2 : index
    %c0_32 = arith.constant 0 : index
    %40 = vector.load %arg11[%c0_30, %c1_31, %c2, %c0_32] : memref<2x6x6x64xf32, #tpu.memory_space<vmem>>, vector<2x1x1x64xf32>
    %41 = vector.shape_cast %40 : vector<2x1x1x64xf32> to vector<2x64xf32>
    %42 = vector.shape_cast %39 : vector<2x64xf32> to vector<2x1x1x64xf32>
    tpu.vector_store %arg11[%c0_30, %c1_31, %c2, %c0_32], %42 {strides = array<i32>} : memref<2x6x6x64xf32, #tpu.memory_space<vmem>>, vector<2x1x1x64xf32>,
    %43 = vector.extract_strided_slice %20 {offsets = [0, 4, 0], sizes = [2, 1, 64], strides = [1, 1, 1]} : vector<2x10x64xf32> to vector<2x1x64xf32>
    %44 = vector.shape_cast %43 : vector<2x1x64xf32> to vector<2x64xf32>
    %45 = vector.extract_strided_slice %20 {offsets = [0, 5, 0], sizes = [2, 1, 64], strides = [1, 1, 1]} : vector<2x10x64xf32> to vector<2x1x64xf32>
    %46 = vector.shape_cast %45 : vector<2x1x64xf32> to vector<2x64xf32>
    %47 = arith.maximumf %44, %46 : vector<2x64xf32>
    %48 = vector.extract_strided_slice %20 {offsets = [0, 6, 0], sizes = [2, 1, 64], strides = [1, 1, 1]} : vector<2x10x64xf32> to vector<2x1x64xf32>
    %49 = vector.shape_cast %48 : vector<2x1x64xf32> to vector<2x64xf32>
    %50 = arith.maximumf %47, %49 : vector<2x64xf32>
    %c0_33 = arith.constant 0 : index
    %c1_34 = arith.constant 1 : index
    %c3 = arith.constant 3 : index
    %c0_35 = arith.constant 0 : index
    %51 = vector.load %arg11[%c0_33, %c1_34, %c3, %c0_35] : memref<2x6x6x64xf32, #tpu.memory_space<vmem>>, vector<2x1x1x64xf32>
    %52 = vector.shape_cast %51 : vector<2x1x1x64xf32> to vector<2x64xf32>
    %53 = vector.shape_cast %50 : vector<2x64xf32> to vector<2x1x1x64xf32>
    tpu.vector_store %arg11[%c0_33, %c1_34, %c3, %c0_35], %53 {strides = array<i32>} : memref<2x6x6x64xf32, #tpu.memory_space<vmem>>, vector<2x1x1x64xf32>,
    %54 = vector.extract_strided_slice %20 {offsets = [0, 6, 0], sizes = [2, 1, 64], strides = [1, 1, 1]} : vector<2x10x64xf32> to vector<2x1x64xf32>
    %55 = vector.shape_cast %54 : vector<2x1x64xf32> to vector<2x64xf32>
    %56 = vector.extract_strided_slice %20 {offsets = [0, 7, 0], sizes = [2, 1, 64], strides = [1, 1, 1]} : vector<2x10x64xf32> to vector<2x1x64xf32>
    %57 = vector.shape_cast %56 : vector<2x1x64xf32> to vector<2x64xf32>
    %58 = arith.maximumf %55, %57 : vector<2x64xf32>
    %59 = vector.extract_strided_slice %20 {offsets = [0, 8, 0], sizes = [2, 1, 64], strides = [1, 1, 1]} : vector<2x10x64xf32> to vector<2x1x64xf32>
    %60 = vector.shape_cast %59 : vector<2x1x64xf32> to vector<2x64xf32>
    %61 = arith.maximumf %58, %60 : vector<2x64xf32>
    %c0_36 = arith.constant 0 : index
    %c1_37 = arith.constant 1 : index
    %c4 = arith.constant 4 : index
    %c0_38 = arith.constant 0 : index
    %62 = vector.load %arg11[%c0_36, %c1_37, %c4, %c0_38] : memref<2x6x6x64xf32, #tpu.memory_space<vmem>>, vector<2x1x1x64xf32>
    %63 = vector.shape_cast %62 : vector<2x1x1x64xf32> to vector<2x64xf32>
    %64 = vector.shape_cast %61 : vector<2x64xf32> to vector<2x1x1x64xf32>
    tpu.vector_store %arg11[%c0_36, %c1_37, %c4, %c0_38], %64 {strides = array<i32>} : memref<2x6x6x64xf32, #tpu.memory_space<vmem>>, vector<2x1x1x64xf32>,
    %c0_39 = arith.constant 0 : index
    %c2_40 = arith.constant 2 : index
    %c0_41 = arith.constant 0 : index
    %c0_42 = arith.constant 0 : index
    %65 = vector.load %arg10[%c0_39, %c2_40, %c0_41, %c0_42] : memref<2x10x10x64xf32, #tpu.memory_space<vmem>>, vector<2x3x10x64xf32>
    %cst_43 = arith.constant dense<0xFF800000> : vector<2x10x64xf32>
    %66 = vector.multi_reduction <maximumf>, %65, %cst_43 [1] : vector<2x3x10x64xf32> to vector<2x10x64xf32>
    %67 = vector.extract_strided_slice %66 {offsets = [0, 0, 0], sizes = [2, 1, 64], strides = [1, 1, 1]} : vector<2x10x64xf32> to vector<2x1x64xf32>
    %68 = vector.shape_cast %67 : vector<2x1x64xf32> to vector<2x64xf32>
    %69 = vector.extract_strided_slice %66 {offsets = [0, 1, 0], sizes = [2, 1, 64], strides = [1, 1, 1]} : vector<2x10x64xf32> to vector<2x1x64xf32>
    %70 = vector.shape_cast %69 : vector<2x1x64xf32> to vector<2x64xf32>
    %71 = arith.maximumf %68, %70 : vector<2x64xf32>
    %72 = vector.extract_strided_slice %66 {offsets = [0, 2, 0], sizes = [2, 1, 64], strides = [1, 1, 1]} : vector<2x10x64xf32> to vector<2x1x64xf32>
    %73 = vector.shape_cast %72 : vector<2x1x64xf32> to vector<2x64xf32>
    %74 = arith.maximumf %71, %73 : vector<2x64xf32>
    %c0_44 = arith.constant 0 : index
    %c2_45 = arith.constant 2 : index
    %c1_46 = arith.constant 1 : index
    %c0_47 = arith.constant 0 : index
    %75 = vector.load %arg11[%c0_44, %c2_45, %c1_46, %c0_47] : memref<2x6x6x64xf32, #tpu.memory_space<vmem>>, vector<2x1x1x64xf32>
    %76 = vector.shape_cast %75 : vector<2x1x1x64xf32> to vector<2x64xf32>
    %77 = vector.shape_cast %74 : vector<2x64xf32> to vector<2x1x1x64xf32>
    tpu.vector_store %arg11[%c0_44, %c2_45, %c1_46, %c0_47], %77 {strides = array<i32>} : memref<2x6x6x64xf32, #tpu.memory_space<vmem>>, vector<2x1x1x64xf32>,
    %78 = vector.extract_strided_slice %66 {offsets = [0, 2, 0], sizes = [2, 1, 64], strides = [1, 1, 1]} : vector<2x10x64xf32> to vector<2x1x64xf32>
    %79 = vector.shape_cast %78 : vector<2x1x64xf32> to vector<2x64xf32>
    %80 = vector.extract_strided_slice %66 {offsets = [0, 3, 0], sizes = [2, 1, 64], strides = [1, 1, 1]} : vector<2x10x64xf32> to vector<2x1x64xf32>
    %81 = vector.shape_cast %80 : vector<2x1x64xf32> to vector<2x64xf32>
    %82 = arith.maximumf %79, %81 : vector<2x64xf32>
    %83 = vector.extract_strided_slice %66 {offsets = [0, 4, 0], sizes = [2, 1, 64], strides = [1, 1, 1]} : vector<2x10x64xf32> to vector<2x1x64xf32>
    %84 = vector.shape_cast %83 : vector<2x1x64xf32> to vector<2x64xf32>
    %85 = arith.maximumf %82, %84 : vector<2x64xf32>
    %c0_48 = arith.constant 0 : index
    %c2_49 = arith.constant 2 : index
    %c2_50 = arith.constant 2 : index
    %c0_51 = arith.constant 0 : index
    %86 = vector.load %arg11[%c0_48, %c2_49, %c2_50, %c0_51] : memref<2x6x6x64xf32, #tpu.memory_space<vmem>>, vector<2x1x1x64xf32>
    %87 = vector.shape_cast %86 : vector<2x1x1x64xf32> to vector<2x64xf32>
    %88 = vector.shape_cast %85 : vector<2x64xf32> to vector<2x1x1x64xf32>
    tpu.vector_store %arg11[%c0_48, %c2_49, %c2_50, %c0_51], %88 {strides = array<i32>} : memref<2x6x6x64xf32, #tpu.memory_space<vmem>>, vector<2x1x1x64xf32>,
    %89 = vector.extract_strided_slice %66 {offsets = [0, 4, 0], sizes = [2, 1, 64], strides = [1, 1, 1]} : vector<2x10x64xf32> to vector<2x1x64xf32>
    %90 = vector.shape_cast %89 : vector<2x1x64xf32> to vector<2x64xf32>
    %91 = vector.extract_strided_slice %66 {offsets = [0, 5, 0], sizes = [2, 1, 64], strides = [1, 1, 1]} : vector<2x10x64xf32> to vector<2x1x64xf32>
    %92 = vector.shape_cast %91 : vector<2x1x64xf32> to vector<2x64xf32>
    %93 = arith.maximumf %90, %92 : vector<2x64xf32>
    %94 = vector.extract_strided_slice %66 {offsets = [0, 6, 0], sizes = [2, 1, 64], strides = [1, 1, 1]} : vector<2x10x64xf32> to vector<2x1x64xf32>
    %95 = vector.shape_cast %94 : vector<2x1x64xf32> to vector<2x64xf32>
    %96 = arith.maximumf %93, %95 : vector<2x64xf32>
    %c0_52 = arith.constant 0 : index
    %c2_53 = arith.constant 2 : index
    %c3_54 = arith.constant 3 : index
    %c0_55 = arith.constant 0 : index
    %97 = vector.load %arg11[%c0_52, %c2_53, %c3_54, %c0_55] : memref<2x6x6x64xf32, #tpu.memory_space<vmem>>, vector<2x1x1x64xf32>
    %98 = vector.shape_cast %97 : vector<2x1x1x64xf32> to vector<2x64xf32>
    %99 = vector.shape_cast %96 : vector<2x64xf32> to vector<2x1x1x64xf32>
    tpu.vector_store %arg11[%c0_52, %c2_53, %c3_54, %c0_55], %99 {strides = array<i32>} : memref<2x6x6x64xf32, #tpu.memory_space<vmem>>, vector<2x1x1x64xf32>,
    %100 = vector.extract_strided_slice %66 {offsets = [0, 6, 0], sizes = [2, 1, 64], strides = [1, 1, 1]} : vector<2x10x64xf32> to vector<2x1x64xf32>
    %101 = vector.shape_cast %100 : vector<2x1x64xf32> to vector<2x64xf32>
    %102 = vector.extract_strided_slice %66 {offsets = [0, 7, 0], sizes = [2, 1, 64], strides = [1, 1, 1]} : vector<2x10x64xf32> to vector<2x1x64xf32>
    %103 = vector.shape_cast %102 : vector<2x1x64xf32> to vector<2x64xf32>
    %104 = arith.maximumf %101, %103 : vector<2x64xf32>
    %105 = vector.extract_strided_slice %66 {offsets = [0, 8, 0], sizes = [2, 1, 64], strides = [1, 1, 1]} : vector<2x10x64xf32> to vector<2x1x64xf32>
    %106 = vector.shape_cast %105 : vector<2x1x64xf32> to vector<2x64xf32>
    %107 = arith.maximumf %104, %106 : vector<2x64xf32>
    %c0_56 = arith.constant 0 : index
    %c2_57 = arith.constant 2 : index
    %c4_58 = arith.constant 4 : index
    %c0_59 = arith.constant 0 : index
    %108 = vector.load %arg11[%c0_56, %c2_57, %c4_58, %c0_59] : memref<2x6x6x64xf32, #tpu.memory_space<vmem>>, vector<2x1x1x64xf32>
    %109 = vector.shape_cast %108 : vector<2x1x1x64xf32> to vector<2x64xf32>
    %110 = vector.shape_cast %107 : vector<2x64xf32> to vector<2x1x1x64xf32>
    tpu.vector_store %arg11[%c0_56, %c2_57, %c4_58, %c0_59], %110 {strides = array<i32>} : memref<2x6x6x64xf32, #tpu.memory_space<vmem>>, vector<2x1x1x64xf32>,
    %c0_60 = arith.constant 0 : index
    %c4_61 = arith.constant 4 : index
    %c0_62 = arith.constant 0 : index
    %c0_63 = arith.constant 0 : index
    %111 = vector.load %arg10[%c0_60, %c4_61, %c0_62, %c0_63] : memref<2x10x10x64xf32, #tpu.memory_space<vmem>>, vector<2x3x10x64xf32>
    %cst_64 = arith.constant dense<0xFF800000> : vector<2x10x64xf32>
    %112 = vector.multi_reduction <maximumf>, %111, %cst_64 [1] : vector<2x3x10x64xf32> to vector<2x10x64xf32>
    %113 = vector.extract_strided_slice %112 {offsets = [0, 0, 0], sizes = [2, 1, 64], strides = [1, 1, 1]} : vector<2x10x64xf32> to vector<2x1x64xf32>
    %114 = vector.shape_cast %113 : vector<2x1x64xf32> to vector<2x64xf32>
    %115 = vector.extract_strided_slice %112 {offsets = [0, 1, 0], sizes = [2, 1, 64], strides = [1, 1, 1]} : vector<2x10x64xf32> to vector<2x1x64xf32>
    %116 = vector.shape_cast %115 : vector<2x1x64xf32> to vector<2x64xf32>
    %117 = arith.maximumf %114, %116 : vector<2x64xf32>
    %118 = vector.extract_strided_slice %112 {offsets = [0, 2, 0], sizes = [2, 1, 64], strides = [1, 1, 1]} : vector<2x10x64xf32> to vector<2x1x64xf32>
    %119 = vector.shape_cast %118 : vector<2x1x64xf32> to vector<2x64xf32>
    %120 = arith.maximumf %117, %119 : vector<2x64xf32>
    %c0_65 = arith.constant 0 : index
    %c3_66 = arith.constant 3 : index
    %c1_67 = arith.constant 1 : index
    %c0_68 = arith.constant 0 : index
    %121 = vector.load %arg11[%c0_65, %c3_66, %c1_67, %c0_68] : memref<2x6x6x64xf32, #tpu.memory_space<vmem>>, vector<2x1x1x64xf32>
    %122 = vector.shape_cast %121 : vector<2x1x1x64xf32> to vector<2x64xf32>
    %123 = vector.shape_cast %120 : vector<2x64xf32> to vector<2x1x1x64xf32>
    tpu.vector_store %arg11[%c0_65, %c3_66, %c1_67, %c0_68], %123 {strides = array<i32>} : memref<2x6x6x64xf32, #tpu.memory_space<vmem>>, vector<2x1x1x64xf32>,
    %124 = vector.extract_strided_slice %112 {offsets = [0, 2, 0], sizes = [2, 1, 64], strides = [1, 1, 1]} : vector<2x10x64xf32> to vector<2x1x64xf32>
    %125 = vector.shape_cast %124 : vector<2x1x64xf32> to vector<2x64xf32>
    %126 = vector.extract_strided_slice %112 {offsets = [0, 3, 0], sizes = [2, 1, 64], strides = [1, 1, 1]} : vector<2x10x64xf32> to vector<2x1x64xf32>
    %127 = vector.shape_cast %126 : vector<2x1x64xf32> to vector<2x64xf32>
    %128 = arith.maximumf %125, %127 : vector<2x64xf32>
    %129 = vector.extract_strided_slice %112 {offsets = [0, 4, 0], sizes = [2, 1, 64], strides = [1, 1, 1]} : vector<2x10x64xf32> to vector<2x1x64xf32>
    %130 = vector.shape_cast %129 : vector<2x1x64xf32> to vector<2x64xf32>
    %131 = arith.maximumf %128, %130 : vector<2x64xf32>
    %c0_69 = arith.constant 0 : index
    %c3_70 = arith.constant 3 : index
    %c2_71 = arith.constant 2 : index
    %c0_72 = arith.constant 0 : index
    %132 = vector.load %arg11[%c0_69, %c3_70, %c2_71, %c0_72] : memref<2x6x6x64xf32, #tpu.memory_space<vmem>>, vector<2x1x1x64xf32>
    %133 = vector.shape_cast %132 : vector<2x1x1x64xf32> to vector<2x64xf32>
    %134 = vector.shape_cast %131 : vector<2x64xf32> to vector<2x1x1x64xf32>
    tpu.vector_store %arg11[%c0_69, %c3_70, %c2_71, %c0_72], %134 {strides = array<i32>} : memref<2x6x6x64xf32, #tpu.memory_space<vmem>>, vector<2x1x1x64xf32>,
    %135 = vector.extract_strided_slice %112 {offsets = [0, 4, 0], sizes = [2, 1, 64], strides = [1, 1, 1]} : vector<2x10x64xf32> to vector<2x1x64xf32>
    %136 = vector.shape_cast %135 : vector<2x1x64xf32> to vector<2x64xf32>
    %137 = vector.extract_strided_slice %112 {offsets = [0, 5, 0], sizes = [2, 1, 64], strides = [1, 1, 1]} : vector<2x10x64xf32> to vector<2x1x64xf32>
    %138 = vector.shape_cast %137 : vector<2x1x64xf32> to vector<2x64xf32>
    %139 = arith.maximumf %136, %138 : vector<2x64xf32>
    %140 = vector.extract_strided_slice %112 {offsets = [0, 6, 0], sizes = [2, 1, 64], strides = [1, 1, 1]} : vector<2x10x64xf32> to vector<2x1x64xf32>
    %141 = vector.shape_cast %140 : vector<2x1x64xf32> to vector<2x64xf32>
    %142 = arith.maximumf %139, %141 : vector<2x64xf32>
    %c0_73 = arith.constant 0 : index
    %c3_74 = arith.constant 3 : index
    %c3_75 = arith.constant 3 : index
    %c0_76 = arith.constant 0 : index
    %143 = vector.load %arg11[%c0_73, %c3_74, %c3_75, %c0_76] : memref<2x6x6x64xf32, #tpu.memory_space<vmem>>, vector<2x1x1x64xf32>
    %144 = vector.shape_cast %143 : vector<2x1x1x64xf32> to vector<2x64xf32>
    %145 = vector.shape_cast %142 : vector<2x64xf32> to vector<2x1x1x64xf32>
    tpu.vector_store %arg11[%c0_73, %c3_74, %c3_75, %c0_76], %145 {strides = array<i32>} : memref<2x6x6x64xf32, #tpu.memory_space<vmem>>, vector<2x1x1x64xf32>,
    %146 = vector.extract_strided_slice %112 {offsets = [0, 6, 0], sizes = [2, 1, 64], strides = [1, 1, 1]} : vector<2x10x64xf32> to vector<2x1x64xf32>
    %147 = vector.shape_cast %146 : vector<2x1x64xf32> to vector<2x64xf32>
    %148 = vector.extract_strided_slice %112 {offsets = [0, 7, 0], sizes = [2, 1, 64], strides = [1, 1, 1]} : vector<2x10x64xf32> to vector<2x1x64xf32>
    %149 = vector.shape_cast %148 : vector<2x1x64xf32> to vector<2x64xf32>
    %150 = arith.maximumf %147, %149 : vector<2x64xf32>
    %151 = vector.extract_strided_slice %112 {offsets = [0, 8, 0], sizes = [2, 1, 64], strides = [1, 1, 1]} : vector<2x10x64xf32> to vector<2x1x64xf32>
    %152 = vector.shape_cast %151 : vector<2x1x64xf32> to vector<2x64xf32>
    %153 = arith.maximumf %150, %152 : vector<2x64xf32>
    %c0_77 = arith.constant 0 : index
    %c3_78 = arith.constant 3 : index
    %c4_79 = arith.constant 4 : index
    %c0_80 = arith.constant 0 : index
    %154 = vector.load %arg11[%c0_77, %c3_78, %c4_79, %c0_80] : memref<2x6x6x64xf32, #tpu.memory_space<vmem>>, vector<2x1x1x64xf32>
    %155 = vector.shape_cast %154 : vector<2x1x1x64xf32> to vector<2x64xf32>
    %156 = vector.shape_cast %153 : vector<2x64xf32> to vector<2x1x1x64xf32>
    tpu.vector_store %arg11[%c0_77, %c3_78, %c4_79, %c0_80], %156 {strides = array<i32>} : memref<2x6x6x64xf32, #tpu.memory_space<vmem>>, vector<2x1x1x64xf32>,
    %c0_81 = arith.constant 0 : index
    %c6 = arith.constant 6 : index
    %c0_82 = arith.constant 0 : index
    %c0_83 = arith.constant 0 : index
    %157 = vector.load %arg10[%c0_81, %c6, %c0_82, %c0_83] : memref<2x10x10x64xf32, #tpu.memory_space<vmem>>, vector<2x3x10x64xf32>
    %cst_84 = arith.constant dense<0xFF800000> : vector<2x10x64xf32>
    %158 = vector.multi_reduction <maximumf>, %157, %cst_84 [1] : vector<2x3x10x64xf32> to vector<2x10x64xf32>
    %159 = vector.extract_strided_slice %158 {offsets = [0, 0, 0], sizes = [2, 1, 64], strides = [1, 1, 1]} : vector<2x10x64xf32> to vector<2x1x64xf32>
    %160 = vector.shape_cast %159 : vector<2x1x64xf32> to vector<2x64xf32>
    %161 = vector.extract_strided_slice %158 {offsets = [0, 1, 0], sizes = [2, 1, 64], strides = [1, 1, 1]} : vector<2x10x64xf32> to vector<2x1x64xf32>
    %162 = vector.shape_cast %161 : vector<2x1x64xf32> to vector<2x64xf32>
    %163 = arith.maximumf %160, %162 : vector<2x64xf32>
    %164 = vector.extract_strided_slice %158 {offsets = [0, 2, 0], sizes = [2, 1, 64], strides = [1, 1, 1]} : vector<2x10x64xf32> to vector<2x1x64xf32>
    %165 = vector.shape_cast %164 : vector<2x1x64xf32> to vector<2x64xf32>
    %166 = arith.maximumf %163, %165 : vector<2x64xf32>
    %c0_85 = arith.constant 0 : index
    %c4_86 = arith.constant 4 : index
    %c1_87 = arith.constant 1 : index
    %c0_88 = arith.constant 0 : index
    %167 = vector.load %arg11[%c0_85, %c4_86, %c1_87, %c0_88] : memref<2x6x6x64xf32, #tpu.memory_space<vmem>>, vector<2x1x1x64xf32>
    %168 = vector.shape_cast %167 : vector<2x1x1x64xf32> to vector<2x64xf32>
    %169 = vector.shape_cast %166 : vector<2x64xf32> to vector<2x1x1x64xf32>
    tpu.vector_store %arg11[%c0_85, %c4_86, %c1_87, %c0_88], %169 {strides = array<i32>} : memref<2x6x6x64xf32, #tpu.memory_space<vmem>>, vector<2x1x1x64xf32>,
    %170 = vector.extract_strided_slice %158 {offsets = [0, 2, 0], sizes = [2, 1, 64], strides = [1, 1, 1]} : vector<2x10x64xf32> to vector<2x1x64xf32>
    %171 = vector.shape_cast %170 : vector<2x1x64xf32> to vector<2x64xf32>
    %172 = vector.extract_strided_slice %158 {offsets = [0, 3, 0], sizes = [2, 1, 64], strides = [1, 1, 1]} : vector<2x10x64xf32> to vector<2x1x64xf32>
    %173 = vector.shape_cast %172 : vector<2x1x64xf32> to vector<2x64xf32>
    %174 = arith.maximumf %171, %173 : vector<2x64xf32>
    %175 = vector.extract_strided_slice %158 {offsets = [0, 4, 0], sizes = [2, 1, 64], strides = [1, 1, 1]} : vector<2x10x64xf32> to vector<2x1x64xf32>
    %176 = vector.shape_cast %175 : vector<2x1x64xf32> to vector<2x64xf32>
    %177 = arith.maximumf %174, %176 : vector<2x64xf32>
    %c0_89 = arith.constant 0 : index
    %c4_90 = arith.constant 4 : index
    %c2_91 = arith.constant 2 : index
    %c0_92 = arith.constant 0 : index
    %178 = vector.load %arg11[%c0_89, %c4_90, %c2_91, %c0_92] : memref<2x6x6x64xf32, #tpu.memory_space<vmem>>, vector<2x1x1x64xf32>
    %179 = vector.shape_cast %178 : vector<2x1x1x64xf32> to vector<2x64xf32>
    %180 = vector.shape_cast %177 : vector<2x64xf32> to vector<2x1x1x64xf32>
    tpu.vector_store %arg11[%c0_89, %c4_90, %c2_91, %c0_92], %180 {strides = array<i32>} : memref<2x6x6x64xf32, #tpu.memory_space<vmem>>, vector<2x1x1x64xf32>,
    %181 = vector.extract_strided_slice %158 {offsets = [0, 4, 0], sizes = [2, 1, 64], strides = [1, 1, 1]} : vector<2x10x64xf32> to vector<2x1x64xf32>
    %182 = vector.shape_cast %181 : vector<2x1x64xf32> to vector<2x64xf32>
    %183 = vector.extract_strided_slice %158 {offsets = [0, 5, 0], sizes = [2, 1, 64], strides = [1, 1, 1]} : vector<2x10x64xf32> to vector<2x1x64xf32>
    %184 = vector.shape_cast %183 : vector<2x1x64xf32> to vector<2x64xf32>
    %185 = arith.maximumf %182, %184 : vector<2x64xf32>
    %186 = vector.extract_strided_slice %158 {offsets = [0, 6, 0], sizes = [2, 1, 64], strides = [1, 1, 1]} : vector<2x10x64xf32> to vector<2x1x64xf32>
    %187 = vector.shape_cast %186 : vector<2x1x64xf32> to vector<2x64xf32>
    %188 = arith.maximumf %185, %187 : vector<2x64xf32>
    %c0_93 = arith.constant 0 : index
    %c4_94 = arith.constant 4 : index
    %c3_95 = arith.constant 3 : index
    %c0_96 = arith.constant 0 : index
    %189 = vector.load %arg11[%c0_93, %c4_94, %c3_95, %c0_96] : memref<2x6x6x64xf32, #tpu.memory_space<vmem>>, vector<2x1x1x64xf32>
    %190 = vector.shape_cast %189 : vector<2x1x1x64xf32> to vector<2x64xf32>
    %191 = vector.shape_cast %188 : vector<2x64xf32> to vector<2x1x1x64xf32>
    tpu.vector_store %arg11[%c0_93, %c4_94, %c3_95, %c0_96], %191 {strides = array<i32>} : memref<2x6x6x64xf32, #tpu.memory_space<vmem>>, vector<2x1x1x64xf32>,
    %192 = vector.extract_strided_slice %158 {offsets = [0, 6, 0], sizes = [2, 1, 64], strides = [1, 1, 1]} : vector<2x10x64xf32> to vector<2x1x64xf32>
    %193 = vector.shape_cast %192 : vector<2x1x64xf32> to vector<2x64xf32>
    %194 = vector.extract_strided_slice %158 {offsets = [0, 7, 0], sizes = [2, 1, 64], strides = [1, 1, 1]} : vector<2x10x64xf32> to vector<2x1x64xf32>
    %195 = vector.shape_cast %194 : vector<2x1x64xf32> to vector<2x64xf32>
    %196 = arith.maximumf %193, %195 : vector<2x64xf32>
    %197 = vector.extract_strided_slice %158 {offsets = [0, 8, 0], sizes = [2, 1, 64], strides = [1, 1, 1]} : vector<2x10x64xf32> to vector<2x1x64xf32>
    %198 = vector.shape_cast %197 : vector<2x1x64xf32> to vector<2x64xf32>
    %199 = arith.maximumf %196, %198 : vector<2x64xf32>
    %c0_97 = arith.constant 0 : index
    %c4_98 = arith.constant 4 : index
    %c4_99 = arith.constant 4 : index
    %c0_100 = arith.constant 0 : index
    %200 = vector.load %arg11[%c0_97, %c4_98, %c4_99, %c0_100] : memref<2x6x6x64xf32, #tpu.memory_space<vmem>>, vector<2x1x1x64xf32>
    %201 = vector.shape_cast %200 : vector<2x1x1x64xf32> to vector<2x64xf32>
    %202 = vector.shape_cast %199 : vector<2x64xf32> to vector<2x1x1x64xf32>
    tpu.vector_store %arg11[%c0_97, %c4_98, %c4_99, %c0_100], %202 {strides = array<i32>} : memref<2x6x6x64xf32, #tpu.memory_space<vmem>>, vector<2x1x1x64xf32>,
    %c0_101 = arith.constant 0 : index
    %c1_102 = arith.constant 1 : index
    %c1_103 = arith.constant 1 : index
    %c0_104 = arith.constant 0 : index
    %203 = vector.load %arg11[%c0_101, %c1_102, %c1_103, %c0_104] : memref<2x6x6x64xf32, #tpu.memory_space<vmem>>, vector<2x4x4x64xf32>
    %204 = vector.shape_cast %203 : vector<2x4x4x64xf32> to vector<32x64xf32>
    %c0_105 = arith.constant 0 : index
    %c0_106 = arith.constant 0 : index
    %c0_107 = arith.constant 0 : index
    %c0_108 = arith.constant 0 : index
    %205 = vector.load %arg11[%c0_105, %c0_106, %c0_107, %c0_108] : memref<2x6x6x64xf32, #tpu.memory_space<vmem>>, vector<2x6x6x64xf32>
    %cst_109 = arith.constant 0.000000e+00 : f32
    %206 = vector.broadcast %cst_109 : f32 to vector<32x64xf32>
    %207 = vector.extract_strided_slice %205 {offsets = [0, 0, 0, 0], sizes = [2, 4, 4, 64], strides = [1, 1, 1, 1]} : vector<2x6x6x64xf32> to vector<2x4x4x64xf32>
    %208 = vector.shape_cast %207 : vector<2x4x4x64xf32> to vector<32x64xf32>
    %209 = arith.truncf %208 : vector<32x64xf32> to vector<32x64xbf16>
    %c0_110 = arith.constant 0 : index
    %c0_111 = arith.constant 0 : index
    %c0_112 = arith.constant 0 : index
    %c0_113 = arith.constant 0 : index
    %210 = vector.load %arg3[%c0_110, %c0_111, %c0_112, %c0_113] : memref<6x9x64x64xbf16, #tpu.memory_space<vmem>>, vector<1x1x64x64xbf16>
    %211 = vector.shape_cast %210 : vector<1x1x64x64xbf16> to vector<64x64xbf16>
    %cst_114 = arith.constant dense<0.000000e+00> : vector<32x64xf32>
    %212 = tpu.matmul %209, %211, %cst_114 {dimension_numbers = #tpu.dot_dimension_numbers<[1], [0], [0], [1], [0, 0, 1, 1], [], []>} : vector<32x64xbf16>, vector<64x64xbf16>, vector<32x64xf32> -> vector<32x64xf32>
    %213 = arith.addf %206, %212 : vector<32x64xf32>
    %214 = vector.extract_strided_slice %205 {offsets = [0, 0, 1, 0], sizes = [2, 4, 4, 64], strides = [1, 1, 1, 1]} : vector<2x6x6x64xf32> to vector<2x4x4x64xf32>
    %215 = vector.shape_cast %214 : vector<2x4x4x64xf32> to vector<32x64xf32>
    %216 = arith.truncf %215 : vector<32x64xf32> to vector<32x64xbf16>
    %c0_115 = arith.constant 0 : index
    %c1_116 = arith.constant 1 : index
    %c0_117 = arith.constant 0 : index
    %c0_118 = arith.constant 0 : index
    %217 = vector.load %arg3[%c0_115, %c1_116, %c0_117, %c0_118] : memref<6x9x64x64xbf16, #tpu.memory_space<vmem>>, vector<1x1x64x64xbf16>
    %218 = vector.shape_cast %217 : vector<1x1x64x64xbf16> to vector<64x64xbf16>
    %cst_119 = arith.constant dense<0.000000e+00> : vector<32x64xf32>
    %219 = tpu.matmul %216, %218, %cst_119 {dimension_numbers = #tpu.dot_dimension_numbers<[1], [0], [0], [1], [0, 0, 1, 1], [], []>} : vector<32x64xbf16>, vector<64x64xbf16>, vector<32x64xf32> -> vector<32x64xf32>
    %220 = arith.addf %213, %219 : vector<32x64xf32>
    %221 = vector.extract_strided_slice %205 {offsets = [0, 0, 2, 0], sizes = [2, 4, 4, 64], strides = [1, 1, 1, 1]} : vector<2x6x6x64xf32> to vector<2x4x4x64xf32>
    %222 = vector.shape_cast %221 : vector<2x4x4x64xf32> to vector<32x64xf32>
    %223 = arith.truncf %222 : vector<32x64xf32> to vector<32x64xbf16>
    %c0_120 = arith.constant 0 : index
    %c2_121 = arith.constant 2 : index
    %c0_122 = arith.constant 0 : index
    %c0_123 = arith.constant 0 : index
    %224 = vector.load %arg3[%c0_120, %c2_121, %c0_122, %c0_123] : memref<6x9x64x64xbf16, #tpu.memory_space<vmem>>, vector<1x1x64x64xbf16>
    %225 = vector.shape_cast %224 : vector<1x1x64x64xbf16> to vector<64x64xbf16>
    %cst_124 = arith.constant dense<0.000000e+00> : vector<32x64xf32>
    %226 = tpu.matmul %223, %225, %cst_124 {dimension_numbers = #tpu.dot_dimension_numbers<[1], [0], [0], [1], [0, 0, 1, 1], [], []>} : vector<32x64xbf16>, vector<64x64xbf16>, vector<32x64xf32> -> vector<32x64xf32>
    %227 = arith.addf %220, %226 : vector<32x64xf32>
    %228 = vector.extract_strided_slice %205 {offsets = [0, 1, 0, 0], sizes = [2, 4, 4, 64], strides = [1, 1, 1, 1]} : vector<2x6x6x64xf32> to vector<2x4x4x64xf32>
    %229 = vector.shape_cast %228 : vector<2x4x4x64xf32> to vector<32x64xf32>
    %230 = arith.truncf %229 : vector<32x64xf32> to vector<32x64xbf16>
    %c0_125 = arith.constant 0 : index
    %c3_126 = arith.constant 3 : index
    %c0_127 = arith.constant 0 : index
    %c0_128 = arith.constant 0 : index
    %231 = vector.load %arg3[%c0_125, %c3_126, %c0_127, %c0_128] : memref<6x9x64x64xbf16, #tpu.memory_space<vmem>>, vector<1x1x64x64xbf16>
    %232 = vector.shape_cast %231 : vector<1x1x64x64xbf16> to vector<64x64xbf16>
    %cst_129 = arith.constant dense<0.000000e+00> : vector<32x64xf32>
    %233 = tpu.matmul %230, %232, %cst_129 {dimension_numbers = #tpu.dot_dimension_numbers<[1], [0], [0], [1], [0, 0, 1, 1], [], []>} : vector<32x64xbf16>, vector<64x64xbf16>, vector<32x64xf32> -> vector<32x64xf32>
    %234 = arith.addf %227, %233 : vector<32x64xf32>
    %235 = vector.extract_strided_slice %205 {offsets = [0, 1, 1, 0], sizes = [2, 4, 4, 64], strides = [1, 1, 1, 1]} : vector<2x6x6x64xf32> to vector<2x4x4x64xf32>
    %236 = vector.shape_cast %235 : vector<2x4x4x64xf32> to vector<32x64xf32>
    %237 = arith.truncf %236 : vector<32x64xf32> to vector<32x64xbf16>
    %c0_130 = arith.constant 0 : index
    %c4_131 = arith.constant 4 : index
    %c0_132 = arith.constant 0 : index
    %c0_133 = arith.constant 0 : index
    %238 = vector.load %arg3[%c0_130, %c4_131, %c0_132, %c0_133] : memref<6x9x64x64xbf16, #tpu.memory_space<vmem>>, vector<1x1x64x64xbf16>
    %239 = vector.shape_cast %238 : vector<1x1x64x64xbf16> to vector<64x64xbf16>
    %cst_134 = arith.constant dense<0.000000e+00> : vector<32x64xf32>
    %240 = tpu.matmul %237, %239, %cst_134 {dimension_numbers = #tpu.dot_dimension_numbers<[1], [0], [0], [1], [0, 0, 1, 1], [], []>} : vector<32x64xbf16>, vector<64x64xbf16>, vector<32x64xf32> -> vector<32x64xf32>
    %241 = arith.addf %234, %240 : vector<32x64xf32>
    %242 = vector.extract_strided_slice %205 {offsets = [0, 1, 2, 0], sizes = [2, 4, 4, 64], strides = [1, 1, 1, 1]} : vector<2x6x6x64xf32> to vector<2x4x4x64xf32>
    %243 = vector.shape_cast %242 : vector<2x4x4x64xf32> to vector<32x64xf32>
    %244 = arith.truncf %243 : vector<32x64xf32> to vector<32x64xbf16>
    %c0_135 = arith.constant 0 : index
    %c5 = arith.constant 5 : index
    %c0_136 = arith.constant 0 : index
    %c0_137 = arith.constant 0 : index
    %245 = vector.load %arg3[%c0_135, %c5, %c0_136, %c0_137] : memref<6x9x64x64xbf16, #tpu.memory_space<vmem>>, vector<1x1x64x64xbf16>
    %246 = vector.shape_cast %245 : vector<1x1x64x64xbf16> to vector<64x64xbf16>
    %cst_138 = arith.constant dense<0.000000e+00> : vector<32x64xf32>
    %247 = tpu.matmul %244, %246, %cst_138 {dimension_numbers = #tpu.dot_dimension_numbers<[1], [0], [0], [1], [0, 0, 1, 1], [], []>} : vector<32x64xbf16>, vector<64x64xbf16>, vector<32x64xf32> -> vector<32x64xf32>
    %248 = arith.addf %241, %247 : vector<32x64xf32>
    %249 = vector.extract_strided_slice %205 {offsets = [0, 2, 0, 0], sizes = [2, 4, 4, 64], strides = [1, 1, 1, 1]} : vector<2x6x6x64xf32> to vector<2x4x4x64xf32>
    %250 = vector.shape_cast %249 : vector<2x4x4x64xf32> to vector<32x64xf32>
    %251 = arith.truncf %250 : vector<32x64xf32> to vector<32x64xbf16>
    %c0_139 = arith.constant 0 : index
    %c6_140 = arith.constant 6 : index
    %c0_141 = arith.constant 0 : index
    %c0_142 = arith.constant 0 : index
    %252 = vector.load %arg3[%c0_139, %c6_140, %c0_141, %c0_142] : memref<6x9x64x64xbf16, #tpu.memory_space<vmem>>, vector<1x1x64x64xbf16>
    %253 = vector.shape_cast %252 : vector<1x1x64x64xbf16> to vector<64x64xbf16>
    %cst_143 = arith.constant dense<0.000000e+00> : vector<32x64xf32>
    %254 = tpu.matmul %251, %253, %cst_143 {dimension_numbers = #tpu.dot_dimension_numbers<[1], [0], [0], [1], [0, 0, 1, 1], [], []>} : vector<32x64xbf16>, vector<64x64xbf16>, vector<32x64xf32> -> vector<32x64xf32>
    %255 = arith.addf %248, %254 : vector<32x64xf32>
    %256 = vector.extract_strided_slice %205 {offsets = [0, 2, 1, 0], sizes = [2, 4, 4, 64], strides = [1, 1, 1, 1]} : vector<2x6x6x64xf32> to vector<2x4x4x64xf32>
    %257 = vector.shape_cast %256 : vector<2x4x4x64xf32> to vector<32x64xf32>
    %258 = arith.truncf %257 : vector<32x64xf32> to vector<32x64xbf16>
    %c0_144 = arith.constant 0 : index
    %c7 = arith.constant 7 : index
    %c0_145 = arith.constant 0 : index
    %c0_146 = arith.constant 0 : index
    %259 = vector.load %arg3[%c0_144, %c7, %c0_145, %c0_146] : memref<6x9x64x64xbf16, #tpu.memory_space<vmem>>, vector<1x1x64x64xbf16>
    %260 = vector.shape_cast %259 : vector<1x1x64x64xbf16> to vector<64x64xbf16>
    %cst_147 = arith.constant dense<0.000000e+00> : vector<32x64xf32>
    %261 = tpu.matmul %258, %260, %cst_147 {dimension_numbers = #tpu.dot_dimension_numbers<[1], [0], [0], [1], [0, 0, 1, 1], [], []>} : vector<32x64xbf16>, vector<64x64xbf16>, vector<32x64xf32> -> vector<32x64xf32>
    %262 = arith.addf %255, %261 : vector<32x64xf32>
    %263 = vector.extract_strided_slice %205 {offsets = [0, 2, 2, 0], sizes = [2, 4, 4, 64], strides = [1, 1, 1, 1]} : vector<2x6x6x64xf32> to vector<2x4x4x64xf32>
    %264 = vector.shape_cast %263 : vector<2x4x4x64xf32> to vector<32x64xf32>
    %265 = arith.truncf %264 : vector<32x64xf32> to vector<32x64xbf16>
    %c0_148 = arith.constant 0 : index
    %c8 = arith.constant 8 : index
    %c0_149 = arith.constant 0 : index
    %c0_150 = arith.constant 0 : index
    %266 = vector.load %arg3[%c0_148, %c8, %c0_149, %c0_150] : memref<6x9x64x64xbf16, #tpu.memory_space<vmem>>, vector<1x1x64x64xbf16>
    %267 = vector.shape_cast %266 : vector<1x1x64x64xbf16> to vector<64x64xbf16>
    %cst_151 = arith.constant dense<0.000000e+00> : vector<32x64xf32>
    %268 = tpu.matmul %265, %267, %cst_151 {dimension_numbers = #tpu.dot_dimension_numbers<[1], [0], [0], [1], [0, 0, 1, 1], [], []>} : vector<32x64xbf16>, vector<64x64xbf16>, vector<32x64xf32> -> vector<32x64xf32>
    %269 = arith.addf %262, %268 : vector<32x64xf32>
    %c0_152 = arith.constant 0 : index
    %c0_153 = arith.constant 0 : index
    %c0_154 = arith.constant 0 : index
    %270 = vector.load %arg4[%c0_152, %c0_153, %c0_154] : memref<6x2x64xf32, #tpu.memory_space<vmem>>, vector<1x2x64xf32>
    %271 = vector.shape_cast %270 : vector<1x2x64xf32> to vector<2x64xf32>
    %272 = vector.extract_strided_slice %271 {offsets = [0, 0], sizes = [1, 64], strides = [1, 1]} : vector<2x64xf32> to vector<1x64xf32>
    %273 = vector.broadcast %272 : vector<1x64xf32> to vector<32x64xf32>
    %274 = arith.mulf %269, %273 : vector<32x64xf32>
    %275 = vector.extract_strided_slice %271 {offsets = [1, 0], sizes = [1, 64], strides = [1, 1]} : vector<2x64xf32> to vector<1x64xf32>
    %276 = vector.broadcast %275 : vector<1x64xf32> to vector<32x64xf32>
    %277 = arith.addf %274, %276 : vector<32x64xf32>
    %cst_155 = arith.constant 0.000000e+00 : f32
    %278 = vector.broadcast %cst_155 : f32 to vector<32x64xf32>
    %279 = arith.maximumf %277, %278 : vector<32x64xf32>
    %280 = vector.shape_cast %279 : vector<32x64xf32> to vector<2x4x4x64xf32>
    %c0_156 = arith.constant 0 : index
    %c1_157 = arith.constant 1 : index
    %c1_158 = arith.constant 1 : index
    %c0_159 = arith.constant 0 : index
    %281 = vector.load %arg11[%c0_156, %c1_157, %c1_158, %c0_159] : memref<2x6x6x64xf32, #tpu.memory_space<vmem>>, vector<2x4x4x64xf32>
    tpu.vector_store %arg11[%c0_156, %c1_157, %c1_158, %c0_159], %280 {strides = array<i32>} : memref<2x6x6x64xf32, #tpu.memory_space<vmem>>, vector<2x4x4x64xf32>,
    %c0_160 = arith.constant 0 : index
    %c0_161 = arith.constant 0 : index
    %c0_162 = arith.constant 0 : index
    %c0_163 = arith.constant 0 : index
    %282 = vector.load %arg11[%c0_160, %c0_161, %c0_162, %c0_163] : memref<2x6x6x64xf32, #tpu.memory_space<vmem>>, vector<2x6x6x64xf32>
    %cst_164 = arith.constant 0.000000e+00 : f32
    %283 = vector.broadcast %cst_164 : f32 to vector<32x64xf32>
    %284 = vector.extract_strided_slice %282 {offsets = [0, 0, 0, 0], sizes = [2, 4, 4, 64], strides = [1, 1, 1, 1]} : vector<2x6x6x64xf32> to vector<2x4x4x64xf32>
    %285 = vector.shape_cast %284 : vector<2x4x4x64xf32> to vector<32x64xf32>
    %286 = arith.truncf %285 : vector<32x64xf32> to vector<32x64xbf16>
    %c1_165 = arith.constant 1 : index
    %c0_166 = arith.constant 0 : index
    %c0_167 = arith.constant 0 : index
    %c0_168 = arith.constant 0 : index
    %287 = vector.load %arg3[%c1_165, %c0_166, %c0_167, %c0_168] : memref<6x9x64x64xbf16, #tpu.memory_space<vmem>>, vector<1x1x64x64xbf16>
    %288 = vector.shape_cast %287 : vector<1x1x64x64xbf16> to vector<64x64xbf16>
    %cst_169 = arith.constant dense<0.000000e+00> : vector<32x64xf32>
    %289 = tpu.matmul %286, %288, %cst_169 {dimension_numbers = #tpu.dot_dimension_numbers<[1], [0], [0], [1], [0, 0, 1, 1], [], []>} : vector<32x64xbf16>, vector<64x64xbf16>, vector<32x64xf32> -> vector<32x64xf32>
    %290 = arith.addf %283, %289 : vector<32x64xf32>
    %291 = vector.extract_strided_slice %282 {offsets = [0, 0, 1, 0], sizes = [2, 4, 4, 64], strides = [1, 1, 1, 1]} : vector<2x6x6x64xf32> to vector<2x4x4x64xf32>
    %292 = vector.shape_cast %291 : vector<2x4x4x64xf32> to vector<32x64xf32>
    %293 = arith.truncf %292 : vector<32x64xf32> to vector<32x64xbf16>
    %c1_170 = arith.constant 1 : index
    %c1_171 = arith.constant 1 : index
    %c0_172 = arith.constant 0 : index
    %c0_173 = arith.constant 0 : index
    %294 = vector.load %arg3[%c1_170, %c1_171, %c0_172, %c0_173] : memref<6x9x64x64xbf16, #tpu.memory_space<vmem>>, vector<1x1x64x64xbf16>
    %295 = vector.shape_cast %294 : vector<1x1x64x64xbf16> to vector<64x64xbf16>
    %cst_174 = arith.constant dense<0.000000e+00> : vector<32x64xf32>
    %296 = tpu.matmul %293, %295, %cst_174 {dimension_numbers = #tpu.dot_dimension_numbers<[1], [0], [0], [1], [0, 0, 1, 1], [], []>} : vector<32x64xbf16>, vector<64x64xbf16>, vector<32x64xf32> -> vector<32x64xf32>
    %297 = arith.addf %290, %296 : vector<32x64xf32>
    %298 = vector.extract_strided_slice %282 {offsets = [0, 0, 2, 0], sizes = [2, 4, 4, 64], strides = [1, 1, 1, 1]} : vector<2x6x6x64xf32> to vector<2x4x4x64xf32>
    %299 = vector.shape_cast %298 : vector<2x4x4x64xf32> to vector<32x64xf32>
    %300 = arith.truncf %299 : vector<32x64xf32> to vector<32x64xbf16>
    %c1_175 = arith.constant 1 : index
    %c2_176 = arith.constant 2 : index
    %c0_177 = arith.constant 0 : index
    %c0_178 = arith.constant 0 : index
    %301 = vector.load %arg3[%c1_175, %c2_176, %c0_177, %c0_178] : memref<6x9x64x64xbf16, #tpu.memory_space<vmem>>, vector<1x1x64x64xbf16>
    %302 = vector.shape_cast %301 : vector<1x1x64x64xbf16> to vector<64x64xbf16>
    %cst_179 = arith.constant dense<0.000000e+00> : vector<32x64xf32>
    %303 = tpu.matmul %300, %302, %cst_179 {dimension_numbers = #tpu.dot_dimension_numbers<[1], [0], [0], [1], [0, 0, 1, 1], [], []>} : vector<32x64xbf16>, vector<64x64xbf16>, vector<32x64xf32> -> vector<32x64xf32>
    %304 = arith.addf %297, %303 : vector<32x64xf32>
    %305 = vector.extract_strided_slice %282 {offsets = [0, 1, 0, 0], sizes = [2, 4, 4, 64], strides = [1, 1, 1, 1]} : vector<2x6x6x64xf32> to vector<2x4x4x64xf32>
    %306 = vector.shape_cast %305 : vector<2x4x4x64xf32> to vector<32x64xf32>
    %307 = arith.truncf %306 : vector<32x64xf32> to vector<32x64xbf16>
    %c1_180 = arith.constant 1 : index
    %c3_181 = arith.constant 3 : index
    %c0_182 = arith.constant 0 : index
    %c0_183 = arith.constant 0 : index
    %308 = vector.load %arg3[%c1_180, %c3_181, %c0_182, %c0_183] : memref<6x9x64x64xbf16, #tpu.memory_space<vmem>>, vector<1x1x64x64xbf16>
    %309 = vector.shape_cast %308 : vector<1x1x64x64xbf16> to vector<64x64xbf16>
    %cst_184 = arith.constant dense<0.000000e+00> : vector<32x64xf32>
    %310 = tpu.matmul %307, %309, %cst_184 {dimension_numbers = #tpu.dot_dimension_numbers<[1], [0], [0], [1], [0, 0, 1, 1], [], []>} : vector<32x64xbf16>, vector<64x64xbf16>, vector<32x64xf32> -> vector<32x64xf32>
    %311 = arith.addf %304, %310 : vector<32x64xf32>
    %312 = vector.extract_strided_slice %282 {offsets = [0, 1, 1, 0], sizes = [2, 4, 4, 64], strides = [1, 1, 1, 1]} : vector<2x6x6x64xf32> to vector<2x4x4x64xf32>
    %313 = vector.shape_cast %312 : vector<2x4x4x64xf32> to vector<32x64xf32>
    %314 = arith.truncf %313 : vector<32x64xf32> to vector<32x64xbf16>
    %c1_185 = arith.constant 1 : index
    %c4_186 = arith.constant 4 : index
    %c0_187 = arith.constant 0 : index
    %c0_188 = arith.constant 0 : index
    %315 = vector.load %arg3[%c1_185, %c4_186, %c0_187, %c0_188] : memref<6x9x64x64xbf16, #tpu.memory_space<vmem>>, vector<1x1x64x64xbf16>
    %316 = vector.shape_cast %315 : vector<1x1x64x64xbf16> to vector<64x64xbf16>
    %cst_189 = arith.constant dense<0.000000e+00> : vector<32x64xf32>
    %317 = tpu.matmul %314, %316, %cst_189 {dimension_numbers = #tpu.dot_dimension_numbers<[1], [0], [0], [1], [0, 0, 1, 1], [], []>} : vector<32x64xbf16>, vector<64x64xbf16>, vector<32x64xf32> -> vector<32x64xf32>
    %318 = arith.addf %311, %317 : vector<32x64xf32>
    %319 = vector.extract_strided_slice %282 {offsets = [0, 1, 2, 0], sizes = [2, 4, 4, 64], strides = [1, 1, 1, 1]} : vector<2x6x6x64xf32> to vector<2x4x4x64xf32>
    %320 = vector.shape_cast %319 : vector<2x4x4x64xf32> to vector<32x64xf32>
    %321 = arith.truncf %320 : vector<32x64xf32> to vector<32x64xbf16>
    %c1_190 = arith.constant 1 : index
    %c5_191 = arith.constant 5 : index
    %c0_192 = arith.constant 0 : index
    %c0_193 = arith.constant 0 : index
    %322 = vector.load %arg3[%c1_190, %c5_191, %c0_192, %c0_193] : memref<6x9x64x64xbf16, #tpu.memory_space<vmem>>, vector<1x1x64x64xbf16>
    %323 = vector.shape_cast %322 : vector<1x1x64x64xbf16> to vector<64x64xbf16>
    %cst_194 = arith.constant dense<0.000000e+00> : vector<32x64xf32>
    %324 = tpu.matmul %321, %323, %cst_194 {dimension_numbers = #tpu.dot_dimension_numbers<[1], [0], [0], [1], [0, 0, 1, 1], [], []>} : vector<32x64xbf16>, vector<64x64xbf16>, vector<32x64xf32> -> vector<32x64xf32>
    %325 = arith.addf %318, %324 : vector<32x64xf32>
    %326 = vector.extract_strided_slice %282 {offsets = [0, 2, 0, 0], sizes = [2, 4, 4, 64], strides = [1, 1, 1, 1]} : vector<2x6x6x64xf32> to vector<2x4x4x64xf32>
    %327 = vector.shape_cast %326 : vector<2x4x4x64xf32> to vector<32x64xf32>
    %328 = arith.truncf %327 : vector<32x64xf32> to vector<32x64xbf16>
    %c1_195 = arith.constant 1 : index
    %c6_196 = arith.constant 6 : index
    %c0_197 = arith.constant 0 : index
    %c0_198 = arith.constant 0 : index
    %329 = vector.load %arg3[%c1_195, %c6_196, %c0_197, %c0_198] : memref<6x9x64x64xbf16, #tpu.memory_space<vmem>>, vector<1x1x64x64xbf16>
    %330 = vector.shape_cast %329 : vector<1x1x64x64xbf16> to vector<64x64xbf16>
    %cst_199 = arith.constant dense<0.000000e+00> : vector<32x64xf32>
    %331 = tpu.matmul %328, %330, %cst_199 {dimension_numbers = #tpu.dot_dimension_numbers<[1], [0], [0], [1], [0, 0, 1, 1], [], []>} : vector<32x64xbf16>, vector<64x64xbf16>, vector<32x64xf32> -> vector<32x64xf32>
    %332 = arith.addf %325, %331 : vector<32x64xf32>
    %333 = vector.extract_strided_slice %282 {offsets = [0, 2, 1, 0], sizes = [2, 4, 4, 64], strides = [1, 1, 1, 1]} : vector<2x6x6x64xf32> to vector<2x4x4x64xf32>
    %334 = vector.shape_cast %333 : vector<2x4x4x64xf32> to vector<32x64xf32>
    %335 = arith.truncf %334 : vector<32x64xf32> to vector<32x64xbf16>
    %c1_200 = arith.constant 1 : index
    %c7_201 = arith.constant 7 : index
    %c0_202 = arith.constant 0 : index
    %c0_203 = arith.constant 0 : index
    %336 = vector.load %arg3[%c1_200, %c7_201, %c0_202, %c0_203] : memref<6x9x64x64xbf16, #tpu.memory_space<vmem>>, vector<1x1x64x64xbf16>
    %337 = vector.shape_cast %336 : vector<1x1x64x64xbf16> to vector<64x64xbf16>
    %cst_204 = arith.constant dense<0.000000e+00> : vector<32x64xf32>
    %338 = tpu.matmul %335, %337, %cst_204 {dimension_numbers = #tpu.dot_dimension_numbers<[1], [0], [0], [1], [0, 0, 1, 1], [], []>} : vector<32x64xbf16>, vector<64x64xbf16>, vector<32x64xf32> -> vector<32x64xf32>
    %339 = arith.addf %332, %338 : vector<32x64xf32>
    %340 = vector.extract_strided_slice %282 {offsets = [0, 2, 2, 0], sizes = [2, 4, 4, 64], strides = [1, 1, 1, 1]} : vector<2x6x6x64xf32> to vector<2x4x4x64xf32>
    %341 = vector.shape_cast %340 : vector<2x4x4x64xf32> to vector<32x64xf32>
    %342 = arith.truncf %341 : vector<32x64xf32> to vector<32x64xbf16>
    %c1_205 = arith.constant 1 : index
    %c8_206 = arith.constant 8 : index
    %c0_207 = arith.constant 0 : index
    %c0_208 = arith.constant 0 : index
    %343 = vector.load %arg3[%c1_205, %c8_206, %c0_207, %c0_208] : memref<6x9x64x64xbf16, #tpu.memory_space<vmem>>, vector<1x1x64x64xbf16>
    %344 = vector.shape_cast %343 : vector<1x1x64x64xbf16> to vector<64x64xbf16>
    %cst_209 = arith.constant dense<0.000000e+00> : vector<32x64xf32>
    %345 = tpu.matmul %342, %344, %cst_209 {dimension_numbers = #tpu.dot_dimension_numbers<[1], [0], [0], [1], [0, 0, 1, 1], [], []>} : vector<32x64xbf16>, vector<64x64xbf16>, vector<32x64xf32> -> vector<32x64xf32>
    %346 = arith.addf %339, %345 : vector<32x64xf32>
    %c1_210 = arith.constant 1 : index
    %c0_211 = arith.constant 0 : index
    %c0_212 = arith.constant 0 : index
    %347 = vector.load %arg4[%c1_210, %c0_211, %c0_212] : memref<6x2x64xf32, #tpu.memory_space<vmem>>, vector<1x2x64xf32>
    %348 = vector.shape_cast %347 : vector<1x2x64xf32> to vector<2x64xf32>
    %349 = vector.extract_strided_slice %348 {offsets = [0, 0], sizes = [1, 64], strides = [1, 1]} : vector<2x64xf32> to vector<1x64xf32>
    %350 = vector.broadcast %349 : vector<1x64xf32> to vector<32x64xf32>
    %351 = arith.mulf %346, %350 : vector<32x64xf32>
    %352 = vector.extract_strided_slice %348 {offsets = [1, 0], sizes = [1, 64], strides = [1, 1]} : vector<2x64xf32> to vector<1x64xf32>
    %353 = vector.broadcast %352 : vector<1x64xf32> to vector<32x64xf32>
    %354 = arith.addf %351, %353 : vector<32x64xf32>
    %355 = arith.addf %354, %204 : vector<32x64xf32>
    %cst_213 = arith.constant 0.000000e+00 : f32
    %356 = vector.broadcast %cst_213 : f32 to vector<32x64xf32>
    %357 = arith.maximumf %355, %356 : vector<32x64xf32>
    %358 = vector.shape_cast %357 : vector<32x64xf32> to vector<2x4x4x64xf32>
    %c0_214 = arith.constant 0 : index
    %c1_215 = arith.constant 1 : index
    %c1_216 = arith.constant 1 : index
    %c0_217 = arith.constant 0 : index
    %359 = vector.load %arg11[%c0_214, %c1_215, %c1_216, %c0_217] : memref<2x6x6x64xf32, #tpu.memory_space<vmem>>, vector<2x4x4x64xf32>
    tpu.vector_store %arg11[%c0_214, %c1_215, %c1_216, %c0_217], %358 {strides = array<i32>} : memref<2x6x6x64xf32, #tpu.memory_space<vmem>>, vector<2x4x4x64xf32>,
    %c0_218 = arith.constant 0 : index
    %c1_219 = arith.constant 1 : index
    %c1_220 = arith.constant 1 : index
    %c0_221 = arith.constant 0 : index
    %360 = vector.load %arg11[%c0_218, %c1_219, %c1_220, %c0_221] : memref<2x6x6x64xf32, #tpu.memory_space<vmem>>, vector<2x4x4x64xf32>
    %361 = vector.shape_cast %360 : vector<2x4x4x64xf32> to vector<32x64xf32>
    %c0_222 = arith.constant 0 : index
    %c0_223 = arith.constant 0 : index
    %c0_224 = arith.constant 0 : index
    %c0_225 = arith.constant 0 : index
    %362 = vector.load %arg11[%c0_222, %c0_223, %c0_224, %c0_225] : memref<2x6x6x64xf32, #tpu.memory_space<vmem>>, vector<2x6x6x64xf32>
    %cst_226 = arith.constant 0.000000e+00 : f32
    %363 = vector.broadcast %cst_226 : f32 to vector<32x64xf32>
    %364 = vector.extract_strided_slice %362 {offsets = [0, 0, 0, 0], sizes = [2, 4, 4, 64], strides = [1, 1, 1, 1]} : vector<2x6x6x64xf32> to vector<2x4x4x64xf32>
    %365 = vector.shape_cast %364 : vector<2x4x4x64xf32> to vector<32x64xf32>
    %366 = arith.truncf %365 : vector<32x64xf32> to vector<32x64xbf16>
    %c2_227 = arith.constant 2 : index
    %c0_228 = arith.constant 0 : index
    %c0_229 = arith.constant 0 : index
    %c0_230 = arith.constant 0 : index
    %367 = vector.load %arg3[%c2_227, %c0_228, %c0_229, %c0_230] : memref<6x9x64x64xbf16, #tpu.memory_space<vmem>>, vector<1x1x64x64xbf16>
    %368 = vector.shape_cast %367 : vector<1x1x64x64xbf16> to vector<64x64xbf16>
    %cst_231 = arith.constant dense<0.000000e+00> : vector<32x64xf32>
    %369 = tpu.matmul %366, %368, %cst_231 {dimension_numbers = #tpu.dot_dimension_numbers<[1], [0], [0], [1], [0, 0, 1, 1], [], []>} : vector<32x64xbf16>, vector<64x64xbf16>, vector<32x64xf32> -> vector<32x64xf32>
    %370 = arith.addf %363, %369 : vector<32x64xf32>
    %371 = vector.extract_strided_slice %362 {offsets = [0, 0, 1, 0], sizes = [2, 4, 4, 64], strides = [1, 1, 1, 1]} : vector<2x6x6x64xf32> to vector<2x4x4x64xf32>
    %372 = vector.shape_cast %371 : vector<2x4x4x64xf32> to vector<32x64xf32>
    %373 = arith.truncf %372 : vector<32x64xf32> to vector<32x64xbf16>
    %c2_232 = arith.constant 2 : index
    %c1_233 = arith.constant 1 : index
    %c0_234 = arith.constant 0 : index
    %c0_235 = arith.constant 0 : index
    %374 = vector.load %arg3[%c2_232, %c1_233, %c0_234, %c0_235] : memref<6x9x64x64xbf16, #tpu.memory_space<vmem>>, vector<1x1x64x64xbf16>
    %375 = vector.shape_cast %374 : vector<1x1x64x64xbf16> to vector<64x64xbf16>
    %cst_236 = arith.constant dense<0.000000e+00> : vector<32x64xf32>
    %376 = tpu.matmul %373, %375, %cst_236 {dimension_numbers = #tpu.dot_dimension_numbers<[1], [0], [0], [1], [0, 0, 1, 1], [], []>} : vector<32x64xbf16>, vector<64x64xbf16>, vector<32x64xf32> -> vector<32x64xf32>
    %377 = arith.addf %370, %376 : vector<32x64xf32>
    %378 = vector.extract_strided_slice %362 {offsets = [0, 0, 2, 0], sizes = [2, 4, 4, 64], strides = [1, 1, 1, 1]} : vector<2x6x6x64xf32> to vector<2x4x4x64xf32>
    %379 = vector.shape_cast %378 : vector<2x4x4x64xf32> to vector<32x64xf32>
    %380 = arith.truncf %379 : vector<32x64xf32> to vector<32x64xbf16>
    %c2_237 = arith.constant 2 : index
    %c2_238 = arith.constant 2 : index
    %c0_239 = arith.constant 0 : index
    %c0_240 = arith.constant 0 : index
    %381 = vector.load %arg3[%c2_237, %c2_238, %c0_239, %c0_240] : memref<6x9x64x64xbf16, #tpu.memory_space<vmem>>, vector<1x1x64x64xbf16>
    %382 = vector.shape_cast %381 : vector<1x1x64x64xbf16> to vector<64x64xbf16>
    %cst_241 = arith.constant dense<0.000000e+00> : vector<32x64xf32>
    %383 = tpu.matmul %380, %382, %cst_241 {dimension_numbers = #tpu.dot_dimension_numbers<[1], [0], [0], [1], [0, 0, 1, 1], [], []>} : vector<32x64xbf16>, vector<64x64xbf16>, vector<32x64xf32> -> vector<32x64xf32>
    %384 = arith.addf %377, %383 : vector<32x64xf32>
    %385 = vector.extract_strided_slice %362 {offsets = [0, 1, 0, 0], sizes = [2, 4, 4, 64], strides = [1, 1, 1, 1]} : vector<2x6x6x64xf32> to vector<2x4x4x64xf32>
    %386 = vector.shape_cast %385 : vector<2x4x4x64xf32> to vector<32x64xf32>
    %387 = arith.truncf %386 : vector<32x64xf32> to vector<32x64xbf16>
    %c2_242 = arith.constant 2 : index
    %c3_243 = arith.constant 3 : index
    %c0_244 = arith.constant 0 : index
    %c0_245 = arith.constant 0 : index
    %388 = vector.load %arg3[%c2_242, %c3_243, %c0_244, %c0_245] : memref<6x9x64x64xbf16, #tpu.memory_space<vmem>>, vector<1x1x64x64xbf16>
    %389 = vector.shape_cast %388 : vector<1x1x64x64xbf16> to vector<64x64xbf16>
    %cst_246 = arith.constant dense<0.000000e+00> : vector<32x64xf32>
    %390 = tpu.matmul %387, %389, %cst_246 {dimension_numbers = #tpu.dot_dimension_numbers<[1], [0], [0], [1], [0, 0, 1, 1], [], []>} : vector<32x64xbf16>, vector<64x64xbf16>, vector<32x64xf32> -> vector<32x64xf32>
    %391 = arith.addf %384, %390 : vector<32x64xf32>
    %392 = vector.extract_strided_slice %362 {offsets = [0, 1, 1, 0], sizes = [2, 4, 4, 64], strides = [1, 1, 1, 1]} : vector<2x6x6x64xf32> to vector<2x4x4x64xf32>
    %393 = vector.shape_cast %392 : vector<2x4x4x64xf32> to vector<32x64xf32>
    %394 = arith.truncf %393 : vector<32x64xf32> to vector<32x64xbf16>
    %c2_247 = arith.constant 2 : index
    %c4_248 = arith.constant 4 : index
    %c0_249 = arith.constant 0 : index
    %c0_250 = arith.constant 0 : index
    %395 = vector.load %arg3[%c2_247, %c4_248, %c0_249, %c0_250] : memref<6x9x64x64xbf16, #tpu.memory_space<vmem>>, vector<1x1x64x64xbf16>
    %396 = vector.shape_cast %395 : vector<1x1x64x64xbf16> to vector<64x64xbf16>
    %cst_251 = arith.constant dense<0.000000e+00> : vector<32x64xf32>
    %397 = tpu.matmul %394, %396, %cst_251 {dimension_numbers = #tpu.dot_dimension_numbers<[1], [0], [0], [1], [0, 0, 1, 1], [], []>} : vector<32x64xbf16>, vector<64x64xbf16>, vector<32x64xf32> -> vector<32x64xf32>
    %398 = arith.addf %391, %397 : vector<32x64xf32>
    %399 = vector.extract_strided_slice %362 {offsets = [0, 1, 2, 0], sizes = [2, 4, 4, 64], strides = [1, 1, 1, 1]} : vector<2x6x6x64xf32> to vector<2x4x4x64xf32>
    %400 = vector.shape_cast %399 : vector<2x4x4x64xf32> to vector<32x64xf32>
    %401 = arith.truncf %400 : vector<32x64xf32> to vector<32x64xbf16>
    %c2_252 = arith.constant 2 : index
    %c5_253 = arith.constant 5 : index
    %c0_254 = arith.constant 0 : index
    %c0_255 = arith.constant 0 : index
    %402 = vector.load %arg3[%c2_252, %c5_253, %c0_254, %c0_255] : memref<6x9x64x64xbf16, #tpu.memory_space<vmem>>, vector<1x1x64x64xbf16>
    %403 = vector.shape_cast %402 : vector<1x1x64x64xbf16> to vector<64x64xbf16>
    %cst_256 = arith.constant dense<0.000000e+00> : vector<32x64xf32>
    %404 = tpu.matmul %401, %403, %cst_256 {dimension_numbers = #tpu.dot_dimension_numbers<[1], [0], [0], [1], [0, 0, 1, 1], [], []>} : vector<32x64xbf16>, vector<64x64xbf16>, vector<32x64xf32> -> vector<32x64xf32>
    %405 = arith.addf %398, %404 : vector<32x64xf32>
    %406 = vector.extract_strided_slice %362 {offsets = [0, 2, 0, 0], sizes = [2, 4, 4, 64], strides = [1, 1, 1, 1]} : vector<2x6x6x64xf32> to vector<2x4x4x64xf32>
    %407 = vector.shape_cast %406 : vector<2x4x4x64xf32> to vector<32x64xf32>
    %408 = arith.truncf %407 : vector<32x64xf32> to vector<32x64xbf16>
    %c2_257 = arith.constant 2 : index
    %c6_258 = arith.constant 6 : index
    %c0_259 = arith.constant 0 : index
    %c0_260 = arith.constant 0 : index
    %409 = vector.load %arg3[%c2_257, %c6_258, %c0_259, %c0_260] : memref<6x9x64x64xbf16, #tpu.memory_space<vmem>>, vector<1x1x64x64xbf16>
    %410 = vector.shape_cast %409 : vector<1x1x64x64xbf16> to vector<64x64xbf16>
    %cst_261 = arith.constant dense<0.000000e+00> : vector<32x64xf32>
    %411 = tpu.matmul %408, %410, %cst_261 {dimension_numbers = #tpu.dot_dimension_numbers<[1], [0], [0], [1], [0, 0, 1, 1], [], []>} : vector<32x64xbf16>, vector<64x64xbf16>, vector<32x64xf32> -> vector<32x64xf32>
    %412 = arith.addf %405, %411 : vector<32x64xf32>
    %413 = vector.extract_strided_slice %362 {offsets = [0, 2, 1, 0], sizes = [2, 4, 4, 64], strides = [1, 1, 1, 1]} : vector<2x6x6x64xf32> to vector<2x4x4x64xf32>
    %414 = vector.shape_cast %413 : vector<2x4x4x64xf32> to vector<32x64xf32>
    %415 = arith.truncf %414 : vector<32x64xf32> to vector<32x64xbf16>
    %c2_262 = arith.constant 2 : index
    %c7_263 = arith.constant 7 : index
    %c0_264 = arith.constant 0 : index
    %c0_265 = arith.constant 0 : index
    %416 = vector.load %arg3[%c2_262, %c7_263, %c0_264, %c0_265] : memref<6x9x64x64xbf16, #tpu.memory_space<vmem>>, vector<1x1x64x64xbf16>
    %417 = vector.shape_cast %416 : vector<1x1x64x64xbf16> to vector<64x64xbf16>
    %cst_266 = arith.constant dense<0.000000e+00> : vector<32x64xf32>
    %418 = tpu.matmul %415, %417, %cst_266 {dimension_numbers = #tpu.dot_dimension_numbers<[1], [0], [0], [1], [0, 0, 1, 1], [], []>} : vector<32x64xbf16>, vector<64x64xbf16>, vector<32x64xf32> -> vector<32x64xf32>
    %419 = arith.addf %412, %418 : vector<32x64xf32>
    %420 = vector.extract_strided_slice %362 {offsets = [0, 2, 2, 0], sizes = [2, 4, 4, 64], strides = [1, 1, 1, 1]} : vector<2x6x6x64xf32> to vector<2x4x4x64xf32>
    %421 = vector.shape_cast %420 : vector<2x4x4x64xf32> to vector<32x64xf32>
    %422 = arith.truncf %421 : vector<32x64xf32> to vector<32x64xbf16>
    %c2_267 = arith.constant 2 : index
    %c8_268 = arith.constant 8 : index
    %c0_269 = arith.constant 0 : index
    %c0_270 = arith.constant 0 : index
    %423 = vector.load %arg3[%c2_267, %c8_268, %c0_269, %c0_270] : memref<6x9x64x64xbf16, #tpu.memory_space<vmem>>, vector<1x1x64x64xbf16>
    %424 = vector.shape_cast %423 : vector<1x1x64x64xbf16> to vector<64x64xbf16>
    %cst_271 = arith.constant dense<0.000000e+00> : vector<32x64xf32>
    %425 = tpu.matmul %422, %424, %cst_271 {dimension_numbers = #tpu.dot_dimension_numbers<[1], [0], [0], [1], [0, 0, 1, 1], [], []>} : vector<32x64xbf16>, vector<64x64xbf16>, vector<32x64xf32> -> vector<32x64xf32>
    %426 = arith.addf %419, %425 : vector<32x64xf32>
    %c2_272 = arith.constant 2 : index
    %c0_273 = arith.constant 0 : index
    %c0_274 = arith.constant 0 : index
    %427 = vector.load %arg4[%c2_272, %c0_273, %c0_274] : memref<6x2x64xf32, #tpu.memory_space<vmem>>, vector<1x2x64xf32>
    %428 = vector.shape_cast %427 : vector<1x2x64xf32> to vector<2x64xf32>
    %429 = vector.extract_strided_slice %428 {offsets = [0, 0], sizes = [1, 64], strides = [1, 1]} : vector<2x64xf32> to vector<1x64xf32>
    %430 = vector.broadcast %429 : vector<1x64xf32> to vector<32x64xf32>
    %431 = arith.mulf %426, %430 : vector<32x64xf32>
    %432 = vector.extract_strided_slice %428 {offsets = [1, 0], sizes = [1, 64], strides = [1, 1]} : vector<2x64xf32> to vector<1x64xf32>
    %433 = vector.broadcast %432 : vector<1x64xf32> to vector<32x64xf32>
    %434 = arith.addf %431, %433 : vector<32x64xf32>
    %cst_275 = arith.constant 0.000000e+00 : f32
    %435 = vector.broadcast %cst_275 : f32 to vector<32x64xf32>
    %436 = arith.maximumf %434, %435 : vector<32x64xf32>
    %437 = vector.shape_cast %436 : vector<32x64xf32> to vector<2x4x4x64xf32>
    %c0_276 = arith.constant 0 : index
    %c1_277 = arith.constant 1 : index
    %c1_278 = arith.constant 1 : index
    %c0_279 = arith.constant 0 : index
    %438 = vector.load %arg11[%c0_276, %c1_277, %c1_278, %c0_279] : memref<2x6x6x64xf32, #tpu.memory_space<vmem>>, vector<2x4x4x64xf32>
    tpu.vector_store %arg11[%c0_276, %c1_277, %c1_278, %c0_279], %437 {strides = array<i32>} : memref<2x6x6x64xf32, #tpu.memory_space<vmem>>, vector<2x4x4x64xf32>,
    %c0_280 = arith.constant 0 : index
    %c0_281 = arith.constant 0 : index
    %c0_282 = arith.constant 0 : index
    %c0_283 = arith.constant 0 : index
    %439 = vector.load %arg11[%c0_280, %c0_281, %c0_282, %c0_283] : memref<2x6x6x64xf32, #tpu.memory_space<vmem>>, vector<2x6x6x64xf32>
    %cst_284 = arith.constant 0.000000e+00 : f32
    %440 = vector.broadcast %cst_284 : f32 to vector<32x64xf32>
    %441 = vector.extract_strided_slice %439 {offsets = [0, 0, 0, 0], sizes = [2, 4, 4, 64], strides = [1, 1, 1, 1]} : vector<2x6x6x64xf32> to vector<2x4x4x64xf32>
    %442 = vector.shape_cast %441 : vector<2x4x4x64xf32> to vector<32x64xf32>
    %443 = arith.truncf %442 : vector<32x64xf32> to vector<32x64xbf16>
    %c3_285 = arith.constant 3 : index
    %c0_286 = arith.constant 0 : index
    %c0_287 = arith.constant 0 : index
    %c0_288 = arith.constant 0 : index
    %444 = vector.load %arg3[%c3_285, %c0_286, %c0_287, %c0_288] : memref<6x9x64x64xbf16, #tpu.memory_space<vmem>>, vector<1x1x64x64xbf16>
    %445 = vector.shape_cast %444 : vector<1x1x64x64xbf16> to vector<64x64xbf16>
    %cst_289 = arith.constant dense<0.000000e+00> : vector<32x64xf32>
    %446 = tpu.matmul %443, %445, %cst_289 {dimension_numbers = #tpu.dot_dimension_numbers<[1], [0], [0], [1], [0, 0, 1, 1], [], []>} : vector<32x64xbf16>, vector<64x64xbf16>, vector<32x64xf32> -> vector<32x64xf32>
    %447 = arith.addf %440, %446 : vector<32x64xf32>
    %448 = vector.extract_strided_slice %439 {offsets = [0, 0, 1, 0], sizes = [2, 4, 4, 64], strides = [1, 1, 1, 1]} : vector<2x6x6x64xf32> to vector<2x4x4x64xf32>
    %449 = vector.shape_cast %448 : vector<2x4x4x64xf32> to vector<32x64xf32>
    %450 = arith.truncf %449 : vector<32x64xf32> to vector<32x64xbf16>
    %c3_290 = arith.constant 3 : index
    %c1_291 = arith.constant 1 : index
    %c0_292 = arith.constant 0 : index
    %c0_293 = arith.constant 0 : index
    %451 = vector.load %arg3[%c3_290, %c1_291, %c0_292, %c0_293] : memref<6x9x64x64xbf16, #tpu.memory_space<vmem>>, vector<1x1x64x64xbf16>
    %452 = vector.shape_cast %451 : vector<1x1x64x64xbf16> to vector<64x64xbf16>
    %cst_294 = arith.constant dense<0.000000e+00> : vector<32x64xf32>
    %453 = tpu.matmul %450, %452, %cst_294 {dimension_numbers = #tpu.dot_dimension_numbers<[1], [0], [0], [1], [0, 0, 1, 1], [], []>} : vector<32x64xbf16>, vector<64x64xbf16>, vector<32x64xf32> -> vector<32x64xf32>
    %454 = arith.addf %447, %453 : vector<32x64xf32>
    %455 = vector.extract_strided_slice %439 {offsets = [0, 0, 2, 0], sizes = [2, 4, 4, 64], strides = [1, 1, 1, 1]} : vector<2x6x6x64xf32> to vector<2x4x4x64xf32>
    %456 = vector.shape_cast %455 : vector<2x4x4x64xf32> to vector<32x64xf32>
    %457 = arith.truncf %456 : vector<32x64xf32> to vector<32x64xbf16>
    %c3_295 = arith.constant 3 : index
    %c2_296 = arith.constant 2 : index
    %c0_297 = arith.constant 0 : index
    %c0_298 = arith.constant 0 : index
    %458 = vector.load %arg3[%c3_295, %c2_296, %c0_297, %c0_298] : memref<6x9x64x64xbf16, #tpu.memory_space<vmem>>, vector<1x1x64x64xbf16>
    %459 = vector.shape_cast %458 : vector<1x1x64x64xbf16> to vector<64x64xbf16>
    %cst_299 = arith.constant dense<0.000000e+00> : vector<32x64xf32>
    %460 = tpu.matmul %457, %459, %cst_299 {dimension_numbers = #tpu.dot_dimension_numbers<[1], [0], [0], [1], [0, 0, 1, 1], [], []>} : vector<32x64xbf16>, vector<64x64xbf16>, vector<32x64xf32> -> vector<32x64xf32>
    %461 = arith.addf %454, %460 : vector<32x64xf32>
    %462 = vector.extract_strided_slice %439 {offsets = [0, 1, 0, 0], sizes = [2, 4, 4, 64], strides = [1, 1, 1, 1]} : vector<2x6x6x64xf32> to vector<2x4x4x64xf32>
    %463 = vector.shape_cast %462 : vector<2x4x4x64xf32> to vector<32x64xf32>
    %464 = arith.truncf %463 : vector<32x64xf32> to vector<32x64xbf16>
    %c3_300 = arith.constant 3 : index
    %c3_301 = arith.constant 3 : index
    %c0_302 = arith.constant 0 : index
    %c0_303 = arith.constant 0 : index
    %465 = vector.load %arg3[%c3_300, %c3_301, %c0_302, %c0_303] : memref<6x9x64x64xbf16, #tpu.memory_space<vmem>>, vector<1x1x64x64xbf16>
    %466 = vector.shape_cast %465 : vector<1x1x64x64xbf16> to vector<64x64xbf16>
    %cst_304 = arith.constant dense<0.000000e+00> : vector<32x64xf32>
    %467 = tpu.matmul %464, %466, %cst_304 {dimension_numbers = #tpu.dot_dimension_numbers<[1], [0], [0], [1], [0, 0, 1, 1], [], []>} : vector<32x64xbf16>, vector<64x64xbf16>, vector<32x64xf32> -> vector<32x64xf32>
    %468 = arith.addf %461, %467 : vector<32x64xf32>
    %469 = vector.extract_strided_slice %439 {offsets = [0, 1, 1, 0], sizes = [2, 4, 4, 64], strides = [1, 1, 1, 1]} : vector<2x6x6x64xf32> to vector<2x4x4x64xf32>
    %470 = vector.shape_cast %469 : vector<2x4x4x64xf32> to vector<32x64xf32>
    %471 = arith.truncf %470 : vector<32x64xf32> to vector<32x64xbf16>
    %c3_305 = arith.constant 3 : index
    %c4_306 = arith.constant 4 : index
    %c0_307 = arith.constant 0 : index
    %c0_308 = arith.constant 0 : index
    %472 = vector.load %arg3[%c3_305, %c4_306, %c0_307, %c0_308] : memref<6x9x64x64xbf16, #tpu.memory_space<vmem>>, vector<1x1x64x64xbf16>
    %473 = vector.shape_cast %472 : vector<1x1x64x64xbf16> to vector<64x64xbf16>
    %cst_309 = arith.constant dense<0.000000e+00> : vector<32x64xf32>
    %474 = tpu.matmul %471, %473, %cst_309 {dimension_numbers = #tpu.dot_dimension_numbers<[1], [0], [0], [1], [0, 0, 1, 1], [], []>} : vector<32x64xbf16>, vector<64x64xbf16>, vector<32x64xf32> -> vector<32x64xf32>
    %475 = arith.addf %468, %474 : vector<32x64xf32>
    %476 = vector.extract_strided_slice %439 {offsets = [0, 1, 2, 0], sizes = [2, 4, 4, 64], strides = [1, 1, 1, 1]} : vector<2x6x6x64xf32> to vector<2x4x4x64xf32>
    %477 = vector.shape_cast %476 : vector<2x4x4x64xf32> to vector<32x64xf32>
    %478 = arith.truncf %477 : vector<32x64xf32> to vector<32x64xbf16>
    %c3_310 = arith.constant 3 : index
    %c5_311 = arith.constant 5 : index
    %c0_312 = arith.constant 0 : index
    %c0_313 = arith.constant 0 : index
    %479 = vector.load %arg3[%c3_310, %c5_311, %c0_312, %c0_313] : memref<6x9x64x64xbf16, #tpu.memory_space<vmem>>, vector<1x1x64x64xbf16>
    %480 = vector.shape_cast %479 : vector<1x1x64x64xbf16> to vector<64x64xbf16>
    %cst_314 = arith.constant dense<0.000000e+00> : vector<32x64xf32>
    %481 = tpu.matmul %478, %480, %cst_314 {dimension_numbers = #tpu.dot_dimension_numbers<[1], [0], [0], [1], [0, 0, 1, 1], [], []>} : vector<32x64xbf16>, vector<64x64xbf16>, vector<32x64xf32> -> vector<32x64xf32>
    %482 = arith.addf %475, %481 : vector<32x64xf32>
    %483 = vector.extract_strided_slice %439 {offsets = [0, 2, 0, 0], sizes = [2, 4, 4, 64], strides = [1, 1, 1, 1]} : vector<2x6x6x64xf32> to vector<2x4x4x64xf32>
    %484 = vector.shape_cast %483 : vector<2x4x4x64xf32> to vector<32x64xf32>
    %485 = arith.truncf %484 : vector<32x64xf32> to vector<32x64xbf16>
    %c3_315 = arith.constant 3 : index
    %c6_316 = arith.constant 6 : index
    %c0_317 = arith.constant 0 : index
    %c0_318 = arith.constant 0 : index
    %486 = vector.load %arg3[%c3_315, %c6_316, %c0_317, %c0_318] : memref<6x9x64x64xbf16, #tpu.memory_space<vmem>>, vector<1x1x64x64xbf16>
    %487 = vector.shape_cast %486 : vector<1x1x64x64xbf16> to vector<64x64xbf16>
    %cst_319 = arith.constant dense<0.000000e+00> : vector<32x64xf32>
    %488 = tpu.matmul %485, %487, %cst_319 {dimension_numbers = #tpu.dot_dimension_numbers<[1], [0], [0], [1], [0, 0, 1, 1], [], []>} : vector<32x64xbf16>, vector<64x64xbf16>, vector<32x64xf32> -> vector<32x64xf32>
    %489 = arith.addf %482, %488 : vector<32x64xf32>
    %490 = vector.extract_strided_slice %439 {offsets = [0, 2, 1, 0], sizes = [2, 4, 4, 64], strides = [1, 1, 1, 1]} : vector<2x6x6x64xf32> to vector<2x4x4x64xf32>
    %491 = vector.shape_cast %490 : vector<2x4x4x64xf32> to vector<32x64xf32>
    %492 = arith.truncf %491 : vector<32x64xf32> to vector<32x64xbf16>
    %c3_320 = arith.constant 3 : index
    %c7_321 = arith.constant 7 : index
    %c0_322 = arith.constant 0 : index
    %c0_323 = arith.constant 0 : index
    %493 = vector.load %arg3[%c3_320, %c7_321, %c0_322, %c0_323] : memref<6x9x64x64xbf16, #tpu.memory_space<vmem>>, vector<1x1x64x64xbf16>
    %494 = vector.shape_cast %493 : vector<1x1x64x64xbf16> to vector<64x64xbf16>
    %cst_324 = arith.constant dense<0.000000e+00> : vector<32x64xf32>
    %495 = tpu.matmul %492, %494, %cst_324 {dimension_numbers = #tpu.dot_dimension_numbers<[1], [0], [0], [1], [0, 0, 1, 1], [], []>} : vector<32x64xbf16>, vector<64x64xbf16>, vector<32x64xf32> -> vector<32x64xf32>
    %496 = arith.addf %489, %495 : vector<32x64xf32>
    %497 = vector.extract_strided_slice %439 {offsets = [0, 2, 2, 0], sizes = [2, 4, 4, 64], strides = [1, 1, 1, 1]} : vector<2x6x6x64xf32> to vector<2x4x4x64xf32>
    %498 = vector.shape_cast %497 : vector<2x4x4x64xf32> to vector<32x64xf32>
    %499 = arith.truncf %498 : vector<32x64xf32> to vector<32x64xbf16>
    %c3_325 = arith.constant 3 : index
    %c8_326 = arith.constant 8 : index
    %c0_327 = arith.constant 0 : index
    %c0_328 = arith.constant 0 : index
    %500 = vector.load %arg3[%c3_325, %c8_326, %c0_327, %c0_328] : memref<6x9x64x64xbf16, #tpu.memory_space<vmem>>, vector<1x1x64x64xbf16>
    %501 = vector.shape_cast %500 : vector<1x1x64x64xbf16> to vector<64x64xbf16>
    %cst_329 = arith.constant dense<0.000000e+00> : vector<32x64xf32>
    %502 = tpu.matmul %499, %501, %cst_329 {dimension_numbers = #tpu.dot_dimension_numbers<[1], [0], [0], [1], [0, 0, 1, 1], [], []>} : vector<32x64xbf16>, vector<64x64xbf16>, vector<32x64xf32> -> vector<32x64xf32>
    %503 = arith.addf %496, %502 : vector<32x64xf32>
    %c3_330 = arith.constant 3 : index
    %c0_331 = arith.constant 0 : index
    %c0_332 = arith.constant 0 : index
    %504 = vector.load %arg4[%c3_330, %c0_331, %c0_332] : memref<6x2x64xf32, #tpu.memory_space<vmem>>, vector<1x2x64xf32>
    %505 = vector.shape_cast %504 : vector<1x2x64xf32> to vector<2x64xf32>
    %506 = vector.extract_strided_slice %505 {offsets = [0, 0], sizes = [1, 64], strides = [1, 1]} : vector<2x64xf32> to vector<1x64xf32>
    %507 = vector.broadcast %506 : vector<1x64xf32> to vector<32x64xf32>
    %508 = arith.mulf %503, %507 : vector<32x64xf32>
    %509 = vector.extract_strided_slice %505 {offsets = [1, 0], sizes = [1, 64], strides = [1, 1]} : vector<2x64xf32> to vector<1x64xf32>
    %510 = vector.broadcast %509 : vector<1x64xf32> to vector<32x64xf32>
    %511 = arith.addf %508, %510 : vector<32x64xf32>
    %512 = arith.addf %511, %361 : vector<32x64xf32>
    %cst_333 = arith.constant 0.000000e+00 : f32
    %513 = vector.broadcast %cst_333 : f32 to vector<32x64xf32>
    %514 = arith.maximumf %512, %513 : vector<32x64xf32>
    %515 = vector.shape_cast %514 : vector<32x64xf32> to vector<2x4x4x64xf32>
    %c0_334 = arith.constant 0 : index
    %c1_335 = arith.constant 1 : index
    %c1_336 = arith.constant 1 : index
    %c0_337 = arith.constant 0 : index
    %516 = vector.load %arg11[%c0_334, %c1_335, %c1_336, %c0_337] : memref<2x6x6x64xf32, #tpu.memory_space<vmem>>, vector<2x4x4x64xf32>
    tpu.vector_store %arg11[%c0_334, %c1_335, %c1_336, %c0_337], %515 {strides = array<i32>} : memref<2x6x6x64xf32, #tpu.memory_space<vmem>>, vector<2x4x4x64xf32>,
    %c0_338 = arith.constant 0 : index
    %c1_339 = arith.constant 1 : index
    %c1_340 = arith.constant 1 : index
    %c0_341 = arith.constant 0 : index
    %517 = vector.load %arg11[%c0_338, %c1_339, %c1_340, %c0_341] : memref<2x6x6x64xf32, #tpu.memory_space<vmem>>, vector<2x4x4x64xf32>
    %518 = vector.shape_cast %517 : vector<2x4x4x64xf32> to vector<32x64xf32>
    %c0_342 = arith.constant 0 : index
    %c0_343 = arith.constant 0 : index
    %c0_344 = arith.constant 0 : index
    %c0_345 = arith.constant 0 : index
    %519 = vector.load %arg11[%c0_342, %c0_343, %c0_344, %c0_345] : memref<2x6x6x64xf32, #tpu.memory_space<vmem>>, vector<2x6x6x64xf32>
    %cst_346 = arith.constant 0.000000e+00 : f32
    %520 = vector.broadcast %cst_346 : f32 to vector<32x64xf32>
    %521 = vector.extract_strided_slice %519 {offsets = [0, 0, 0, 0], sizes = [2, 4, 4, 64], strides = [1, 1, 1, 1]} : vector<2x6x6x64xf32> to vector<2x4x4x64xf32>
    %522 = vector.shape_cast %521 : vector<2x4x4x64xf32> to vector<32x64xf32>
    %523 = arith.truncf %522 : vector<32x64xf32> to vector<32x64xbf16>
    %c4_347 = arith.constant 4 : index
    %c0_348 = arith.constant 0 : index
    %c0_349 = arith.constant 0 : index
    %c0_350 = arith.constant 0 : index
    %524 = vector.load %arg3[%c4_347, %c0_348, %c0_349, %c0_350] : memref<6x9x64x64xbf16, #tpu.memory_space<vmem>>, vector<1x1x64x64xbf16>
    %525 = vector.shape_cast %524 : vector<1x1x64x64xbf16> to vector<64x64xbf16>
    %cst_351 = arith.constant dense<0.000000e+00> : vector<32x64xf32>
    %526 = tpu.matmul %523, %525, %cst_351 {dimension_numbers = #tpu.dot_dimension_numbers<[1], [0], [0], [1], [0, 0, 1, 1], [], []>} : vector<32x64xbf16>, vector<64x64xbf16>, vector<32x64xf32> -> vector<32x64xf32>
    %527 = arith.addf %520, %526 : vector<32x64xf32>
    %528 = vector.extract_strided_slice %519 {offsets = [0, 0, 1, 0], sizes = [2, 4, 4, 64], strides = [1, 1, 1, 1]} : vector<2x6x6x64xf32> to vector<2x4x4x64xf32>
    %529 = vector.shape_cast %528 : vector<2x4x4x64xf32> to vector<32x64xf32>
    %530 = arith.truncf %529 : vector<32x64xf32> to vector<32x64xbf16>
    %c4_352 = arith.constant 4 : index
    %c1_353 = arith.constant 1 : index
    %c0_354 = arith.constant 0 : index
    %c0_355 = arith.constant 0 : index
    %531 = vector.load %arg3[%c4_352, %c1_353, %c0_354, %c0_355] : memref<6x9x64x64xbf16, #tpu.memory_space<vmem>>, vector<1x1x64x64xbf16>
    %532 = vector.shape_cast %531 : vector<1x1x64x64xbf16> to vector<64x64xbf16>
    %cst_356 = arith.constant dense<0.000000e+00> : vector<32x64xf32>
    %533 = tpu.matmul %530, %532, %cst_356 {dimension_numbers = #tpu.dot_dimension_numbers<[1], [0], [0], [1], [0, 0, 1, 1], [], []>} : vector<32x64xbf16>, vector<64x64xbf16>, vector<32x64xf32> -> vector<32x64xf32>
    %534 = arith.addf %527, %533 : vector<32x64xf32>
    %535 = vector.extract_strided_slice %519 {offsets = [0, 0, 2, 0], sizes = [2, 4, 4, 64], strides = [1, 1, 1, 1]} : vector<2x6x6x64xf32> to vector<2x4x4x64xf32>
    %536 = vector.shape_cast %535 : vector<2x4x4x64xf32> to vector<32x64xf32>
    %537 = arith.truncf %536 : vector<32x64xf32> to vector<32x64xbf16>
    %c4_357 = arith.constant 4 : index
    %c2_358 = arith.constant 2 : index
    %c0_359 = arith.constant 0 : index
    %c0_360 = arith.constant 0 : index
    %538 = vector.load %arg3[%c4_357, %c2_358, %c0_359, %c0_360] : memref<6x9x64x64xbf16, #tpu.memory_space<vmem>>, vector<1x1x64x64xbf16>
    %539 = vector.shape_cast %538 : vector<1x1x64x64xbf16> to vector<64x64xbf16>
    %cst_361 = arith.constant dense<0.000000e+00> : vector<32x64xf32>
    %540 = tpu.matmul %537, %539, %cst_361 {dimension_numbers = #tpu.dot_dimension_numbers<[1], [0], [0], [1], [0, 0, 1, 1], [], []>} : vector<32x64xbf16>, vector<64x64xbf16>, vector<32x64xf32> -> vector<32x64xf32>
    %541 = arith.addf %534, %540 : vector<32x64xf32>
    %542 = vector.extract_strided_slice %519 {offsets = [0, 1, 0, 0], sizes = [2, 4, 4, 64], strides = [1, 1, 1, 1]} : vector<2x6x6x64xf32> to vector<2x4x4x64xf32>
    %543 = vector.shape_cast %542 : vector<2x4x4x64xf32> to vector<32x64xf32>
    %544 = arith.truncf %543 : vector<32x64xf32> to vector<32x64xbf16>
    %c4_362 = arith.constant 4 : index
    %c3_363 = arith.constant 3 : index
    %c0_364 = arith.constant 0 : index
    %c0_365 = arith.constant 0 : index
    %545 = vector.load %arg3[%c4_362, %c3_363, %c0_364, %c0_365] : memref<6x9x64x64xbf16, #tpu.memory_space<vmem>>, vector<1x1x64x64xbf16>
    %546 = vector.shape_cast %545 : vector<1x1x64x64xbf16> to vector<64x64xbf16>
    %cst_366 = arith.constant dense<0.000000e+00> : vector<32x64xf32>
    %547 = tpu.matmul %544, %546, %cst_366 {dimension_numbers = #tpu.dot_dimension_numbers<[1], [0], [0], [1], [0, 0, 1, 1], [], []>} : vector<32x64xbf16>, vector<64x64xbf16>, vector<32x64xf32> -> vector<32x64xf32>
    %548 = arith.addf %541, %547 : vector<32x64xf32>
    %549 = vector.extract_strided_slice %519 {offsets = [0, 1, 1, 0], sizes = [2, 4, 4, 64], strides = [1, 1, 1, 1]} : vector<2x6x6x64xf32> to vector<2x4x4x64xf32>
    %550 = vector.shape_cast %549 : vector<2x4x4x64xf32> to vector<32x64xf32>
    %551 = arith.truncf %550 : vector<32x64xf32> to vector<32x64xbf16>
    %c4_367 = arith.constant 4 : index
    %c4_368 = arith.constant 4 : index
    %c0_369 = arith.constant 0 : index
    %c0_370 = arith.constant 0 : index
    %552 = vector.load %arg3[%c4_367, %c4_368, %c0_369, %c0_370] : memref<6x9x64x64xbf16, #tpu.memory_space<vmem>>, vector<1x1x64x64xbf16>
    %553 = vector.shape_cast %552 : vector<1x1x64x64xbf16> to vector<64x64xbf16>
    %cst_371 = arith.constant dense<0.000000e+00> : vector<32x64xf32>
    %554 = tpu.matmul %551, %553, %cst_371 {dimension_numbers = #tpu.dot_dimension_numbers<[1], [0], [0], [1], [0, 0, 1, 1], [], []>} : vector<32x64xbf16>, vector<64x64xbf16>, vector<32x64xf32> -> vector<32x64xf32>
    %555 = arith.addf %548, %554 : vector<32x64xf32>
    %556 = vector.extract_strided_slice %519 {offsets = [0, 1, 2, 0], sizes = [2, 4, 4, 64], strides = [1, 1, 1, 1]} : vector<2x6x6x64xf32> to vector<2x4x4x64xf32>
    %557 = vector.shape_cast %556 : vector<2x4x4x64xf32> to vector<32x64xf32>
    %558 = arith.truncf %557 : vector<32x64xf32> to vector<32x64xbf16>
    %c4_372 = arith.constant 4 : index
    %c5_373 = arith.constant 5 : index
    %c0_374 = arith.constant 0 : index
    %c0_375 = arith.constant 0 : index
    %559 = vector.load %arg3[%c4_372, %c5_373, %c0_374, %c0_375] : memref<6x9x64x64xbf16, #tpu.memory_space<vmem>>, vector<1x1x64x64xbf16>
    %560 = vector.shape_cast %559 : vector<1x1x64x64xbf16> to vector<64x64xbf16>
    %cst_376 = arith.constant dense<0.000000e+00> : vector<32x64xf32>
    %561 = tpu.matmul %558, %560, %cst_376 {dimension_numbers = #tpu.dot_dimension_numbers<[1], [0], [0], [1], [0, 0, 1, 1], [], []>} : vector<32x64xbf16>, vector<64x64xbf16>, vector<32x64xf32> -> vector<32x64xf32>
    %562 = arith.addf %555, %561 : vector<32x64xf32>
    %563 = vector.extract_strided_slice %519 {offsets = [0, 2, 0, 0], sizes = [2, 4, 4, 64], strides = [1, 1, 1, 1]} : vector<2x6x6x64xf32> to vector<2x4x4x64xf32>
    %564 = vector.shape_cast %563 : vector<2x4x4x64xf32> to vector<32x64xf32>
    %565 = arith.truncf %564 : vector<32x64xf32> to vector<32x64xbf16>
    %c4_377 = arith.constant 4 : index
    %c6_378 = arith.constant 6 : index
    %c0_379 = arith.constant 0 : index
    %c0_380 = arith.constant 0 : index
    %566 = vector.load %arg3[%c4_377, %c6_378, %c0_379, %c0_380] : memref<6x9x64x64xbf16, #tpu.memory_space<vmem>>, vector<1x1x64x64xbf16>
    %567 = vector.shape_cast %566 : vector<1x1x64x64xbf16> to vector<64x64xbf16>
    %cst_381 = arith.constant dense<0.000000e+00> : vector<32x64xf32>
    %568 = tpu.matmul %565, %567, %cst_381 {dimension_numbers = #tpu.dot_dimension_numbers<[1], [0], [0], [1], [0, 0, 1, 1], [], []>} : vector<32x64xbf16>, vector<64x64xbf16>, vector<32x64xf32> -> vector<32x64xf32>
    %569 = arith.addf %562, %568 : vector<32x64xf32>
    %570 = vector.extract_strided_slice %519 {offsets = [0, 2, 1, 0], sizes = [2, 4, 4, 64], strides = [1, 1, 1, 1]} : vector<2x6x6x64xf32> to vector<2x4x4x64xf32>
    %571 = vector.shape_cast %570 : vector<2x4x4x64xf32> to vector<32x64xf32>
    %572 = arith.truncf %571 : vector<32x64xf32> to vector<32x64xbf16>
    %c4_382 = arith.constant 4 : index
    %c7_383 = arith.constant 7 : index
    %c0_384 = arith.constant 0 : index
    %c0_385 = arith.constant 0 : index
    %573 = vector.load %arg3[%c4_382, %c7_383, %c0_384, %c0_385] : memref<6x9x64x64xbf16, #tpu.memory_space<vmem>>, vector<1x1x64x64xbf16>
    %574 = vector.shape_cast %573 : vector<1x1x64x64xbf16> to vector<64x64xbf16>
    %cst_386 = arith.constant dense<0.000000e+00> : vector<32x64xf32>
    %575 = tpu.matmul %572, %574, %cst_386 {dimension_numbers = #tpu.dot_dimension_numbers<[1], [0], [0], [1], [0, 0, 1, 1], [], []>} : vector<32x64xbf16>, vector<64x64xbf16>, vector<32x64xf32> -> vector<32x64xf32>
    %576 = arith.addf %569, %575 : vector<32x64xf32>
    %577 = vector.extract_strided_slice %519 {offsets = [0, 2, 2, 0], sizes = [2, 4, 4, 64], strides = [1, 1, 1, 1]} : vector<2x6x6x64xf32> to vector<2x4x4x64xf32>
    %578 = vector.shape_cast %577 : vector<2x4x4x64xf32> to vector<32x64xf32>
    %579 = arith.truncf %578 : vector<32x64xf32> to vector<32x64xbf16>
    %c4_387 = arith.constant 4 : index
    %c8_388 = arith.constant 8 : index
    %c0_389 = arith.constant 0 : index
    %c0_390 = arith.constant 0 : index
    %580 = vector.load %arg3[%c4_387, %c8_388, %c0_389, %c0_390] : memref<6x9x64x64xbf16, #tpu.memory_space<vmem>>, vector<1x1x64x64xbf16>
    %581 = vector.shape_cast %580 : vector<1x1x64x64xbf16> to vector<64x64xbf16>
    %cst_391 = arith.constant dense<0.000000e+00> : vector<32x64xf32>
    %582 = tpu.matmul %579, %581, %cst_391 {dimension_numbers = #tpu.dot_dimension_numbers<[1], [0], [0], [1], [0, 0, 1, 1], [], []>} : vector<32x64xbf16>, vector<64x64xbf16>, vector<32x64xf32> -> vector<32x64xf32>
    %583 = arith.addf %576, %582 : vector<32x64xf32>
    %c4_392 = arith.constant 4 : index
    %c0_393 = arith.constant 0 : index
    %c0_394 = arith.constant 0 : index
    %584 = vector.load %arg4[%c4_392, %c0_393, %c0_394] : memref<6x2x64xf32, #tpu.memory_space<vmem>>, vector<1x2x64xf32>
    %585 = vector.shape_cast %584 : vector<1x2x64xf32> to vector<2x64xf32>
    %586 = vector.extract_strided_slice %585 {offsets = [0, 0], sizes = [1, 64], strides = [1, 1]} : vector<2x64xf32> to vector<1x64xf32>
    %587 = vector.broadcast %586 : vector<1x64xf32> to vector<32x64xf32>
    %588 = arith.mulf %583, %587 : vector<32x64xf32>
    %589 = vector.extract_strided_slice %585 {offsets = [1, 0], sizes = [1, 64], strides = [1, 1]} : vector<2x64xf32> to vector<1x64xf32>
    %590 = vector.broadcast %589 : vector<1x64xf32> to vector<32x64xf32>
    %591 = arith.addf %588, %590 : vector<32x64xf32>
    %cst_395 = arith.constant 0.000000e+00 : f32
    %592 = vector.broadcast %cst_395 : f32 to vector<32x64xf32>
    %593 = arith.maximumf %591, %592 : vector<32x64xf32>
    %594 = vector.shape_cast %593 : vector<32x64xf32> to vector<2x4x4x64xf32>
    %c0_396 = arith.constant 0 : index
    %c1_397 = arith.constant 1 : index
    %c1_398 = arith.constant 1 : index
    %c0_399 = arith.constant 0 : index
    %595 = vector.load %arg11[%c0_396, %c1_397, %c1_398, %c0_399] : memref<2x6x6x64xf32, #tpu.memory_space<vmem>>, vector<2x4x4x64xf32>
    tpu.vector_store %arg11[%c0_396, %c1_397, %c1_398, %c0_399], %594 {strides = array<i32>} : memref<2x6x6x64xf32, #tpu.memory_space<vmem>>, vector<2x4x4x64xf32>,
    %c0_400 = arith.constant 0 : index
    %c0_401 = arith.constant 0 : index
    %c0_402 = arith.constant 0 : index
    %c0_403 = arith.constant 0 : index
    %596 = vector.load %arg11[%c0_400, %c0_401, %c0_402, %c0_403] : memref<2x6x6x64xf32, #tpu.memory_space<vmem>>, vector<2x6x6x64xf32>
    %cst_404 = arith.constant 0.000000e+00 : f32
    %597 = vector.broadcast %cst_404 : f32 to vector<32x64xf32>
    %598 = vector.extract_strided_slice %596 {offsets = [0, 0, 0, 0], sizes = [2, 4, 4, 64], strides = [1, 1, 1, 1]} : vector<2x6x6x64xf32> to vector<2x4x4x64xf32>
    %599 = vector.shape_cast %598 : vector<2x4x4x64xf32> to vector<32x64xf32>
    %600 = arith.truncf %599 : vector<32x64xf32> to vector<32x64xbf16>
    %c5_405 = arith.constant 5 : index
    %c0_406 = arith.constant 0 : index
    %c0_407 = arith.constant 0 : index
    %c0_408 = arith.constant 0 : index
    %601 = vector.load %arg3[%c5_405, %c0_406, %c0_407, %c0_408] : memref<6x9x64x64xbf16, #tpu.memory_space<vmem>>, vector<1x1x64x64xbf16>
    %602 = vector.shape_cast %601 : vector<1x1x64x64xbf16> to vector<64x64xbf16>
    %cst_409 = arith.constant dense<0.000000e+00> : vector<32x64xf32>
    %603 = tpu.matmul %600, %602, %cst_409 {dimension_numbers = #tpu.dot_dimension_numbers<[1], [0], [0], [1], [0, 0, 1, 1], [], []>} : vector<32x64xbf16>, vector<64x64xbf16>, vector<32x64xf32> -> vector<32x64xf32>
    %604 = arith.addf %597, %603 : vector<32x64xf32>
    %605 = vector.extract_strided_slice %596 {offsets = [0, 0, 1, 0], sizes = [2, 4, 4, 64], strides = [1, 1, 1, 1]} : vector<2x6x6x64xf32> to vector<2x4x4x64xf32>
    %606 = vector.shape_cast %605 : vector<2x4x4x64xf32> to vector<32x64xf32>
    %607 = arith.truncf %606 : vector<32x64xf32> to vector<32x64xbf16>
    %c5_410 = arith.constant 5 : index
    %c1_411 = arith.constant 1 : index
    %c0_412 = arith.constant 0 : index
    %c0_413 = arith.constant 0 : index
    %608 = vector.load %arg3[%c5_410, %c1_411, %c0_412, %c0_413] : memref<6x9x64x64xbf16, #tpu.memory_space<vmem>>, vector<1x1x64x64xbf16>
    %609 = vector.shape_cast %608 : vector<1x1x64x64xbf16> to vector<64x64xbf16>
    %cst_414 = arith.constant dense<0.000000e+00> : vector<32x64xf32>
    %610 = tpu.matmul %607, %609, %cst_414 {dimension_numbers = #tpu.dot_dimension_numbers<[1], [0], [0], [1], [0, 0, 1, 1], [], []>} : vector<32x64xbf16>, vector<64x64xbf16>, vector<32x64xf32> -> vector<32x64xf32>
    %611 = arith.addf %604, %610 : vector<32x64xf32>
    %612 = vector.extract_strided_slice %596 {offsets = [0, 0, 2, 0], sizes = [2, 4, 4, 64], strides = [1, 1, 1, 1]} : vector<2x6x6x64xf32> to vector<2x4x4x64xf32>
    %613 = vector.shape_cast %612 : vector<2x4x4x64xf32> to vector<32x64xf32>
    %614 = arith.truncf %613 : vector<32x64xf32> to vector<32x64xbf16>
    %c5_415 = arith.constant 5 : index
    %c2_416 = arith.constant 2 : index
    %c0_417 = arith.constant 0 : index
    %c0_418 = arith.constant 0 : index
    %615 = vector.load %arg3[%c5_415, %c2_416, %c0_417, %c0_418] : memref<6x9x64x64xbf16, #tpu.memory_space<vmem>>, vector<1x1x64x64xbf16>
    %616 = vector.shape_cast %615 : vector<1x1x64x64xbf16> to vector<64x64xbf16>
    %cst_419 = arith.constant dense<0.000000e+00> : vector<32x64xf32>
    %617 = tpu.matmul %614, %616, %cst_419 {dimension_numbers = #tpu.dot_dimension_numbers<[1], [0], [0], [1], [0, 0, 1, 1], [], []>} : vector<32x64xbf16>, vector<64x64xbf16>, vector<32x64xf32> -> vector<32x64xf32>
    %618 = arith.addf %611, %617 : vector<32x64xf32>
    %619 = vector.extract_strided_slice %596 {offsets = [0, 1, 0, 0], sizes = [2, 4, 4, 64], strides = [1, 1, 1, 1]} : vector<2x6x6x64xf32> to vector<2x4x4x64xf32>
    %620 = vector.shape_cast %619 : vector<2x4x4x64xf32> to vector<32x64xf32>
    %621 = arith.truncf %620 : vector<32x64xf32> to vector<32x64xbf16>
    %c5_420 = arith.constant 5 : index
    %c3_421 = arith.constant 3 : index
    %c0_422 = arith.constant 0 : index
    %c0_423 = arith.constant 0 : index
    %622 = vector.load %arg3[%c5_420, %c3_421, %c0_422, %c0_423] : memref<6x9x64x64xbf16, #tpu.memory_space<vmem>>, vector<1x1x64x64xbf16>
    %623 = vector.shape_cast %622 : vector<1x1x64x64xbf16> to vector<64x64xbf16>
    %cst_424 = arith.constant dense<0.000000e+00> : vector<32x64xf32>
    %624 = tpu.matmul %621, %623, %cst_424 {dimension_numbers = #tpu.dot_dimension_numbers<[1], [0], [0], [1], [0, 0, 1, 1], [], []>} : vector<32x64xbf16>, vector<64x64xbf16>, vector<32x64xf32> -> vector<32x64xf32>
    %625 = arith.addf %618, %624 : vector<32x64xf32>
    %626 = vector.extract_strided_slice %596 {offsets = [0, 1, 1, 0], sizes = [2, 4, 4, 64], strides = [1, 1, 1, 1]} : vector<2x6x6x64xf32> to vector<2x4x4x64xf32>
    %627 = vector.shape_cast %626 : vector<2x4x4x64xf32> to vector<32x64xf32>
    %628 = arith.truncf %627 : vector<32x64xf32> to vector<32x64xbf16>
    %c5_425 = arith.constant 5 : index
    %c4_426 = arith.constant 4 : index
    %c0_427 = arith.constant 0 : index
    %c0_428 = arith.constant 0 : index
    %629 = vector.load %arg3[%c5_425, %c4_426, %c0_427, %c0_428] : memref<6x9x64x64xbf16, #tpu.memory_space<vmem>>, vector<1x1x64x64xbf16>
    %630 = vector.shape_cast %629 : vector<1x1x64x64xbf16> to vector<64x64xbf16>
    %cst_429 = arith.constant dense<0.000000e+00> : vector<32x64xf32>
    %631 = tpu.matmul %628, %630, %cst_429 {dimension_numbers = #tpu.dot_dimension_numbers<[1], [0], [0], [1], [0, 0, 1, 1], [], []>} : vector<32x64xbf16>, vector<64x64xbf16>, vector<32x64xf32> -> vector<32x64xf32>
    %632 = arith.addf %625, %631 : vector<32x64xf32>
    %633 = vector.extract_strided_slice %596 {offsets = [0, 1, 2, 0], sizes = [2, 4, 4, 64], strides = [1, 1, 1, 1]} : vector<2x6x6x64xf32> to vector<2x4x4x64xf32>
    %634 = vector.shape_cast %633 : vector<2x4x4x64xf32> to vector<32x64xf32>
    %635 = arith.truncf %634 : vector<32x64xf32> to vector<32x64xbf16>
    %c5_430 = arith.constant 5 : index
    %c5_431 = arith.constant 5 : index
    %c0_432 = arith.constant 0 : index
    %c0_433 = arith.constant 0 : index
    %636 = vector.load %arg3[%c5_430, %c5_431, %c0_432, %c0_433] : memref<6x9x64x64xbf16, #tpu.memory_space<vmem>>, vector<1x1x64x64xbf16>
    %637 = vector.shape_cast %636 : vector<1x1x64x64xbf16> to vector<64x64xbf16>
    %cst_434 = arith.constant dense<0.000000e+00> : vector<32x64xf32>
    %638 = tpu.matmul %635, %637, %cst_434 {dimension_numbers = #tpu.dot_dimension_numbers<[1], [0], [0], [1], [0, 0, 1, 1], [], []>} : vector<32x64xbf16>, vector<64x64xbf16>, vector<32x64xf32> -> vector<32x64xf32>
    %639 = arith.addf %632, %638 : vector<32x64xf32>
    %640 = vector.extract_strided_slice %596 {offsets = [0, 2, 0, 0], sizes = [2, 4, 4, 64], strides = [1, 1, 1, 1]} : vector<2x6x6x64xf32> to vector<2x4x4x64xf32>
    %641 = vector.shape_cast %640 : vector<2x4x4x64xf32> to vector<32x64xf32>
    %642 = arith.truncf %641 : vector<32x64xf32> to vector<32x64xbf16>
    %c5_435 = arith.constant 5 : index
    %c6_436 = arith.constant 6 : index
    %c0_437 = arith.constant 0 : index
    %c0_438 = arith.constant 0 : index
    %643 = vector.load %arg3[%c5_435, %c6_436, %c0_437, %c0_438] : memref<6x9x64x64xbf16, #tpu.memory_space<vmem>>, vector<1x1x64x64xbf16>
    %644 = vector.shape_cast %643 : vector<1x1x64x64xbf16> to vector<64x64xbf16>
    %cst_439 = arith.constant dense<0.000000e+00> : vector<32x64xf32>
    %645 = tpu.matmul %642, %644, %cst_439 {dimension_numbers = #tpu.dot_dimension_numbers<[1], [0], [0], [1], [0, 0, 1, 1], [], []>} : vector<32x64xbf16>, vector<64x64xbf16>, vector<32x64xf32> -> vector<32x64xf32>
    %646 = arith.addf %639, %645 : vector<32x64xf32>
    %647 = vector.extract_strided_slice %596 {offsets = [0, 2, 1, 0], sizes = [2, 4, 4, 64], strides = [1, 1, 1, 1]} : vector<2x6x6x64xf32> to vector<2x4x4x64xf32>
    %648 = vector.shape_cast %647 : vector<2x4x4x64xf32> to vector<32x64xf32>
    %649 = arith.truncf %648 : vector<32x64xf32> to vector<32x64xbf16>
    %c5_440 = arith.constant 5 : index
    %c7_441 = arith.constant 7 : index
    %c0_442 = arith.constant 0 : index
    %c0_443 = arith.constant 0 : index
    %650 = vector.load %arg3[%c5_440, %c7_441, %c0_442, %c0_443] : memref<6x9x64x64xbf16, #tpu.memory_space<vmem>>, vector<1x1x64x64xbf16>
    %651 = vector.shape_cast %650 : vector<1x1x64x64xbf16> to vector<64x64xbf16>
    %cst_444 = arith.constant dense<0.000000e+00> : vector<32x64xf32>
    %652 = tpu.matmul %649, %651, %cst_444 {dimension_numbers = #tpu.dot_dimension_numbers<[1], [0], [0], [1], [0, 0, 1, 1], [], []>} : vector<32x64xbf16>, vector<64x64xbf16>, vector<32x64xf32> -> vector<32x64xf32>
    %653 = arith.addf %646, %652 : vector<32x64xf32>
    %654 = vector.extract_strided_slice %596 {offsets = [0, 2, 2, 0], sizes = [2, 4, 4, 64], strides = [1, 1, 1, 1]} : vector<2x6x6x64xf32> to vector<2x4x4x64xf32>
    %655 = vector.shape_cast %654 : vector<2x4x4x64xf32> to vector<32x64xf32>
    %656 = arith.truncf %655 : vector<32x64xf32> to vector<32x64xbf16>
    %c5_445 = arith.constant 5 : index
    %c8_446 = arith.constant 8 : index
    %c0_447 = arith.constant 0 : index
    %c0_448 = arith.constant 0 : index
    %657 = vector.load %arg3[%c5_445, %c8_446, %c0_447, %c0_448] : memref<6x9x64x64xbf16, #tpu.memory_space<vmem>>, vector<1x1x64x64xbf16>
    %658 = vector.shape_cast %657 : vector<1x1x64x64xbf16> to vector<64x64xbf16>
    %cst_449 = arith.constant dense<0.000000e+00> : vector<32x64xf32>
    %659 = tpu.matmul %656, %658, %cst_449 {dimension_numbers = #tpu.dot_dimension_numbers<[1], [0], [0], [1], [0, 0, 1, 1], [], []>} : vector<32x64xbf16>, vector<64x64xbf16>, vector<32x64xf32> -> vector<32x64xf32>
    %660 = arith.addf %653, %659 : vector<32x64xf32>
    %c5_450 = arith.constant 5 : index
    %c0_451 = arith.constant 0 : index
    %c0_452 = arith.constant 0 : index
    %661 = vector.load %arg4[%c5_450, %c0_451, %c0_452] : memref<6x2x64xf32, #tpu.memory_space<vmem>>, vector<1x2x64xf32>
    %662 = vector.shape_cast %661 : vector<1x2x64xf32> to vector<2x64xf32>
    %663 = vector.extract_strided_slice %662 {offsets = [0, 0], sizes = [1, 64], strides = [1, 1]} : vector<2x64xf32> to vector<1x64xf32>
    %664 = vector.broadcast %663 : vector<1x64xf32> to vector<32x64xf32>
    %665 = arith.mulf %660, %664 : vector<32x64xf32>
    %666 = vector.extract_strided_slice %662 {offsets = [1, 0], sizes = [1, 64], strides = [1, 1]} : vector<2x64xf32> to vector<1x64xf32>
    %667 = vector.broadcast %666 : vector<1x64xf32> to vector<32x64xf32>
    %668 = arith.addf %665, %667 : vector<32x64xf32>
    %669 = arith.addf %668, %518 : vector<32x64xf32>
    %cst_453 = arith.constant 0.000000e+00 : f32
    %670 = vector.broadcast %cst_453 : f32 to vector<32x64xf32>
    %671 = arith.maximumf %669, %670 : vector<32x64xf32>
    %672 = vector.shape_cast %671 : vector<32x64xf32> to vector<2x4x4x64xf32>
    %c0_454 = arith.constant 0 : index
    %c1_455 = arith.constant 1 : index
    %c1_456 = arith.constant 1 : index
    %c0_457 = arith.constant 0 : index
    %673 = vector.load %arg11[%c0_454, %c1_455, %c1_456, %c0_457] : memref<2x6x6x64xf32, #tpu.memory_space<vmem>>, vector<2x4x4x64xf32>
    tpu.vector_store %arg11[%c0_454, %c1_455, %c1_456, %c0_457], %672 {strides = array<i32>} : memref<2x6x6x64xf32, #tpu.memory_space<vmem>>, vector<2x4x4x64xf32>,
    %c0_458 = arith.constant 0 : index
    %c1_459 = arith.constant 1 : index
    %c1_460 = arith.constant 1 : index
    %c0_461 = arith.constant 0 : index
    %674 = vector.load %arg11[%c0_458, %c1_459, %c1_460, %c0_461] : memref<2x6x6x64xf32, #tpu.memory_space<vmem>>, vector<2x4x4x64xf32>
    %675 = vector.shape_cast %674 : vector<2x4x4x64xf32> to vector<32x64xf32>
    %c0_462 = arith.constant 0 : index
    %c0_463 = arith.constant 0 : index
    %676 = vector.load %arg8[%c0_462, %c0_463] : memref<32x64xf32, #tpu.memory_space<vmem>>, vector<32x64xf32>
    tpu.vector_store %arg8[%c0_462, %c0_463], %675 {strides = array<i32>} : memref<32x64xf32, #tpu.memory_space<vmem>>, vector<32x64xf32>,
    %c0_464 = arith.constant 0 : index
    %c0_465 = arith.constant 0 : index
    %c0_466 = arith.constant 0 : index
    %c0_467 = arith.constant 0 : index
    %677 = vector.load %arg11[%c0_464, %c0_465, %c0_466, %c0_467] : memref<2x6x6x64xf32, #tpu.memory_space<vmem>>, vector<2x6x6x64xf32>
    %cst_468 = arith.constant 0.000000e+00 : f32
    %678 = vector.broadcast %cst_468 : f32 to vector<32x32xf32>
    %679 = vector.extract_strided_slice %677 {offsets = [0, 0, 0, 0], sizes = [2, 4, 4, 64], strides = [1, 1, 1, 1]} : vector<2x6x6x64xf32> to vector<2x4x4x64xf32>
    %680 = vector.shape_cast %679 : vector<2x4x4x64xf32> to vector<32x64xf32>
    %681 = arith.truncf %680 : vector<32x64xf32> to vector<32x64xbf16>
    %c0_469 = arith.constant 0 : index
    %c0_470 = arith.constant 0 : index
    %c0_471 = arith.constant 0 : index
    %682 = vector.load %arg5[%c0_469, %c0_470, %c0_471] : memref<9x64x32xbf16, #tpu.memory_space<vmem>>, vector<1x64x32xbf16>
    %683 = vector.shape_cast %682 : vector<1x64x32xbf16> to vector<64x32xbf16>
    %cst_472 = arith.constant dense<0.000000e+00> : vector<32x32xf32>
    %684 = tpu.matmul %681, %683, %cst_472 {dimension_numbers = #tpu.dot_dimension_numbers<[1], [0], [0], [1], [0, 0, 1, 1], [], []>} : vector<32x64xbf16>, vector<64x32xbf16>, vector<32x32xf32> -> vector<32x32xf32>
    %685 = arith.addf %678, %684 : vector<32x32xf32>
    %686 = vector.extract_strided_slice %677 {offsets = [0, 0, 1, 0], sizes = [2, 4, 4, 64], strides = [1, 1, 1, 1]} : vector<2x6x6x64xf32> to vector<2x4x4x64xf32>
    %687 = vector.shape_cast %686 : vector<2x4x4x64xf32> to vector<32x64xf32>
    %688 = arith.truncf %687 : vector<32x64xf32> to vector<32x64xbf16>
    %c1_473 = arith.constant 1 : index
    %c0_474 = arith.constant 0 : index
    %c0_475 = arith.constant 0 : index
    %689 = vector.load %arg5[%c1_473, %c0_474, %c0_475] : memref<9x64x32xbf16, #tpu.memory_space<vmem>>, vector<1x64x32xbf16>
    %690 = vector.shape_cast %689 : vector<1x64x32xbf16> to vector<64x32xbf16>
    %cst_476 = arith.constant dense<0.000000e+00> : vector<32x32xf32>
    %691 = tpu.matmul %688, %690, %cst_476 {dimension_numbers = #tpu.dot_dimension_numbers<[1], [0], [0], [1], [0, 0, 1, 1], [], []>} : vector<32x64xbf16>, vector<64x32xbf16>, vector<32x32xf32> -> vector<32x32xf32>
    %692 = arith.addf %685, %691 : vector<32x32xf32>
    %693 = vector.extract_strided_slice %677 {offsets = [0, 0, 2, 0], sizes = [2, 4, 4, 64], strides = [1, 1, 1, 1]} : vector<2x6x6x64xf32> to vector<2x4x4x64xf32>
    %694 = vector.shape_cast %693 : vector<2x4x4x64xf32> to vector<32x64xf32>
    %695 = arith.truncf %694 : vector<32x64xf32> to vector<32x64xbf16>
    %c2_477 = arith.constant 2 : index
    %c0_478 = arith.constant 0 : index
    %c0_479 = arith.constant 0 : index
    %696 = vector.load %arg5[%c2_477, %c0_478, %c0_479] : memref<9x64x32xbf16, #tpu.memory_space<vmem>>, vector<1x64x32xbf16>
    %697 = vector.shape_cast %696 : vector<1x64x32xbf16> to vector<64x32xbf16>
    %cst_480 = arith.constant dense<0.000000e+00> : vector<32x32xf32>
    %698 = tpu.matmul %695, %697, %cst_480 {dimension_numbers = #tpu.dot_dimension_numbers<[1], [0], [0], [1], [0, 0, 1, 1], [], []>} : vector<32x64xbf16>, vector<64x32xbf16>, vector<32x32xf32> -> vector<32x32xf32>
    %699 = arith.addf %692, %698 : vector<32x32xf32>
    %700 = vector.extract_strided_slice %677 {offsets = [0, 1, 0, 0], sizes = [2, 4, 4, 64], strides = [1, 1, 1, 1]} : vector<2x6x6x64xf32> to vector<2x4x4x64xf32>
    %701 = vector.shape_cast %700 : vector<2x4x4x64xf32> to vector<32x64xf32>
    %702 = arith.truncf %701 : vector<32x64xf32> to vector<32x64xbf16>
    %c3_481 = arith.constant 3 : index
    %c0_482 = arith.constant 0 : index
    %c0_483 = arith.constant 0 : index
    %703 = vector.load %arg5[%c3_481, %c0_482, %c0_483] : memref<9x64x32xbf16, #tpu.memory_space<vmem>>, vector<1x64x32xbf16>
    %704 = vector.shape_cast %703 : vector<1x64x32xbf16> to vector<64x32xbf16>
    %cst_484 = arith.constant dense<0.000000e+00> : vector<32x32xf32>
    %705 = tpu.matmul %702, %704, %cst_484 {dimension_numbers = #tpu.dot_dimension_numbers<[1], [0], [0], [1], [0, 0, 1, 1], [], []>} : vector<32x64xbf16>, vector<64x32xbf16>, vector<32x32xf32> -> vector<32x32xf32>
    %706 = arith.addf %699, %705 : vector<32x32xf32>
    %707 = vector.extract_strided_slice %677 {offsets = [0, 1, 1, 0], sizes = [2, 4, 4, 64], strides = [1, 1, 1, 1]} : vector<2x6x6x64xf32> to vector<2x4x4x64xf32>
    %708 = vector.shape_cast %707 : vector<2x4x4x64xf32> to vector<32x64xf32>
    %709 = arith.truncf %708 : vector<32x64xf32> to vector<32x64xbf16>
    %c4_485 = arith.constant 4 : index
    %c0_486 = arith.constant 0 : index
    %c0_487 = arith.constant 0 : index
    %710 = vector.load %arg5[%c4_485, %c0_486, %c0_487] : memref<9x64x32xbf16, #tpu.memory_space<vmem>>, vector<1x64x32xbf16>
    %711 = vector.shape_cast %710 : vector<1x64x32xbf16> to vector<64x32xbf16>
    %cst_488 = arith.constant dense<0.000000e+00> : vector<32x32xf32>
    %712 = tpu.matmul %709, %711, %cst_488 {dimension_numbers = #tpu.dot_dimension_numbers<[1], [0], [0], [1], [0, 0, 1, 1], [], []>} : vector<32x64xbf16>, vector<64x32xbf16>, vector<32x32xf32> -> vector<32x32xf32>
    %713 = arith.addf %706, %712 : vector<32x32xf32>
    %714 = vector.extract_strided_slice %677 {offsets = [0, 1, 2, 0], sizes = [2, 4, 4, 64], strides = [1, 1, 1, 1]} : vector<2x6x6x64xf32> to vector<2x4x4x64xf32>
    %715 = vector.shape_cast %714 : vector<2x4x4x64xf32> to vector<32x64xf32>
    %716 = arith.truncf %715 : vector<32x64xf32> to vector<32x64xbf16>
    %c5_489 = arith.constant 5 : index
    %c0_490 = arith.constant 0 : index
    %c0_491 = arith.constant 0 : index
    %717 = vector.load %arg5[%c5_489, %c0_490, %c0_491] : memref<9x64x32xbf16, #tpu.memory_space<vmem>>, vector<1x64x32xbf16>
    %718 = vector.shape_cast %717 : vector<1x64x32xbf16> to vector<64x32xbf16>
    %cst_492 = arith.constant dense<0.000000e+00> : vector<32x32xf32>
    %719 = tpu.matmul %716, %718, %cst_492 {dimension_numbers = #tpu.dot_dimension_numbers<[1], [0], [0], [1], [0, 0, 1, 1], [], []>} : vector<32x64xbf16>, vector<64x32xbf16>, vector<32x32xf32> -> vector<32x32xf32>
    %720 = arith.addf %713, %719 : vector<32x32xf32>
    %721 = vector.extract_strided_slice %677 {offsets = [0, 2, 0, 0], sizes = [2, 4, 4, 64], strides = [1, 1, 1, 1]} : vector<2x6x6x64xf32> to vector<2x4x4x64xf32>
    %722 = vector.shape_cast %721 : vector<2x4x4x64xf32> to vector<32x64xf32>
    %723 = arith.truncf %722 : vector<32x64xf32> to vector<32x64xbf16>
    %c6_493 = arith.constant 6 : index
    %c0_494 = arith.constant 0 : index
    %c0_495 = arith.constant 0 : index
    %724 = vector.load %arg5[%c6_493, %c0_494, %c0_495] : memref<9x64x32xbf16, #tpu.memory_space<vmem>>, vector<1x64x32xbf16>
    %725 = vector.shape_cast %724 : vector<1x64x32xbf16> to vector<64x32xbf16>
    %cst_496 = arith.constant dense<0.000000e+00> : vector<32x32xf32>
    %726 = tpu.matmul %723, %725, %cst_496 {dimension_numbers = #tpu.dot_dimension_numbers<[1], [0], [0], [1], [0, 0, 1, 1], [], []>} : vector<32x64xbf16>, vector<64x32xbf16>, vector<32x32xf32> -> vector<32x32xf32>
    %727 = arith.addf %720, %726 : vector<32x32xf32>
    %728 = vector.extract_strided_slice %677 {offsets = [0, 2, 1, 0], sizes = [2, 4, 4, 64], strides = [1, 1, 1, 1]} : vector<2x6x6x64xf32> to vector<2x4x4x64xf32>
    %729 = vector.shape_cast %728 : vector<2x4x4x64xf32> to vector<32x64xf32>
    %730 = arith.truncf %729 : vector<32x64xf32> to vector<32x64xbf16>
    %c7_497 = arith.constant 7 : index
    %c0_498 = arith.constant 0 : index
    %c0_499 = arith.constant 0 : index
    %731 = vector.load %arg5[%c7_497, %c0_498, %c0_499] : memref<9x64x32xbf16, #tpu.memory_space<vmem>>, vector<1x64x32xbf16>
    %732 = vector.shape_cast %731 : vector<1x64x32xbf16> to vector<64x32xbf16>
    %cst_500 = arith.constant dense<0.000000e+00> : vector<32x32xf32>
    %733 = tpu.matmul %730, %732, %cst_500 {dimension_numbers = #tpu.dot_dimension_numbers<[1], [0], [0], [1], [0, 0, 1, 1], [], []>} : vector<32x64xbf16>, vector<64x32xbf16>, vector<32x32xf32> -> vector<32x32xf32>
    %734 = arith.addf %727, %733 : vector<32x32xf32>
    %735 = vector.extract_strided_slice %677 {offsets = [0, 2, 2, 0], sizes = [2, 4, 4, 64], strides = [1, 1, 1, 1]} : vector<2x6x6x64xf32> to vector<2x4x4x64xf32>
    %736 = vector.shape_cast %735 : vector<2x4x4x64xf32> to vector<32x64xf32>
    %737 = arith.truncf %736 : vector<32x64xf32> to vector<32x64xbf16>
    %c8_501 = arith.constant 8 : index
    %c0_502 = arith.constant 0 : index
    %c0_503 = arith.constant 0 : index
    %738 = vector.load %arg5[%c8_501, %c0_502, %c0_503] : memref<9x64x32xbf16, #tpu.memory_space<vmem>>, vector<1x64x32xbf16>
    %739 = vector.shape_cast %738 : vector<1x64x32xbf16> to vector<64x32xbf16>
    %cst_504 = arith.constant dense<0.000000e+00> : vector<32x32xf32>
    %740 = tpu.matmul %737, %739, %cst_504 {dimension_numbers = #tpu.dot_dimension_numbers<[1], [0], [0], [1], [0, 0, 1, 1], [], []>} : vector<32x64xbf16>, vector<64x32xbf16>, vector<32x32xf32> -> vector<32x32xf32>
    %741 = arith.addf %734, %740 : vector<32x32xf32>
    %c0_505 = arith.constant 0 : index
    %c0_506 = arith.constant 0 : index
    %742 = vector.load %arg6[%c0_505, %c0_506] : memref<2x32xf32, #tpu.memory_space<vmem>>, vector<2x32xf32>
    %743 = vector.extract_strided_slice %742 {offsets = [0, 0], sizes = [1, 32], strides = [1, 1]} : vector<2x32xf32> to vector<1x32xf32>
    %744 = vector.broadcast %743 : vector<1x32xf32> to vector<32x32xf32>
    %745 = arith.mulf %741, %744 : vector<32x32xf32>
    %746 = vector.extract_strided_slice %742 {offsets = [1, 0], sizes = [1, 32], strides = [1, 1]} : vector<2x32xf32> to vector<1x32xf32>
    %747 = vector.broadcast %746 : vector<1x32xf32> to vector<32x32xf32>
    %748 = arith.addf %745, %747 : vector<32x32xf32>
    %c0_507 = arith.constant 0 : index
    %c0_508 = arith.constant 0 : index
    %749 = vector.load %arg9[%c0_507, %c0_508] : memref<32x32xf32, #tpu.memory_space<vmem>>, vector<32x32xf32>
    tpu.vector_store %arg9[%c0_507, %c0_508], %748 {strides = array<i32>} : memref<32x32xf32, #tpu.memory_space<vmem>>, vector<32x32xf32>,
    return
  }
}

</mosaic_0001>

<bundles_post_ra>
// kernel: resnet_unet_encoder_forward.1
= control target key start
LH: loop header
LB: loop body
LE: loop exit
PB: predicated region body
PF: predicated region fallthrough
CT: control target
= control target key end

     0   :  { %15 = vsyncpa [#allocation5], 0  ;;  %s12895_s0 = inlined_call_operand.vmem [shape: bf16[128,256], index: 0, kind: input, shape index: {}]   ;;  %s12896_s1 = inlined_call_operand.vmem [shape: bf16[256,64], index: 1, kind: input, shape index: {}]   ;;  %s12897_s2 = inlined_call_operand.vmem [shape: f32[2,64], index: 2, kind: input, shape index: {}]   ;;  %s12898_s3 = inlined_call_operand.vmem [shape: bf16[6,9,64,64], index: 3, kind: input, shape index: {}]   ;;  %s12899_s4 = inlined_call_operand.vmem [shape: f32[6,2,64], index: 4, kind: input, shape index: {}]   ;;  %s12900_s5 = inlined_call_operand.vmem [shape: bf16[9,64,32], index: 5, kind: input, shape index: {}]   ;;  %s12901_s6 = inlined_call_operand.vmem [shape: f32[2,32], index: 6, kind: input, shape index: {}]   ;;  %s12902_s7 = inlined_call_operand.hbm [shape: f32[128,64], index: 7, kind: output, shape index: {0}]   ;;  %s12903_s8 = inlined_call_operand.hbm [shape: f32[32,64], index: 8, kind: output, shape index: {1}]   ;;  %s12904_s9 = inlined_call_operand.hbm [shape: f32[32,32], index: 9, kind: output, shape index: {2}]  }
   0x1   :  { %v9508_v0 = vld [vmem:[%s12896_s1 + $0x38] sm:$0xff]  ;;  %v9507_v2 = vld [vmem:[%s12896_s1 + $0x30] sm:$0xff]  ;;  %v9506_v4 = vld [vmem:[%s12896_s1 + $0x28] sm:$0xff] }
   0x2   :  { %v9516_v1 = vld [vmem:[%s12896_s1 + $0x78] sm:$0xff]  ;;  %256 = vmatpush.bf16.msra.mxu0 %v9508_v0  ;;  %v9515_v3 = vld [vmem:[%s12896_s1 + $0x70] sm:$0xff]  ;;  %v9514_v5 = vld [vmem:[%s12896_s1 + $0x68] sm:$0xff] }
   0x3   :  { %305 = vmatpush.bf16.msra.mxu1 %v9516_v1 }
   0x6   :  { %257 = vmatpush.bf16.msra.mxu0 %v9507_v2 }
   0x7   :  { %306 = vmatpush.bf16.msra.mxu1 %v9515_v3 }
   0x8   :  { %16 = vsyncpa [#allocation7], 0  ;;  %v9505_v6 = vld [vmem:[%s12896_s1 + $0x20] sm:$0xff]  ;;  %v9504_v8 = vld [vmem:[%s12896_s1 + $0x18] sm:$0xff]  ;;  %vm405_vm0 = vcmask 523264   ;;  %vm423_vm1 = vcmask 517120  }
   0x9   :  { %v9513_v7 = vld [vmem:[%s12896_s1 + $0x60] sm:$0xff]  ;;  %v9512_v9 = vld [vmem:[%s12896_s1 + $0x58] sm:$0xff]  ;;  %v9503_v10 = vld [vmem:[%s12896_s1 + $0x10] sm:$0xff]  ;;  %v9855_v58 = vmov 0.0   ;;  %vm480_vm2 = vcmask 521216   ;;  %vm540_vm3 = vcmask 516096  }
   0xa   :  { %258 = vmatpush.bf16.msra.mxu0 %v9506_v4  ;;  %v9511_v11 = vld [vmem:[%s12896_s1 + $0x50] sm:$0xff]  ;;  %v9502_v12 = vld [vmem:[%s12896_s1 + $0x8] sm:$0xff]  ;;  %v9501_v14 = vld [vmem:[%s12896_s1] sm:$0xff]  ;;  %422 = vst.msk [vmem:[#allocation2] sm:$0xff] %vm405_vm0, %v9855_v58  ;;  %vm543_vm4 = vcmask 518146   ;;  %vm546_vm5 = vcmask 520196  }
   0xb   :  { %307 = vmatpush.bf16.msra.mxu1 %v9514_v5  ;;  %v9510_v13 = vld [vmem:[%s12896_s1 + $0x48] sm:$0xff]  ;;  %v9509_v15 = vld [vmem:[%s12896_s1 + $0x40] sm:$0xff]  ;;  %v7572_v22 = vld [vmem:[%s12895_s0 + $0x10] sm:$0xf]  ;;  %424 = vst.msk [vmem:[#allocation2 + $0x8] sm:$0x3] %vm423_vm1, %v9855_v58 }
   0xc   :  { %v7564_v16 = vld [vmem:[%s12895_s0] sm:$0xf]  ;;  %v9486_v17 = vld [vmem:[%s12895_s0 + $0x4] sm:$0xf0]  ;;  %v9485_v18 = vld [vmem:[%s12895_s0 + $0x4] sm:$0xf] }
   0xd   :  { %v7566_v19 = vld [vmem:[%s12895_s0 + $0x8] sm:$0xf0]  ;;  %v7565_v20 = vor.u32 %v9486_v17, %v7564_v16  ;;  %v9488_v23 = vld [vmem:[%s12895_s0 + $0x14] sm:$0xf0]  ;;  %v9487_v24 = vld [vmem:[%s12895_s0 + $0x14] sm:$0xf] }
   0xe   :  { %259 = vmatpush.bf16.msra.mxu0 %v9505_v6  ;;  %v7569_v21 = vor.u32 %v9485_v18, %v7566_v19  ;;  %v7574_v25 = vld [vmem:[%s12895_s0 + $0x18] sm:$0xf0]  ;;  %v7573_v26 = vor.u32 %v9488_v23, %v7572_v22  ;;  %v7580_v28 = vld [vmem:[%s12895_s0 + $0x20] sm:$0xf]  ;;  %v9490_v29 = vld [vmem:[%s12895_s0 + $0x24] sm:$0xf0] }
   0xf   :  { %308 = vmatpush.bf16.msra.mxu1 %v9513_v7  ;;  %v7577_v27 = vor.u32 %v9487_v24, %v7574_v25  ;;  %v9489_v30 = vld [vmem:[%s12895_s0 + $0x24] sm:$0xf]  ;;  %v7582_v31 = vld [vmem:[%s12895_s0 + $0x28] sm:$0xf0]  ;;  %v7581_v32 = vor.u32 %v9490_v29, %v7580_v28  ;;  %v7588_v34 = vld [vmem:[%s12895_s0 + $0x30] sm:$0xf] }
  0x10   :  { %v7585_v33 = vor.u32 %v9489_v30, %v7582_v31  ;;  %v9492_v35 = vld [vmem:[%s12895_s0 + $0x34] sm:$0xf0]  ;;  %v9491_v36 = vld [vmem:[%s12895_s0 + $0x34] sm:$0xf]  ;;  %v7590_v37 = vld [vmem:[%s12895_s0 + $0x38] sm:$0xf0] }
  0x11   :  { %v7589_v38 = vor.u32 %v9492_v35, %v7588_v34  ;;  %v7593_v39 = vor.u32 %v9491_v36, %v7590_v37  ;;  %v7596_v40 = vld [vmem:[%s12895_s0 + $0x40] sm:$0xf]  ;;  %v9494_v41 = vld [vmem:[%s12895_s0 + $0x44] sm:$0xf0]  ;;  %v9493_v42 = vld [vmem:[%s12895_s0 + $0x44] sm:$0xf] }
  0x12   :  { %260 = vmatpush.bf16.msra.mxu0 %v9504_v8  ;;  %v7598_v43 = vld [vmem:[%s12895_s0 + $0x48] sm:$0xf0]  ;;  %v7597_v44 = vor.u32 %v9494_v41, %v7596_v40  ;;  %v7604_v46 = vld [vmem:[%s12895_s0 + $0x50] sm:$0xf]  ;;  %v9496_v47 = vld [vmem:[%s12895_s0 + $0x54] sm:$0xf0] }
  0x13   :  { %309 = vmatpush.bf16.msra.mxu1 %v9512_v9  ;;  %v7601_v45 = vor.u32 %v9493_v42, %v7598_v43  ;;  %v9495_v48 = vld [vmem:[%s12895_s0 + $0x54] sm:$0xf]  ;;  %v7606_v49 = vld [vmem:[%s12895_s0 + $0x58] sm:$0xf0]  ;;  %v7605_v50 = vor.u32 %v9496_v47, %v7604_v46  ;;  %v7612_v52 = vld [vmem:[%s12895_s0 + $0x60] sm:$0xf] }
  0x14   :  { %v7609_v51 = vor.u32 %v9495_v48, %v7606_v49  ;;  %v9498_v53 = vld [vmem:[%s12895_s0 + $0x64] sm:$0xf0]  ;;  %v9497_v54 = vld [vmem:[%s12895_s0 + $0x64] sm:$0xf]  ;;  %v7614_v55 = vld [vmem:[%s12895_s0 + $0x68] sm:$0xf0] }
  0x15   :  { %v7613_v56 = vor.u32 %v9498_v53, %v7612_v52  ;;  %v7617_v57 = vor.u32 %v9497_v54, %v7614_v55  ;;  %425 = vst.msk [vmem:[#allocation2 + $0x10] sm:$0xff] %vm405_vm0, %v9855_v58  ;;  %v7620_v59 = vld [vmem:[%s12895_s0 + $0x70] sm:$0xf]  ;;  %v9500_v60 = vld [vmem:[%s12895_s0 + $0x74] sm:$0xf0]  ;;  %vm557_vm6 = vcmask 522246  }
  0x16   :  { %261 = vmatpush.bf16.msra.mxu0 %v9503_v10  ;;  %426 = vst.msk [vmem:[#allocation2 + $0x18] sm:$0x3] %vm423_vm1, %v9855_v58  ;;  %v9499_v61 = vld [vmem:[%s12895_s0 + $0x74] sm:$0xf]  ;;  %v7622_v62 = vld [vmem:[%s12895_s0 + $0x78] sm:$0xf0]  ;;  %v7621_v63 = vor.u32 %v9500_v60, %v7620_v59 }
  0x17   :  { %310 = vmatpush.bf16.msra.mxu1 %v9511_v11  ;;  %427 = vst.msk [vmem:[#allocation2 + $0x20] sm:$0xff] %vm405_vm0, %v9855_v58  ;;  %v7625_v0 = vor.u32 %v9499_v61, %v7622_v62  ;;  %v354_v1 = vld [vmem:[%s12897_s2] sm:$0x3]  ;;  %v494_v22 = vld [vmem:[#allocation2 + $0x8] sm:$0x3]  ;;  %vm821_vm7 = vcmask 1042432  }
  0x18   :  { %428 = vst.msk [vmem:[#allocation2 + $0x28] sm:$0x3] %vm423_vm1, %v9855_v58  ;;  %v10100_v2 = vperm.slane %v354_v1, 0  ;;  %v10106_v6 = vperm.slane %v354_v1, 1  ;;  %v510_v28 = vsel %vm423_vm1, %v494_v22, -inf  ;;  %vm822_vm8 = vcmask 1046532  }
  0x19   :  { %429 = vst.msk [vmem:[#allocation2 + $0x30] sm:$0xff] %vm405_vm0, %v9855_v58  ;;  %vm10187_vm9 = vmor %vm821_vm7, %vm822_vm8  ;;  %vm988_vm10 = vcmask 1041408   ;;  %vm989_vm11 = vcmask 1045508   ;;  %vm1699_vm13 = vcmask 519168   ;;  %s7528_s25 = sshll.u32 %s12903_s8, 4  ;;  %s9856_s26 = smov [#allocation6]   ;;  %s7529_s25 = int_to_ptr.hbm [resolvable:$true] %s7528_s25 }
  0x1a   :  { %262 = vmatpush.bf16.msra.mxu0 %v9502_v12  ;;  %430 = vst.msk [vmem:[#allocation2 + $0x38] sm:$0x3] %vm423_vm1, %v9855_v58  ;;  %vm10200_vm12 = vmor %vm988_vm10, %vm989_vm11  ;;  %s7526_s27 = sshll.u32 %s9856_s26, 4  ;;  %s9858_s1 = smov 8   ;;  %vm7504_vm14 = vcmask 261120   ;;  %s7527_s27 = int_to_ptr.vmem [resolvable:$true] %s7526_s27 }
  0x1b   :  { %311 = vmatpush.bf16.msra.mxu1 %v9510_v13  ;;  %431 = vst.msk [vmem:[#allocation2 + $0x40] sm:$0xff] %vm405_vm0, %v9855_v58  ;;  %s7515_s10 = sshll.u32 %s12902_s7, 4  ;;  %s7541_s14 = sshll.u32 %s12904_s9, 4  ;;  %s7516_s10 = int_to_ptr.hbm [resolvable:$true] %s7515_s10  ;;  %s7542_s14 = int_to_ptr.hbm [resolvable:$true] %s7541_s14 }
  0x1c   :  { %432 = vst.msk [vmem:[#allocation2 + $0x48] sm:$0x3] %vm423_vm1, %v9855_v58 }
  0x1d   :  { %433 = vst.msk [vmem:[#allocation2 + $0x50] sm:$0xff] %vm405_vm0, %v9855_v58 }
  0x1e   :  { %263 = vmatpush.bf16.msra.mxu0 %v9501_v14  ;;  %434 = vst.msk [vmem:[#allocation2 + $0x58] sm:$0x3] %vm423_vm1, %v9855_v58 }
  0x1f   :  { %312 = vmatpush.bf16.msra.mxu1 %v9509_v15  ;;  %435 = vst.msk [vmem:[#allocation2 + $0x60] sm:$0xff] %vm405_vm0, %v9855_v58 }
  0x20   :  { %436 = vst.msk [vmem:[#allocation2 + $0x68] sm:$0x3] %vm423_vm1, %v9855_v58 }
  0x21   :  { %264 = vmatmul.bf16.vlgmr.msra.gmra.mxu0 %v7565_v20  ;;  %437 = vst.msk [vmem:[#allocation2 + $0x70] sm:$0xff] %vm405_vm0, %v9855_v58  ;;  %v493_v20 = vld [vmem:[#allocation2] sm:$0xff] }
  0x22   :  { %313 = vmatmul.bf16.vlgmr.msra.gmra.mxu1 %v7569_v21  ;;  %438 = vst.msk [vmem:[#allocation2 + $0x78] sm:$0x3] %vm423_vm1, %v9855_v58  ;;  %v505_v25 = vsel %vm405_vm0, %v493_v20, -inf }
  0x23   :  { %439 = vst.msk [vmem:[#allocation2 + $0x80] sm:$0xff] %vm405_vm0, %v9855_v58 }
  0x24   :  { %440 = vst.msk [vmem:[#allocation2 + $0x88] sm:$0x3] %vm423_vm1, %v9855_v58 }
  0x25   :  { %443 = vst.msk [vmem:[#allocation2 + $0xa0] sm:$0xff] %vm405_vm0, %v9855_v58 }
  0x26   :  { %444 = vst.msk [vmem:[#allocation2 + $0xa8] sm:$0x3] %vm423_vm1, %v9855_v58 }
  0x27   :  { %445 = vst.msk [vmem:[#allocation2 + $0xb0] sm:$0xff] %vm405_vm0, %v9855_v58 }
  0x28   :  { %446 = vst.msk [vmem:[#allocation2 + $0xb8] sm:$0x3] %vm423_vm1, %v9855_v58 }
  0x29   :  { %447 = vst.msk [vmem:[#allocation2 + $0xc0] sm:$0xff] %vm405_vm0, %v9855_v58 }
  0x2a   :  { %448 = vst.msk [vmem:[#allocation2 + $0xc8] sm:$0x3] %vm423_vm1, %v9855_v58 }
  0x2b   :  { %449 = vst.msk [vmem:[#allocation2 + $0xd0] sm:$0xff] %vm405_vm0, %v9855_v58 }
  0x2c   :  { %450 = vst.msk [vmem:[#allocation2 + $0xd8] sm:$0x3] %vm423_vm1, %v9855_v58 }
  0x2d   :  { %451 = vst.msk [vmem:[#allocation2 + $0xe0] sm:$0xff] %vm405_vm0, %v9855_v58 }
  0x2e   :  { %452 = vst.msk [vmem:[#allocation2 + $0xe8] sm:$0x3] %vm423_vm1, %v9855_v58 }
  0x2f   :  { %453 = vst.msk [vmem:[#allocation2 + $0xf0] sm:$0xff] %vm405_vm0, %v9855_v58 }
  0x30   :  { %454 = vst.msk [vmem:[#allocation2 + $0xf8] sm:$0x3] %vm423_vm1, %v9855_v58 }
  0x31   :  { %269 = vmatmul.bf16.gmra.mxu0 %v7573_v26  ;;  %455 = vst.msk [vmem:[#allocation2 + $0x100] sm:$0xff] %vm405_vm0, %v9855_v58 }
  0x32   :  { %318 = vmatmul.bf16.gmra.mxu1 %v7577_v27  ;;  %456 = vst.msk [vmem:[#allocation2 + $0x108] sm:$0x3] %vm423_vm1, %v9855_v58 }
  0x33   :  { %457 = vst.msk [vmem:[#allocation2 + $0x110] sm:$0xff] %vm405_vm0, %v9855_v58 }
  0x34   :  { %458 = vst.msk [vmem:[#allocation2 + $0x118] sm:$0x3] %vm423_vm1, %v9855_v58 }
  0x35   :  { %459 = vst.msk [vmem:[#allocation2 + $0x120] sm:$0xff] %vm405_vm0, %v9855_v58 }
  0x36   :  { %460 = vst.msk [vmem:[#allocation2 + $0x128] sm:$0x3] %vm423_vm1, %v9855_v58 }
  0x37   :  { %481 = vst.msk [vmem:[#allocation3] sm:$0x3f] %vm480_vm2, %v9855_v58 }
  0x38   :  { %482 = vst.msk [vmem:[#allocation3 + $0x8] sm:$0x3f] %vm480_vm2, %v9855_v58 }
  0x39   :  { %486 = vst.msk [vmem:[#allocation3 + $0x28] sm:$0x3f] %vm480_vm2, %v9855_v58 }
  0x3a   :  { %487 = vst.msk [vmem:[#allocation3 + $0x30] sm:$0x3f] %vm480_vm2, %v9855_v58 }
  0x3b   :  { %492 = vst.msk [vmem:[#allocation3 + $0x58] sm:$0x3f] %vm480_vm2, %v9855_v58 }
  0x3c   :  { %483 = vst.msk [vmem:[#allocation3 + $0x10] sm:$0x3f] %vm480_vm2, %v9855_v58 }
  0x3d   :  { %484 = vst.msk [vmem:[#allocation3 + $0x18] sm:$0x3f] %vm480_vm2, %v9855_v58 }
  0x3e   :  { %485 = vst.msk [vmem:[#allocation3 + $0x20] sm:$0x3f] %vm480_vm2, %v9855_v58 }
  0x3f   :  { %488 = vst.msk [vmem:[#allocation3 + $0x38] sm:$0x3f] %vm480_vm2, %v9855_v58 }
  0x40   :  { %489 = vst.msk [vmem:[#allocation3 + $0x40] sm:$0x3f] %vm480_vm2, %v9855_v58 }
  0x41   :  { %274 = vmatmul.bf16.gmra.mxu0 %v7581_v32  ;;  %490 = vst.msk [vmem:[#allocation3 + $0x48] sm:$0x3f] %vm480_vm2, %v9855_v58 }
  0x42   :  { %323 = vmatmul.bf16.gmra.mxu1 %v7585_v33  ;;  %491 = vst.msk [vmem:[#allocation3 + $0x50] sm:$0x3f] %vm480_vm2, %v9855_v58 }
  0x51   :  { %279 = vmatmul.bf16.gmra.mxu0 %v7589_v38 }
  0x52   :  { %328 = vmatmul.bf16.gmra.mxu1 %v7593_v39  ;;  %v760_v39 = vld [vmem:[#allocation3] sm:$0x3f] }
  0x53   :  { %780 = vst [vmem:[#allocation1] ss:$2 sm:$0xff] %v760_v39  ;;  %v7690_v54 = vrot.slane %v760_v39, 9 }
  0x61   :  { %284 = vmatmul.bf16.gmra.mxu0 %v7597_v44 }
  0x62   :  { %333 = vmatmul.bf16.gmra.mxu1 %v7601_v45 }
  0x71   :  { %289 = vmatmul.bf16.gmra.mxu0 %v7605_v50 }
  0x72   :  { %338 = vmatmul.bf16.gmra.mxu1 %v7609_v51  ;;  %v813_v51 = vrot.slane %v760_v39, 4 }
  0x74   :  { %v826_v55 = vrot.slane %v813_v51, 5  ;;  %v993_v1 = vrot.slane %v813_v51, 6 }
  0x76   :  { %v827_v58 = vsel %vm10187_vm9, %v7690_v54, %v826_v55 }
  0x81   :  { %294 = vmatmul.bf16.gmra.mxu0 %v7613_v56 }
  0x82   :  { %343 = vmatmul.bf16.gmra.mxu1 %v7617_v57 }
  0x91   :  { %299 = vmatmul.bf16.gmra.mxu0 %v7621_v63 }
  0x92   :  { %348 = vmatmul.bf16.gmra.mxu1 %v7625_v0  ;;  %v7742_v0 = vrot.slane %v760_v39, 10 }
  0x9e   :  { %v265_v3 = vpop.f32.mrf.mxu0 }
  0x9f   :  { %v314_v4 = vpop.f32.mrf.mxu1 }
  0xa0   :  { %v315_v5 = vadd.f32 %v314_v4, %v265_v3 }
  0xa2   :  { %v356_v7 = vmul.f32 %v10100_v2, %v315_v5  ;;  %v994_v5 = vsel %vm10200_vm12, %v7742_v0, %v993_v1 }
  0xa4   :  { %v373_v8 = vadd.f32 %v10106_v6, %v356_v7 }
  0xa6   :  { %v389_v9 = vmax.f32 %v373_v8, 0.0  ;;  %v267_v10 = vpop.f32.mrf.mxu0 }
  0xa7   :  { %v316_v11 = vpop.f32.mrf.mxu1 }
  0xa8   :  { %406 = vst.msk [vmem:[#allocation4] sm:$0xff] %vm405_vm0, %v389_v9  ;;  %v317_v12 = vadd.f32 %v316_v11, %v267_v10 }
  0xa9   :  { %464 = vst.msk [vmem:[#allocation2 + $0x11] sm:$0xff] %vm405_vm0, %v389_v9 }
  0xaa   :  { %v357_v13 = vmul.f32 %v10100_v2, %v317_v12 }
  0xac   :  { %v374_v14 = vadd.f32 %v10106_v6, %v357_v13 }
  0xae   :  { %v390_v15 = vmax.f32 %v374_v14, 0.0  ;;  %v270_v16 = vpop.f32.mrf.mxu0 }
  0xaf   :  { %v319_v17 = vpop.f32.mrf.mxu1 }
  0xb0   :  { %v320_v18 = vadd.f32 %v319_v17, %v270_v16  ;;  %407 = vst.msk [vmem:[#allocation4 + $0x8] sm:$0xff] %vm405_vm0, %v390_v15  ;;  %v495_v21 = vld [vmem:[#allocation2 + $0x10] sm:$0xff]  ;;  %v496_v23 = vld [vmem:[#allocation2 + $0x18] sm:$0x3] }
  0xb1   :  { %465 = vst.msk [vmem:[#allocation2 + $0x21] sm:$0xff] %vm405_vm0, %v390_v15  ;;  %v506_v26 = vsel %vm405_vm0, %v495_v21, -inf  ;;  %v511_v29 = vsel %vm423_vm1, %v496_v23, -inf }
  0xb2   :  { %v358_v19 = vmul.f32 %v10100_v2, %v320_v18  ;;  %v507_v33 = vmax.f32 %v505_v25, %v506_v26  ;;  %v512_v36 = vmax.f32 %v510_v28, %v511_v29 }
  0xb4   :  { %v375_v24 = vadd.f32 %v10106_v6, %v358_v19 }
  0xb6   :  { %v391_v27 = vmax.f32 %v375_v24, 0.0  ;;  %v272_v30 = vpop.f32.mrf.mxu0 }
  0xb7   :  { %v321_v31 = vpop.f32.mrf.mxu1 }
  0xb8   :  { %v322_v32 = vadd.f32 %v321_v31, %v272_v30  ;;  %v497_v34 = vld [vmem:[#allocation2 + $0x20] sm:$0xff]  ;;  %v498_v35 = vld [vmem:[#allocation2 + $0x28] sm:$0x3]  ;;  %408 = vst.msk [vmem:[#allocation4 + $0x10] sm:$0xff] %vm405_vm0, %v391_v27 }
  0xb9   :  { %v10162_v37 = vsel %vm405_vm0, %v497_v34, -inf  ;;  %v513_v38 = vsel %vm423_vm1, %v498_v35, -inf  ;;  %466 = vst.msk [vmem:[#allocation2 + $0x31] sm:$0xff] %vm405_vm0, %v391_v27  ;;  %v562_v17 = vld [vmem:[#allocation2 + $0x28] sm:$0x3] }
  0xba   :  { %v359_v40 = vmul.f32 %v10100_v2, %v322_v32  ;;  %v509_v41 = vmax.f32 %v507_v33, %v10162_v37  ;;  %v514_v42 = vmax.f32 %v512_v36, %v513_v38  ;;  %v578_v23 = vsel %vm423_vm1, %v562_v17, -inf }
  0xbc   :  { %v376_v43 = vadd.f32 %v10106_v6, %v359_v40  ;;  %v527_v44 = vrot.slane %v509_v41, 1  ;;  %v533_v47 = vrot.slane %v509_v41, 2  ;;  %v551_v48 = vrot.slane %v514_v42, 2 }
  0xbe   :  { %v392_v45 = vmax.f32 %v376_v43, 0.0  ;;  %v531_v46 = vmax.f32 %v509_v41, %v527_v44  ;;  %v275_v62 = vpop.f32.mrf.mxu0 }
  0xbf   :  { %v324_v63 = vpop.f32.mrf.mxu1 }
  0xc0   :  { %v537_v49 = vmax.f32 %v531_v46, %v533_v47  ;;  %v555_v50 = vmax.f32 %v531_v46, %v551_v48  ;;  %409 = vst.msk [vmem:[#allocation4 + $0x18] sm:$0xff] %vm405_vm0, %v392_v45  ;;  %v563_v15 = vld [vmem:[#allocation2 + $0x30] sm:$0xff]  ;;  %v564_v16 = vld [vmem:[#allocation2 + $0x38] sm:$0x3]  ;;  %v325_v22 = vadd.f32 %v324_v63, %v275_v62  ;;  %v9519_v62 = vld [vmem:[%s12898_s3 + $0x10] sm:$0xff] }
  0xc1   :  { %467 = vst.msk [vmem:[#allocation2 + $0x41] sm:$0xff] %vm405_vm0, %v392_v45  ;;  %v574_v18 = vsel %vm405_vm0, %v563_v15, -inf  ;;  %v579_v19 = vsel %vm423_vm1, %v564_v16, -inf  ;;  %v9524_v16 = vld [vmem:[%s12898_s3 + $0x38] sm:$0xff] }
  0xc2   :  { %541 = vst.msk [vmem:[#allocation3 + $0x9] sm:$0x1] %vm540_vm3, %v537_v49  ;;  %v575_v24 = vmax.f32 %v10162_v37, %v574_v18  ;;  %v580_v27 = vmax.f32 %v578_v23, %v579_v19  ;;  %v360_v32 = vmul.f32 %v10100_v2, %v325_v22  ;;  %924 = vmatpush.bf16.msra.mxu2 %v9524_v16  ;;  %v9521_v16 = vld [vmem:[%s12898_s3 + $0x20] sm:$0xff] }
  0xc3   :  { %544 = vst.msk [vmem:[#allocation3 + $0x8] sm:$0x4] %vm543_vm4, %v537_v49 }
  0xc4   :  { %547 = vst.msk [vmem:[#allocation3 + $0x7] sm:$0x10] %vm546_vm5, %v537_v49  ;;  %v377_v38 = vadd.f32 %v10106_v6, %v360_v32  ;;  %v9523_v32 = vld [vmem:[%s12898_s3 + $0x30] sm:$0xff] }
  0xc5   :  { %558 = vst.msk [vmem:[#allocation3 + $0x6] sm:$0x40] %vm557_vm6, %v555_v50 }
  0xc6   :  { %v277_v10 = vpop.f32.mrf.mxu0  ;;  %v393_v43 = vmax.f32 %v377_v38, 0.0  ;;  %925 = vmatpush.bf16.msra.mxu2 %v9523_v32 }
  0xc7   :  { %v326_v11 = vpop.f32.mrf.mxu1 }
  0xc8   :  { %v565_v20 = vld [vmem:[#allocation2 + $0x40] sm:$0xff]  ;;  %v566_v21 = vld [vmem:[#allocation2 + $0x48] sm:$0x3]  ;;  %v327_v33 = vadd.f32 %v326_v11, %v277_v10  ;;  %410 = vst.msk [vmem:[#allocation4 + $0x20] sm:$0xff] %vm405_vm0, %v393_v43 }
  0xc9   :  { %v10220_v28 = vsel %vm405_vm0, %v565_v20, -inf  ;;  %v581_v29 = vsel %vm423_vm1, %v566_v21, -inf  ;;  %468 = vst.msk [vmem:[#allocation2 + $0x51] sm:$0xff] %vm405_vm0, %v393_v43  ;;  %v9517_v43 = vld [vmem:[%s12898_s3] sm:$0xff] }
  0xca   :  { %v577_v30 = vmax.f32 %v575_v24, %v10220_v28  ;;  %v582_v31 = vmax.f32 %v580_v27, %v581_v29  ;;  %v361_v37 = vmul.f32 %v10100_v2, %v327_v33  ;;  %v9518_v27 = vld [vmem:[%s12898_s3 + $0x8] sm:$0xff] }
  0xcc   :  { %v761_v52 = vld [vmem:[#allocation3 + $0x8] sm:$0x3f]  ;;  %v595_v35 = vrot.slane %v577_v30, 1  ;;  %v601_v41 = vrot.slane %v577_v30, 2  ;;  %v616_v42 = vrot.slane %v582_v31, 2  ;;  %v378_v44 = vadd.f32 %v10106_v6, %v361_v37 }
  0xcd   :  { %782 = vst [vmem:[#allocation1 + $0x1] ss:$2 sm:$0xff] %v761_v52  ;;  %v814_v53 = vrot.slane %v761_v52, 4  ;;  %v7691_v59 = vrot.slane %v761_v52, 9  ;;  %v7743_v7 = vrot.slane %v761_v52, 10 }
  0xce   :  { %v280_v13 = vpop.f32.mrf.mxu0  ;;  %v599_v40 = vmax.f32 %v577_v30, %v595_v35  ;;  %v394_v51 = vmax.f32 %v378_v44, 0.0 }
  0xcf   :  { %v830_v57 = vrot.slane %v814_v53, 5  ;;  %v997_v4 = vrot.slane %v814_v53, 6  ;;  %v329_v14 = vpop.f32.mrf.mxu1 }
  0xd0   :  { %v330_v34 = vadd.f32 %v329_v14, %v280_v13  ;;  %v605_v46 = vmax.f32 %v599_v40, %v601_v41  ;;  %v620_v47 = vmax.f32 %v599_v40, %v616_v42  ;;  %411 = vst.msk [vmem:[#allocation4 + $0x28] sm:$0xff] %vm405_vm0, %v394_v51  ;;  %v627_v11 = vld [vmem:[#allocation2 + $0x50] sm:$0xff]  ;;  %v628_v14 = vld [vmem:[#allocation2 + $0x58] sm:$0x3] }
  0xd1   :  { %v10197_v61 = vsel %vm10187_vm9, %v7691_v59, %v830_v57  ;;  %v10210_v9 = vsel %vm10200_vm12, %v7743_v7, %v997_v4  ;;  %v9520_v57 = vld [vmem:[%s12898_s3 + $0x18] sm:$0xff]  ;;  %469 = vst.msk [vmem:[#allocation2 + $0x61] sm:$0xff] %vm405_vm0, %v394_v51  ;;  %v626_v4 = vld [vmem:[#allocation2 + $0x48] sm:$0x3]  ;;  %v638_v15 = vsel %vm405_vm0, %v627_v11, -inf  ;;  %v643_v19 = vsel %vm423_vm1, %v628_v14, -inf }
  0xd2   :  { %v362_v39 = vmul.f32 %v10100_v2, %v330_v34  ;;  %608 = vst.msk [vmem:[#allocation3 + $0x11] sm:$0x1] %vm540_vm3, %v605_v46  ;;  %973 = vmatpush.bf16.msra.mxu3 %v9520_v57  ;;  %v642_v17 = vsel %vm423_vm1, %v626_v4, -inf  ;;  %v639_v18 = vmax.f32 %v10220_v28, %v638_v15  ;;  %v500_v4 = vld [vmem:[#allocation2 + $0xa8] sm:$0x3] }
  0xd3   :  { %610 = vst.msk [vmem:[#allocation3 + $0x10] sm:$0x4] %vm543_vm4, %v605_v46  ;;  %v644_v22 = vmax.f32 %v642_v17, %v643_v19 }
  0xd4   :  { %v10193_v60 = vld.sshfl [vmem:[#allocation1] sm:$0xff pattern:$0x75316420]  ;;  %v379_v48 = vadd.f32 %v10106_v6, %v362_v39  ;;  %612 = vst.msk [vmem:[#allocation3 + $0xf] sm:$0x10] %vm546_vm5, %v605_v46 }
  0xd5   :  { %856 = vst [vmem:[#allocation1] ss:$2 sm:$0xff] %v827_v58 }
  0xd6   :  { %858 = vst [vmem:[#allocation1 + $0x1] ss:$2 sm:$0xff] %v10197_v61  ;;  %v282_v25 = vpop.f32.mrf.mxu0  ;;  %v395_v54 = vmax.f32 %v379_v48, 0.0  ;;  %974 = vmatpush.bf16.msra.mxu3 %v9519_v62  ;;  %v499_v48 = vld [vmem:[#allocation2 + $0xa0] sm:$0xff] }
  0xd7   :  { %v331_v26 = vpop.f32.mrf.mxu1  ;;  %622 = vst.msk [vmem:[#allocation3 + $0xe] sm:$0x40] %vm557_vm6, %v620_v47  ;;  %v515_v11 = vsel %vm405_vm0, %v499_v48, -inf }
  0xd8   :  { %v332_v36 = vadd.f32 %v331_v26, %v282_v25  ;;  %412 = vst.msk [vmem:[#allocation4 + $0x30] sm:$0xff] %vm405_vm0, %v395_v54  ;;  %v629_v20 = vld [vmem:[#allocation2 + $0x60] sm:$0xff]  ;;  %v630_v21 = vld [vmem:[#allocation2 + $0x68] sm:$0x3] }
  0xd9   :  { %470 = vst.msk [vmem:[#allocation2 + $0x71] sm:$0xff] %vm405_vm0, %v395_v54  ;;  %v640_v23 = vsel %vm405_vm0, %v629_v20, -inf  ;;  %v645_v24 = vsel %vm423_vm1, %v630_v21, -inf  ;;  %v690_v25 = vld [vmem:[#allocation2 + $0x68] sm:$0x3]  ;;  %v9522_v54 = vld [vmem:[%s12898_s3 + $0x28] sm:$0xff] }
  0xda   :  { %v363_v45 = vmul.f32 %v10100_v2, %v332_v36  ;;  %v641_v29 = vmax.f32 %v639_v18, %v640_v23  ;;  %v646_v33 = vmax.f32 %v644_v22, %v645_v24  ;;  %975 = vmatpush.bf16.msra.mxu3 %v9518_v27  ;;  %926 = vmatpush.bf16.msra.mxu2 %v9522_v54  ;;  %v520_v22 = vsel %vm423_vm1, %v500_v4, -inf }
  0xdc   :  { %v659_v39 = vrot.slane %v641_v29, 1  ;;  %v665_v51 = vrot.slane %v641_v29, 2  ;;  %v680_v57 = vrot.slane %v646_v33, 2 }
  0xdd   :  { %v10206_v8 = vld.sshfl [vmem:[#allocation1] sm:$0xff pattern:$0x75316420] }
  0xde   :  { %1023 = vst [vmem:[#allocation1] ss:$2 sm:$0xff] %v994_v5  ;;  %v285_v49 = vpop.f32.mrf.mxu0  ;;  %v10251_v5 = vld [vmem:[#allocation3 + $0x10] sm:$0x3f]  ;;  %976 = vmatpush.bf16.msra.mxu3 %v9517_v43  ;;  %927 = vmatpush.bf16.msra.mxu2 %v9521_v16 }
  0xdf   :  { %1025 = vst [vmem:[#allocation1 + $0x1] ss:$2 sm:$0xff] %v10210_v9  ;;  %v334_v50 = vpop.f32.mrf.mxu1  ;;  %v815_v10 = vrot.slane %v10251_v5, 4  ;;  %v7692_v44 = vrot.slane %v10251_v5, 9 }
  0xe0   :  { %v335_v53 = vadd.f32 %v334_v50, %v285_v49  ;;  %784 = vst [vmem:[#allocation1 + $0x10] ss:$2 sm:$0xff] %v10251_v5  ;;  %v691_v30 = vld [vmem:[#allocation2 + $0x70] sm:$0xff]  ;;  %v692_v31 = vld [vmem:[#allocation2 + $0x78] sm:$0x3]  ;;  %v663_v50 = vmax.f32 %v641_v29, %v659_v39 }
  0xe1   :  { %v834_v28 = vrot.slane %v815_v10, 5  ;;  %v702_v34 = vsel %vm405_vm0, %v691_v30, -inf  ;;  %v707_v35 = vsel %vm423_vm1, %v692_v31, -inf  ;;  %v1001_v17 = vrot.slane %v815_v10, 6 }
  0xe2   :  { %v364_v55 = vmul.f32 %v10100_v2, %v335_v53  ;;  %v703_v40 = vmax.f32 %v640_v23, %v702_v34  ;;  %v7744_v10 = vrot.slane %v10251_v5, 10 }
  0xe4   :  { %v381_v59 = vadd.f32 %v10106_v6, %v364_v55  ;;  %v10296_v55 = vsel %vm10187_vm9, %v7692_v44, %v834_v28  ;;  %v10327_v33 = vsel %vm10200_vm12, %v7744_v10, %v1001_v17 }
  0xe6   :  { %v10213_v12 = vld.sshfl [vmem:[#allocation1] sm:$0xff pattern:$0x75316420]  ;;  %v287_v63 = vpop.f32.mrf.mxu0  ;;  %v397_v7 = vmax.f32 %v381_v59, 0.0  ;;  %v669_v59 = vmax.f32 %v663_v50, %v665_v51 }
  0xe7   :  { %1112 = vst [vmem:[#allocation1] ss:$2 sm:$0xff] %v761_v52  ;;  %v380_v52 = vadd.f32 %v10106_v6, %v363_v45  ;;  %v336_v0 = vpop.f32.mrf.mxu1  ;;  %v706_v45 = vsel %vm423_vm1, %v690_v25, -inf }
  0xe8   :  { %v337_v1 = vadd.f32 %v336_v0, %v287_v63  ;;  %1114 = vst [vmem:[#allocation1 + $0x1] ss:$2 sm:$0xff] %v10251_v5  ;;  %v684_v0 = vmax.f32 %v663_v50, %v680_v57 }
  0xe9   :  { %v396_v58 = vmax.f32 %v380_v52, 0.0  ;;  %414 = vst.msk [vmem:[#allocation4 + $0x40] sm:$0xff] %vm405_vm0, %v397_v7  ;;  %v708_v52 = vmax.f32 %v706_v45, %v707_v35 }
  0xea   :  { %v365_v13 = vmul.f32 %v10100_v2, %v337_v1  ;;  %472 = vst.msk [vmem:[#allocation2 + $0xb1] sm:$0xff] %vm405_vm0, %v397_v7 }
  0xeb   :  { %413 = vst.msk [vmem:[#allocation4 + $0x38] sm:$0xff] %vm405_vm0, %v396_v58 }
  0xec   :  { %471 = vst.msk [vmem:[#allocation2 + $0x81] sm:$0xff] %vm405_vm0, %v396_v58  ;;  %v382_v26 = vadd.f32 %v10106_v6, %v365_v13 }
  0xed   :  { %672 = vst.msk [vmem:[#allocation3 + $0x19] sm:$0x1] %vm540_vm3, %v669_v59 }
  0xee   :  { %v398_v36 = vmax.f32 %v382_v26, 0.0  ;;  %v290_v38 = vpop.f32.mrf.mxu0  ;;  %674 = vst.msk [vmem:[#allocation3 + $0x18] sm:$0x4] %vm543_vm4, %v669_v59 }
  0xef   :  { %v339_v37 = vpop.f32.mrf.mxu1  ;;  %v10288_v49 = vld.sshfl [vmem:[#allocation1] sm:$0xff pattern:$0x75316420]  ;;  %676 = vst.msk [vmem:[#allocation3 + $0x17] sm:$0x10] %vm546_vm5, %v669_v59 }
  0xf0   :  { %415 = vst.msk [vmem:[#allocation4 + $0x48] sm:$0xff] %vm405_vm0, %v398_v36  ;;  %v340_v58 = vadd.f32 %v339_v37, %v290_v38 }
  0xf1   :  { %473 = vst.msk [vmem:[#allocation2 + $0xc1] sm:$0xff] %vm405_vm0, %v398_v36  ;;  %v501_v7 = vld [vmem:[#allocation2 + $0xb0] sm:$0xff]  ;;  %v502_v14 = vld [vmem:[#allocation2 + $0xb8] sm:$0x3] }
  0xf2   :  { %1209 = vst [vmem:[#allocation1] ss:$2 sm:$0xff] %v10197_v61  ;;  %v366_v13 = vmul.f32 %v10100_v2, %v340_v58  ;;  %v516_v15 = vsel %vm405_vm0, %v501_v7, -inf  ;;  %v521_v25 = vsel %vm423_vm1, %v502_v14, -inf }
  0xf3   :  { %v693_v41 = vld [vmem:[#allocation2 + $0x80] sm:$0xff]  ;;  %v694_v42 = vld [vmem:[#allocation2 + $0x88] sm:$0x3]  ;;  %1211 = vst [vmem:[#allocation1 + $0x1] ss:$2 sm:$0xff] %v10296_v55  ;;  %v517_v24 = vmax.f32 %v515_v11, %v516_v15  ;;  %v522_v34 = vmax.f32 %v520_v22, %v521_v25 }
  0xf4   :  { %v704_v46 = vsel %vm405_vm0, %v693_v41, -inf  ;;  %v709_v47 = vsel %vm423_vm1, %v694_v42, -inf  ;;  %v383_v23 = vadd.f32 %v10106_v6, %v366_v13  ;;  %686 = vst.msk [vmem:[#allocation3 + $0x16] sm:$0x40] %vm557_vm6, %v684_v0 }
  0xf5   :  { %v705_v53 = vmax.f32 %v703_v40, %v704_v46  ;;  %v710_v62 = vmax.f32 %v708_v52, %v709_v47 }
  0xf6   :  { %v292_v18 = vpop.f32.mrf.mxu0  ;;  %v399_v35 = vmax.f32 %v383_v23, 0.0 }
  0xf7   :  { %v723_v63 = vrot.slane %v705_v53, 1  ;;  %v729_v1 = vrot.slane %v705_v53, 2  ;;  %v341_v19 = vpop.f32.mrf.mxu1  ;;  %v744_v21 = vrot.slane %v710_v62, 2 }
  0xf8   :  { %v503_v26 = vld [vmem:[#allocation2 + $0xc0] sm:$0xff]  ;;  %v504_v27 = vld [vmem:[#allocation2 + $0xc8] sm:$0x3]  ;;  %v342_v36 = vadd.f32 %v341_v19, %v292_v18  ;;  %416 = vst.msk [vmem:[#allocation4 + $0x50] sm:$0xff] %vm405_vm0, %v399_v35 }
  0xf9   :  { %v727_v61 = vmax.f32 %v705_v53, %v723_v63  ;;  %v10318_v28 = vsel %vm405_vm0, %v503_v26, -inf  ;;  %v523_v32 = vsel %vm423_vm1, %v504_v27, -inf  ;;  %474 = vst.msk [vmem:[#allocation2 + $0xd1] sm:$0xff] %vm405_vm0, %v399_v35 }
  0xfa   :  { %v10320_v29 = vld.sshfl [vmem:[#allocation1] sm:$0xff pattern:$0x75316420]  ;;  %v519_v31 = vmax.f32 %v517_v24, %v10318_v28  ;;  %v524_v37 = vmax.f32 %v522_v34, %v523_v32  ;;  %v568_v34 = vld [vmem:[#allocation2 + $0xc8] sm:$0x3] }
  0xfb   :  { %v733_v20 = vmax.f32 %v727_v61, %v729_v1  ;;  %v748_v30 = vmax.f32 %v727_v61, %v744_v21  ;;  %1304 = vst [vmem:[#allocation1] ss:$2 sm:$0xff] %v10210_v9  ;;  %v10333_v43 = vld [vmem:[#allocation3 + $0x18] sm:$0x3f]  ;;  %v367_v9 = vmul.f32 %v10100_v2, %v342_v36 }
  0xfc   :  { %1306 = vst [vmem:[#allocation1 + $0x1] ss:$2 sm:$0xff] %v10327_v33  ;;  %v528_v38 = vrot.slane %v519_v31, 1  ;;  %v534_v40 = vrot.slane %v519_v31, 2  ;;  %v816_v44 = vrot.slane %v10333_v43, 4  ;;  %v552_v47 = vrot.slane %v524_v37, 2 }
  0xfd   :  { %736 = vst.msk [vmem:[#allocation3 + $0x21] sm:$0x1] %vm540_vm3, %v733_v20  ;;  %v384_v51 = vadd.f32 %v10106_v6, %v367_v9  ;;  %v7693_v54 = vrot.slane %v10333_v43, 9  ;;  %v7745_v19 = vrot.slane %v10333_v43, 10 }
  0xfe   :  { %738 = vst.msk [vmem:[#allocation3 + $0x20] sm:$0x4] %vm543_vm4, %v733_v20  ;;  %v532_v39 = vmax.f32 %v519_v31, %v528_v38  ;;  %v295_v41 = vpop.f32.mrf.mxu0  ;;  %v838_v52 = vrot.slane %v816_v44, 5  ;;  %v1005_v14 = vrot.slane %v816_v44, 6  ;;  %v588_v44 = vsel %vm423_vm1, %v568_v34, -inf }
  0xff   :  { %740 = vst.msk [vmem:[#allocation3 + $0x1f] sm:$0x10] %vm546_vm5, %v733_v20  ;;  %v344_v42 = vpop.f32.mrf.mxu1  ;;  %v400_v62 = vmax.f32 %v384_v51, 0.0 }
 0x100   :  { %750 = vst.msk [vmem:[#allocation3 + $0x1e] sm:$0x40] %vm557_vm6, %v748_v30  ;;  %v538_v45 = vmax.f32 %v532_v39, %v534_v40  ;;  %v345_v46 = vadd.f32 %v344_v42, %v295_v41  ;;  %v556_v50 = vmax.f32 %v532_v39, %v552_v47  ;;  %v10353_v0 = vsel %vm10187_vm9, %v7693_v54, %v838_v52  ;;  %v569_v13 = vld [vmem:[#allocation2 + $0xd0] sm:$0xff]  ;;  %v570_v27 = vld [vmem:[#allocation2 + $0xd8] sm:$0x3] }
 0x101   :  { %786 = vst [vmem:[#allocation1 + $0x11] ss:$2 sm:$0xff] %v10333_v43  ;;  %v584_v20 = vsel %vm405_vm0, %v569_v13, -inf  ;;  %v10381_v24 = vsel %vm10200_vm12, %v7745_v19, %v1005_v14  ;;  %v589_v36 = vsel %vm423_vm1, %v570_v27, -inf }
 0x102   :  { %542 = vst.msk [vmem:[#allocation3 + $0x39] sm:$0x1] %vm540_vm3, %v538_v45  ;;  %v368_v53 = vmul.f32 %v10100_v2, %v345_v46  ;;  %v585_v31 = vmax.f32 %v10318_v28, %v584_v20 }
 0x103   :  { %v10341_v48 = vld.sshfl [vmem:[#allocation1] sm:$0xff pattern:$0x75316420]  ;;  %545 = vst.msk [vmem:[#allocation3 + $0x38] sm:$0x4] %vm543_vm4, %v538_v45 }
 0x104   :  { %1393 = vst [vmem:[#allocation1] ss:$2 sm:$0xff] %v10251_v5  ;;  %v10356_v5 = vld [vmem:[#allocation3 + $0x30] sm:$0x3f]  ;;  %v385_v4 = vadd.f32 %v10106_v6, %v368_v53  ;;  %v590_v53 = vmax.f32 %v588_v44, %v589_v36 }
 0x105   :  { %1395 = vst [vmem:[#allocation1 + $0x1] ss:$2 sm:$0xff] %v10333_v43  ;;  %v817_v15 = vrot.slane %v10356_v5, 4  ;;  %v7694_v25 = vrot.slane %v10356_v5, 9 }
 0x106   :  { %548 = vst.msk [vmem:[#allocation3 + $0x37] sm:$0x10] %vm546_vm5, %v538_v45  ;;  %v297_v57 = vpop.f32.mrf.mxu0  ;;  %v401_v61 = vmax.f32 %v385_v4, 0.0 }
 0x107   :  { %v346_v58 = vpop.f32.mrf.mxu1  ;;  %559 = vst.msk [vmem:[#allocation3 + $0x36] sm:$0x40] %vm557_vm6, %v556_v50  ;;  %v842_v26 = vrot.slane %v817_v15, 5  ;;  %v10407_v9 = vld [vmem:[#allocation3 + $0x20] sm:$0x3f]  ;;  %v1009_v47 = vrot.slane %v817_v15, 6 }
 0x108   :  { %v796_v59 = vld.sshfl [vmem:[#allocation1 + $0x10] sm:$0xff pattern:$0x75316420]  ;;  %v347_v63 = vadd.f32 %v346_v58, %v297_v57  ;;  %788 = vst [vmem:[#allocation1 + $0x20] ss:$2 sm:$0xff] %v10356_v5 }
 0x109   :  { %860 = vst [vmem:[#allocation1 + $0x10] ss:$2 sm:$0xff] %v10296_v55  ;;  %v803_v1 = vpack.c.bf16 %v796_v59, %v10193_v60  ;;  %v843_v37 = vsel %vm10187_vm9, %v7694_v25, %v842_v26 }
 0x10a   :  { %862 = vst [vmem:[#allocation1 + $0x11] ss:$2 sm:$0xff] %v10353_v0  ;;  %v369_v7 = vmul.f32 %v10100_v2, %v347_v63  ;;  %v10421_v63 = vld [vmem:[#allocation3] sm:$0x3f] }
 0x10b   :  { %7740 = vmatmul.msk.bf16.vlgmr.msra.gmra.mxu3 %vm405_vm0, %v803_v1  ;;  %417 = vst.msk [vmem:[#allocation4 + $0x58] sm:$0xff] %vm405_vm0, %v400_v62 }
 0x10c   :  { %v10365_v11 = vld.sshfl [vmem:[#allocation1] sm:$0xff pattern:$0x75316420]  ;;  %475 = vst.msk [vmem:[#allocation2 + $0xe1] sm:$0xff] %vm405_vm0, %v400_v62  ;;  %v386_v60 = vadd.f32 %v10106_v6, %v369_v7 }
 0x10d   :  { %1490 = vst [vmem:[#allocation1] ss:$2 sm:$0xff] %v10296_v55 }
 0x10e   :  { %1492 = vst [vmem:[#allocation1 + $0x1] ss:$2 sm:$0xff] %v10353_v0  ;;  %v10372_v16 = vld [vmem:[#allocation3 + $0x38] sm:$0x3f]  ;;  %v300_v17 = vpop.f32.mrf.mxu0  ;;  %v402_v55 = vmax.f32 %v386_v60, 0.0 }
 0x10f   :  { %v349_v18 = vpop.f32.mrf.mxu1  ;;  %790 = vst [vmem:[#allocation1 + $0x21] ss:$2 sm:$0xff] %v10372_v16  ;;  %v818_v22 = vrot.slane %v10372_v16, 4  ;;  %v7695_v41 = vrot.slane %v10372_v16, 9 }
 0x110   :  { %418 = vst.msk [vmem:[#allocation4 + $0x60] sm:$0xff] %vm405_vm0, %v401_v61  ;;  %v350_v23 = vadd.f32 %v349_v18, %v300_v17 }
 0x111   :  { %v872_v21 = vld.sshfl [vmem:[#allocation1 + $0x10] sm:$0xff pattern:$0x75316420]  ;;  %476 = vst.msk [vmem:[#allocation2 + $0xf1] sm:$0xff] %vm405_vm0, %v401_v61  ;;  %v846_v35 = vrot.slane %v818_v22, 5  ;;  %v1013_v1 = vrot.slane %v818_v22, 6 }
 0x112   :  { %1027 = vst [vmem:[#allocation1 + $0x10] ss:$2 sm:$0xff] %v10327_v33  ;;  %v879_v10 = vpack.c.bf16 %v872_v21, %v10206_v8  ;;  %v370_v30 = vmul.f32 %v10100_v2, %v350_v23 }
 0x113   :  { %1029 = vst [vmem:[#allocation1 + $0x11] ss:$2 sm:$0xff] %v10381_v24  ;;  %v571_v32 = vld [vmem:[#allocation2 + $0xe0] sm:$0xff]  ;;  %v572_v39 = vld [vmem:[#allocation2 + $0xe8] sm:$0x3]  ;;  %v10412_v46 = vsel %vm10187_vm9, %v7695_v41, %v846_v35 }
 0x114   :  { %7722 = vmatmul.msk.bf16.vlgmr.msra.gmra.mxu2 %vm405_vm0, %v879_v10  ;;  %v586_v38 = vsel %vm405_vm0, %v571_v32, -inf  ;;  %419 = vst.msk [vmem:[#allocation4 + $0x68] sm:$0xff] %vm405_vm0, %v402_v55  ;;  %v10404_v42 = vadd.f32 %v10106_v6, %v370_v30  ;;  %v591_v50 = vsel %vm423_vm1, %v572_v39, -inf  ;;  %v632_v51 = vld [vmem:[#allocation2 + $0xe8] sm:$0x3]  ;;  %v7802_v10 = vrot.slane %v10407_v9, 9 }
 0x115   :  { %v10394_v8 = vld.sshfl [vmem:[#allocation1] sm:$0xff pattern:$0x75316420]  ;;  %v587_v28 = vmax.f32 %v585_v31, %v586_v38  ;;  %477 = vst.msk [vmem:[#allocation2 + $0x101] sm:$0xff] %vm405_vm0, %v402_v55  ;;  %v592_v4 = vmax.f32 %v590_v53, %v591_v50  ;;  %v652_v15 = vsel %vm423_vm1, %v632_v51, -inf  ;;  %v7830_v50 = vrot.slane %v10407_v9, 10 }
 0x116   :  { %1585 = vst [vmem:[#allocation1] ss:$2 sm:$0xff] %v10327_v33  ;;  %v10400_v40 = vld.sshfl [vmem:[#allocation1 + $0x20] sm:$0xff pattern:$0x75316420]  ;;  %v7746_v33 = vrot.slane %v10356_v5, 10  ;;  %v302_v22 = vpop.f32.mrf.mxu0 }
 0x117   :  { %1587 = vst [vmem:[#allocation1 + $0x1] ss:$2 sm:$0xff] %v10381_v24  ;;  %v596_v45 = vrot.slane %v587_v28, 1  ;;  %v602_v57 = vrot.slane %v587_v28, 2  ;;  %v403_v62 = vmax.f32 %v10404_v42, 0.0  ;;  %v1199_v5 = vrot.slane %v10407_v9, 4  ;;  %v351_v55 = vpop.f32.mrf.mxu1 }
 0x118   :  { %864 = vst [vmem:[#allocation1 + $0x20] ss:$2 sm:$0xff] %v843_v37  ;;  %v633_v58 = vld [vmem:[#allocation2 + $0xf0] sm:$0xff]  ;;  %v634_v59 = vld [vmem:[#allocation2 + $0xf8] sm:$0x3]  ;;  %v1010_v20 = vsel %vm10200_vm12, %v7746_v33, %v1009_v47  ;;  %v617_v25 = vrot.slane %v592_v4, 2  ;;  %v352_v36 = vadd.f32 %v351_v55, %v302_v22 }
 0x119   :  { %866 = vst [vmem:[#allocation1 + $0x21] ss:$2 sm:$0xff] %v10412_v46  ;;  %v600_v54 = vmax.f32 %v587_v28, %v596_v45  ;;  %v648_v13 = vsel %vm405_vm0, %v633_v58, -inf  ;;  %v653_v61 = vsel %vm423_vm1, %v634_v59, -inf  ;;  %v1203_v23 = vrot.slane %v1199_v5, 5  ;;  %v9528_v55 = vld [vmem:[%s12898_s3 + $0x58] sm:$0xff] }
 0x11a   :  { %v10416_v52 = vld.sshfl [vmem:[#allocation1 + $0x10] sm:$0xff pattern:$0x75316420]  ;;  %420 = vst.msk [vmem:[#allocation4 + $0x70] sm:$0xff] %vm405_vm0, %v403_v62  ;;  %v649_v17 = vmax.f32 %v586_v38, %v648_v13  ;;  %v654_v26 = vmax.f32 %v652_v15, %v653_v61  ;;  %v371_v44 = vmul.f32 %v10100_v2, %v352_v36  ;;  %v1298_v33 = vrot.slane %v1199_v5, 6  ;;  %1091 = vmatpush.bf16.msrb.mxu2 %v9528_v55 }
 0x11b   :  { %1116 = vst [vmem:[#allocation1 + $0x10] ss:$2 sm:$0xff] %v10333_v43  ;;  %v606_v7 = vmax.f32 %v600_v54, %v602_v57  ;;  %v7747_v43 = vrot.slane %v10372_v16, 10  ;;  %v621_v32 = vmax.f32 %v600_v54, %v617_v25  ;;  %v10455_v37 = vsel %vm10187_vm9, %v7802_v10, %v1203_v23  ;;  %v10491_v58 = vld [vmem:[#allocation3 + $0x28] sm:$0x3f] }
 0x11c   :  { %1118 = vst [vmem:[#allocation1 + $0x11] ss:$2 sm:$0xff] %v10407_v9  ;;  %v635_v60 = vld [vmem:[#allocation2 + $0x100] sm:$0xff]  ;;  %v636_v14 = vld [vmem:[#allocation2 + $0x108] sm:$0x3]  ;;  %v10475_v2 = vsel %vm10200_vm12, %v7830_v50, %v1298_v33  ;;  %v9529_v33 = vld [vmem:[%s12898_s3 + $0x60] sm:$0xff] }
 0x11d   :  { %609 = vst.msk [vmem:[#allocation3 + $0x41] sm:$0x1] %vm540_vm3, %v606_v7  ;;  %v10432_v18 = vsel %vm405_vm0, %v635_v60, -inf  ;;  %v655_v21 = vsel %vm423_vm1, %v636_v14, -inf  ;;  %v10447_v31 = vsel %vm10200_vm12, %v7747_v43, %v1013_v1  ;;  %v1480_v1 = vrot.slane %v10491_v58, 4  ;;  %v9531_v13 = vld [vmem:[%s12898_s3 + $0x70] sm:$0xff] }
 0x11e   :  { %v10434_v19 = vld.sshfl [vmem:[#allocation1] sm:$0xff pattern:$0x75316420]  ;;  %611 = vst.msk [vmem:[#allocation3 + $0x40] sm:$0x4] %vm543_vm4, %v606_v7  ;;  %v651_v27 = vmax.f32 %v649_v17, %v10432_v18  ;;  %v656_v34 = vmax.f32 %v654_v26, %v655_v21 }
 0x11f   :  { %1728 = vst [vmem:[#allocation1] ss:$2 sm:$0xff] %v10421_v63  ;;  %v1484_v43 = vrot.slane %v1480_v1, 5  ;;  %v696_v23 = vld [vmem:[#allocation2 + $0x108] sm:$0x3] }
 0x120   :  { %v10443_v30 = vld.sshfl [vmem:[#allocation1 + $0x20] sm:$0xff pattern:$0x75316420]  ;;  %613 = vst.msk [vmem:[#allocation3 + $0x3f] sm:$0x10] %vm546_vm5, %v606_v7  ;;  %v660_v35 = vrot.slane %v651_v27, 1 }
 0x121   :  { %1031 = vst [vmem:[#allocation1 + $0x20] ss:$2 sm:$0xff] %v1010_v20  ;;  %v666_v28 = vrot.slane %v651_v27, 2  ;;  %v681_v42 = vrot.slane %v656_v34, 2 }
 0x122   :  { %1033 = vst [vmem:[#allocation1 + $0x21] ss:$2 sm:$0xff] %v10447_v31  ;;  %v664_v39 = vmax.f32 %v651_v27, %v660_v35 }
 0x123   :  { %v10450_v38 = vld.sshfl [vmem:[#allocation1 + $0x10] sm:$0xff pattern:$0x75316420]  ;;  %623 = vst.msk [vmem:[#allocation3 + $0x3e] sm:$0x40] %vm557_vm6, %v621_v32 }
 0x124   :  { %1213 = vst [vmem:[#allocation1 + $0x10] ss:$2 sm:$0xff] %v10353_v0  ;;  %v670_v41 = vmax.f32 %v664_v39, %v666_v28  ;;  %v685_v45 = vmax.f32 %v664_v39, %v681_v42  ;;  %v388_v0 = vadd.f32 %v10106_v6, %v371_v44  ;;  %v716_v28 = vsel %vm423_vm1, %v696_v23, -inf }
 0x125   :  { %1215 = vst [vmem:[#allocation1 + $0x11] ss:$2 sm:$0xff] %v10455_v37 }
 0x126   :  { %478 = vst.msk [vmem:[#allocation2 + $0x111] sm:$0xff] %vm405_vm0, %v403_v62  ;;  %v404_v54 = vmax.f32 %v388_v0, 0.0 }
 0x127   :  { %673 = vst.msk [vmem:[#allocation3 + $0x49] sm:$0x1] %vm540_vm3, %v670_v41 }
 0x128   :  { %675 = vst.msk [vmem:[#allocation3 + $0x48] sm:$0x4] %vm543_vm4, %v670_v41 }
 0x129   :  { %v10464_v47 = vld.sshfl [vmem:[#allocation1 + $0x20] sm:$0xff pattern:$0x75316420]  ;;  %677 = vst.msk [vmem:[#allocation3 + $0x47] sm:$0x10] %vm546_vm5, %v670_v41 }
 0x12a   :  { %1120 = vst [vmem:[#allocation1 + $0x20] ss:$2 sm:$0xff] %v10372_v16  ;;  %v10478_v53 = vld [vmem:[#allocation3 + $0x40] sm:$0x3f]  ;;  %v9532_v16 = vld [vmem:[%s12898_s3 + $0x78] sm:$0xff] }
 0x12b   :  { %687 = vst.msk [vmem:[#allocation3 + $0x46] sm:$0x40] %vm557_vm6, %v685_v45  ;;  %v819_v6 = vrot.slane %v10478_v53, 4  ;;  %1180 = vmatpush.bf16.msrb.mxu3 %v9532_v16  ;;  %v7696_v4 = vrot.slane %v10478_v53, 9  ;;  %v7748_v41 = vrot.slane %v10478_v53, 10  ;;  %v7912_v16 = vrot.slane %v10491_v58, 10 }
 0x12c   :  { %v10470_v51 = vld.sshfl [vmem:[#allocation1 + $0x10] sm:$0xff pattern:$0x75316420]  ;;  %792 = vst [vmem:[#allocation1 + $0x30] ss:$2 sm:$0xff] %v10478_v53 }
 0x12d   :  { %1308 = vst [vmem:[#allocation1 + $0x10] ss:$2 sm:$0xff] %v10381_v24  ;;  %v697_v57 = vld [vmem:[#allocation2 + $0x110] sm:$0xff]  ;;  %v850_v59 = vrot.slane %v819_v6, 5  ;;  %v698_v21 = vld [vmem:[#allocation2 + $0x118] sm:$0x3] }
 0x12e   :  { %1310 = vst [vmem:[#allocation1 + $0x11] ss:$2 sm:$0xff] %v10475_v2  ;;  %v712_v7 = vsel %vm405_vm0, %v697_v57, -inf  ;;  %v1017_v34 = vrot.slane %v819_v6, 6  ;;  %v717_v35 = vsel %vm423_vm1, %v698_v21, -inf  ;;  %v1579_v57 = vrot.slane %v1480_v1, 6 }
 0x12f   :  { %1122 = vst [vmem:[#allocation1 + $0x21] ss:$2 sm:$0xff] %v10478_v53  ;;  %v10509_v60 = vsel %vm10187_vm9, %v7696_v4, %v850_v59  ;;  %1181 = vmatpush.bf16.msrb.mxu3 %v9531_v13  ;;  %v713_v15 = vmax.f32 %v10432_v18, %v712_v7  ;;  %v718_v50 = vmax.f32 %v716_v28, %v717_v35  ;;  %v9526_v4 = vld [vmem:[%s12898_s3 + $0x48] sm:$0xff] }
 0x130   :  { %421 = vst.msk [vmem:[#allocation4 + $0x78] sm:$0xff] %vm405_vm0, %v404_v54 }
 0x131   :  { %479 = vst.msk [vmem:[#allocation2 + $0x121] sm:$0xff] %vm405_vm0, %v404_v54  ;;  %v1018_v54 = vsel %vm10200_vm12, %v7748_v41, %v1017_v34  ;;  %v9543_v41 = vld [vmem:[%s12898_s3 + $0xd0] sm:$0xff] }
 0x132   :  { %v10489_v24 = vld [vmem:[#allocation3 + $0x48] sm:$0x3f] }
 0x133   :  { %794 = vst [vmem:[#allocation1 + $0x31] ss:$2 sm:$0xff] %v10489_v24  ;;  %v820_v62 = vrot.slane %v10489_v24, 4  ;;  %v7697_v20 = vrot.slane %v10489_v24, 9  ;;  %v7749_v7 = vrot.slane %v10489_v24, 10 }
 0x135   :  { %v10495_v5 = vld.sshfl [vmem:[#allocation1 + $0x10] sm:$0xff pattern:$0x75316420]  ;;  %v854_v14 = vrot.slane %v820_v62, 5 }
 0x136   :  { %1397 = vst [vmem:[#allocation1 + $0x10] ss:$2 sm:$0xff] %v10407_v9  ;;  %v10505_v61 = vld.sshfl [vmem:[#allocation1 + $0x20] sm:$0xff pattern:$0x75316420]  ;;  %v7884_v9 = vrot.slane %v10491_v58, 9 }
 0x137   :  { %1399 = vst [vmem:[#allocation1 + $0x11] ss:$2 sm:$0xff] %v10491_v58  ;;  %v10525_v18 = vsel %vm10187_vm9, %v7697_v20, %v854_v14  ;;  %v9525_v14 = vld [vmem:[%s12898_s3 + $0x40] sm:$0xff]  ;;  %v9540_v20 = vld [vmem:[%s12898_s3 + $0xb8] sm:$0xff] }
 0x138   :  { %1217 = vst [vmem:[#allocation1 + $0x20] ss:$2 sm:$0xff] %v10412_v46  ;;  %v699_v17 = vld [vmem:[#allocation2 + $0x120] sm:$0xff]  ;;  %v700_v27 = vld [vmem:[#allocation2 + $0x128] sm:$0x3]  ;;  %v1485_v32 = vsel %vm10187_vm9, %v7884_v9, %v1484_v43 }
 0x139   :  { %1219 = vst [vmem:[#allocation1 + $0x21] ss:$2 sm:$0xff] %v10509_v60  ;;  %v714_v22 = vsel %vm405_vm0, %v699_v17, -inf  ;;  %v9530_v46 = vld [vmem:[%s12898_s3 + $0x68] sm:$0xff]  ;;  %v719_v42 = vsel %vm423_vm1, %v700_v27, -inf }
 0x13a   :  { %v798_v25 = vld.sshfl [vmem:[#allocation1 + $0x30] sm:$0xff pattern:$0x75316420]  ;;  %v715_v26 = vmax.f32 %v713_v15, %v714_v22  ;;  %1182 = vmatpush.bf16.msrb.mxu3 %v9530_v46  ;;  %v720_v59 = vmax.f32 %v718_v50, %v719_v42  ;;  %v1135_v15 = vpack.c.bf16 %v10450_v38, %v10288_v49  ;;  %v1046_v49 = vpack.c.bf16 %v10416_v52, %v10213_v12  ;;  %v9538_v22 = vld [vmem:[%s12898_s3 + $0xa8] sm:$0xff]  ;;  %v10616_v27 = vld [vmem:[#allocation3 + $0x30] sm:$0x3f] }
 0x13b   :  { %868 = vst [vmem:[#allocation1 + $0x30] ss:$2 sm:$0xff] %v10509_v60  ;;  %v804_v10 = vpack.c.bf16 %v798_v25, %v10400_v40  ;;  %v9527_v40 = vld [vmem:[%s12898_s3 + $0x50] sm:$0xff]  ;;  %v1327_v42 = vpack.c.bf16 %v10495_v5, %v10341_v48  ;;  %v9546_v48 = vld [vmem:[%s12898_s3 + $0xe8] sm:$0xff] }
 0x13c   :  { %870 = vst [vmem:[#allocation1 + $0x31] ss:$2 sm:$0xff] %v10525_v18  ;;  %v724_v36 = vrot.slane %v715_v26, 1  ;;  %v730_v45 = vrot.slane %v715_v26, 2  ;;  %1092 = vmatpush.bf16.msrb.mxu2 %v9527_v40  ;;  %v745_v1 = vrot.slane %v720_v59, 2  ;;  %v9535_v25 = vld [vmem:[%s12898_s3 + $0x90] sm:$0xff] }
 0x13d   :  { %7741 = vmatmul.msk.bf16.gmra.mxu3 %vm405_vm0, %v804_v10  ;;  %v9544_v40 = vld [vmem:[%s12898_s3 + $0xd8] sm:$0xff]  ;;  %v9545_v59 = vld [vmem:[%s12898_s3 + $0xe0] sm:$0xff] }
 0x13e   :  { %v10533_v39 = vld.sshfl [vmem:[#allocation1 + $0x10] sm:$0xff pattern:$0x75316420]  ;;  %v728_v44 = vmax.f32 %v715_v26, %v724_v36  ;;  %1183 = vmatpush.bf16.msrb.mxu3 %v9529_v33  ;;  %v9537_v26 = vld [vmem:[%s12898_s3 + $0xa0] sm:$0xff] }
 0x13f   :  { %1494 = vst [vmem:[#allocation1 + $0x10] ss:$2 sm:$0xff] %v10455_v37  ;;  %v1021_v37 = vrot.slane %v820_v62, 6  ;;  %v1580_v62 = vsel %vm10200_vm12, %v7912_v16, %v1579_v57  ;;  %v9533_v36 = vld [vmem:[%s12898_s3 + $0x80] sm:$0xff] }
 0x140   :  { %1496 = vst [vmem:[#allocation1 + $0x11] ss:$2 sm:$0xff] %v1485_v32  ;;  %v10546_v0 = vld.sshfl [vmem:[#allocation1 + $0x20] sm:$0xff pattern:$0x75316420]  ;;  %v734_v6 = vmax.f32 %v728_v44, %v730_v45  ;;  %1093 = vmatpush.bf16.msrb.mxu2 %v9526_v4  ;;  %v749_v43 = vmax.f32 %v728_v44, %v745_v1  ;;  %v9547_v45 = vld [vmem:[%s12898_s3 + $0xf0] sm:$0xff] }
 0x141   :  { %1312 = vst [vmem:[#allocation1 + $0x20] ss:$2 sm:$0xff] %v10447_v31  ;;  %v10560_v31 = vsel %vm10200_vm12, %v7749_v7, %v1021_v37  ;;  %v771_v44 = vld [vmem:[#allocation3 + $0x58] sm:$0x3f] }
 0x142   :  { %1314 = vst [vmem:[#allocation1 + $0x21] ss:$2 sm:$0xff] %v1018_v54  ;;  %1372 = vmatpush.bf16.msra.mxu3 %v9540_v20  ;;  %v1481_v50 = vrot.slane %v771_v44, 4  ;;  %v7885_v5 = vrot.slane %v771_v44, 9  ;;  %v9541_v4 = vld [vmem:[%s12898_s3 + $0xc0] sm:$0xff]  ;;  %v7913_v7 = vrot.slane %v771_v44, 10 }
 0x143   :  { %737 = vst.msk [vmem:[#allocation3 + $0x51] sm:$0x1] %vm540_vm3, %v734_v6  ;;  %v874_v13 = vld.sshfl [vmem:[#allocation1 + $0x30] sm:$0xff pattern:$0x75316420] }
 0x144   :  { %739 = vst.msk [vmem:[#allocation3 + $0x50] sm:$0x4] %vm543_vm4, %v734_v6  ;;  %v880_v58 = vpack.c.bf16 %v874_v13, %v10443_v30  ;;  %1094 = vmatpush.bf16.msrb.mxu2 %v9525_v14  ;;  %v1488_v37 = vrot.slane %v1481_v50, 5  ;;  %v9550_v14 = vld [vmem:[%s12898_s3 + $0x108] sm:$0xff] }
 0x145   :  { %1035 = vst [vmem:[#allocation1 + $0x30] ss:$2 sm:$0xff] %v1018_v54 }
 0x146   :  { %1037 = vst [vmem:[#allocation1 + $0x31] ss:$2 sm:$0xff] %v10560_v31  ;;  %7723 = vmatmul.msk.bf16.gmra.mxu2 %vm405_vm0, %v880_v58  ;;  %v1489_v16 = vsel %vm10187_vm9, %v7885_v5, %v1488_v37 }
 0x147   :  { %v10569_v9 = vld.sshfl [vmem:[#allocation1 + $0x10] sm:$0xff pattern:$0x75316420]  ;;  %741 = vst.msk [vmem:[#allocation3 + $0x4f] sm:$0x10] %vm546_vm5, %v734_v6  ;;  %v1232_v6 = vpack.c.bf16 %v10470_v51, %v10320_v29  ;;  %v1583_v29 = vrot.slane %v1481_v50, 6 }
 0x148   :  { %1589 = vst [vmem:[#allocation1 + $0x10] ss:$2 sm:$0xff] %v10475_v2 }
 0x149   :  { %1591 = vst [vmem:[#allocation1 + $0x11] ss:$2 sm:$0xff] %v1580_v62  ;;  %v10574_v30 = vld.sshfl [vmem:[#allocation1 + $0x20] sm:$0xff pattern:$0x75316420]  ;;  %v1584_v13 = vsel %vm10200_vm12, %v7913_v7, %v1583_v29  ;;  %v9551_v62 = vld [vmem:[%s12898_s3 + $0x110] sm:$0xff] }
 0x14a   :  { %1401 = vst [vmem:[#allocation1 + $0x20] ss:$2 sm:$0xff] %v10478_v53  ;;  %v1672_v29 = vld [vmem:[%s12899_s4] sm:$0x3] }
 0x14b   :  { %1403 = vst [vmem:[#allocation1 + $0x21] ss:$2 sm:$0xff] %v10489_v24 }
 0x14c   :  { %751 = vst.msk [vmem:[#allocation3 + $0x4e] sm:$0x40] %vm557_vm6, %v749_v43  ;;  %v9549_v43 = vld [vmem:[%s12898_s3 + $0x100] sm:$0xff] }
 0x14d   :  { %v1041_v17 = vld.sshfl [vmem:[#allocation1 + $0x30] sm:$0xff pattern:$0x75316420]  ;;  %7800 = vmatmul.msk.bf16.vlgmr.msrb.gmra.mxu3 %vm405_vm0, %v1135_v15 }
 0x14e   :  { %1124 = vst [vmem:[#allocation1 + $0x30] ss:$2 sm:$0xff] %v10489_v24  ;;  %v9539_v24 = vld [vmem:[%s12898_s3 + $0xb0] sm:$0xff]  ;;  %v1047_v34 = vpack.c.bf16 %v1041_v17, %v10464_v47  ;;  %v9548_v47 = vld [vmem:[%s12898_s3 + $0xf8] sm:$0xff] }
 0x14f   :  { %1373 = vmatpush.bf16.msra.mxu3 %v9539_v24 }
 0x152   :  { %v10583_v2 = vld.sshfl [vmem:[#allocation1 + $0x20] sm:$0xff pattern:$0x75316420] }
 0x153   :  { %1498 = vst [vmem:[#allocation1 + $0x20] ss:$2 sm:$0xff] %v10509_v60  ;;  %v770_v53 = vld [vmem:[#allocation3 + $0x50] sm:$0x3f]  ;;  %1374 = vmatpush.bf16.msra.mxu3 %v9538_v22 }
 0x154   :  { %1500 = vst [vmem:[#allocation1 + $0x21] ss:$2 sm:$0xff] %v10525_v18  ;;  %v1200_v38 = vrot.slane %v770_v53, 4  ;;  %v9536_v60 = vld [vmem:[%s12898_s3 + $0x98] sm:$0xff]  ;;  %v7803_v52 = vrot.slane %v770_v53, 9  ;;  %v7831_v32 = vrot.slane %v770_v53, 10 }
 0x155   :  { %1126 = vst [vmem:[#allocation1 + $0x31] ss:$2 sm:$0xff] %v770_v53  ;;  %1277 = vmatpush.bf16.msra.mxu2 %v9536_v60 }
 0x156   :  { %7774 = vmatmul.msk.bf16.vlgmr.msrb.gmra.mxu2 %vm405_vm0, %v1046_v49  ;;  %v1207_v21 = vrot.slane %v1200_v38, 5 }
 0x157   :  { %1375 = vmatpush.bf16.msra.mxu3 %v9537_v26 }
 0x158   :  { %v1208_v23 = vsel %vm10187_vm9, %v7803_v52, %v1207_v21 }
 0x159   :  { %1278 = vmatpush.bf16.msra.mxu2 %v9535_v25 }
 0x15b   :  { %v10602_v55 = vld.sshfl [vmem:[#allocation1 + $0x20] sm:$0xff pattern:$0x75316420]  ;;  %1558 = vmatpush.bf16.msrb.mxu3 %v9548_v47 }
 0x15c   :  { %1593 = vst [vmem:[#allocation1 + $0x20] ss:$2 sm:$0xff] %v1018_v54  ;;  %v1130_v12 = vld.sshfl [vmem:[#allocation1 + $0x30] sm:$0xff pattern:$0x75316420]  ;;  %v9542_v54 = vld [vmem:[%s12898_s3 + $0xc8] sm:$0xff] }
 0x15d   :  { %1595 = vst [vmem:[#allocation1 + $0x21] ss:$2 sm:$0xff] %v10560_v31  ;;  %v1136_v46 = vpack.c.bf16 %v1130_v12, %v10505_v61  ;;  %v9534_v61 = vld [vmem:[%s12898_s3 + $0x88] sm:$0xff] }
 0x15e   :  { %1221 = vst [vmem:[#allocation1 + $0x30] ss:$2 sm:$0xff] %v10525_v18  ;;  %v1302_v18 = vrot.slane %v1200_v38, 6  ;;  %1279 = vmatpush.bf16.msra.mxu2 %v9534_v61 }
 0x15f   :  { %1223 = vst [vmem:[#allocation1 + $0x31] ss:$2 sm:$0xff] %v1208_v23  ;;  %7801 = vmatmul.msk.bf16.gmra.mxu3 %vm405_vm0, %v1136_v46 }
 0x160   :  { %v1303_v28 = vsel %vm10200_vm12, %v7831_v32, %v1302_v18  ;;  %1559 = vmatpush.bf16.msrb.mxu3 %v9547_v45 }
 0x162   :  { %1280 = vmatpush.bf16.msra.mxu2 %v9533_v36 }
 0x164   :  { %v10621_v10 = vld.sshfl [vmem:[#allocation1 + $0x20] sm:$0xff pattern:$0x75316420]  ;;  %1560 = vmatpush.bf16.msrb.mxu3 %v9546_v48 }
 0x165   :  { %1736 = vst [vmem:[#allocation1 + $0x20] ss:$2 sm:$0xff] %v10616_v27 }
 0x166   :  { %v1227_v35 = vld.sshfl [vmem:[#allocation1 + $0x30] sm:$0xff pattern:$0x75316420]  ;;  %7775 = vmatmul.msk.bf16.gmra.mxu2 %vm405_vm0, %v1047_v34 }
 0x167   :  { %1316 = vst [vmem:[#allocation1 + $0x30] ss:$2 sm:$0xff] %v10560_v31  ;;  %1461 = vmatpush.bf16.msrb.mxu2 %v9544_v40  ;;  %v9552_v31 = vld [vmem:[%s12898_s3 + $0x118] sm:$0xff]  ;;  %v1233_v1 = vpack.c.bf16 %v1227_v35, %v10546_v0  ;;  %v1416_v0 = vpack.c.bf16 %v10533_v39, %v10365_v11 }
 0x168   :  { %1318 = vst [vmem:[#allocation1 + $0x31] ss:$2 sm:$0xff] %v1303_v28  ;;  %1561 = vmatpush.bf16.msrb.mxu3 %v9545_v59 }
 0x16b   :  { %1462 = vmatpush.bf16.msrb.mxu2 %v9543_v41  ;;  %v9554_v41 = vld [vmem:[%s12898_s3 + $0x128] sm:$0xff] }
 0x16f   :  { %v1322_v33 = vld.sshfl [vmem:[#allocation1 + $0x30] sm:$0xff pattern:$0x75316420]  ;;  %7856 = vmatmul.msk.bf16.vlgmr.msra.gmra.mxu3 %vm405_vm0, %v1327_v42  ;;  %1463 = vmatpush.bf16.msrb.mxu2 %v9542_v54 }
 0x170   :  { %1405 = vst [vmem:[#allocation1 + $0x30] ss:$2 sm:$0xff] %v770_v53  ;;  %v1328_v51 = vpack.c.bf16 %v1322_v33, %v10574_v30  ;;  %v1513_v30 = vpack.c.bf16 %v10569_v9, %v10394_v8  ;;  %v1601_v8 = vld.sshfl [vmem:[#allocation1 + $0x10] sm:$0xff pattern:$0x75316420] }
 0x171   :  { %1407 = vst [vmem:[#allocation1 + $0x31] ss:$2 sm:$0xff] %v771_v44  ;;  %v1608_v9 = vpack.c.bf16 %v1601_v8, %v10434_v19 }
 0x173   :  { %1464 = vmatpush.bf16.msrb.mxu2 %v9541_v4 }
 0x176   :  { %7828 = vmatmul.msk.bf16.vlgmr.msra.gmra.mxu2 %vm405_vm0, %v1232_v6 }
 0x177   :  { %1653 = vmatpush.bf16.msra.mxu2 %v9552_v31  ;;  %v10708_v31 = vperm.slane %v1672_v29, 0 }
 0x178   :  { %v1411_v57 = vld.sshfl [vmem:[#allocation1 + $0x30] sm:$0xff pattern:$0x75316420] }
 0x179   :  { %1502 = vst [vmem:[#allocation1 + $0x30] ss:$2 sm:$0xff] %v1208_v23  ;;  %v1417_v49 = vpack.c.bf16 %v1411_v57, %v10583_v2  ;;  %v9556_v2 = vld [vmem:[%s12898_s3 + $0x138] sm:$0xff] }
 0x17a   :  { %1504 = vst [vmem:[#allocation1 + $0x31] ss:$2 sm:$0xff] %v1489_v16  ;;  %9769 = vmatpush.bf16.msrb.mxu1 %v9556_v2  ;;  %1919 = vmatpush.bf16.msrb.mxu0 %v9556_v2  ;;  %v1762_v2 = vrot.slane %v10421_v63, 4 }
 0x17b   :  { %1654 = vmatpush.bf16.msra.mxu2 %v9551_v62 }
 0x17f   :  { %7857 = vmatmul.msk.bf16.gmra.mxu3 %vm405_vm0, %v1328_v51  ;;  %1655 = vmatpush.bf16.msra.mxu2 %v9550_v14  ;;  %v10710_v14 = vperm.slane %v1672_v29, 1 }
 0x181   :  { %v1508_v58 = vld.sshfl [vmem:[#allocation1 + $0x30] sm:$0xff pattern:$0x75316420] }
 0x182   :  { %1597 = vst [vmem:[#allocation1 + $0x30] ss:$2 sm:$0xff] %v1303_v28  ;;  %v1514_v53 = vpack.c.bf16 %v1508_v58, %v10602_v55 }
 0x183   :  { %1599 = vst [vmem:[#allocation1 + $0x31] ss:$2 sm:$0xff] %v1584_v13  ;;  %1656 = vmatpush.bf16.msra.mxu2 %v9549_v43 }
 0x186   :  { %7829 = vmatmul.msk.bf16.gmra.mxu2 %vm405_vm0, %v1233_v1 }
 0x18a   :  { %v1603_v38 = vld.sshfl [vmem:[#allocation1 + $0x30] sm:$0xff pattern:$0x75316420] }
 0x18b   :  { %v1609_v24 = vpack.c.bf16 %v1603_v38, %v10621_v10  ;;  %v9555_v10 = vld [vmem:[%s12898_s3 + $0x130] sm:$0xff] }
 0x18c   :  { %9770 = vmatpush.bf16.msrb.mxu1 %v9555_v10  ;;  %1920 = vmatpush.bf16.msrb.mxu0 %v9555_v10  ;;  %v10714_v38 = vld [vmem:[#allocation3 + $0x9] sm:$0xf] }
 0x18e   :  { %v978_v15 = vpop.f32.mrf.mxu3 }
 0x18f   :  { %7910 = vmatmul.msk.bf16.vlgmr.msrb.gmra.mxu3 %vm405_vm0, %v1513_v30 }
 0x190   :  { %9771 = vmatpush.bf16.msrb.mxu1 %v9554_v41  ;;  %1921 = vmatpush.bf16.msrb.mxu0 %v9554_v41  ;;  %v9559_v41 = vld [vmem:[%s12898_s3 + $0x150] sm:$0xff] }
 0x196   :  { %7882 = vmatmul.msk.bf16.vlgmr.msrb.gmra.mxu2 %vm405_vm0, %v1416_v0  ;;  %v980_v11 = vpop.f32.mrf.mxu3 }
 0x197   :  { %v929_v17 = vpop.f32.mrf.mxu2 }
 0x198   :  { %v979_v20 = vadd.f32 %v978_v15, %v929_v17 }
 0x19f   :  { %7911 = vmatmul.msk.bf16.gmra.mxu3 %vm405_vm0, %v1514_v53  ;;  %v931_v39 = vpop.f32.mrf.mxu2 }
 0x1a0   :  { %v981_v5 = vadd.f32 %v980_v11, %v931_v39 }
 0x1a6   :  { %7883 = vmatmul.msk.bf16.gmra.mxu2 %vm405_vm0, %v1417_v49 }
 0x1b6   :  { %7938 = vmatmul.msk.bf16.vlgmr.msra.gmra.mxu2 %vm405_vm0, %v1608_v9 }
 0x1c0   :  { %v983_v21 = vpop.f32.mrf.mxu3 }
 0x1c6   :  { %7939 = vmatmul.msk.bf16.gmra.mxu2 %vm405_vm0, %v1609_v24 }
 0x1c8   :  { %v985_v19 = vpop.f32.mrf.mxu3 }
 0x1c9   :  { %v934_v60 = vpop.f32.mrf.mxu2 }
 0x1ca   :  { %v984_v22 = vadd.f32 %v983_v21, %v934_v60  ;;  %v10717_v60 = vld [vmem:[#allocation3 + $0x11] sm:$0xf] }
 0x1d0   :  { %v1185_v46 = vpop.f32.mrf.mxu3 }
 0x1d1   :  { %v936_v55 = vpop.f32.mrf.mxu2 }
 0x1d2   :  { %v986_v17 = vadd.f32 %v985_v19, %v936_v55 }
 0x1d8   :  { %v1187_v61 = vpop.f32.mrf.mxu3 }
 0x1d9   :  { %v1096_v12 = vpop.f32.mrf.mxu2 }
 0x1da   :  { %v1106_v52 = vadd.f32 %v1096_v12, %v979_v20 }
 0x1dc   :  { %v1195_v48 = vadd.f32 %v1185_v46, %v1106_v52 }
 0x1e1   :  { %v1098_v23 = vpop.f32.mrf.mxu2 }
 0x1e2   :  { %v1190_v32 = vpop.f32.mrf.mxu3  ;;  %v1107_v6 = vadd.f32 %v1098_v23, %v981_v5  ;;  %v9560_v23 = vld [vmem:[%s12898_s3 + $0x158] sm:$0xff] }
 0x1e3   :  { %1870 = vmatpush.bf16.msra.mxu3 %v9560_v23 }
 0x1e4   :  { %v1196_v4 = vadd.f32 %v1187_v61, %v1107_v6  ;;  %v1772_v61 = vrot.slane %v1762_v2, 5 }
 0x1e7   :  { %1871 = vmatpush.bf16.msra.mxu3 %v9559_v41 }
 0x1e9   :  { %v1101_v25 = vpop.f32.mrf.mxu2 }
 0x1ea   :  { %v1108_v26 = vadd.f32 %v1101_v25, %v984_v22  ;;  %v1192_v35 = vpop.f32.mrf.mxu3 }
 0x1ec   :  { %v1197_v15 = vadd.f32 %v1190_v32, %v1108_v26  ;;  %v7948_v26 = vrot.slane %v10421_v63, 9 }
 0x1f1   :  { %v1103_v18 = vpop.f32.mrf.mxu2 }
 0x1f2   :  { %v1377_v28 = vpop.f32.mrf.mxu3  ;;  %v1109_v49 = vadd.f32 %v1103_v18, %v986_v17  ;;  %v10771_v17 = vld [vmem:[#allocation3 + $0x41] sm:$0xf] }
 0x1f4   :  { %v1198_v22 = vadd.f32 %v1192_v35, %v1109_v49 }
 0x1f9   :  { %v1282_v34 = vpop.f32.mrf.mxu2 }
 0x1fa   :  { %v1379_v42 = vpop.f32.mrf.mxu3  ;;  %v1292_v37 = vadd.f32 %v1282_v34, %v1195_v48 }
 0x1fc   :  { %v1387_v59 = vadd.f32 %v1377_v28, %v1292_v37  ;;  %v9558_v37 = vld [vmem:[%s12898_s3 + $0x148] sm:$0xff] }
 0x1fd   :  { %1872 = vmatpush.bf16.msra.mxu3 %v9558_v37 }
 0x201   :  { %v1284_v36 = vpop.f32.mrf.mxu2 }
 0x202   :  { %v1382_v45 = vpop.f32.mrf.mxu3  ;;  %v1293_v51 = vadd.f32 %v1284_v36, %v1196_v4  ;;  %v10731_v36 = vld [vmem:[#allocation3 + $0x19] sm:$0xf] }
 0x204   :  { %v1388_v62 = vadd.f32 %v1379_v42, %v1293_v51  ;;  %v9553_v42 = vld [vmem:[%s12898_s3 + $0x120] sm:$0xff] }
 0x205   :  { %9772 = vmatpush.bf16.msrb.mxu1 %v9553_v42  ;;  %1922 = vmatpush.bf16.msrb.mxu0 %v9553_v42 }
 0x209   :  { %v1287_v40 = vpop.f32.mrf.mxu2 }
 0x20a   :  { %v1384_v50 = vpop.f32.mrf.mxu3  ;;  %v1294_v53 = vadd.f32 %v1287_v40, %v1197_v15 }
 0x20c   :  { %v1389_v21 = vadd.f32 %v1382_v45, %v1294_v53  ;;  %v10743_v45 = vld [vmem:[#allocation3 + $0x21] sm:$0xf] }
 0x211   :  { %v1289_v47 = vpop.f32.mrf.mxu2 }
 0x212   :  { %v1563_v16 = vpop.f32.mrf.mxu3  ;;  %v1295_v52 = vadd.f32 %v1289_v47, %v1198_v22 }
 0x214   :  { %v1390_v34 = vadd.f32 %v1384_v50, %v1295_v52 }
 0x219   :  { %v1466_v44 = vpop.f32.mrf.mxu2 }
 0x21a   :  { %v1476_v7 = vadd.f32 %v1466_v44, %v1387_v59  ;;  %v1565_v43 = vpop.f32.mrf.mxu3 }
 0x21c   :  { %v1573_v13 = vadd.f32 %v1563_v16, %v1476_v7 }
 0x221   :  { %v1468_v33 = vpop.f32.mrf.mxu2 }
 0x222   :  { %v1477_v30 = vadd.f32 %v1468_v33, %v1388_v62  ;;  %v1568_v19 = vpop.f32.mrf.mxu3 }
 0x224   :  { %v1574_v9 = vadd.f32 %v1565_v43, %v1477_v30  ;;  %v10764_v43 = vld [vmem:[#allocation3 + $0x39] sm:$0xf] }
 0x229   :  { %v1471_v54 = vpop.f32.mrf.mxu2 }
 0x22a   :  { %v1478_v12 = vadd.f32 %v1471_v54, %v1389_v21  ;;  %v1773_v54 = vsel %vm10187_vm9, %v7948_v26, %v1772_v61  ;;  %v1570_v48 = vpop.f32.mrf.mxu3  ;;  %v7952_v61 = vrot.slane %v10616_v27, 9 }
 0x22c   :  { %v1575_v10 = vadd.f32 %v1568_v19, %v1478_v12  ;;  %v1766_v19 = vrot.slane %v10616_v27, 4 }
 0x231   :  { %v1473_v57 = vpop.f32.mrf.mxu2 }
 0x232   :  { %v1479_v44 = vadd.f32 %v1473_v57, %v1390_v34  ;;  %v1788_v34 = vrot.slane %v1766_v19, 5 }
 0x234   :  { %v1576_v16 = vadd.f32 %v1570_v48, %v1479_v44  ;;  %v9563_v48 = vld [vmem:[%s12898_s3 + $0x170] sm:$0xff] }
 0x239   :  { %v1658_v58 = vpop.f32.mrf.mxu2 }
 0x23a   :  { %v1668_v1 = vadd.f32 %v1658_v58, %v1573_v13  ;;  %v8000_v13 = vrot.slane %v10421_v63, 10  ;;  %v1936_v58 = vrot.slane %v1762_v2, 6  ;;  %v9567_v2 = vld [vmem:[%s12898_s3 + $0x190] sm:$0xff] }
 0x23c   :  { %v1674_v0 = vmul.f32 %v10708_v31, %v1668_v1  ;;  %v1937_v53 = vsel %vm10200_vm12, %v8000_v13, %v1936_v58 }
 0x23e   :  { %v1679_v20 = vadd.f32 %v10710_v14, %v1674_v0  ;;  %v9557_v0 = vld [vmem:[%s12898_s3 + $0x140] sm:$0xff] }
 0x23f   :  { %1873 = vmatpush.bf16.msra.mxu3 %v9557_v0  ;;  %v9562_v0 = vld [vmem:[%s12898_s3 + $0x168] sm:$0xff] }
 0x240   :  { %v1683_v8 = vmax.f32 %v1679_v20, 0.0 }
 0x241   :  { %v1660_v11 = vpop.f32.mrf.mxu2 }
 0x242   :  { %v1691_v39 = vrot.slane %v1683_v8, 4  ;;  %1700 = vst.msk [vmem:[#allocation3 + $0x9] sm:$0xf] %vm1699_vm13, %v1683_v8  ;;  %v1669_v24 = vadd.f32 %v1660_v11, %v1574_v9 }
 0x244   :  { %1701 = vst.msk [vmem:[#allocation3 + $0x11] sm:$0xf] %vm1699_vm13, %v1691_v39  ;;  %v1675_v55 = vmul.f32 %v10708_v31, %v1669_v24  ;;  %v10783_v24 = vld [vmem:[#allocation3 + $0x49] sm:$0xf] }
 0x246   :  { %v1680_v46 = vadd.f32 %v10710_v14, %v1675_v55 }
 0x248   :  { %v1684_v25 = vmax.f32 %v1680_v46, 0.0 }
 0x249   :  { %v10727_v18 = vld [vmem:[#allocation3 + $0x8] sm:$0x3f]  ;;  %v1663_v32 = vpop.f32.mrf.mxu2 }
 0x24a   :  { %1730 = vst [vmem:[#allocation1 + $0x1] ss:$2 sm:$0xff] %v10727_v18  ;;  %v1763_v35 = vrot.slane %v10727_v18, 4  ;;  %v1692_v28 = vrot.slane %v1684_v25, 4  ;;  %v1670_v47 = vadd.f32 %v1663_v32, %v1575_v10  ;;  %v7949_v6 = vrot.slane %v10727_v18, 9  ;;  %v9564_v10 = vld [vmem:[%s12898_s3 + $0x178] sm:$0xff] }
 0x24b   :  { %v10733_v40 = vld [vmem:[#allocation3 + $0x10] sm:$0x3f]  ;;  %1702 = vst.msk [vmem:[#allocation3 + $0x19] sm:$0xf] %vm1699_vm13, %v1684_v25  ;;  %v8001_v11 = vrot.slane %v10727_v18, 10  ;;  %v9566_v32 = vld [vmem:[%s12898_s3 + $0x188] sm:$0xff]  ;;  %2034 = vmatpush.bf16.msra.mxu1 %v9564_v10 }
 0x24c   :  { %1732 = vst [vmem:[#allocation1 + $0x10] ss:$2 sm:$0xff] %v10733_v40  ;;  %v1676_v33 = vmul.f32 %v10708_v31, %v1670_v47  ;;  %v1776_v50 = vrot.slane %v1763_v35, 5  ;;  %v1764_v1 = vrot.slane %v10733_v40, 4  ;;  %v1940_v20 = vrot.slane %v1763_v35, 6 }
 0x24d   :  { %1703 = vst.msk [vmem:[#allocation3 + $0x21] sm:$0xf] %vm1699_vm13, %v1692_v28  ;;  %v7950_v9 = vrot.slane %v10733_v40, 9  ;;  %v10825_v28 = vld [vmem:[#allocation3 + $0x51] sm:$0xf] }
 0x24e   :  { %v1681_v5 = vadd.f32 %v10710_v14, %v1676_v33  ;;  %v10756_v7 = vsel %vm10187_vm9, %v7949_v6, %v1776_v50  ;;  %v1780_v49 = vrot.slane %v1764_v1, 5  ;;  %v10791_v22 = vsel %vm10200_vm12, %v8001_v11, %v1940_v20 }
 0x24f   :  { %v1944_v47 = vrot.slane %v1764_v1, 6  ;;  %v8002_v50 = vrot.slane %v10733_v40, 10  ;;  %2035 = vmatpush.bf16.msra.mxu1 %v9563_v48 }
 0x250   :  { %v1685_v59 = vmax.f32 %v1681_v5, 0.0  ;;  %v10799_v12 = vsel %vm10187_vm9, %v7950_v9, %v1780_v49  ;;  %v9565_v5 = vld [vmem:[%s12898_s3 + $0x180] sm:$0xff]  ;;  %v8004_v49 = vrot.slane %v10616_v27, 10 }
 0x251   :  { %v1743_v57 = vld.sshfl [vmem:[#allocation1] sm:$0xff pattern:$0x75316420]  ;;  %v1665_v4 = vpop.f32.mrf.mxu2 }
 0x252   :  { %1802 = vst [vmem:[#allocation1] ss:$2 sm:$0xff] %v1773_v54  ;;  %v10758_v29 = vld [vmem:[#allocation3 + $0x18] sm:$0x3f]  ;;  %v1671_v51 = vadd.f32 %v1665_v4, %v1576_v16  ;;  %v1693_v62 = vrot.slane %v1685_v59, 4 }
 0x253   :  { %1804 = vst [vmem:[#allocation1 + $0x1] ss:$2 sm:$0xff] %v10756_v7  ;;  %v1765_v15 = vrot.slane %v10758_v29, 4  ;;  %v7951_v21 = vrot.slane %v10758_v29, 9  ;;  %v8003_v37 = vrot.slane %v10758_v29, 10  ;;  %2036 = vmatpush.bf16.msra.mxu1 %v9562_v0  ;;  %v9561_v27 = vld [vmem:[%s12898_s3 + $0x160] sm:$0xff] }
 0x254   :  { %1734 = vst [vmem:[#allocation1 + $0x11] ss:$2 sm:$0xff] %v10758_v29  ;;  %v1677_v30 = vmul.f32 %v10708_v31, %v1671_v51  ;;  %v9568_v31 = vld [vmem:[%s12898_s3 + $0x198] sm:$0xff]  ;;  %v10883_v9 = vld [vmem:[#allocation3 + $0x20] sm:$0x3f] }
 0x255   :  { %1704 = vst.msk [vmem:[#allocation3 + $0x39] sm:$0xf] %vm1699_vm13, %v1685_v59  ;;  %v1784_v39 = vrot.slane %v1765_v15, 5  ;;  %2123 = vmatpush.bf16.msrb.mxu2 %v9568_v31  ;;  %v1948_v44 = vrot.slane %v1765_v15, 6  ;;  %v10849_v59 = vsel %vm10200_vm12, %v8002_v50, %v1944_v47  ;;  %v9576_v15 = vld [vmem:[%s12898_s3 + $0x1d8] sm:$0xff] }
 0x256   :  { %1705 = vst.msk [vmem:[#allocation3 + $0x41] sm:$0xf] %vm1699_vm13, %v1693_v62  ;;  %v1682_v63 = vadd.f32 %v10710_v14, %v1677_v30  ;;  %v9572_v30 = vld [vmem:[%s12898_s3 + $0x1b8] sm:$0xff]  ;;  %2315 = vmatpush.bf16.msra.mxu0 %v9576_v15  ;;  %v9583_v15 = vld [vmem:[%s12898_s3 + $0x210] sm:$0xff] }
 0x257   :  { %v10806_v23 = vsel %vm10187_vm9, %v7951_v21, %v1784_v39  ;;  %2220 = vmatpush.bf16.msrb.mxu3 %v9572_v30  ;;  %2037 = vmatpush.bf16.msra.mxu1 %v9561_v27 }
 0x258   :  { %v1686_v8 = vmax.f32 %v1682_v63, 0.0 }
 0x259   :  { %2124 = vmatpush.bf16.msrb.mxu2 %v9567_v2  ;;  %v2142_v2 = vrot.slane %v10883_v9, 4 }
 0x25a   :  { %v10785_v14 = vld.sshfl [vmem:[#allocation1] sm:$0xff pattern:$0x75316420]  ;;  %1706 = vst.msk [vmem:[#allocation3 + $0x49] sm:$0xf] %vm1699_vm13, %v1686_v8  ;;  %v1694_v26 = vrot.slane %v1686_v8, 4 }
 0x25b   :  { %1966 = vst [vmem:[#allocation1] ss:$2 sm:$0xff] %v1937_v53  ;;  %v1744_v55 = vld.sshfl [vmem:[#allocation1 + $0x10] sm:$0xff pattern:$0x75316420]  ;;  %v1952_v8 = vrot.slane %v1766_v19, 6 }
 0x25c   :  { %1968 = vst [vmem:[#allocation1 + $0x1] ss:$2 sm:$0xff] %v10791_v22  ;;  %v10802_v52 = vld [vmem:[#allocation3 + $0x38] sm:$0x3f]  ;;  %v1751_v46 = vpack.c.bf16 %v1744_v55, %v1743_v57  ;;  %v1789_v57 = vsel %vm10187_vm9, %v7952_v61, %v1788_v34  ;;  %v9575_v55 = vld [vmem:[%s12898_s3 + $0x1d0] sm:$0xff]  ;;  %v9574_v34 = vld [vmem:[%s12898_s3 + $0x1c8] sm:$0xff] }
 0x25d   :  { %1806 = vst [vmem:[#allocation1 + $0x10] ss:$2 sm:$0xff] %v10799_v12  ;;  %v10809_v25 = vld [vmem:[#allocation3 + $0x40] sm:$0x3f]  ;;  %v1767_v35 = vrot.slane %v10802_v52, 4  ;;  %2125 = vmatpush.bf16.msrb.mxu2 %v9566_v32  ;;  %v7953_v6 = vrot.slane %v10802_v52, 9  ;;  %2316 = vmatpush.bf16.msra.mxu0 %v9575_v55 }
 0x25e   :  { %1808 = vst [vmem:[#allocation1 + $0x11] ss:$2 sm:$0xff] %v10806_v23  ;;  %7998 = vmatmul.msk.bf16.vlgmr.msrb.gmra.mxu0 %vm405_vm0, %v1751_v46  ;;  %v1768_v41 = vrot.slane %v10809_v25, 4  ;;  %v7954_v1 = vrot.slane %v10809_v25, 9  ;;  %v1953_v46 = vsel %vm10200_vm12, %v8004_v49, %v1952_v8  ;;  %v8005_v10 = vrot.slane %v10802_v52, 10  ;;  %v9580_v49 = vld [vmem:[%s12898_s3 + $0x1f8] sm:$0xff] }
 0x25f   :  { %1738 = vst [vmem:[#allocation1 + $0x21] ss:$2 sm:$0xff] %v10802_v52  ;;  %v1792_v16 = vrot.slane %v1767_v35, 5  ;;  %v1956_v19 = vrot.slane %v1767_v35, 6  ;;  %v8006_v47 = vrot.slane %v10809_v25, 10  ;;  %v9582_v8 = vld [vmem:[%s12898_s3 + $0x208] sm:$0xff] }
 0x260   :  { %1740 = vst [vmem:[#allocation1 + $0x30] ss:$2 sm:$0xff] %v10809_v25  ;;  %v1796_v51 = vrot.slane %v1768_v41, 5  ;;  %v1960_v61 = vrot.slane %v1768_v41, 6  ;;  %v9581_v55 = vld [vmem:[%s12898_s3 + $0x200] sm:$0xff] }
 0x261   :  { %1707 = vst.msk [vmem:[#allocation3 + $0x51] sm:$0xf] %vm1699_vm13, %v1694_v26  ;;  %v10829_v42 = vld [vmem:[#allocation3 + $0x48] sm:$0x3f]  ;;  %2126 = vmatpush.bf16.msrb.mxu2 %v9565_v5  ;;  %v10871_v63 = vsel %vm10187_vm9, %v7953_v6, %v1792_v16  ;;  %v10918_v41 = vsel %vm10200_vm12, %v8005_v10, %v1956_v19  ;;  %2317 = vmatpush.bf16.msra.mxu0 %v9574_v34  ;;  %v9569_v5 = vld [vmem:[%s12898_s3 + $0x1a0] sm:$0xff]  ;;  %v2146_v6 = vrot.slane %v2142_v2, 5 }
 0x262   :  { %1742 = vst [vmem:[#allocation1 + $0x31] ss:$2 sm:$0xff] %v10829_v42  ;;  %v1769_v33 = vrot.slane %v10829_v42, 4  ;;  %v7955_v20 = vrot.slane %v10829_v42, 9  ;;  %v10877_v31 = vsel %vm10187_vm9, %v7954_v1, %v1796_v51  ;;  %v9578_v10 = vld [vmem:[%s12898_s3 + $0x1e8] sm:$0xff] }
 0x263   :  { %v10834_v54 = vld.sshfl [vmem:[#allocation1] sm:$0xff pattern:$0x75316420] }
 0x264   :  { %2055 = vst [vmem:[#allocation1] ss:$2 sm:$0xff] %v10727_v18  ;;  %v10854_v18 = vsel %vm10200_vm12, %v8003_v37, %v1948_v44  ;;  %v1800_v58 = vrot.slane %v1769_v33, 5  ;;  %v1964_v32 = vrot.slane %v1769_v33, 6  ;;  %v8007_v44 = vrot.slane %v10829_v42, 10  ;;  %v9573_v37 = vld [vmem:[%s12898_s3 + $0x1c0] sm:$0xff] }
 0x265   :  { %2057 = vst [vmem:[#allocation1 + $0x1] ss:$2 sm:$0xff] %v10733_v40  ;;  %v1818_v4 = vld.sshfl [vmem:[#allocation1 + $0x10] sm:$0xff pattern:$0x75316420]  ;;  %v10923_v33 = vsel %vm10200_vm12, %v8006_v47, %v1960_v61  ;;  %2318 = vmatpush.bf16.msra.mxu0 %v9573_v37  ;;  %v9588_v61 = vld [vmem:[%s12898_s3 + $0x238] sm:$0xff] }
 0x266   :  { %1970 = vst [vmem:[#allocation1 + $0x10] ss:$2 sm:$0xff] %v10849_v59  ;;  %v1745_v13 = vld.sshfl [vmem:[#allocation1 + $0x20] sm:$0xff pattern:$0x75316420]  ;;  %v1825_v62 = vpack.c.bf16 %v1818_v4, %v10785_v14  ;;  %v10887_v11 = vsel %vm10187_vm9, %v7955_v20, %v1800_v58  ;;  %v9571_v14 = vld [vmem:[%s12898_s3 + $0x1b0] sm:$0xff]  ;;  %v10928_v48 = vsel %vm10200_vm12, %v8007_v44, %v1964_v32 }
 0x267   :  { %1972 = vst [vmem:[#allocation1 + $0x11] ss:$2 sm:$0xff] %v10854_v18  ;;  %2221 = vmatpush.bf16.msrb.mxu3 %v9571_v14  ;;  %v8060_v4 = vrot.slane %v10883_v9, 9  ;;  %v2241_v20 = vrot.slane %v2142_v2, 6  ;;  %v1713_v32 = vld [vmem:[#allocation3 + $0x28] sm:$0x3f] }
 0x268   :  { %1810 = vst [vmem:[#allocation1 + $0x20] ss:$2 sm:$0xff] %v1789_v57  ;;  %7980 = vmatmul.msk.bf16.vlgmr.msra.gmra.mxu3 %vm405_vm0, %v1825_v62  ;;  %v10954_v1 = vld [vmem:[#allocation3 + $0x50] sm:$0x3f] }
 0x269   :  { %1812 = vst [vmem:[#allocation1 + $0x21] ss:$2 sm:$0xff] %v10871_v63  ;;  %v1746_v53 = vld.sshfl [vmem:[#allocation1 + $0x30] sm:$0xff pattern:$0x75316420]  ;;  %v10946_v58 = vsel %vm10187_vm9, %v8060_v4, %v2146_v6 }
 0x26a   :  { %1814 = vst [vmem:[#allocation1 + $0x30] ss:$2 sm:$0xff] %v10877_v31  ;;  %v1752_v39 = vpack.c.bf16 %v1746_v53, %v1745_v13  ;;  %v9584_v13 = vld [vmem:[%s12898_s3 + $0x218] sm:$0xff] }
 0x26b   :  { %1816 = vst [vmem:[#allocation1 + $0x31] ss:$2 sm:$0xff] %v10887_v11  ;;  %2501 = vmatpush.bf16.msra.mxu2 %v9584_v13  ;;  %v1719_v13 = vld [vmem:[#allocation3 + $0x58] sm:$0x3f] }
 0x26c   :  { %v2070_v21 = vld.sshfl [vmem:[#allocation1] sm:$0xff pattern:$0x75316420]  ;;  %7999 = vmatmul.msk.bf16.vlgmr.msrb.gmra.mxu1 %vm405_vm0, %v1752_v39 }
 0x26d   :  { %2152 = vst [vmem:[#allocation1] ss:$2 sm:$0xff] %v10756_v7  ;;  %v9570_v7 = vld [vmem:[%s12898_s3 + $0x1a8] sm:$0xff]  ;;  %2404 = vmatpush.bf16.msrb.mxu1 %v9580_v49 }
 0x26e   :  { %2154 = vst [vmem:[#allocation1 + $0x1] ss:$2 sm:$0xff] %v10799_v12  ;;  %v1982_v26 = vld.sshfl [vmem:[#allocation1 + $0x10] sm:$0xff pattern:$0x75316420]  ;;  %2222 = vmatpush.bf16.msrb.mxu3 %v9570_v7  ;;  %v2423_v7 = vrot.slane %v1713_v32, 4 }
 0x26f   :  { %2059 = vst [vmem:[#allocation1 + $0x10] ss:$2 sm:$0xff] %v10758_v29  ;;  %v1989_v30 = vpack.c.bf16 %v1982_v26, %v10834_v54  ;;  %2502 = vmatpush.bf16.msra.mxu2 %v9583_v15  ;;  %v8088_v54 = vrot.slane %v10883_v9, 10 }
 0x270   :  { %2061 = vst [vmem:[#allocation1 + $0x11] ss:$2 sm:$0xff] %v10883_v9  ;;  %v1819_v35 = vld.sshfl [vmem:[#allocation1 + $0x20] sm:$0xff pattern:$0x75316420]  ;;  %v2427_v37 = vrot.slane %v2423_v7, 5 }
 0x271   :  { %1974 = vst [vmem:[#allocation1 + $0x20] ss:$2 sm:$0xff] %v1953_v46  ;;  %v10977_v14 = vsel %vm10200_vm12, %v8088_v54, %v2241_v20  ;;  %v2522_v15 = vrot.slane %v2423_v7, 6 }
 0x272   :  { %1976 = vst [vmem:[#allocation1 + $0x21] ss:$2 sm:$0xff] %v10918_v41  ;;  %v1820_v50 = vld.sshfl [vmem:[#allocation1 + $0x30] sm:$0xff pattern:$0x75316420]  ;;  %2223 = vmatpush.bf16.msrb.mxu3 %v9569_v5  ;;  %v8142_v5 = vrot.slane %v1713_v32, 9 }
 0x273   :  { %1978 = vst [vmem:[#allocation1 + $0x30] ss:$2 sm:$0xff] %v10923_v33  ;;  %v1826_v16 = vpack.c.bf16 %v1820_v50, %v1819_v35  ;;  %2503 = vmatpush.bf16.msra.mxu2 %v9582_v8 }
 0x274   :  { %1980 = vst [vmem:[#allocation1 + $0x31] ss:$2 sm:$0xff] %v10928_v48  ;;  %v2428_v4 = vsel %vm10187_vm9, %v8142_v5, %v2427_v37 }
 0x275   :  { %v2167_v57 = vld.sshfl [vmem:[#allocation1] sm:$0xff pattern:$0x75316420] }
 0x276   :  { %2247 = vst [vmem:[#allocation1] ss:$2 sm:$0xff] %v10791_v22  ;;  %2596 = vmatpush.bf16.msra.mxu3 %v9588_v61 }
 0x277   :  { %2249 = vst [vmem:[#allocation1 + $0x1] ss:$2 sm:$0xff] %v10849_v59  ;;  %v2071_v51 = vld.sshfl [vmem:[#allocation1 + $0x10] sm:$0xff pattern:$0x75316420]  ;;  %2504 = vmatpush.bf16.msra.mxu2 %v9581_v55 }
 0x278   :  { %2156 = vst [vmem:[#allocation1 + $0x10] ss:$2 sm:$0xff] %v10806_v23  ;;  %7981 = vmatmul.msk.bf16.gmra.mxu3 %vm405_vm0, %v1826_v16  ;;  %v2078_v62 = vpack.c.bf16 %v2071_v51, %v2070_v21  ;;  %v8061_v21 = vrot.slane %v10954_v1, 9 }
 0x279   :  { %2158 = vst [vmem:[#allocation1 + $0x11] ss:$2 sm:$0xff] %v10946_v58  ;;  %v10951_v22 = vld.sshfl [vmem:[#allocation1 + $0x20] sm:$0xff pattern:$0x75316420] }
 0x27a   :  { %2063 = vst [vmem:[#allocation1 + $0x20] ss:$2 sm:$0xff] %v10802_v52  ;;  %8058 = vmatmul.msk.bf16.vlgmr.msrb.gmra.mxu2 %vm405_vm0, %v2078_v62  ;;  %v2143_v52 = vrot.slane %v10954_v1, 4  ;;  %v9585_v62 = vld [vmem:[%s12898_s3 + $0x220] sm:$0xff] }
 0x27b   :  { %2065 = vst [vmem:[#allocation1 + $0x21] ss:$2 sm:$0xff] %v10809_v25  ;;  %v1984_v0 = vld.sshfl [vmem:[#allocation1 + $0x30] sm:$0xff pattern:$0x75316420] }
 0x27c   :  { %2067 = vst [vmem:[#allocation1 + $0x30] ss:$2 sm:$0xff] %v10829_v42  ;;  %8032 = vmatmul.msk.bf16.vlgmr.msra.gmra.mxu1 %vm405_vm0, %v1989_v30  ;;  %v2245_v35 = vrot.slane %v2143_v52, 6  ;;  %v1990_v44 = vpack.c.bf16 %v1984_v0, %v10951_v22  ;;  %v2424_v30 = vrot.slane %v1719_v13, 4  ;;  %v8170_v0 = vrot.slane %v1713_v32, 10 }
 0x27d   :  { %2069 = vst [vmem:[#allocation1 + $0x31] ss:$2 sm:$0xff] %v10954_v1 }
 0x27e   :  { %v2262_v53 = vld.sshfl [vmem:[#allocation1] sm:$0xff pattern:$0x75316420]  ;;  %v2523_v54 = vsel %vm10200_vm12, %v8170_v0, %v2522_v15 }
 0x27f   :  { %2336 = vst [vmem:[#allocation1] ss:$2 sm:$0xff] %v10733_v40  ;;  %v2150_v40 = vrot.slane %v2143_v52, 5  ;;  %v8143_v52 = vrot.slane %v1719_v13, 9 }
 0x280   :  { %v2168_v39 = vld.sshfl [vmem:[#allocation1 + $0x10] sm:$0xff pattern:$0x75316420]  ;;  %2338 = vst [vmem:[#allocation1 + $0x1] ss:$2 sm:$0xff] %v10758_v29 }
 0x281   :  { %2251 = vst [vmem:[#allocation1 + $0x10] ss:$2 sm:$0xff] %v10854_v18  ;;  %v9579_v29 = vld [vmem:[%s12898_s3 + $0x1f0] sm:$0xff]  ;;  %v10992_v19 = vsel %vm10187_vm9, %v8061_v21, %v2150_v40  ;;  %v2175_v46 = vpack.c.bf16 %v2168_v39, %v2167_v57  ;;  %v2526_v40 = vrot.slane %v2424_v30, 6 }
 0x282   :  { %2253 = vst [vmem:[#allocation1 + $0x11] ss:$2 sm:$0xff] %v10977_v14  ;;  %v2072_v27 = vld.sshfl [vmem:[#allocation1 + $0x20] sm:$0xff pattern:$0x75316420]  ;;  %2405 = vmatpush.bf16.msrb.mxu1 %v9579_v29 }
 0x283   :  { %2160 = vst [vmem:[#allocation1 + $0x20] ss:$2 sm:$0xff] %v10871_v63 }
 0x284   :  { %2162 = vst [vmem:[#allocation1 + $0x21] ss:$2 sm:$0xff] %v10877_v31  ;;  %v2073_v2 = vld.sshfl [vmem:[#allocation1 + $0x30] sm:$0xff pattern:$0x75316420] }
 0x285   :  { %2164 = vst [vmem:[#allocation1 + $0x30] ss:$2 sm:$0xff] %v10887_v11  ;;  %v2079_v63 = vpack.c.bf16 %v2073_v2, %v2072_v27 }
 0x286   :  { %2166 = vst [vmem:[#allocation1 + $0x31] ss:$2 sm:$0xff] %v10992_v19  ;;  %2406 = vmatpush.bf16.msrb.mxu1 %v9578_v10 }
 0x287   :  { %v10996_v26 = vld.sshfl [vmem:[#allocation1] sm:$0xff pattern:$0x75316420] }
 0x288   :  { %2433 = vst [vmem:[#allocation1] ss:$2 sm:$0xff] %v10799_v12  ;;  %8086 = vmatmul.msk.bf16.vlgmr.msrb.gmra.mxu3 %vm405_vm0, %v2175_v46  ;;  %v9587_v12 = vld [vmem:[%s12898_s3 + $0x230] sm:$0xff] }
 0x289   :  { %v2263_v34 = vld.sshfl [vmem:[#allocation1 + $0x10] sm:$0xff pattern:$0x75316420]  ;;  %2435 = vst [vmem:[#allocation1 + $0x1] ss:$2 sm:$0xff] %v10806_v23  ;;  %v8089_v23 = vrot.slane %v10954_v1, 10  ;;  %2597 = vmatpush.bf16.msra.mxu3 %v9587_v12 }
 0x28a   :  { %2340 = vst [vmem:[#allocation1 + $0x10] ss:$2 sm:$0xff] %v10883_v9  ;;  %8059 = vmatmul.msk.bf16.gmra.mxu2 %vm405_vm0, %v2079_v63  ;;  %v2270_v47 = vpack.c.bf16 %v2263_v34, %v2262_v53  ;;  %v9577_v9 = vld [vmem:[%s12898_s3 + $0x1e0] sm:$0xff]  ;;  %v2431_v53 = vrot.slane %v2424_v30, 5 }
 0x28b   :  { %2342 = vst [vmem:[#allocation1 + $0x11] ss:$2 sm:$0xff] %v1713_v32  ;;  %v2169_v50 = vld.sshfl [vmem:[#allocation1 + $0x20] sm:$0xff pattern:$0x75316420]  ;;  %v11023_v16 = vsel %vm10200_vm12, %v8089_v23, %v2245_v35  ;;  %2407 = vmatpush.bf16.msrb.mxu1 %v9577_v9 }
 0x28c   :  { %2255 = vst [vmem:[#allocation1 + $0x20] ss:$2 sm:$0xff] %v10918_v41  ;;  %8114 = vmatmul.msk.bf16.vlgmr.msra.gmra.mxu0 %vm405_vm0, %v2270_v47  ;;  %8033 = vmatmul.msk.bf16.gmra.mxu1 %vm405_vm0, %v1990_v44  ;;  %v9586_v41 = vld [vmem:[%s12898_s3 + $0x228] sm:$0xff]  ;;  %v2432_v8 = vsel %vm10187_vm9, %v8143_v52, %v2431_v53 }
 0x28d   :  { %2257 = vst [vmem:[#allocation1 + $0x21] ss:$2 sm:$0xff] %v10923_v33  ;;  %v2170_v6 = vld.sshfl [vmem:[#allocation1 + $0x30] sm:$0xff pattern:$0x75316420]  ;;  %2598 = vmatpush.bf16.msra.mxu3 %v9586_v41 }
 0x28e   :  { %2259 = vst [vmem:[#allocation1 + $0x30] ss:$2 sm:$0xff] %v10928_v48  ;;  %v2176_v20 = vpack.c.bf16 %v2170_v6, %v2169_v50 }
 0x28f   :  { %2261 = vst [vmem:[#allocation1 + $0x31] ss:$2 sm:$0xff] %v11023_v16 }
 0x290   :  { %v2448_v57 = vld.sshfl [vmem:[#allocation1] sm:$0xff pattern:$0x75316420] }
 0x291   :  { %2528 = vst [vmem:[#allocation1] ss:$2 sm:$0xff] %v10849_v59  ;;  %2599 = vmatpush.bf16.msra.mxu3 %v9585_v62 }
 0x292   :  { %v2352_v51 = vld.sshfl [vmem:[#allocation1 + $0x10] sm:$0xff pattern:$0x75316420]  ;;  %2530 = vst [vmem:[#allocation1 + $0x1] ss:$2 sm:$0xff] %v10854_v18 }
 0x293   :  { %2437 = vst [vmem:[#allocation1 + $0x10] ss:$2 sm:$0xff] %v10946_v58 }
 0x294   :  { %2439 = vst [vmem:[#allocation1 + $0x11] ss:$2 sm:$0xff] %v2428_v4  ;;  %v2264_v22 = vld.sshfl [vmem:[#allocation1 + $0x20] sm:$0xff pattern:$0x75316420] }
 0x295   :  { %2344 = vst [vmem:[#allocation1 + $0x20] ss:$2 sm:$0xff] %v10809_v25  ;;  %v2359_v25 = vpack.c.bf16 %v2352_v51, %v10996_v26 }
 0x296   :  { %v2265_v59 = vld.sshfl [vmem:[#allocation1 + $0x30] sm:$0xff pattern:$0x75316420]  ;;  %2346 = vst [vmem:[#allocation1 + $0x21] ss:$2 sm:$0xff] %v10829_v42 }
 0x297   :  { %2348 = vst [vmem:[#allocation1 + $0x30] ss:$2 sm:$0xff] %v10954_v1  ;;  %v2271_v18 = vpack.c.bf16 %v2265_v59, %v2264_v22 }
 0x298   :  { %2350 = vst [vmem:[#allocation1 + $0x31] ss:$2 sm:$0xff] %v1719_v13  ;;  %8087 = vmatmul.msk.bf16.gmra.mxu3 %vm405_vm0, %v2176_v20  ;;  %v8198_v20 = vld [vmem:[%s12899_s4 + $0x2] sm:$0x3] }
 0x299   :  { %v2543_v58 = vld.sshfl [vmem:[#allocation1] sm:$0xff pattern:$0x75316420] }
 0x29a   :  { %2635 = vst [vmem:[#allocation1] ss:$2 sm:$0xff] %v10714_v38 }
 0x29b   :  { %v2449_v49 = vld.sshfl [vmem:[#allocation1 + $0x10] sm:$0xff pattern:$0x75316420]  ;;  %2637 = vst [vmem:[#allocation1 + $0x1] ss:$2 sm:$0xff] %v10717_v60 }
 0x29c   :  { %2532 = vst [vmem:[#allocation1 + $0x10] ss:$2 sm:$0xff] %v10977_v14  ;;  %8115 = vmatmul.msk.bf16.gmra.mxu0 %vm405_vm0, %v2271_v18  ;;  %v2456_v42 = vpack.c.bf16 %v2449_v49, %v2448_v57  ;;  %8140 = vmatmul.msk.bf16.vlgmr.msrb.gmra.mxu1 %vm405_vm0, %v2359_v25  ;;  %v11055_v60 = vld [vmem:[#allocation3] sm:$0x3f]  ;;  %v8171_v14 = vrot.slane %v1719_v13, 10 }
 0x29d   :  { %2534 = vst [vmem:[#allocation1 + $0x11] ss:$2 sm:$0xff] %v2523_v54  ;;  %v2353_v1 = vld.sshfl [vmem:[#allocation1 + $0x20] sm:$0xff pattern:$0x75316420]  ;;  %v11084_v54 = vperm.slane %v8198_v20, 0 }
 0x29e   :  { %2441 = vst [vmem:[#allocation1 + $0x20] ss:$2 sm:$0xff] %v10877_v31  ;;  %8168 = vmatmul.msk.bf16.vlgmr.msra.gmra.mxu2 %vm405_vm0, %v2456_v42 }
 0x29f   :  { %v2354_v38 = vld.sshfl [vmem:[#allocation1 + $0x30] sm:$0xff pattern:$0x75316420]  ;;  %2443 = vst [vmem:[#allocation1 + $0x21] ss:$2 sm:$0xff] %v10887_v11  ;;  %v2527_v11 = vsel %vm10200_vm12, %v8171_v14, %v2526_v40 }
 0x2a0   :  { %2445 = vst [vmem:[#allocation1 + $0x30] ss:$2 sm:$0xff] %v10992_v19  ;;  %v2360_v2 = vpack.c.bf16 %v2354_v38, %v2353_v1  ;;  %v11086_v1 = vperm.slane %v8198_v20, 1 }
 0x2a1   :  { %2447 = vst [vmem:[#allocation1 + $0x31] ss:$2 sm:$0xff] %v2432_v8 }
 0x2a2   :  { %v11058_v39 = vld.sshfl [vmem:[#allocation1] sm:$0xff pattern:$0x75316420] }
 0x2a3   :  { %2714 = vst [vmem:[#allocation1] ss:$2 sm:$0xff] %v11055_v60 }
 0x2a4   :  { %v2544_v27 = vld.sshfl [vmem:[#allocation1 + $0x10] sm:$0xff pattern:$0x75316420] }
 0x2a5   :  { %2639 = vst [vmem:[#allocation1 + $0x10] ss:$2 sm:$0xff] %v10731_v36  ;;  %v2551_v21 = vpack.c.bf16 %v2544_v27, %v2543_v58  ;;  %v9592_v27 = vld [vmem:[%s12898_s3 + $0x258] sm:$0xff] }
 0x2a6   :  { %2641 = vst [vmem:[#allocation1 + $0x11] ss:$2 sm:$0xff] %v10743_v45  ;;  %v2450_v31 = vld.sshfl [vmem:[#allocation1 + $0x20] sm:$0xff pattern:$0x75316420]  ;;  %2905 = vmatpush.bf16.msra.mxu1 %v9592_v27 }
 0x2a7   :  { %2536 = vst [vmem:[#allocation1 + $0x20] ss:$2 sm:$0xff] %v10923_v33  ;;  %v11075_v33 = vld [vmem:[#allocation3 + $0x30] sm:$0x3f] }
 0x2a8   :  { %v2451_v29 = vld.sshfl [vmem:[#allocation1 + $0x30] sm:$0xff pattern:$0x75316420]  ;;  %2538 = vst [vmem:[#allocation1 + $0x21] ss:$2 sm:$0xff] %v10928_v48  ;;  %8196 = vmatmul.msk.bf16.vlgmr.msra.gmra.mxu3 %vm405_vm0, %v2551_v21 }
 0x2a9   :  { %2540 = vst [vmem:[#allocation1 + $0x30] ss:$2 sm:$0xff] %v11023_v16  ;;  %v2457_v55 = vpack.c.bf16 %v2451_v29, %v2450_v31 }
 0x2aa   :  { %2542 = vst [vmem:[#allocation1 + $0x31] ss:$2 sm:$0xff] %v2527_v11 }
 0x2ac   :  { %8141 = vmatmul.msk.bf16.gmra.mxu1 %vm405_vm0, %v2360_v2 }
 0x2ae   :  { %8169 = vmatmul.msk.bf16.gmra.mxu2 %vm405_vm0, %v2457_v55 }
 0x2af   :  { %v2545_v36 = vld.sshfl [vmem:[#allocation1 + $0x20] sm:$0xff pattern:$0x75316420] }
 0x2b0   :  { %2643 = vst [vmem:[#allocation1 + $0x20] ss:$2 sm:$0xff] %v10764_v43 }
 0x2b1   :  { %v2546_v45 = vld.sshfl [vmem:[#allocation1 + $0x30] sm:$0xff pattern:$0x75316420]  ;;  %2645 = vst [vmem:[#allocation1 + $0x21] ss:$2 sm:$0xff] %v10771_v17 }
 0x2b2   :  { %2647 = vst [vmem:[#allocation1 + $0x30] ss:$2 sm:$0xff] %v10783_v24  ;;  %v2552_v48 = vpack.c.bf16 %v2546_v45, %v2545_v36 }
 0x2b3   :  { %2649 = vst [vmem:[#allocation1 + $0x31] ss:$2 sm:$0xff] %v10825_v28 }
 0x2b8   :  { %8197 = vmatmul.msk.bf16.gmra.mxu3 %vm405_vm0, %v2552_v48  ;;  %v11078_v19 = vld.sshfl [vmem:[#allocation1 + $0x20] sm:$0xff pattern:$0x75316420] }
 0x2b9   :  { %2722 = vst [vmem:[#allocation1 + $0x20] ss:$2 sm:$0xff] %v11075_v33 }
 0x2db   :  { %v1924_v34 = vpop.f32.mrf.mxu0 }
 0x2e3   :  { %v1926_v12 = vpop.f32.mrf.mxu0 }
 0x2e9   :  { %v1929_v63 = vpop.f32.mrf.mxu1 }
 0x2eb   :  { %v1875_v46 = vpop.f32.mrf.mxu3 }
 0x2ec   :  { %v1925_v5 = vadd.f32 %v1924_v34, %v1875_v46 }
 0x2f1   :  { %v1931_v26 = vpop.f32.mrf.mxu1 }
 0x2f3   :  { %v1877_v43 = vpop.f32.mrf.mxu3 }
 0x2f4   :  { %v1927_v57 = vadd.f32 %v1926_v12, %v1877_v43 }
 0x2f9   :  { %v2039_v61 = vpop.f32.mrf.mxu1 }
 0x2fa   :  { %v2049_v9 = vadd.f32 %v2039_v61, %v1925_v5 }
 0x2fb   :  { %v1880_v10 = vpop.f32.mrf.mxu3 }
 0x2fc   :  { %v1930_v18 = vadd.f32 %v1929_v63, %v1880_v10  ;;  %v9591_v63 = vld [vmem:[%s12898_s3 + $0x250] sm:$0xff] }
 0x2fd   :  { %v2128_v17 = vpop.f32.mrf.mxu2  ;;  %2906 = vmatpush.bf16.msra.mxu1 %v9591_v63 }
 0x2fe   :  { %v2138_v41 = vadd.f32 %v2128_v17, %v2049_v9  ;;  %v9595_v9 = vld [vmem:[%s12898_s3 + $0x270] sm:$0xff] }
 0x301   :  { %v2041_v32 = vpop.f32.mrf.mxu1 }
 0x302   :  { %v2050_v51 = vadd.f32 %v2041_v32, %v1927_v57  ;;  %v8207_v57 = vrot.slane %v11055_v60, 9 }
 0x303   :  { %v1882_v24 = vpop.f32.mrf.mxu3 }
 0x304   :  { %v1932_v31 = vadd.f32 %v1931_v26, %v1882_v24 }
 0x305   :  { %v2130_v7 = vpop.f32.mrf.mxu2 }
 0x306   :  { %v2139_v0 = vadd.f32 %v2130_v7, %v2050_v51  ;;  %v9590_v7 = vld [vmem:[%s12898_s3 + $0x248] sm:$0xff] }
 0x307   :  { %2907 = vmatpush.bf16.msra.mxu1 %v9590_v7 }
 0x309   :  { %v2044_v28 = vpop.f32.mrf.mxu1  ;;  %v2320_v6 = vpop.f32.mrf.mxu0 }
 0x30a   :  { %v2051_v52 = vadd.f32 %v2044_v28, %v1930_v18 }
 0x30b   :  { %v2225_v35 = vpop.f32.mrf.mxu3 }
 0x30c   :  { %v2235_v4 = vadd.f32 %v2225_v35, %v2138_v41  ;;  %v2651_v35 = vld.sshfl [vmem:[#allocation1 + $0x10] sm:$0xff pattern:$0x75316420] }
 0x30d   :  { %v2133_v47 = vpop.f32.mrf.mxu2 }
 0x30e   :  { %v2330_v22 = vadd.f32 %v2320_v6, %v2235_v4  ;;  %v2140_v38 = vadd.f32 %v2133_v47, %v2051_v52  ;;  %v2748_v47 = vrot.slane %v11055_v60, 4 }
 0x310   :  { %v2758_v51 = vrot.slane %v2748_v47, 5 }
 0x311   :  { %v2046_v50 = vpop.f32.mrf.mxu1  ;;  %v2322_v30 = vpop.f32.mrf.mxu0 }
 0x312   :  { %v2052_v2 = vadd.f32 %v2046_v50, %v1932_v31 }
 0x313   :  { %v2227_v44 = vpop.f32.mrf.mxu3 }
 0x314   :  { %v2236_v58 = vadd.f32 %v2227_v44, %v2139_v0 }
 0x315   :  { %v2135_v23 = vpop.f32.mrf.mxu2 }
 0x316   :  { %v2331_v49 = vadd.f32 %v2322_v30, %v2236_v58  ;;  %v2141_v26 = vadd.f32 %v2135_v23, %v2052_v2 }
 0x319   :  { %v2409_v16 = vpop.f32.mrf.mxu1  ;;  %v2325_v21 = vpop.f32.mrf.mxu0 }
 0x31a   :  { %v2419_v15 = vadd.f32 %v2409_v16, %v2330_v22 }
 0x31b   :  { %v2230_v37 = vpop.f32.mrf.mxu3 }
 0x31c   :  { %v2237_v11 = vadd.f32 %v2230_v37, %v2140_v38  ;;  %v9589_v37 = vld [vmem:[%s12898_s3 + $0x240] sm:$0xff] }
 0x31d   :  { %2908 = vmatpush.bf16.msra.mxu1 %v9589_v37  ;;  %v9601_v37 = vld [vmem:[%s12898_s3 + $0x2a0] sm:$0xff] }
 0x31e   :  { %v2332_v43 = vadd.f32 %v2325_v21, %v2237_v11  ;;  %v8259_v11 = vrot.slane %v11055_v60, 10 }
 0x321   :  { %v2506_v13 = vpop.f32.mrf.mxu2  ;;  %v2411_v59 = vpop.f32.mrf.mxu1 }
 0x322   :  { %v2516_v53 = vadd.f32 %v2506_v13, %v2419_v15  ;;  %v2420_v14 = vadd.f32 %v2411_v59, %v2331_v49  ;;  %v2327_v44 = vpop.f32.mrf.mxu0  ;;  %v9594_v15 = vld [vmem:[%s12898_s3 + $0x268] sm:$0xff]  ;;  %v9600_v59 = vld [vmem:[%s12898_s3 + $0x298] sm:$0xff] }
 0x323   :  { %v2232_v62 = vpop.f32.mrf.mxu3  ;;  %3020 = vmatpush.bf16.msrb.mxu2 %v9600_v59  ;;  %v9608_v59 = vld [vmem:[%s12898_s3 + $0x2d8] sm:$0xff] }
 0x324   :  { %v2238_v28 = vadd.f32 %v2232_v62, %v2141_v26 }
 0x326   :  { %v2333_v16 = vadd.f32 %v2327_v44, %v2238_v28 }
 0x329   :  { %v2508_v8 = vpop.f32.mrf.mxu2  ;;  %v2414_v55 = vpop.f32.mrf.mxu1 }
 0x32a   :  { %v2517_v45 = vadd.f32 %v2508_v8, %v2420_v14  ;;  %v2421_v17 = vadd.f32 %v2414_v55, %v2332_v43  ;;  %v9599_v8 = vld [vmem:[%s12898_s3 + $0x290] sm:$0xff]  ;;  %v2922_v55 = vrot.slane %v2748_v47, 6  ;;  %v9597_v43 = vld [vmem:[%s12898_s3 + $0x280] sm:$0xff]  ;;  %v2752_v47 = vrot.slane %v11075_v33, 4 }
 0x32b   :  { %v2601_v25 = vpop.f32.mrf.mxu3  ;;  %3021 = vmatpush.bf16.msrb.mxu2 %v9599_v8 }
 0x32c   :  { %v2611_v42 = vadd.f32 %v2601_v25, %v2516_v53  ;;  %v2759_v53 = vsel %vm10187_vm9, %v8207_v57, %v2758_v51 }
 0x32e   :  { %v2618_v40 = vmul.f32 %v11084_v54, %v2611_v42  ;;  %v9593_v42 = vld [vmem:[%s12898_s3 + $0x260] sm:$0xff] }
 0x330   :  { %v2623_v29 = vadd.f32 %v11086_v1, %v2618_v40 }
 0x331   :  { %v2511_v24 = vpop.f32.mrf.mxu2  ;;  %v2416_v5 = vpop.f32.mrf.mxu1 }
 0x332   :  { %v2658_v36 = vadd.f32 %v11058_v39, %v2623_v29  ;;  %v9596_v39 = vld [vmem:[%s12898_s3 + $0x278] sm:$0xff]  ;;  %v2518_v12 = vadd.f32 %v2511_v24, %v2421_v17  ;;  %v2422_v22 = vadd.f32 %v2416_v5, %v2333_v16  ;;  %v2774_v16 = vrot.slane %v2752_v47, 5 }
 0x333   :  { %v2603_v48 = vpop.f32.mrf.mxu3  ;;  %2856 = vmatpush.bf16.msrb.mxu0 %v9596_v39 }
 0x334   :  { %v2662_v46 = vmax.f32 %v2658_v36, 0.0  ;;  %v2612_v61 = vadd.f32 %v2603_v48, %v2517_v45  ;;  %v9604_v45 = vld [vmem:[%s12898_s3 + $0x2b8] sm:$0xff]  ;;  %v2653_v48 = vld.sshfl [vmem:[#allocation1 + $0x30] sm:$0xff pattern:$0x75316420] }
 0x335   :  { %3109 = vmatpush.bf16.msrb.mxu3 %v9604_v45  ;;  %v2938_v45 = vrot.slane %v2752_v47, 6 }
 0x336   :  { %v2670_v10 = vrot.slane %v2662_v46, 4  ;;  %2678 = vst.msk [vmem:[#allocation3 + $0x9] sm:$0xf] %vm1699_vm13, %v2662_v46  ;;  %v2619_v32 = vmul.f32 %v11084_v54, %v2612_v61  ;;  %v2923_v61 = vsel %vm10200_vm12, %v8259_v11, %v2922_v55 }
 0x337   :  { %2857 = vmatpush.bf16.msrb.mxu0 %v9595_v9 }
 0x338   :  { %2679 = vst.msk [vmem:[#allocation3 + $0x11] sm:$0xf] %vm1699_vm13, %v2670_v10  ;;  %v2624_v34 = vadd.f32 %v11086_v1, %v2619_v32 }
 0x339   :  { %v2513_v20 = vpop.f32.mrf.mxu2 }
 0x33a   :  { %v2659_v50 = vadd.f32 %v2651_v35, %v2624_v34  ;;  %v2519_v52 = vadd.f32 %v2513_v20, %v2422_v22  ;;  %v9602_v35 = vld [vmem:[%s12898_s3 + $0x2a8] sm:$0xff]  ;;  %v9612_v20 = vld [vmem:[%s12898_s3 + $0x2f8] sm:$0xff] }
 0x33b   :  { %v2606_v23 = vpop.f32.mrf.mxu3  ;;  %2858 = vmatpush.bf16.msrb.mxu0 %v9594_v15  ;;  %3301 = vmatpush.bf16.msrb.mxu1 %v9612_v20 }
 0x33c   :  { %v2663_v6 = vmax.f32 %v2659_v50, 0.0  ;;  %v2613_v41 = vadd.f32 %v2606_v23, %v2518_v12 }
 0x33d   :  { %v11115_v4 = vld [vmem:[#allocation3 + $0x8] sm:$0x3f] }
 0x33e   :  { %2716 = vst [vmem:[#allocation1 + $0x1] ss:$2 sm:$0xff] %v11115_v4  ;;  %v2749_v13 = vrot.slane %v11115_v4, 4  ;;  %v2671_v62 = vrot.slane %v2663_v6, 4  ;;  %v2620_v0 = vmul.f32 %v11084_v54, %v2613_v41  ;;  %v8208_v38 = vrot.slane %v11115_v4, 9 }
 0x33f   :  { %v11119_v30 = vld [vmem:[#allocation3 + $0x10] sm:$0x3f]  ;;  %2680 = vst.msk [vmem:[#allocation3 + $0x19] sm:$0xf] %vm1699_vm13, %v2663_v6  ;;  %2859 = vmatpush.bf16.msrb.mxu0 %v9593_v42  ;;  %v8260_v32 = vrot.slane %v11115_v4, 10  ;;  %v8211_v6 = vrot.slane %v11075_v33, 9 }
 0x340   :  { %2718 = vst [vmem:[#allocation1 + $0x10] ss:$2 sm:$0xff] %v11119_v30  ;;  %v2625_v18 = vadd.f32 %v11086_v1, %v2620_v0  ;;  %v2762_v58 = vrot.slane %v2749_v13, 5  ;;  %v2750_v2 = vrot.slane %v11119_v30, 4  ;;  %v2926_v46 = vrot.slane %v2749_v13, 6 }
 0x341   :  { %2681 = vst.msk [vmem:[#allocation3 + $0x21] sm:$0xf] %vm1699_vm13, %v2671_v62  ;;  %v8209_v17 = vrot.slane %v11119_v30, 9  ;;  %v8261_v0 = vrot.slane %v11119_v30, 10 }
 0x342   :  { %v2660_v25 = vadd.f32 %v11078_v19, %v2625_v18  ;;  %v11144_v31 = vsel %vm10187_vm9, %v8208_v38, %v2762_v58  ;;  %v2766_v26 = vrot.slane %v2750_v2, 5  ;;  %v11179_v28 = vsel %vm10200_vm12, %v8260_v32, %v2926_v46 }
 0x343   :  { %v2608_v49 = vpop.f32.mrf.mxu3  ;;  %v2930_v57 = vrot.slane %v2750_v2, 6  ;;  %3206 = vmatpush.bf16.msra.mxu0 %v9608_v59  ;;  %v9619_v59 = vld [vmem:[%s12898_s3 + $0x330] sm:$0xff] }
 0x344   :  { %v2614_v14 = vadd.f32 %v2608_v49, %v2519_v52  ;;  %v2664_v27 = vmax.f32 %v2660_v25, 0.0  ;;  %v11187_v44 = vsel %vm10187_vm9, %v8209_v17, %v2766_v26 }
 0x345   :  { %v2729_v40 = vld.sshfl [vmem:[#allocation1] sm:$0xff pattern:$0x75316420]  ;;  %v11230_v25 = vsel %vm10200_vm12, %v8261_v0, %v2930_v57  ;;  %v9614_v57 = vld [vmem:[%s12898_s3 + $0x308] sm:$0xff] }
 0x346   :  { %2788 = vst [vmem:[#allocation1] ss:$2 sm:$0xff] %v2759_v53  ;;  %v11146_v19 = vld [vmem:[#allocation3 + $0x18] sm:$0x3f]  ;;  %v2621_v21 = vmul.f32 %v11084_v54, %v2614_v14  ;;  %v2672_v29 = vrot.slane %v2664_v27, 4  ;;  %v9598_v54 = vld [vmem:[%s12898_s3 + $0x288] sm:$0xff]  ;;  %v2775_v53 = vsel %vm10187_vm9, %v8211_v6, %v2774_v16 }
 0x347   :  { %2790 = vst [vmem:[#allocation1 + $0x1] ss:$2 sm:$0xff] %v11144_v31  ;;  %v2751_v60 = vrot.slane %v11146_v19, 4  ;;  %3022 = vmatpush.bf16.msrb.mxu2 %v9598_v54  ;;  %v8210_v7 = vrot.slane %v11146_v19, 9  ;;  %v8262_v18 = vrot.slane %v11146_v19, 10 }
 0x348   :  { %2720 = vst [vmem:[#allocation1 + $0x11] ss:$2 sm:$0xff] %v11146_v19  ;;  %v2626_v36 = vadd.f32 %v11086_v1, %v2621_v21  ;;  %v9603_v1 = vld [vmem:[%s12898_s3 + $0x2b0] sm:$0xff]  ;;  %v11259_v54 = vld [vmem:[#allocation3 + $0x20] sm:$0x3f] }
 0x349   :  { %2682 = vst.msk [vmem:[#allocation3 + $0x39] sm:$0xf] %vm1699_vm13, %v2664_v27  ;;  %v2770_v24 = vrot.slane %v2751_v60, 5  ;;  %3110 = vmatpush.bf16.msrb.mxu3 %v9603_v1  ;;  %v2934_v62 = vrot.slane %v2751_v60, 6  ;;  %v9607_v27 = vld [vmem:[%s12898_s3 + $0x2d0] sm:$0xff]  ;;  %v9610_v1 = vld [vmem:[%s12898_s3 + $0x2e8] sm:$0xff] }
 0x34a   :  { %2683 = vst.msk [vmem:[#allocation3 + $0x41] sm:$0xf] %vm1699_vm13, %v2672_v29  ;;  %v2661_v63 = vadd.f32 %v2653_v48, %v2626_v36  ;;  %v9611_v21 = vld [vmem:[%s12898_s3 + $0x2f0] sm:$0xff]  ;;  %3207 = vmatpush.bf16.msra.mxu0 %v9607_v27  ;;  %v8263_v36 = vrot.slane %v11075_v33, 10  ;;  %v9616_v33 = vld [vmem:[%s12898_s3 + $0x318] sm:$0xff]  ;;  %v8319_v0 = vrot.slane %v11259_v54, 9 }
 0x34b   :  { %3023 = vmatpush.bf16.msrb.mxu2 %v9597_v43  ;;  %v11194_v5 = vsel %vm10187_vm9, %v8210_v7, %v2770_v24  ;;  %3302 = vmatpush.bf16.msrb.mxu1 %v9611_v21  ;;  %v3128_v43 = vrot.slane %v11259_v54, 4  ;;  %v9609_v7 = vld [vmem:[%s12898_s3 + $0x2e0] sm:$0xff] }
 0x34c   :  { %v2665_v10 = vmax.f32 %v2661_v63, 0.0  ;;  %v9606_v63 = vld [vmem:[%s12898_s3 + $0x2c8] sm:$0xff] }
 0x34d   :  { %3111 = vmatpush.bf16.msrb.mxu3 %v9602_v35 }
 0x34e   :  { %v11173_v39 = vld.sshfl [vmem:[#allocation1] sm:$0xff pattern:$0x75316420]  ;;  %2684 = vst.msk [vmem:[#allocation3 + $0x49] sm:$0xf] %vm1699_vm13, %v2665_v10  ;;  %v2673_v9 = vrot.slane %v2665_v10, 4  ;;  %3208 = vmatpush.bf16.msra.mxu0 %v9606_v63  ;;  %v2939_v10 = vsel %vm10200_vm12, %v8263_v36, %v2938_v45 }
 0x34f   :  { %2952 = vst [vmem:[#allocation1] ss:$2 sm:$0xff] %v2923_v61  ;;  %v2730_v34 = vld.sshfl [vmem:[#allocation1 + $0x10] sm:$0xff pattern:$0x75316420]  ;;  %3390 = vmatpush.bf16.msra.mxu2 %v9616_v33  ;;  %3303 = vmatpush.bf16.msrb.mxu1 %v9610_v1 }
 0x350   :  { %2954 = vst [vmem:[#allocation1 + $0x1] ss:$2 sm:$0xff] %v11179_v28  ;;  %v11190_v50 = vld [vmem:[#allocation3 + $0x38] sm:$0x3f]  ;;  %v2737_v12 = vpack.c.bf16 %v2730_v34, %v2729_v40  ;;  %v9615_v34 = vld [vmem:[%s12898_s3 + $0x310] sm:$0xff] }
 0x351   :  { %2792 = vst [vmem:[#allocation1 + $0x10] ss:$2 sm:$0xff] %v11187_v44  ;;  %v11197_v23 = vld [vmem:[#allocation3 + $0x40] sm:$0x3f]  ;;  %v2753_v41 = vrot.slane %v11190_v50, 4  ;;  %3112 = vmatpush.bf16.msrb.mxu3 %v9601_v37  ;;  %v8212_v58 = vrot.slane %v11190_v50, 9 }
 0x352   :  { %2794 = vst [vmem:[#allocation1 + $0x11] ss:$2 sm:$0xff] %v11194_v5  ;;  %8257 = vmatmul.msk.bf16.vlgmr.msra.gmra.mxu1 %vm405_vm0, %v2737_v12  ;;  %v2754_v51 = vrot.slane %v11197_v23, 4  ;;  %v8213_v40 = vrot.slane %v11197_v23, 9  ;;  %v8264_v61 = vrot.slane %v11190_v50, 10  ;;  %v8265_v47 = vrot.slane %v11197_v23, 10 }
 0x353   :  { %2724 = vst [vmem:[#allocation1 + $0x21] ss:$2 sm:$0xff] %v11190_v50  ;;  %v2778_v52 = vrot.slane %v2753_v41, 5  ;;  %v2942_v26 = vrot.slane %v2753_v41, 6  ;;  %3391 = vmatpush.bf16.msra.mxu2 %v9615_v34  ;;  %v9620_v41 = vld [vmem:[%s12898_s3 + $0x338] sm:$0xff]  ;;  %3304 = vmatpush.bf16.msrb.mxu1 %v9609_v7  ;;  %v9623_v33 = vld [vmem:[%s12898_s3 + $0x350] sm:$0xff] }
 0x354   :  { %2726 = vst [vmem:[#allocation1 + $0x30] ss:$2 sm:$0xff] %v11197_v23  ;;  %v2782_v42 = vrot.slane %v2754_v51, 5  ;;  %v2946_v32 = vrot.slane %v2754_v51, 6  ;;  %v3132_v51 = vrot.slane %v3128_v43, 5 }
 0x355   :  { %2685 = vst.msk [vmem:[#allocation3 + $0x51] sm:$0xf] %vm1699_vm13, %v2673_v9  ;;  %v11210_v13 = vld [vmem:[#allocation3 + $0x48] sm:$0x3f]  ;;  %v11249_v11 = vsel %vm10187_vm9, %v8212_v58, %v2778_v52  ;;  %v11298_v12 = vsel %vm10200_vm12, %v8264_v61, %v2942_v26  ;;  %3487 = vmatpush.bf16.msra.mxu3 %v9620_v41 }
 0x356   :  { %2728 = vst [vmem:[#allocation1 + $0x31] ss:$2 sm:$0xff] %v11210_v13  ;;  %v2755_v22 = vrot.slane %v11210_v13, 4  ;;  %v8214_v29 = vrot.slane %v11210_v13, 9  ;;  %v11255_v55 = vsel %vm10187_vm9, %v8213_v40, %v2782_v42  ;;  %v8266_v9 = vrot.slane %v11210_v13, 10  ;;  %v9617_v40 = vld [vmem:[%s12898_s3 + $0x320] sm:$0xff] }
 0x357   :  { %v11215_v15 = vld.sshfl [vmem:[#allocation1] sm:$0xff pattern:$0x75316420]  ;;  %v11304_v37 = vsel %vm10200_vm12, %v8265_v47, %v2946_v32  ;;  %3392 = vmatpush.bf16.msra.mxu2 %v9614_v57  ;;  %v11327_v20 = vsel %vm10187_vm9, %v8319_v0, %v3132_v51  ;;  %v3227_v42 = vrot.slane %v3128_v43, 6  ;;  %v11400_v51 = vld [vmem:[#allocation3] sm:$0x3f] }
 0x358   :  { %3041 = vst [vmem:[#allocation1] ss:$2 sm:$0xff] %v11115_v4  ;;  %v11235_v4 = vsel %vm10200_vm12, %v8262_v18, %v2934_v62  ;;  %v2786_v38 = vrot.slane %v2755_v22, 5  ;;  %v2950_v24 = vrot.slane %v2755_v22, 6 }
 0x359   :  { %3043 = vst [vmem:[#allocation1 + $0x1] ss:$2 sm:$0xff] %v11119_v30  ;;  %v2804_v49 = vld.sshfl [vmem:[#allocation1 + $0x10] sm:$0xff pattern:$0x75316420]  ;;  %3488 = vmatpush.bf16.msra.mxu3 %v9619_v59 }
 0x35a   :  { %2956 = vst [vmem:[#allocation1 + $0x10] ss:$2 sm:$0xff] %v11230_v25  ;;  %v2731_v8 = vld.sshfl [vmem:[#allocation1 + $0x20] sm:$0xff pattern:$0x75316420]  ;;  %v2811_v14 = vpack.c.bf16 %v2804_v49, %v11173_v39  ;;  %v11263_v48 = vsel %vm10187_vm9, %v8214_v29, %v2786_v38  ;;  %v11309_v16 = vsel %vm10200_vm12, %v8266_v9, %v2950_v24  ;;  %v9618_v49 = vld [vmem:[%s12898_s3 + $0x328] sm:$0xff] }
 0x35b   :  { %2958 = vst [vmem:[#allocation1 + $0x11] ss:$2 sm:$0xff] %v11235_v4  ;;  %v9605_v39 = vld [vmem:[%s12898_s3 + $0x2c0] sm:$0xff] }
 0x35c   :  { %2796 = vst [vmem:[#allocation1 + $0x20] ss:$2 sm:$0xff] %v2775_v53  ;;  %8239 = vmatmul.msk.bf16.vlgmr.msrb.gmra.mxu0 %vm405_vm0, %v2811_v14  ;;  %v11336_v52 = vld [vmem:[#allocation3 + $0x50] sm:$0x3f]  ;;  %v8347_v14 = vrot.slane %v11259_v54, 10 }
 0x35d   :  { %2798 = vst [vmem:[#allocation1 + $0x21] ss:$2 sm:$0xff] %v11249_v11  ;;  %v2732_v2 = vld.sshfl [vmem:[#allocation1 + $0x30] sm:$0xff pattern:$0x75316420]  ;;  %3209 = vmatpush.bf16.msra.mxu0 %v9605_v39  ;;  %3489 = vmatpush.bf16.msra.mxu3 %v9618_v49  ;;  %v8348_v32 = vrot.slane %v11336_v52, 10 }
 0x35e   :  { %2800 = vst [vmem:[#allocation1 + $0x30] ss:$2 sm:$0xff] %v11255_v55  ;;  %v2738_v60 = vpack.c.bf16 %v2732_v2, %v2731_v8  ;;  %v3129_v8 = vrot.slane %v11336_v52, 4  ;;  %v11354_v21 = vsel %vm10200_vm12, %v8347_v14, %v3227_v42  ;;  %v8320_v2 = vrot.slane %v11336_v52, 9 }
 0x35f   :  { %2802 = vst [vmem:[#allocation1 + $0x31] ss:$2 sm:$0xff] %v11263_v48 }
 0x360   :  { %v3056_v46 = vld.sshfl [vmem:[#allocation1] sm:$0xff pattern:$0x75316420]  ;;  %v3136_v29 = vrot.slane %v3129_v8, 5  ;;  %v3231_v61 = vrot.slane %v3129_v8, 6 }
 0x361   :  { %3138 = vst [vmem:[#allocation1] ss:$2 sm:$0xff] %v11144_v31  ;;  %3490 = vmatpush.bf16.msra.mxu3 %v9617_v40 }
 0x362   :  { %3140 = vst [vmem:[#allocation1 + $0x1] ss:$2 sm:$0xff] %v11187_v44  ;;  %v2968_v17 = vld.sshfl [vmem:[#allocation1 + $0x10] sm:$0xff pattern:$0x75316420]  ;;  %8258 = vmatmul.msk.bf16.gmra.mxu1 %vm405_vm0, %v2738_v60  ;;  %v11367_v45 = vsel %vm10187_vm9, %v8320_v2, %v3136_v29  ;;  %v3232_v24 = vsel %vm10200_vm12, %v8348_v32, %v3231_v61 }
 0x363   :  { %3045 = vst [vmem:[#allocation1 + $0x10] ss:$2 sm:$0xff] %v11146_v19  ;;  %v2975_v31 = vpack.c.bf16 %v2968_v17, %v11215_v15  ;;  %v9622_v17 = vld [vmem:[%s12898_s3 + $0x348] sm:$0xff] }
 0x364   :  { %3047 = vst [vmem:[#allocation1 + $0x11] ss:$2 sm:$0xff] %v11259_v54  ;;  %v2805_v35 = vld.sshfl [vmem:[#allocation1 + $0x20] sm:$0xff pattern:$0x75316420] }
 0x365   :  { %2960 = vst [vmem:[#allocation1 + $0x20] ss:$2 sm:$0xff] %v2939_v10  ;;  %8291 = vmatmul.msk.bf16.vlgmr.msrb.gmra.mxu2 %vm405_vm0, %v2975_v31  ;;  %v9621_v31 = vld [vmem:[%s12898_s3 + $0x340] sm:$0xff] }
 0x366   :  { %2962 = vst [vmem:[#allocation1 + $0x21] ss:$2 sm:$0xff] %v11298_v12  ;;  %v2806_v6 = vld.sshfl [vmem:[#allocation1 + $0x30] sm:$0xff pattern:$0x75316420] }
 0x367   :  { %2964 = vst [vmem:[#allocation1 + $0x30] ss:$2 sm:$0xff] %v11304_v37  ;;  %v2812_v62 = vpack.c.bf16 %v2806_v6, %v2805_v35  ;;  %v2705_v35 = vld [vmem:[#allocation3 + $0x58] sm:$0x3f] }
 0x368   :  { %2966 = vst [vmem:[#allocation1 + $0x31] ss:$2 sm:$0xff] %v11309_v16  ;;  %v3410_v9 = vrot.slane %v2705_v35, 4 }
 0x369   :  { %v3153_v22 = vld.sshfl [vmem:[#allocation1] sm:$0xff pattern:$0x75316420] }
 0x36a   :  { %3233 = vst [vmem:[#allocation1] ss:$2 sm:$0xff] %v11179_v28  ;;  %v9613_v28 = vld [vmem:[%s12898_s3 + $0x300] sm:$0xff]  ;;  %v3417_v0 = vrot.slane %v3410_v9, 5 }
 0x36b   :  { %3235 = vst [vmem:[#allocation1 + $0x1] ss:$2 sm:$0xff] %v11230_v25  ;;  %v3057_v15 = vld.sshfl [vmem:[#allocation1 + $0x10] sm:$0xff pattern:$0x75316420]  ;;  %3393 = vmatpush.bf16.msra.mxu2 %v9613_v28 }
 0x36c   :  { %3142 = vst [vmem:[#allocation1 + $0x10] ss:$2 sm:$0xff] %v11194_v5  ;;  %8240 = vmatmul.msk.bf16.gmra.mxu0 %vm405_vm0, %v2812_v62  ;;  %v3064_v18 = vpack.c.bf16 %v3057_v15, %v3056_v46  ;;  %v2699_v46 = vld [vmem:[#allocation3 + $0x28] sm:$0x3f] }
 0x36d   :  { %3144 = vst [vmem:[#allocation1 + $0x11] ss:$2 sm:$0xff] %v11327_v20  ;;  %v2969_v58 = vld.sshfl [vmem:[#allocation1 + $0x20] sm:$0xff pattern:$0x75316420]  ;;  %v3409_v1 = vrot.slane %v2699_v46, 4 }
 0x36e   :  { %3049 = vst [vmem:[#allocation1 + $0x20] ss:$2 sm:$0xff] %v11190_v50  ;;  %8317 = vmatmul.msk.bf16.vlgmr.msrb.gmra.mxu3 %vm405_vm0, %v3064_v18  ;;  %v8429_v6 = vrot.slane %v2699_v46, 10 }
 0x36f   :  { %3051 = vst [vmem:[#allocation1 + $0x21] ss:$2 sm:$0xff] %v11197_v23  ;;  %v2970_v53 = vld.sshfl [vmem:[#allocation1 + $0x30] sm:$0xff pattern:$0x75316420]  ;;  %v3508_v41 = vrot.slane %v3409_v1, 6 }
 0x370   :  { %3053 = vst [vmem:[#allocation1 + $0x30] ss:$2 sm:$0xff] %v11210_v13  ;;  %v2976_v50 = vpack.c.bf16 %v2970_v53, %v2969_v58  ;;  %v8430_v58 = vrot.slane %v2705_v35, 10 }
 0x371   :  { %3055 = vst [vmem:[#allocation1 + $0x31] ss:$2 sm:$0xff] %v11336_v52 }
 0x372   :  { %v3248_v38 = vld.sshfl [vmem:[#allocation1] sm:$0xff pattern:$0x75316420] }
 0x373   :  { %3322 = vst [vmem:[#allocation1] ss:$2 sm:$0xff] %v11119_v30 }
 0x374   :  { %v3154_v27 = vld.sshfl [vmem:[#allocation1 + $0x10] sm:$0xff pattern:$0x75316420]  ;;  %3324 = vst [vmem:[#allocation1 + $0x1] ss:$2 sm:$0xff] %v11146_v19  ;;  %v9624_v19 = vld [vmem:[%s12898_s3 + $0x358] sm:$0xff] }
 0x375   :  { %3237 = vst [vmem:[#allocation1 + $0x10] ss:$2 sm:$0xff] %v11235_v4  ;;  %8292 = vmatmul.msk.bf16.gmra.mxu2 %vm405_vm0, %v2976_v50  ;;  %3582 = vmatpush.bf16.msrb.mxu0 %v9624_v19  ;;  %v11421_v50 = vld [vmem:[#allocation3 + $0x30] sm:$0x3f] }
 0x376   :  { %3239 = vst [vmem:[#allocation1 + $0x11] ss:$2 sm:$0xff] %v11354_v21  ;;  %v3058_v30 = vld.sshfl [vmem:[#allocation1 + $0x20] sm:$0xff pattern:$0x75316420] }
 0x377   :  { %3146 = vst [vmem:[#allocation1 + $0x20] ss:$2 sm:$0xff] %v11249_v11  ;;  %v3161_v11 = vpack.c.bf16 %v3154_v27, %v3153_v22  ;;  %v8402_v22 = vrot.slane %v2705_v35, 9 }
 0x378   :  { %3148 = vst [vmem:[#allocation1 + $0x21] ss:$2 sm:$0xff] %v11255_v55  ;;  %v3059_v36 = vld.sshfl [vmem:[#allocation1 + $0x30] sm:$0xff pattern:$0x75316420] }
 0x379   :  { %3150 = vst [vmem:[#allocation1 + $0x30] ss:$2 sm:$0xff] %v11263_v48  ;;  %v3065_v60 = vpack.c.bf16 %v3059_v36, %v3058_v30  ;;  %3583 = vmatpush.bf16.msrb.mxu0 %v9623_v33 }
 0x37a   :  { %3152 = vst [vmem:[#allocation1 + $0x31] ss:$2 sm:$0xff] %v11367_v45 }
 0x37b   :  { %v3337_v63 = vld.sshfl [vmem:[#allocation1] sm:$0xff pattern:$0x75316420] }
 0x37c   :  { %3419 = vst [vmem:[#allocation1] ss:$2 sm:$0xff] %v11187_v44  ;;  %8345 = vmatmul.msk.bf16.vlgmr.msra.gmra.mxu0 %vm405_vm0, %v3161_v11  ;;  %v8401_v44 = vrot.slane %v2699_v46, 9 }
 0x37d   :  { %v3249_v43 = vld.sshfl [vmem:[#allocation1 + $0x10] sm:$0xff pattern:$0x75316420]  ;;  %3421 = vst [vmem:[#allocation1 + $0x1] ss:$2 sm:$0xff] %v11194_v5  ;;  %v3413_v5 = vrot.slane %v3409_v1, 5  ;;  %3584 = vmatpush.bf16.msrb.mxu0 %v9622_v17 }
 0x37e   :  { %3326 = vst [vmem:[#allocation1 + $0x10] ss:$2 sm:$0xff] %v11259_v54  ;;  %8318 = vmatmul.msk.bf16.gmra.mxu3 %vm405_vm0, %v3065_v60  ;;  %v3256_v26 = vpack.c.bf16 %v3249_v43, %v3248_v38 }
 0x37f   :  { %3328 = vst [vmem:[#allocation1 + $0x11] ss:$2 sm:$0xff] %v2699_v46  ;;  %v3155_v10 = vld.sshfl [vmem:[#allocation1 + $0x20] sm:$0xff pattern:$0x75316420]  ;;  %v3414_v7 = vsel %vm10187_vm9, %v8401_v44, %v3413_v5 }
 0x380   :  { %3241 = vst [vmem:[#allocation1 + $0x20] ss:$2 sm:$0xff] %v11298_v12  ;;  %8373 = vmatmul.msk.bf16.vlgmr.msrb.gmra.mxu1 %vm405_vm0, %v3256_v26 }
 0x381   :  { %3243 = vst [vmem:[#allocation1 + $0x21] ss:$2 sm:$0xff] %v11304_v37  ;;  %v3156_v54 = vld.sshfl [vmem:[#allocation1 + $0x30] sm:$0xff pattern:$0x75316420]  ;;  %3585 = vmatpush.bf16.msrb.mxu0 %v9621_v31 }
 0x382   :  { %3245 = vst [vmem:[#allocation1 + $0x30] ss:$2 sm:$0xff] %v11309_v16 }
 0x383   :  { %3247 = vst [vmem:[#allocation1 + $0x31] ss:$2 sm:$0xff] %v3232_v24 }
 0x384   :  { %v3434_v39 = vld.sshfl [vmem:[#allocation1] sm:$0xff pattern:$0x75316420] }
 0x385   :  { %3514 = vst [vmem:[#allocation1] ss:$2 sm:$0xff] %v11230_v25  ;;  %v3162_v25 = vpack.c.bf16 %v3156_v54, %v3155_v10 }
 0x386   :  { %v3338_v34 = vld.sshfl [vmem:[#allocation1 + $0x10] sm:$0xff pattern:$0x75316420]  ;;  %3516 = vst [vmem:[#allocation1 + $0x1] ss:$2 sm:$0xff] %v11235_v4 }
 0x387   :  { %3423 = vst [vmem:[#allocation1 + $0x10] ss:$2 sm:$0xff] %v11327_v20  ;;  %v3345_v47 = vpack.c.bf16 %v3338_v34, %v3337_v63  ;;  %v3418_v20 = vsel %vm10187_vm9, %v8402_v22, %v3417_v0 }
 0x388   :  { %3425 = vst [vmem:[#allocation1 + $0x11] ss:$2 sm:$0xff] %v3414_v7  ;;  %v3250_v12 = vld.sshfl [vmem:[#allocation1 + $0x20] sm:$0xff pattern:$0x75316420] }
 0x389   :  { %3330 = vst [vmem:[#allocation1 + $0x20] ss:$2 sm:$0xff] %v11197_v23  ;;  %8399 = vmatmul.msk.bf16.vlgmr.msra.gmra.mxu2 %vm405_vm0, %v3345_v47  ;;  %v3509_v23 = vsel %vm10200_vm12, %v8429_v6, %v3508_v41  ;;  %v9628_v41 = vld [vmem:[%s12898_s3 + $0x378] sm:$0xff] }
 0x38a   :  { %v3251_v57 = vld.sshfl [vmem:[#allocation1 + $0x30] sm:$0xff pattern:$0x75316420]  ;;  %3332 = vst [vmem:[#allocation1 + $0x21] ss:$2 sm:$0xff] %v11210_v13  ;;  %3848 = vmatpush.bf16.msrb.mxu2 %v9628_v41 }
 0x38b   :  { %3334 = vst [vmem:[#allocation1 + $0x30] ss:$2 sm:$0xff] %v11336_v52  ;;  %v3257_v4 = vpack.c.bf16 %v3251_v57, %v3250_v12  ;;  %v3512_v52 = vrot.slane %v3410_v9, 6 }
 0x38c   :  { %3336 = vst [vmem:[#allocation1 + $0x31] ss:$2 sm:$0xff] %v2705_v35  ;;  %8346 = vmatmul.msk.bf16.gmra.mxu0 %vm405_vm0, %v3162_v25  ;;  %v8457_v35 = vld [vmem:[%s12899_s4 + $0x4] sm:$0x3] }
 0x38d   :  { %v3529_v62 = vld.sshfl [vmem:[#allocation1] sm:$0xff pattern:$0x75316420]  ;;  %v3513_v8 = vsel %vm10200_vm12, %v8430_v58, %v3512_v52  ;;  %v11434_v0 = vperm.slane %v8457_v35, 1  ;;  %v9627_v58 = vld [vmem:[%s12898_s3 + $0x370] sm:$0xff] }
 0x38e   :  { %3657 = vst [vmem:[#allocation1] ss:$2 sm:$0xff] %v11400_v51  ;;  %3849 = vmatpush.bf16.msrb.mxu2 %v9627_v58 }
 0x38f   :  { %v3435_v15 = vld.sshfl [vmem:[#allocation1 + $0x10] sm:$0xff pattern:$0x75316420] }
 0x390   :  { %3518 = vst [vmem:[#allocation1 + $0x10] ss:$2 sm:$0xff] %v11354_v21  ;;  %8374 = vmatmul.msk.bf16.gmra.mxu1 %vm405_vm0, %v3257_v4  ;;  %v3442_v13 = vpack.c.bf16 %v3435_v15, %v3434_v39  ;;  %v11432_v4 = vperm.slane %v8457_v35, 0 }
 0x391   :  { %3520 = vst [vmem:[#allocation1 + $0x11] ss:$2 sm:$0xff] %v3509_v23  ;;  %v3339_v59 = vld.sshfl [vmem:[#allocation1 + $0x20] sm:$0xff pattern:$0x75316420] }
 0x392   :  { %3427 = vst [vmem:[#allocation1 + $0x20] ss:$2 sm:$0xff] %v11255_v55  ;;  %8427 = vmatmul.msk.bf16.vlgmr.msra.gmra.mxu3 %vm405_vm0, %v3442_v13 }
 0x393   :  { %v3340_v18 = vld.sshfl [vmem:[#allocation1 + $0x30] sm:$0xff pattern:$0x75316420]  ;;  %3429 = vst [vmem:[#allocation1 + $0x21] ss:$2 sm:$0xff] %v11263_v48 }
 0x394   :  { %3431 = vst [vmem:[#allocation1 + $0x30] ss:$2 sm:$0xff] %v11367_v45  ;;  %v3346_v28 = vpack.c.bf16 %v3340_v18, %v3339_v59 }
 0x395   :  { %3433 = vst [vmem:[#allocation1 + $0x31] ss:$2 sm:$0xff] %v3418_v20 }
 0x398   :  { %v3530_v53 = vld.sshfl [vmem:[#allocation1 + $0x10] sm:$0xff pattern:$0x75316420] }
 0x399   :  { %8400 = vmatmul.msk.bf16.gmra.mxu2 %vm405_vm0, %v3346_v28  ;;  %v3537_v42 = vpack.c.bf16 %v3530_v53, %v3529_v62  ;;  %v9632_v53 = vld [vmem:[%s12898_s3 + $0x398] sm:$0xff] }
 0x39a   :  { %v3436_v49 = vld.sshfl [vmem:[#allocation1 + $0x20] sm:$0xff pattern:$0x75316420]  ;;  %3799 = vmatpush.bf16.msra.mxu1 %v9632_v53  ;;  %v9634_v53 = vld [vmem:[%s12898_s3 + $0x3a8] sm:$0xff] }
 0x39b   :  { %3522 = vst [vmem:[#allocation1 + $0x20] ss:$2 sm:$0xff] %v11304_v37 }
 0x39c   :  { %v3437_v55 = vld.sshfl [vmem:[#allocation1 + $0x30] sm:$0xff pattern:$0x75316420]  ;;  %3524 = vst [vmem:[#allocation1 + $0x21] ss:$2 sm:$0xff] %v11309_v16  ;;  %8455 = vmatmul.msk.bf16.vlgmr.msrb.gmra.mxu0 %vm405_vm0, %v3537_v42 }
 0x39d   :  { %3526 = vst [vmem:[#allocation1 + $0x30] ss:$2 sm:$0xff] %v3232_v24  ;;  %v3443_v48 = vpack.c.bf16 %v3437_v55, %v3436_v49 }
 0x39e   :  { %3528 = vst [vmem:[#allocation1 + $0x31] ss:$2 sm:$0xff] %v3513_v8 }
 0x3a2   :  { %8428 = vmatmul.msk.bf16.gmra.mxu3 %vm405_vm0, %v3443_v48 }
 0x3a3   :  { %v3531_v38 = vld.sshfl [vmem:[#allocation1 + $0x20] sm:$0xff pattern:$0x75316420] }
 0x3a4   :  { %3665 = vst [vmem:[#allocation1 + $0x20] ss:$2 sm:$0xff] %v11421_v50 }
 0x3a5   :  { %v3532_v14 = vld.sshfl [vmem:[#allocation1 + $0x30] sm:$0xff pattern:$0x75316420] }
 0x3a6   :  { %v3538_v40 = vpack.c.bf16 %v3532_v14, %v3531_v38  ;;  %v11444_v38 = vld [vmem:[#allocation3 + $0x9] sm:$0xf] }
 0x3ac   :  { %8456 = vmatmul.msk.bf16.gmra.mxu0 %vm405_vm0, %v3538_v40 }
 0x3cf   :  { %v2910_v21 = vpop.f32.mrf.mxu1 }
 0x3d7   :  { %v2912_v30 = vpop.f32.mrf.mxu1 }
 0x3d9   :  { %v2861_v37 = vpop.f32.mrf.mxu0 }
 0x3da   :  { %v2911_v26 = vadd.f32 %v2910_v21, %v2861_v37  ;;  %v9626_v21 = vld [vmem:[%s12898_s3 + $0x368] sm:$0xff] }
 0x3db   :  { %3850 = vmatpush.bf16.msrb.mxu2 %v9626_v21 }
 0x3df   :  { %v2915_v63 = vpop.f32.mrf.mxu1 }
 0x3e1   :  { %v2863_v27 = vpop.f32.mrf.mxu0 }
 0x3e2   :  { %v2913_v31 = vadd.f32 %v2912_v30, %v2863_v27 }
 0x3e7   :  { %v2917_v43 = vpop.f32.mrf.mxu1 }
 0x3e8   :  { %v3025_v16 = vpop.f32.mrf.mxu2 }
 0x3e9   :  { %v2866_v29 = vpop.f32.mrf.mxu0  ;;  %v3035_v17 = vadd.f32 %v3025_v16, %v2911_v26  ;;  %v11450_v16 = vld [vmem:[#allocation3 + $0x11] sm:$0xf] }
 0x3ea   :  { %v2916_v23 = vadd.f32 %v2915_v63, %v2866_v29  ;;  %v9631_v29 = vld [vmem:[%s12898_s3 + $0x390] sm:$0xff]  ;;  %v9625_v63 = vld [vmem:[%s12898_s3 + $0x360] sm:$0xff] }
 0x3eb   :  { %3800 = vmatpush.bf16.msra.mxu1 %v9631_v29  ;;  %3851 = vmatpush.bf16.msrb.mxu2 %v9625_v63 }
 0x3f0   :  { %v3027_v2 = vpop.f32.mrf.mxu2 }
 0x3f1   :  { %v3114_v19 = vpop.f32.mrf.mxu3  ;;  %v2868_v36 = vpop.f32.mrf.mxu0  ;;  %v3036_v39 = vadd.f32 %v3027_v2, %v2913_v31 }
 0x3f2   :  { %v3124_v5 = vadd.f32 %v3114_v19, %v3035_v17  ;;  %v2918_v40 = vadd.f32 %v2917_v43, %v2868_v36  ;;  %v3691_v19 = vrot.slane %v11400_v51, 4  ;;  %v8466_v43 = vrot.slane %v11400_v51, 9 }
 0x3f8   :  { %v3030_v45 = vpop.f32.mrf.mxu2 }
 0x3f9   :  { %v3116_v60 = vpop.f32.mrf.mxu3  ;;  %v3211_v11 = vpop.f32.mrf.mxu0  ;;  %v3037_v59 = vadd.f32 %v3030_v45, %v2916_v23 }
 0x3fa   :  { %v3221_v54 = vadd.f32 %v3211_v11, %v3124_v5  ;;  %v3125_v47 = vadd.f32 %v3116_v60, %v3036_v39 }
 0x3fd   :  { %v3306_v44 = vpop.f32.mrf.mxu1 }
 0x3fe   :  { %v3316_v7 = vadd.f32 %v3306_v44, %v3221_v54 }
 0x400   :  { %v3032_v1 = vpop.f32.mrf.mxu2 }
 0x401   :  { %v3119_v33 = vpop.f32.mrf.mxu3  ;;  %v3213_v46 = vpop.f32.mrf.mxu0  ;;  %v3038_v30 = vadd.f32 %v3032_v1, %v2918_v40 }
 0x402   :  { %v3222_v57 = vadd.f32 %v3213_v46, %v3125_v47  ;;  %v3126_v52 = vadd.f32 %v3119_v33, %v3037_v59  ;;  %v11479_v47 = vld [vmem:[#allocation3 + $0x21] sm:$0xf] }
 0x405   :  { %v3308_v12 = vpop.f32.mrf.mxu1 }
 0x406   :  { %v3317_v15 = vadd.f32 %v3308_v12, %v3222_v57  ;;  %v9629_v57 = vld [vmem:[%s12898_s3 + $0x380] sm:$0xff] }
 0x409   :  { %v3216_v61 = vpop.f32.mrf.mxu0  ;;  %v3121_v10 = vpop.f32.mrf.mxu3 }
 0x40a   :  { %v3223_v55 = vadd.f32 %v3216_v61, %v3126_v52  ;;  %v3127_v60 = vadd.f32 %v3121_v10, %v3038_v30  ;;  %v3701_v61 = vrot.slane %v3691_v19, 5  ;;  %v9640_v52 = vld [vmem:[%s12898_s3 + $0x3d8] sm:$0xff] }
 0x40b   :  { %4052 = vmatpush.bf16.msra.mxu0 %v9640_v52 }
 0x40c   :  { %v3395_v32 = vpop.f32.mrf.mxu2 }
 0x40d   :  { %v3405_v9 = vadd.f32 %v3395_v32, %v3316_v7  ;;  %v3311_v49 = vpop.f32.mrf.mxu1  ;;  %v11467_v32 = vld [vmem:[#allocation3 + $0x19] sm:$0xf]  ;;  %v9630_v7 = vld [vmem:[%s12898_s3 + $0x388] sm:$0xff] }
 0x40e   :  { %v3318_v36 = vadd.f32 %v3311_v49, %v3223_v55  ;;  %3801 = vmatpush.bf16.msra.mxu1 %v9630_v7  ;;  %v8518_v49 = vrot.slane %v11400_v51, 10 }
 0x411   :  { %v3218_v24 = vpop.f32.mrf.mxu0 }
 0x412   :  { %v3224_v46 = vadd.f32 %v3218_v24, %v3127_v60  ;;  %3802 = vmatpush.bf16.msra.mxu1 %v9629_v57  ;;  %v9644_v57 = vld [vmem:[%s12898_s3 + $0x3f8] sm:$0xff] }
 0x414   :  { %v3397_v6 = vpop.f32.mrf.mxu2 }
 0x415   :  { %v3492_v34 = vpop.f32.mrf.mxu3  ;;  %v3406_v18 = vadd.f32 %v3397_v6, %v3317_v15  ;;  %v3313_v54 = vpop.f32.mrf.mxu1 }
 0x416   :  { %v3502_v25 = vadd.f32 %v3492_v34, %v3405_v9  ;;  %v9636_v34 = vld [vmem:[%s12898_s3 + $0x3b8] sm:$0xff]  ;;  %v3319_v35 = vadd.f32 %v3313_v54, %v3224_v46  ;;  %v9638_v46 = vld [vmem:[%s12898_s3 + $0x3c8] sm:$0xff]  ;;  %v8470_v54 = vrot.slane %v11421_v50, 9  ;;  %4149 = vmatpush.bf16.msrb.mxu1 %v9644_v57 }
 0x417   :  { %3963 = vmatpush.bf16.msrb.mxu3 %v9636_v34  ;;  %v11566_v34 = vld [vmem:[#allocation3 + $0x51] sm:$0xf] }
 0x419   :  { %v3587_v62 = vpop.f32.mrf.mxu0 }
 0x41a   :  { %v3597_v22 = vadd.f32 %v3587_v62, %v3502_v25  ;;  %v9635_v25 = vld [vmem:[%s12898_s3 + $0x3b0] sm:$0xff]  ;;  %v3702_v62 = vsel %vm10187_vm9, %v8466_v43, %v3701_v61 }
 0x41b   :  { %3964 = vmatpush.bf16.msrb.mxu3 %v9635_v25  ;;  %v9648_v25 = vld [vmem:[%s12898_s3 + $0x418] sm:$0xff] }
 0x41c   :  { %v3604_v13 = vmul.f32 %v11432_v4, %v3597_v22  ;;  %v3400_v48 = vpop.f32.mrf.mxu2  ;;  %4244 = vmatpush.bf16.msra.mxu2 %v9648_v25 }
 0x41d   :  { %v3494_v20 = vpop.f32.mrf.mxu3  ;;  %v3407_v33 = vadd.f32 %v3400_v48, %v3318_v36  ;;  %v11509_v48 = vld [vmem:[#allocation3 + $0x39] sm:$0xf] }
 0x41e   :  { %v3609_v28 = vadd.f32 %v11434_v0, %v3604_v13  ;;  %v3503_v42 = vadd.f32 %v3494_v20, %v3406_v18 }
 0x41f   :  { %3965 = vmatpush.bf16.msrb.mxu3 %v9634_v53 }
 0x420   :  { %v3613_v8 = vmax.f32 %v3609_v28, 0.0 }
 0x421   :  { %v3589_v14 = vpop.f32.mrf.mxu0 }
 0x422   :  { %v3621_v37 = vrot.slane %v3613_v8, 4  ;;  %3629 = vst.msk [vmem:[#allocation3 + $0x9] sm:$0xf] %vm1699_vm13, %v3613_v8  ;;  %v3598_v27 = vadd.f32 %v3589_v14, %v3503_v42  ;;  %v3865_v8 = vrot.slane %v3691_v19, 6 }
 0x424   :  { %3630 = vst.msk [vmem:[#allocation3 + $0x11] sm:$0xf] %vm1699_vm13, %v3621_v37  ;;  %v3605_v2 = vmul.f32 %v11432_v4, %v3598_v27  ;;  %v3402_v24 = vpop.f32.mrf.mxu2  ;;  %v11513_v37 = vld [vmem:[#allocation3 + $0x41] sm:$0xf]  ;;  %v9633_v27 = vld [vmem:[%s12898_s3 + $0x3a0] sm:$0xff]  ;;  %v3866_v29 = vsel %vm10200_vm12, %v8518_v49, %v3865_v8  ;;  %v9643_v8 = vld [vmem:[%s12898_s3 + $0x3f0] sm:$0xff] }
 0x425   :  { %v3497_v45 = vpop.f32.mrf.mxu3  ;;  %v3408_v41 = vadd.f32 %v3402_v24, %v3319_v35  ;;  %3966 = vmatpush.bf16.msrb.mxu3 %v9633_v27  ;;  %v9637_v24 = vld [vmem:[%s12898_s3 + $0x3c0] sm:$0xff]  ;;  %4150 = vmatpush.bf16.msrb.mxu1 %v9643_v8 }
 0x426   :  { %v3610_v11 = vadd.f32 %v11434_v0, %v3605_v2  ;;  %v3504_v17 = vadd.f32 %v3497_v45, %v3407_v33  ;;  %v11528_v45 = vld [vmem:[#allocation3 + $0x49] sm:$0xf] }
 0x428   :  { %v3614_v1 = vmax.f32 %v3610_v11, 0.0 }
 0x429   :  { %v11463_v26 = vld [vmem:[#allocation3 + $0x8] sm:$0x3f]  ;;  %v3592_v44 = vpop.f32.mrf.mxu0 }
 0x42a   :  { %3659 = vst [vmem:[#allocation1 + $0x1] ss:$2 sm:$0xff] %v11463_v26  ;;  %v3692_v10 = vrot.slane %v11463_v26, 4  ;;  %v3622_v5 = vrot.slane %v3614_v1, 4  ;;  %v3599_v39 = vadd.f32 %v3592_v44, %v3504_v17  ;;  %v8467_v23 = vrot.slane %v11463_v26, 9 }
 0x42b   :  { %v11469_v31 = vld [vmem:[#allocation3 + $0x10] sm:$0x3f]  ;;  %3631 = vst.msk [vmem:[#allocation3 + $0x19] sm:$0xf] %vm1699_vm13, %v3614_v1  ;;  %v8519_v36 = vrot.slane %v11463_v26, 10  ;;  %v3695_v17 = vrot.slane %v11421_v50, 4 }
 0x42c   :  { %3661 = vst [vmem:[#allocation1 + $0x10] ss:$2 sm:$0xff] %v11469_v31  ;;  %v3606_v9 = vmul.f32 %v11432_v4, %v3599_v39  ;;  %v3705_v6 = vrot.slane %v3692_v10, 5  ;;  %v3693_v55 = vrot.slane %v11469_v31, 4  ;;  %v3869_v21 = vrot.slane %v3692_v10, 6 }
 0x42d   :  { %3632 = vst.msk [vmem:[#allocation3 + $0x21] sm:$0xf] %vm1699_vm13, %v3622_v5  ;;  %v3499_v12 = vpop.f32.mrf.mxu3  ;;  %v8468_v19 = vrot.slane %v11469_v31, 9  ;;  %v3717_v35 = vrot.slane %v3695_v17, 5 }
 0x42e   :  { %v3611_v22 = vadd.f32 %v11434_v0, %v3606_v9  ;;  %v3505_v15 = vadd.f32 %v3499_v12, %v3408_v41  ;;  %v11495_v18 = vsel %vm10187_vm9, %v8467_v23, %v3705_v6  ;;  %v3709_v30 = vrot.slane %v3693_v55, 5 }
 0x42f   :  { %v11536_v63 = vsel %vm10200_vm12, %v8519_v36, %v3869_v21  ;;  %v3873_v12 = vrot.slane %v3693_v55, 6  ;;  %v9652_v36 = vld [vmem:[%s12898_s3 + $0x438] sm:$0xff] }
 0x430   :  { %v3615_v59 = vmax.f32 %v3611_v22, 0.0  ;;  %v11543_v1 = vsel %vm10187_vm9, %v8468_v19, %v3709_v30  ;;  %v9642_v19 = vld [vmem:[%s12898_s3 + $0x3e8] sm:$0xff]  ;;  %4333 = vmatpush.bf16.msra.mxu3 %v9652_v36 }
 0x431   :  { %v3672_v13 = vld.sshfl [vmem:[#allocation1] sm:$0xff pattern:$0x75316420]  ;;  %v3594_v20 = vpop.f32.mrf.mxu0  ;;  %4151 = vmatpush.bf16.msrb.mxu1 %v9642_v19 }
 0x432   :  { %3731 = vst [vmem:[#allocation1] ss:$2 sm:$0xff] %v3702_v62  ;;  %v11497_v28 = vld [vmem:[#allocation3 + $0x18] sm:$0x3f]  ;;  %v3600_v58 = vadd.f32 %v3594_v20, %v3505_v15  ;;  %v3623_v42 = vrot.slane %v3615_v59, 4  ;;  %v8520_v62 = vrot.slane %v11469_v31, 10  ;;  %v3718_v20 = vsel %vm10187_vm9, %v8470_v54, %v3717_v35 }
 0x433   :  { %3733 = vst [vmem:[#allocation1 + $0x1] ss:$2 sm:$0xff] %v11495_v18  ;;  %v3694_v40 = vrot.slane %v11497_v28, 4  ;;  %v8469_v11 = vrot.slane %v11497_v28, 9  ;;  %v8521_v23 = vrot.slane %v11497_v28, 10 }
 0x434   :  { %3663 = vst [vmem:[#allocation1 + $0x11] ss:$2 sm:$0xff] %v11497_v28  ;;  %v3607_v14 = vmul.f32 %v11432_v4, %v3600_v58  ;;  %v9639_v4 = vld [vmem:[%s12898_s3 + $0x3d0] sm:$0xff]  ;;  %v11589_v58 = vsel %vm10200_vm12, %v8520_v62, %v3873_v12  ;;  %v9656_v62 = vld [vmem:[%s12898_s3 + $0x458] sm:$0xff] }
 0x435   :  { %3633 = vst.msk [vmem:[#allocation3 + $0x39] sm:$0xf] %vm1699_vm13, %v3615_v59  ;;  %4053 = vmatpush.bf16.msra.mxu0 %v9639_v4  ;;  %v3877_v6 = vrot.slane %v3694_v40, 6  ;;  %v3881_v4 = vrot.slane %v3695_v17, 6 }
 0x436   :  { %3634 = vst.msk [vmem:[#allocation3 + $0x41] sm:$0xf] %vm1699_vm13, %v3623_v42  ;;  %v3612_v51 = vadd.f32 %v11434_v0, %v3607_v14  ;;  %v3713_v0 = vrot.slane %v3694_v40, 5  ;;  %v9647_v14 = vld [vmem:[%s12898_s3 + $0x410] sm:$0xff]  ;;  %v8522_v40 = vrot.slane %v11421_v50, 10 }
 0x437   :  { %4245 = vmatpush.bf16.msra.mxu2 %v9647_v14  ;;  %v11618_v50 = vld [vmem:[#allocation3 + $0x20] sm:$0x3f] }
 0x438   :  { %v3616_v2 = vmax.f32 %v3612_v51, 0.0  ;;  %v11551_v44 = vsel %vm10187_vm9, %v8469_v11, %v3713_v0  ;;  %v9646_v0 = vld [vmem:[%s12898_s3 + $0x408] sm:$0xff]  ;;  %v4071_v11 = vrot.slane %v11618_v50, 4  ;;  %v8606_v19 = vrot.slane %v11618_v50, 10 }
 0x439   :  { %4054 = vmatpush.bf16.msra.mxu0 %v9638_v46  ;;  %v9654_v14 = vld [vmem:[%s12898_s3 + $0x448] sm:$0xff] }
 0x43a   :  { %v11530_v60 = vld.sshfl [vmem:[#allocation1] sm:$0xff pattern:$0x75316420]  ;;  %3635 = vst.msk [vmem:[#allocation3 + $0x49] sm:$0xf] %vm1699_vm13, %v3616_v2  ;;  %v3624_v5 = vrot.slane %v3616_v2, 4 }
 0x43b   :  { %3895 = vst [vmem:[#allocation1] ss:$2 sm:$0xff] %v3866_v29  ;;  %v3673_v33 = vld.sshfl [vmem:[#allocation1 + $0x10] sm:$0xff pattern:$0x75316420]  ;;  %4246 = vmatpush.bf16.msra.mxu2 %v9646_v0 }
 0x43c   :  { %3897 = vst [vmem:[#allocation1 + $0x1] ss:$2 sm:$0xff] %v11536_v63  ;;  %v11546_v43 = vld [vmem:[#allocation3 + $0x38] sm:$0x3f]  ;;  %v3680_v61 = vpack.c.bf16 %v3673_v33, %v3672_v13 }
 0x43d   :  { %3735 = vst [vmem:[#allocation1 + $0x10] ss:$2 sm:$0xff] %v11543_v1  ;;  %v11554_v10 = vld [vmem:[#allocation3 + $0x40] sm:$0x3f]  ;;  %v3696_v39 = vrot.slane %v11546_v43, 4  ;;  %4055 = vmatpush.bf16.msra.mxu0 %v9637_v24  ;;  %v8471_v15 = vrot.slane %v11546_v43, 9 }
 0x43e   :  { %3737 = vst [vmem:[#allocation1 + $0x11] ss:$2 sm:$0xff] %v11551_v44  ;;  %8516 = vmatmul.msk.bf16.vlgmr.msrb.gmra.mxu2 %vm405_vm0, %v3680_v61  ;;  %v3697_v7 = vrot.slane %v11554_v10, 4  ;;  %v8472_v55 = vrot.slane %v11554_v10, 9  ;;  %v3882_v61 = vsel %vm10200_vm12, %v8522_v40, %v3881_v4  ;;  %v8524_v12 = vrot.slane %v11554_v10, 10 }
 0x43f   :  { %3667 = vst [vmem:[#allocation1 + $0x21] ss:$2 sm:$0xff] %v11546_v43  ;;  %v3721_v13 = vrot.slane %v3696_v39, 5  ;;  %v3885_v33 = vrot.slane %v3696_v39, 6  ;;  %v9645_v39 = vld [vmem:[%s12898_s3 + $0x400] sm:$0xff] }
 0x440   :  { %3669 = vst [vmem:[#allocation1 + $0x30] ss:$2 sm:$0xff] %v11554_v10  ;;  %v3725_v59 = vrot.slane %v3697_v7, 5  ;;  %v3889_v46 = vrot.slane %v3697_v7, 6  ;;  %v9651_v7 = vld [vmem:[%s12898_s3 + $0x430] sm:$0xff]  ;;  %4247 = vmatpush.bf16.msra.mxu2 %v9645_v39 }
 0x441   :  { %3636 = vst.msk [vmem:[#allocation3 + $0x51] sm:$0xf] %vm1699_vm13, %v3624_v5  ;;  %v11569_v9 = vld [vmem:[#allocation3 + $0x48] sm:$0x3f]  ;;  %v11609_v51 = vsel %vm10187_vm9, %v8471_v15, %v3721_v13  ;;  %v9641_v5 = vld [vmem:[%s12898_s3 + $0x3e0] sm:$0xff]  ;;  %4334 = vmatpush.bf16.msra.mxu3 %v9651_v7  ;;  %v4075_v15 = vrot.slane %v4071_v11, 5  ;;  %4430 = vmatpush.bf16.msrb.mxu0 %v9656_v62 }
 0x442   :  { %3671 = vst [vmem:[#allocation1 + $0x31] ss:$2 sm:$0xff] %v11569_v9  ;;  %v3698_v41 = vrot.slane %v11569_v9, 4  ;;  %v8473_v27 = vrot.slane %v11569_v9, 9  ;;  %v11615_v21 = vsel %vm10187_vm9, %v8472_v55, %v3725_v59  ;;  %4152 = vmatpush.bf16.msrb.mxu1 %v9641_v5  ;;  %v11663_v57 = vsel %vm10200_vm12, %v8524_v12, %v3889_v46  ;;  %v9657_v62 = vld [vmem:[%s12898_s3 + $0x460] sm:$0xff] }
 0x443   :  { %v11580_v22 = vld.sshfl [vmem:[#allocation1] sm:$0xff pattern:$0x75316420] }
 0x444   :  { %3984 = vst [vmem:[#allocation1] ss:$2 sm:$0xff] %v11463_v26  ;;  %v3729_v53 = vrot.slane %v3698_v41, 5  ;;  %v11594_v26 = vsel %vm10200_vm12, %v8521_v23, %v3877_v6  ;;  %v3893_v54 = vrot.slane %v3698_v41, 6  ;;  %v8525_v41 = vrot.slane %v11569_v9, 10  ;;  %v9650_v23 = vld [vmem:[%s12898_s3 + $0x428] sm:$0xff] }
 0x445   :  { %3986 = vst [vmem:[#allocation1 + $0x1] ss:$2 sm:$0xff] %v11469_v31  ;;  %v3747_v52 = vld.sshfl [vmem:[#allocation1 + $0x10] sm:$0xff pattern:$0x75316420]  ;;  %4335 = vmatpush.bf16.msra.mxu3 %v9650_v23 }
 0x446   :  { %3899 = vst [vmem:[#allocation1 + $0x10] ss:$2 sm:$0xff] %v11589_v58  ;;  %v3674_v49 = vld.sshfl [vmem:[#allocation1 + $0x20] sm:$0xff pattern:$0x75316420]  ;;  %v3754_v42 = vpack.c.bf16 %v3747_v52, %v11530_v60  ;;  %v11622_v30 = vsel %vm10187_vm9, %v8473_v27, %v3729_v53  ;;  %v9655_v53 = vld [vmem:[%s12898_s3 + $0x450] sm:$0xff] }
 0x447   :  { %3901 = vst [vmem:[#allocation1 + $0x11] ss:$2 sm:$0xff] %v11594_v26  ;;  %v9649_v52 = vld [vmem:[%s12898_s3 + $0x420] sm:$0xff]  ;;  %4431 = vmatpush.bf16.msrb.mxu0 %v9655_v53  ;;  %v4170_v27 = vrot.slane %v4071_v11, 6 }
 0x448   :  { %3739 = vst [vmem:[#allocation1 + $0x20] ss:$2 sm:$0xff] %v3718_v20  ;;  %8498 = vmatmul.msk.bf16.vlgmr.msra.gmra.mxu1 %vm405_vm0, %v3754_v42  ;;  %v8578_v20 = vrot.slane %v11618_v50, 9  ;;  %v11695_v55 = vld [vmem:[#allocation3 + $0x50] sm:$0x3f] }
 0x449   :  { %3741 = vst [vmem:[#allocation1 + $0x21] ss:$2 sm:$0xff] %v11609_v51  ;;  %v3675_v29 = vld.sshfl [vmem:[#allocation1 + $0x30] sm:$0xff pattern:$0x75316420]  ;;  %4336 = vmatpush.bf16.msra.mxu3 %v9649_v52  ;;  %v11713_v0 = vsel %vm10200_vm12, %v8606_v19, %v4170_v27 }
 0x44a   :  { %3743 = vst [vmem:[#allocation1 + $0x30] ss:$2 sm:$0xff] %v11615_v21  ;;  %v3681_v2 = vpack.c.bf16 %v3675_v29, %v3674_v49  ;;  %v11689_v42 = vsel %vm10187_vm9, %v8578_v20, %v4075_v15 }
 0x44b   :  { %3745 = vst [vmem:[#allocation1 + $0x31] ss:$2 sm:$0xff] %v11622_v30  ;;  %4432 = vmatpush.bf16.msrb.mxu0 %v9654_v14 }
 0x44c   :  { %v3999_v60 = vld.sshfl [vmem:[#allocation1] sm:$0xff pattern:$0x75316420] }
 0x44d   :  { %4081 = vst [vmem:[#allocation1] ss:$2 sm:$0xff] %v11495_v18  ;;  %v8523_v18 = vrot.slane %v11546_v43, 10 }
 0x44e   :  { %4083 = vst [vmem:[#allocation1 + $0x1] ss:$2 sm:$0xff] %v11543_v1  ;;  %v3911_v17 = vld.sshfl [vmem:[#allocation1 + $0x10] sm:$0xff pattern:$0x75316420]  ;;  %8517 = vmatmul.msk.bf16.gmra.mxu2 %vm405_vm0, %v3681_v2  ;;  %v9653_v2 = vld [vmem:[%s12898_s3 + $0x440] sm:$0xff] }
 0x44f   :  { %3988 = vst [vmem:[#allocation1 + $0x10] ss:$2 sm:$0xff] %v11497_v28  ;;  %v3918_v24 = vpack.c.bf16 %v3911_v17, %v11580_v22  ;;  %v11657_v6 = vsel %vm10200_vm12, %v8523_v18, %v3885_v33  ;;  %v11671_v22 = vsel %vm10200_vm12, %v8525_v41, %v3893_v54  ;;  %4433 = vmatpush.bf16.msrb.mxu0 %v9653_v2  ;;  %v3642_v18 = vld [vmem:[#allocation3 + $0x28] sm:$0x3f]  ;;  %v8607_v41 = vrot.slane %v11695_v55, 10 }
 0x450   :  { %3990 = vst [vmem:[#allocation1 + $0x11] ss:$2 sm:$0xff] %v11618_v50  ;;  %v3748_v35 = vld.sshfl [vmem:[#allocation1 + $0x20] sm:$0xff pattern:$0x75316420]  ;;  %v4352_v54 = vrot.slane %v3642_v18, 4 }
 0x451   :  { %3903 = vst [vmem:[#allocation1 + $0x20] ss:$2 sm:$0xff] %v3882_v61  ;;  %8550 = vmatmul.msk.bf16.vlgmr.msrb.gmra.mxu3 %vm405_vm0, %v3918_v24  ;;  %v8688_v53 = vrot.slane %v3642_v18, 10 }
 0x452   :  { %3905 = vst [vmem:[#allocation1 + $0x21] ss:$2 sm:$0xff] %v11657_v6  ;;  %v3749_v25 = vld.sshfl [vmem:[#allocation1 + $0x30] sm:$0xff pattern:$0x75316420] }
 0x453   :  { %3907 = vst [vmem:[#allocation1 + $0x30] ss:$2 sm:$0xff] %v11663_v57  ;;  %v3755_v13 = vpack.c.bf16 %v3749_v25, %v3748_v35  ;;  %v9658_v35 = vld [vmem:[%s12898_s3 + $0x468] sm:$0xff] }
 0x454   :  { %3909 = vst [vmem:[#allocation1 + $0x31] ss:$2 sm:$0xff] %v11671_v22 }
 0x455   :  { %v4096_v59 = vld.sshfl [vmem:[#allocation1] sm:$0xff pattern:$0x75316420] }
 0x456   :  { %4176 = vst [vmem:[#allocation1] ss:$2 sm:$0xff] %v11536_v63 }
 0x457   :  { %4178 = vst [vmem:[#allocation1 + $0x1] ss:$2 sm:$0xff] %v11589_v58  ;;  %v4000_v49 = vld.sshfl [vmem:[#allocation1 + $0x10] sm:$0xff pattern:$0x75316420] }
 0x458   :  { %4085 = vst [vmem:[#allocation1 + $0x10] ss:$2 sm:$0xff] %v11551_v44  ;;  %8499 = vmatmul.msk.bf16.gmra.mxu1 %vm405_vm0, %v3755_v13  ;;  %v4007_v63 = vpack.c.bf16 %v4000_v49, %v3999_v60  ;;  %v3648_v13 = vld [vmem:[#allocation3 + $0x58] sm:$0x3f]  ;;  %v4451_v49 = vrot.slane %v4352_v54, 6 }
 0x459   :  { %4087 = vst [vmem:[#allocation1 + $0x11] ss:$2 sm:$0xff] %v11689_v42  ;;  %v3912_v8 = vld.sshfl [vmem:[#allocation1 + $0x20] sm:$0xff pattern:$0x75316420]  ;;  %v4353_v52 = vrot.slane %v3648_v13, 4 }
 0x45a   :  { %3992 = vst [vmem:[#allocation1 + $0x20] ss:$2 sm:$0xff] %v11546_v43  ;;  %8576 = vmatmul.msk.bf16.vlgmr.msra.gmra.mxu0 %vm405_vm0, %v4007_v63  ;;  %v4072_v43 = vrot.slane %v11695_v55, 4 }
 0x45b   :  { %3994 = vst [vmem:[#allocation1 + $0x21] ss:$2 sm:$0xff] %v11554_v10  ;;  %v3913_v40 = vld.sshfl [vmem:[#allocation1 + $0x30] sm:$0xff pattern:$0x75316420]  ;;  %v4360_v14 = vrot.slane %v4353_v52, 5 }
 0x45c   :  { %3996 = vst [vmem:[#allocation1 + $0x30] ss:$2 sm:$0xff] %v11569_v9  ;;  %v3919_v4 = vpack.c.bf16 %v3913_v40, %v3912_v8  ;;  %v4079_v60 = vrot.slane %v4072_v43, 5  ;;  %v4174_v39 = vrot.slane %v4072_v43, 6  ;;  %v8661_v8 = vrot.slane %v3648_v13, 9 }
 0x45d   :  { %3998 = vst [vmem:[#allocation1 + $0x31] ss:$2 sm:$0xff] %v11695_v55  ;;  %v4452_v40 = vsel %vm10200_vm12, %v8688_v53, %v4451_v49  ;;  %v4455_v2 = vrot.slane %v4353_v52, 6  ;;  %v8716_v49 = vld [vmem:[%s12899_s4 + $0x6] sm:$0x3] }
 0x45e   :  { %v4191_v29 = vld.sshfl [vmem:[#allocation1] sm:$0xff pattern:$0x75316420]  ;;  %v11747_v25 = vsel %vm10200_vm12, %v8607_v41, %v4174_v39  ;;  %v4361_v27 = vsel %vm10187_vm9, %v8661_v8, %v4360_v14  ;;  %v11804_v8 = vperm.slane %v8716_v49, 0  ;;  %v9664_v14 = vld [vmem:[%s12898_s3 + $0x498] sm:$0xff] }
 0x45f   :  { %4265 = vst [vmem:[#allocation1] ss:$2 sm:$0xff] %v11469_v31  ;;  %v9660_v31 = vld [vmem:[%s12898_s3 + $0x478] sm:$0xff]  ;;  %4834 = vmatpush.bf16.msrb.mxu3 %v9664_v14 }
 0x460   :  { %v4097_v36 = vld.sshfl [vmem:[#allocation1 + $0x10] sm:$0xff pattern:$0x75316420]  ;;  %4267 = vst [vmem:[#allocation1 + $0x1] ss:$2 sm:$0xff] %v11497_v28  ;;  %v8579_v28 = vrot.slane %v11695_v55, 9  ;;  %4525 = vmatpush.bf16.msra.mxu1 %v9660_v31 }
 0x461   :  { %4180 = vst [vmem:[#allocation1 + $0x10] ss:$2 sm:$0xff] %v11594_v26  ;;  %8551 = vmatmul.msk.bf16.gmra.mxu3 %vm405_vm0, %v3919_v4  ;;  %v4104_v17 = vpack.c.bf16 %v4097_v36, %v4096_v59 }
 0x462   :  { %4182 = vst [vmem:[#allocation1 + $0x11] ss:$2 sm:$0xff] %v11713_v0  ;;  %v4001_v11 = vld.sshfl [vmem:[#allocation1 + $0x20] sm:$0xff pattern:$0x75316420]  ;;  %v11726_v46 = vsel %vm10187_vm9, %v8579_v28, %v4079_v60 }
 0x463   :  { %4089 = vst [vmem:[#allocation1 + $0x20] ss:$2 sm:$0xff] %v11609_v51  ;;  %v9659_v51 = vld [vmem:[%s12898_s3 + $0x470] sm:$0xff] }
 0x464   :  { %4091 = vst [vmem:[#allocation1 + $0x21] ss:$2 sm:$0xff] %v11615_v21  ;;  %v4002_v33 = vld.sshfl [vmem:[#allocation1 + $0x30] sm:$0xff pattern:$0x75316420]  ;;  %4526 = vmatpush.bf16.msra.mxu1 %v9659_v51 }
 0x465   :  { %4093 = vst [vmem:[#allocation1 + $0x30] ss:$2 sm:$0xff] %v11622_v30  ;;  %v4008_v61 = vpack.c.bf16 %v4002_v33, %v4001_v11 }
 0x466   :  { %4095 = vst [vmem:[#allocation1 + $0x31] ss:$2 sm:$0xff] %v11726_v46 }
 0x467   :  { %v4280_v5 = vld.sshfl [vmem:[#allocation1] sm:$0xff pattern:$0x75316420] }
 0x468   :  { %4362 = vst [vmem:[#allocation1] ss:$2 sm:$0xff] %v11543_v1  ;;  %8604 = vmatmul.msk.bf16.vlgmr.msrb.gmra.mxu1 %vm405_vm0, %v4104_v17  ;;  %v8660_v1 = vrot.slane %v3642_v18, 9 }
 0x469   :  { %v4192_v24 = vld.sshfl [vmem:[#allocation1 + $0x10] sm:$0xff pattern:$0x75316420]  ;;  %4364 = vst [vmem:[#allocation1 + $0x1] ss:$2 sm:$0xff] %v11551_v44  ;;  %v4356_v44 = vrot.slane %v4352_v54, 5  ;;  %4527 = vmatpush.bf16.msra.mxu1 %v9658_v35 }
 0x46a   :  { %4269 = vst [vmem:[#allocation1 + $0x10] ss:$2 sm:$0xff] %v11618_v50  ;;  %8577 = vmatmul.msk.bf16.gmra.mxu0 %vm405_vm0, %v4008_v61  ;;  %v4199_v7 = vpack.c.bf16 %v4192_v24, %v4191_v29  ;;  %v8689_v29 = vrot.slane %v3648_v13, 10 }
 0x46b   :  { %4271 = vst [vmem:[#allocation1 + $0x11] ss:$2 sm:$0xff] %v3642_v18  ;;  %v4098_v12 = vld.sshfl [vmem:[#allocation1 + $0x20] sm:$0xff pattern:$0x75316420]  ;;  %v4357_v23 = vsel %vm10187_vm9, %v8660_v1, %v4356_v44 }
 0x46c   :  { %4184 = vst [vmem:[#allocation1 + $0x20] ss:$2 sm:$0xff] %v11657_v6  ;;  %8632 = vmatmul.msk.bf16.vlgmr.msra.gmra.mxu2 %vm405_vm0, %v4199_v7  ;;  %v4456_v36 = vsel %vm10200_vm12, %v8689_v29, %v4455_v2  ;;  %v9663_v2 = vld [vmem:[%s12898_s3 + $0x490] sm:$0xff] }
 0x46d   :  { %4186 = vst [vmem:[#allocation1 + $0x21] ss:$2 sm:$0xff] %v11663_v57  ;;  %v4099_v50 = vld.sshfl [vmem:[#allocation1 + $0x30] sm:$0xff pattern:$0x75316420]  ;;  %4528 = vmatpush.bf16.msra.mxu1 %v9657_v62  ;;  %4835 = vmatpush.bf16.msrb.mxu3 %v9663_v2 }
 0x46e   :  { %4188 = vst [vmem:[#allocation1 + $0x30] ss:$2 sm:$0xff] %v11671_v22 }
 0x46f   :  { %4190 = vst [vmem:[#allocation1 + $0x31] ss:$2 sm:$0xff] %v11747_v25 }
 0x470   :  { %v4377_v6 = vld.sshfl [vmem:[#allocation1] sm:$0xff pattern:$0x75316420] }
 0x471   :  { %4457 = vst [vmem:[#allocation1] ss:$2 sm:$0xff] %v11589_v58  ;;  %v4105_v58 = vpack.c.bf16 %v4099_v50, %v4098_v12 }
 0x472   :  { %v4281_v15 = vld.sshfl [vmem:[#allocation1 + $0x10] sm:$0xff pattern:$0x75316420]  ;;  %4459 = vst [vmem:[#allocation1 + $0x1] ss:$2 sm:$0xff] %v11594_v26 }
 0x473   :  { %4366 = vst [vmem:[#allocation1 + $0x10] ss:$2 sm:$0xff] %v11689_v42  ;;  %v4288_v59 = vpack.c.bf16 %v4281_v15, %v4280_v5 }
 0x474   :  { %4368 = vst [vmem:[#allocation1 + $0x11] ss:$2 sm:$0xff] %v4357_v23  ;;  %v4193_v20 = vld.sshfl [vmem:[#allocation1 + $0x20] sm:$0xff pattern:$0x75316420] }
 0x475   :  { %4273 = vst [vmem:[#allocation1 + $0x20] ss:$2 sm:$0xff] %v11554_v10  ;;  %8658 = vmatmul.msk.bf16.vlgmr.msra.gmra.mxu3 %vm405_vm0, %v4288_v59 }
 0x476   :  { %v4194_v63 = vld.sshfl [vmem:[#allocation1 + $0x30] sm:$0xff pattern:$0x75316420]  ;;  %4275 = vst [vmem:[#allocation1 + $0x21] ss:$2 sm:$0xff] %v11569_v9 }
 0x477   :  { %4277 = vst [vmem:[#allocation1 + $0x30] ss:$2 sm:$0xff] %v11695_v55  ;;  %v4200_v26 = vpack.c.bf16 %v4194_v63, %v4193_v20 }
 0x478   :  { %4279 = vst [vmem:[#allocation1 + $0x31] ss:$2 sm:$0xff] %v3648_v13  ;;  %8605 = vmatmul.msk.bf16.gmra.mxu1 %vm405_vm0, %v4105_v58 }
 0x479   :  { %v4472_v42 = vld.sshfl [vmem:[#allocation1] sm:$0xff pattern:$0x75316420] }
 0x47a   :  { %4564 = vst [vmem:[#allocation1] ss:$2 sm:$0xff] %v11444_v38  ;;  %v11775_v38 = vld [vmem:[#allocation3] sm:$0x3f] }
 0x47b   :  { %v4378_v10 = vld.sshfl [vmem:[#allocation1 + $0x10] sm:$0xff pattern:$0x75316420]  ;;  %4566 = vst [vmem:[#allocation1 + $0x1] ss:$2 sm:$0xff] %v11450_v16 }
 0x47c   :  { %4461 = vst [vmem:[#allocation1 + $0x10] ss:$2 sm:$0xff] %v11713_v0  ;;  %8633 = vmatmul.msk.bf16.gmra.mxu2 %vm405_vm0, %v4200_v26  ;;  %v4385_v9 = vpack.c.bf16 %v4378_v10, %v4377_v6 }
 0x47d   :  { %4463 = vst [vmem:[#allocation1 + $0x11] ss:$2 sm:$0xff] %v4452_v40  ;;  %v4282_v55 = vld.sshfl [vmem:[#allocation1 + $0x20] sm:$0xff pattern:$0x75316420] }
 0x47e   :  { %4370 = vst [vmem:[#allocation1 + $0x20] ss:$2 sm:$0xff] %v11615_v21  ;;  %8686 = vmatmul.msk.bf16.vlgmr.msrb.gmra.mxu0 %vm405_vm0, %v4385_v9 }
 0x47f   :  { %v4283_v43 = vld.sshfl [vmem:[#allocation1 + $0x30] sm:$0xff pattern:$0x75316420]  ;;  %4372 = vst [vmem:[#allocation1 + $0x21] ss:$2 sm:$0xff] %v11622_v30 }
 0x480   :  { %4374 = vst [vmem:[#allocation1 + $0x30] ss:$2 sm:$0xff] %v11726_v46  ;;  %v4289_v16 = vpack.c.bf16 %v4283_v43, %v4282_v55  ;;  %v11809_v43 = vperm.slane %v8716_v49, 1 }
 0x481   :  { %4376 = vst [vmem:[#allocation1 + $0x31] ss:$2 sm:$0xff] %v4361_v27 }
 0x482   :  { %v11778_v4 = vld.sshfl [vmem:[#allocation1] sm:$0xff pattern:$0x75316420] }
 0x483   :  { %4643 = vst [vmem:[#allocation1] ss:$2 sm:$0xff] %v11775_v38 }
 0x484   :  { %v4473_v19 = vld.sshfl [vmem:[#allocation1 + $0x10] sm:$0xff pattern:$0x75316420] }
 0x485   :  { %4568 = vst [vmem:[#allocation1 + $0x10] ss:$2 sm:$0xff] %v11467_v32  ;;  %8659 = vmatmul.msk.bf16.gmra.mxu3 %vm405_vm0, %v4289_v16  ;;  %v4480_v30 = vpack.c.bf16 %v4473_v19, %v4472_v42 }
 0x486   :  { %4570 = vst [vmem:[#allocation1 + $0x11] ss:$2 sm:$0xff] %v11479_v47  ;;  %v4379_v21 = vld.sshfl [vmem:[#allocation1 + $0x20] sm:$0xff pattern:$0x75316420] }
 0x487   :  { %4465 = vst [vmem:[#allocation1 + $0x20] ss:$2 sm:$0xff] %v11663_v57  ;;  %v11795_v57 = vld [vmem:[#allocation3 + $0x30] sm:$0x3f] }
 0x488   :  { %v4380_v0 = vld.sshfl [vmem:[#allocation1 + $0x30] sm:$0xff pattern:$0x75316420]  ;;  %4467 = vst [vmem:[#allocation1 + $0x21] ss:$2 sm:$0xff] %v11671_v22  ;;  %8714 = vmatmul.msk.bf16.vlgmr.msra.gmra.mxu1 %vm405_vm0, %v4480_v30 }
 0x489   :  { %4469 = vst [vmem:[#allocation1 + $0x30] ss:$2 sm:$0xff] %v11747_v25  ;;  %v4386_v32 = vpack.c.bf16 %v4380_v0, %v4379_v21 }
 0x48a   :  { %4471 = vst [vmem:[#allocation1 + $0x31] ss:$2 sm:$0xff] %v4456_v36 }
 0x48e   :  { %8687 = vmatmul.msk.bf16.gmra.mxu0 %vm405_vm0, %v4386_v32 }
 0x48f   :  { %v4474_v60 = vld.sshfl [vmem:[#allocation1 + $0x20] sm:$0xff pattern:$0x75316420] }
 0x490   :  { %4572 = vst [vmem:[#allocation1 + $0x20] ss:$2 sm:$0xff] %v11509_v48 }
 0x491   :  { %v4475_v47 = vld.sshfl [vmem:[#allocation1 + $0x30] sm:$0xff pattern:$0x75316420]  ;;  %4574 = vst [vmem:[#allocation1 + $0x21] ss:$2 sm:$0xff] %v11513_v37 }
 0x492   :  { %4576 = vst [vmem:[#allocation1 + $0x30] ss:$2 sm:$0xff] %v11528_v45  ;;  %v4481_v22 = vpack.c.bf16 %v4475_v47, %v4474_v60 }
 0x493   :  { %4578 = vst [vmem:[#allocation1 + $0x31] ss:$2 sm:$0xff] %v11566_v34 }
 0x498   :  { %v11797_v11 = vld.sshfl [vmem:[#allocation1 + $0x20] sm:$0xff pattern:$0x75316420]  ;;  %8715 = vmatmul.msk.bf16.gmra.mxu1 %vm405_vm0, %v4481_v22  ;;  %v9668_v22 = vld [vmem:[%s12898_s3 + $0x4b8] sm:$0xff] }
 0x499   :  { %4651 = vst [vmem:[#allocation1 + $0x20] ss:$2 sm:$0xff] %v11795_v57  ;;  %4785 = vmatpush.bf16.msrb.mxu2 %v9668_v22 }
 0x4c1   :  { %v3853_v33 = vpop.f32.mrf.mxu2 }
 0x4c5   :  { %v3804_v31 = vpop.f32.mrf.mxu1 }
 0x4c6   :  { %v3854_v12 = vadd.f32 %v3853_v33, %v3804_v31  ;;  %v9662_v31 = vld [vmem:[%s12898_s3 + $0x488] sm:$0xff] }
 0x4c7   :  { %4836 = vmatpush.bf16.msrb.mxu3 %v9662_v31  ;;  %v4582_v31 = vld.sshfl [vmem:[#allocation1 + $0x30] sm:$0xff pattern:$0x75316420] }
 0x4c9   :  { %v3855_v37 = vpop.f32.mrf.mxu2 }
 0x4cd   :  { %v3806_v28 = vpop.f32.mrf.mxu1 }
 0x4ce   :  { %v3856_v6 = vadd.f32 %v3855_v37, %v3806_v28 }
 0x4d1   :  { %v3858_v34 = vpop.f32.mrf.mxu2 }
 0x4d4   :  { %v3968_v48 = vpop.f32.mrf.mxu3 }
 0x4d5   :  { %v3809_v46 = vpop.f32.mrf.mxu1  ;;  %v3978_v44 = vadd.f32 %v3968_v48, %v3854_v12 }
 0x4d6   :  { %v3859_v58 = vadd.f32 %v3858_v34, %v3809_v46  ;;  %v9661_v34 = vld [vmem:[%s12898_s3 + $0x480] sm:$0xff] }
 0x4d7   :  { %v4057_v61 = vpop.f32.mrf.mxu0  ;;  %4837 = vmatpush.bf16.msrb.mxu3 %v9661_v34 }
 0x4d8   :  { %v4067_v25 = vadd.f32 %v4057_v61, %v3978_v44 }
 0x4d9   :  { %v3860_v24 = vpop.f32.mrf.mxu2 }
 0x4dc   :  { %v3970_v17 = vpop.f32.mrf.mxu3 }
 0x4dd   :  { %v3811_v45 = vpop.f32.mrf.mxu1  ;;  %v3979_v13 = vadd.f32 %v3970_v17, %v3856_v6 }
 0x4de   :  { %v3861_v0 = vadd.f32 %v3860_v24, %v3811_v45 }
 0x4df   :  { %v4059_v51 = vpop.f32.mrf.mxu0 }
 0x4e0   :  { %v4068_v63 = vadd.f32 %v4059_v51, %v3979_v13  ;;  %v9667_v51 = vld [vmem:[%s12898_s3 + $0x4b0] sm:$0xff] }
 0x4e1   :  { %4786 = vmatpush.bf16.msrb.mxu2 %v9667_v51 }
 0x4e4   :  { %v3973_v5 = vpop.f32.mrf.mxu3 }
 0x4e5   :  { %v4154_v18 = vpop.f32.mrf.mxu1  ;;  %v3980_v9 = vadd.f32 %v3973_v5, %v3859_v58 }
 0x4e6   :  { %v4164_v23 = vadd.f32 %v4154_v18, %v4067_v25 }
 0x4e7   :  { %v4062_v54 = vpop.f32.mrf.mxu0 }
 0x4e8   :  { %v4069_v21 = vadd.f32 %v4062_v54, %v3980_v9  ;;  %v4580_v54 = vld.sshfl [vmem:[#allocation1 + $0x10] sm:$0xff pattern:$0x75316420] }
 0x4ec   :  { %v3975_v7 = vpop.f32.mrf.mxu3 }
 0x4ed   :  { %v4156_v39 = vpop.f32.mrf.mxu1  ;;  %v3981_v33 = vadd.f32 %v3975_v7, %v3861_v0 }
 0x4ee   :  { %v4165_v26 = vadd.f32 %v4156_v39, %v4068_v63 }
 0x4ef   :  { %v4064_v35 = vpop.f32.mrf.mxu0  ;;  %v4249_v1 = vpop.f32.mrf.mxu2 }
 0x4f0   :  { %v4259_v59 = vadd.f32 %v4249_v1, %v4164_v23  ;;  %v4070_v5 = vadd.f32 %v4064_v35, %v3981_v33  ;;  %v9666_v1 = vld [vmem:[%s12898_s3 + $0x4a8] sm:$0xff]  ;;  %v4677_v35 = vrot.slane %v11775_v38, 4  ;;  %v9669_v33 = vld [vmem:[%s12898_s3 + $0x4c0] sm:$0xff] }
 0x4f1   :  { %4787 = vmatpush.bf16.msrb.mxu2 %v9666_v1 }
 0x4f5   :  { %v4159_v41 = vpop.f32.mrf.mxu1 }
 0x4f6   :  { %v4166_v32 = vadd.f32 %v4159_v41, %v4069_v21  ;;  %v9672_v41 = vld [vmem:[%s12898_s3 + $0x4d8] sm:$0xff] }
 0x4f7   :  { %v4251_v20 = vpop.f32.mrf.mxu2  ;;  %4949 = vmatpush.bf16.msra.mxu0 %v9672_v41 }
 0x4f8   :  { %v4338_v50 = vpop.f32.mrf.mxu3  ;;  %v4260_v55 = vadd.f32 %v4251_v20, %v4165_v26  ;;  %v8725_v20 = vrot.slane %v11775_v38, 9  ;;  %v9665_v26 = vld [vmem:[%s12898_s3 + $0x4a0] sm:$0xff] }
 0x4f9   :  { %v4348_v52 = vadd.f32 %v4338_v50, %v4259_v59  ;;  %4788 = vmatpush.bf16.msrb.mxu2 %v9665_v26 }
 0x4fb   :  { %v4435_v62 = vpop.f32.mrf.mxu0 }
 0x4fc   :  { %v4445_v42 = vadd.f32 %v4435_v62, %v4348_v52  ;;  %v4687_v52 = vrot.slane %v4677_v35, 5 }
 0x4fd   :  { %v4161_v15 = vpop.f32.mrf.mxu1 }
 0x4fe   :  { %v4167_v39 = vadd.f32 %v4161_v15, %v4070_v5  ;;  %v4688_v9 = vsel %vm10187_vm9, %v8725_v20, %v4687_v52  ;;  %v9679_v52 = vld [vmem:[%s12898_s3 + $0x510] sm:$0xff] }
 0x4ff   :  { %v4254_v19 = vpop.f32.mrf.mxu2 }
 0x500   :  { %v4340_v53 = vpop.f32.mrf.mxu3  ;;  %v4261_v48 = vadd.f32 %v4254_v19, %v4166_v32  ;;  %v8777_v32 = vrot.slane %v11775_v38, 10  ;;  %v9675_v38 = vld [vmem:[%s12898_s3 + $0x4f0] sm:$0xff] }
 0x501   :  { %v4349_v16 = vadd.f32 %v4340_v53, %v4260_v55 }
 0x503   :  { %v4437_v40 = vpop.f32.mrf.mxu0 }
 0x504   :  { %v4446_v60 = vadd.f32 %v4437_v40, %v4349_v16  ;;  %v9670_v16 = vld [vmem:[%s12898_s3 + $0x4c8] sm:$0xff] }
 0x505   :  { %v4530_v10 = vpop.f32.mrf.mxu1 }
 0x506   :  { %v4540_v27 = vadd.f32 %v4530_v10, %v4445_v42  ;;  %v9671_v42 = vld [vmem:[%s12898_s3 + $0x4d0] sm:$0xff]  ;;  %v9676_v10 = vld [vmem:[%s12898_s3 + $0x4f8] sm:$0xff] }
 0x507   :  { %v4256_v24 = vpop.f32.mrf.mxu2  ;;  %4950 = vmatpush.bf16.msra.mxu0 %v9671_v42  ;;  %5038 = vmatpush.bf16.msrb.mxu1 %v9676_v10 }
 0x508   :  { %v4547_v29 = vmul.f32 %v11804_v8, %v4540_v27  ;;  %v4343_v36 = vpop.f32.mrf.mxu3  ;;  %v4262_v25 = vadd.f32 %v4256_v24, %v4167_v39 }
 0x509   :  { %v4350_v17 = vadd.f32 %v4343_v36, %v4261_v48 }
 0x50a   :  { %v4552_v30 = vadd.f32 %v11809_v43, %v4547_v29 }
 0x50b   :  { %v4440_v37 = vpop.f32.mrf.mxu0  ;;  %4951 = vmatpush.bf16.msra.mxu0 %v9670_v16  ;;  %5039 = vmatpush.bf16.msrb.mxu1 %v9675_v38  ;;  %v9688_v38 = vld [vmem:[%s12898_s3 + $0x558] sm:$0xff] }
 0x50c   :  { %v4587_v47 = vadd.f32 %v11778_v4, %v4552_v30  ;;  %v4447_v7 = vadd.f32 %v4440_v37, %v4350_v17  ;;  %v9674_v37 = vld [vmem:[%s12898_s3 + $0x4e8] sm:$0xff] }
 0x50d   :  { %v4532_v28 = vpop.f32.mrf.mxu1 }
 0x50e   :  { %v4591_v46 = vmax.f32 %v4587_v47, 0.0  ;;  %v4541_v61 = vadd.f32 %v4532_v28, %v4446_v60  ;;  %v4851_v60 = vrot.slane %v4677_v35, 6 }
 0x50f   :  { %4952 = vmatpush.bf16.msra.mxu0 %v9669_v33  ;;  %5040 = vmatpush.bf16.msrb.mxu1 %v9674_v37 }
 0x510   :  { %v4599_v45 = vrot.slane %v4591_v46, 4  ;;  %4607 = vst.msk [vmem:[#allocation3 + $0x9] sm:$0xf] %vm1699_vm13, %v4591_v46  ;;  %v4548_v4 = vmul.f32 %v11804_v8, %v4541_v61  ;;  %v4345_v44 = vpop.f32.mrf.mxu3 }
 0x511   :  { %v4351_v13 = vadd.f32 %v4345_v44, %v4262_v25  ;;  %v9680_v44 = vld [vmem:[%s12898_s3 + $0x518] sm:$0xff]  ;;  %v8729_v25 = vrot.slane %v11795_v57, 9 }
 0x512   :  { %4608 = vst.msk [vmem:[#allocation3 + $0x11] sm:$0xf] %vm1699_vm13, %v4599_v45  ;;  %v4553_v18 = vadd.f32 %v11809_v43, %v4548_v4  ;;  %5135 = vmatpush.bf16.msra.mxu2 %v9680_v44  ;;  %v9686_v44 = vld [vmem:[%s12898_s3 + $0x548] sm:$0xff] }
 0x513   :  { %v4442_v49 = vpop.f32.mrf.mxu0  ;;  %5319 = vmatpush.bf16.msrb.mxu0 %v9688_v38 }
 0x514   :  { %v4588_v12 = vadd.f32 %v4580_v54, %v4553_v18  ;;  %v4448_v40 = vadd.f32 %v4442_v49, %v4351_v13  ;;  %v4681_v54 = vrot.slane %v11795_v57, 4  ;;  %v9683_v49 = vld [vmem:[%s12898_s3 + $0x530] sm:$0xff] }
 0x515   :  { %v4535_v50 = vpop.f32.mrf.mxu1 }
 0x516   :  { %v4592_v62 = vmax.f32 %v4588_v12, 0.0  ;;  %v4542_v6 = vadd.f32 %v4535_v50, %v4447_v7  ;;  %v9673_v12 = vld [vmem:[%s12898_s3 + $0x4e0] sm:$0xff]  ;;  %v9684_v50 = vld [vmem:[%s12898_s3 + $0x538] sm:$0xff]  ;;  %5136 = vmatpush.bf16.msra.mxu2 %v9679_v52 }
 0x517   :  { %v11840_v23 = vld [vmem:[#allocation3 + $0x8] sm:$0x3f]  ;;  %5041 = vmatpush.bf16.msrb.mxu1 %v9673_v12  ;;  %5230 = vmatpush.bf16.msra.mxu3 %v9684_v50  ;;  %v9685_v52 = vld [vmem:[%s12898_s3 + $0x540] sm:$0xff] }
 0x518   :  { %4645 = vst [vmem:[#allocation1 + $0x1] ss:$2 sm:$0xff] %v11840_v23  ;;  %v4678_v15 = vrot.slane %v11840_v23, 4  ;;  %v4600_v59 = vrot.slane %v4592_v62, 4  ;;  %v4549_v63 = vmul.f32 %v11804_v8, %v4542_v6  ;;  %v8726_v29 = vrot.slane %v11840_v23, 9  ;;  %v9691_v12 = vld [vmem:[%s12898_s3 + $0x570] sm:$0xff] }
 0x519   :  { %v11845_v53 = vld [vmem:[#allocation3 + $0x10] sm:$0x3f]  ;;  %4609 = vst.msk [vmem:[#allocation3 + $0x19] sm:$0xf] %vm1699_vm13, %v4592_v62  ;;  %v8778_v17 = vrot.slane %v11840_v23, 10  ;;  %v4703_v62 = vrot.slane %v4681_v54, 5 }
 0x51a   :  { %4647 = vst [vmem:[#allocation1 + $0x10] ss:$2 sm:$0xff] %v11845_v53  ;;  %v4554_v58 = vadd.f32 %v11809_v43, %v4549_v63  ;;  %v4691_v14 = vrot.slane %v4678_v15, 5  ;;  %v4679_v47 = vrot.slane %v11845_v53, 4  ;;  %v4855_v48 = vrot.slane %v4678_v15, 6 }
 0x51b   :  { %4610 = vst.msk [vmem:[#allocation3 + $0x21] sm:$0xf] %vm1699_vm13, %v4600_v59  ;;  %v8727_v4 = vrot.slane %v11845_v53, 9  ;;  %v8779_v63 = vrot.slane %v11845_v53, 10  ;;  %v4704_v10 = vsel %vm10187_vm9, %v8729_v25, %v4703_v62  ;;  %5231 = vmatpush.bf16.msra.mxu3 %v9683_v49 }
 0x51c   :  { %v4589_v55 = vadd.f32 %v11797_v11, %v4554_v58  ;;  %v11870_v30 = vsel %vm10187_vm9, %v8726_v29, %v4691_v14  ;;  %v4695_v46 = vrot.slane %v4679_v47, 5  ;;  %v11901_v34 = vsel %vm10200_vm12, %v8778_v17, %v4855_v48  ;;  %v9681_v48 = vld [vmem:[%s12898_s3 + $0x520] sm:$0xff] }
 0x51d   :  { %v4537_v27 = vpop.f32.mrf.mxu1  ;;  %v4859_v15 = vrot.slane %v4679_v47, 6 }
 0x51e   :  { %v4543_v2 = vadd.f32 %v4537_v27, %v4448_v40  ;;  %v4593_v21 = vmax.f32 %v4589_v55, 0.0  ;;  %v11907_v24 = vsel %vm10187_vm9, %v8727_v4, %v4695_v46  ;;  %v9687_v46 = vld [vmem:[%s12898_s3 + $0x550] sm:$0xff] }
 0x51f   :  { %v4658_v19 = vld.sshfl [vmem:[#allocation1] sm:$0xff pattern:$0x75316420]  ;;  %5320 = vmatpush.bf16.msrb.mxu0 %v9687_v46 }
 0x520   :  { %4717 = vst [vmem:[#allocation1] ss:$2 sm:$0xff] %v4688_v9  ;;  %v11872_v36 = vld [vmem:[#allocation3 + $0x18] sm:$0x3f]  ;;  %v4550_v11 = vmul.f32 %v11804_v8, %v4543_v2  ;;  %v4601_v0 = vrot.slane %v4593_v21, 4  ;;  %v11956_v9 = vsel %vm10200_vm12, %v8779_v63, %v4859_v15  ;;  %v9695_v63 = vld [vmem:[%s12898_s3 + $0x590] sm:$0xff] }
 0x521   :  { %4719 = vst [vmem:[#allocation1 + $0x1] ss:$2 sm:$0xff] %v11870_v30  ;;  %v4680_v28 = vrot.slane %v11872_v36, 4  ;;  %v8728_v18 = vrot.slane %v11872_v36, 9  ;;  %v8780_v42 = vrot.slane %v11872_v36, 10 }
 0x522   :  { %4649 = vst [vmem:[#allocation1 + $0x11] ss:$2 sm:$0xff] %v11872_v36  ;;  %v4555_v22 = vadd.f32 %v11809_v43, %v4550_v11  ;;  %v4852_v43 = vsel %vm10200_vm12, %v8777_v32, %v4851_v60  ;;  %v9682_v11 = vld [vmem:[%s12898_s3 + $0x528] sm:$0xff]  ;;  %v4867_v32 = vrot.slane %v4681_v54, 6 }
 0x523   :  { %4611 = vst.msk [vmem:[#allocation3 + $0x39] sm:$0xf] %vm1699_vm13, %v4593_v21  ;;  %v4699_v45 = vrot.slane %v4680_v28, 5  ;;  %v4863_v20 = vrot.slane %v4680_v28, 6  ;;  %v9678_v21 = vld [vmem:[%s12898_s3 + $0x508] sm:$0xff]  ;;  %5232 = vmatpush.bf16.msra.mxu3 %v9682_v11  ;;  %5321 = vmatpush.bf16.msrb.mxu0 %v9686_v44 }
 0x524   :  { %4612 = vst.msk [vmem:[#allocation3 + $0x41] sm:$0xf] %vm1699_vm13, %v4601_v0  ;;  %v4590_v8 = vadd.f32 %v4582_v31, %v4555_v22  ;;  %v8781_v0 = vrot.slane %v11795_v57, 10  ;;  %5137 = vmatpush.bf16.msra.mxu2 %v9678_v21  ;;  %v9677_v57 = vld [vmem:[%s12898_s3 + $0x500] sm:$0xff]  ;;  %v11990_v28 = vld [vmem:[#allocation3 + $0x20] sm:$0x3f] }
 0x525   :  { %v11917_v1 = vsel %vm10187_vm9, %v8728_v18, %v4699_v45  ;;  %v5057_v37 = vrot.slane %v11990_v28, 4  ;;  %v9692_v45 = vld [vmem:[%s12898_s3 + $0x578] sm:$0xff]  ;;  %v8865_v21 = vrot.slane %v11990_v28, 10 }
 0x526   :  { %v4594_v61 = vmax.f32 %v4590_v8, 0.0  ;;  %v4868_v4 = vsel %vm10200_vm12, %v8781_v0, %v4867_v32  ;;  %5416 = vmatpush.bf16.msra.mxu1 %v9692_v45 }
 0x527   :  { %5233 = vmatpush.bf16.msra.mxu3 %v9681_v48  ;;  %5322 = vmatpush.bf16.msrb.mxu0 %v9685_v52  ;;  %v4628_v48 = vld [vmem:[#allocation3 + $0x28] sm:$0x3f] }
 0x528   :  { %v11896_v51 = vld.sshfl [vmem:[#allocation1] sm:$0xff pattern:$0x75316420]  ;;  %4613 = vst.msk [vmem:[#allocation3 + $0x49] sm:$0xf] %vm1699_vm13, %v4594_v61  ;;  %v4602_v35 = vrot.slane %v4594_v61, 4  ;;  %5138 = vmatpush.bf16.msra.mxu2 %v9677_v57 }
 0x529   :  { %4881 = vst [vmem:[#allocation1] ss:$2 sm:$0xff] %v4852_v43  ;;  %v4659_v5 = vld.sshfl [vmem:[#allocation1 + $0x10] sm:$0xff pattern:$0x75316420]  ;;  %v9696_v61 = vld [vmem:[%s12898_s3 + $0x598] sm:$0xff] }
 0x52a   :  { %4883 = vst [vmem:[#allocation1 + $0x1] ss:$2 sm:$0xff] %v11901_v34  ;;  %v11910_v39 = vld [vmem:[#allocation3 + $0x38] sm:$0x3f]  ;;  %v4666_v7 = vpack.c.bf16 %v4659_v5, %v4658_v19  ;;  %5417 = vmatpush.bf16.msra.mxu1 %v9691_v12  ;;  %v8919_v45 = vrot.slane %v4628_v48, 9 }
 0x52b   :  { %4721 = vst [vmem:[#allocation1 + $0x10] ss:$2 sm:$0xff] %v11907_v24  ;;  %v11920_v41 = vld [vmem:[#allocation3 + $0x40] sm:$0x3f]  ;;  %v4682_v6 = vrot.slane %v11910_v39, 4  ;;  %v8730_v14 = vrot.slane %v11910_v39, 9 }
 0x52c   :  { %4723 = vst [vmem:[#allocation1 + $0x11] ss:$2 sm:$0xff] %v11917_v1  ;;  %8775 = vmatmul.msk.bf16.vlgmr.msrb.gmra.mxu3 %vm405_vm0, %v4666_v7  ;;  %v4683_v13 = vrot.slane %v11920_v41, 4  ;;  %v8731_v19 = vrot.slane %v11920_v41, 9  ;;  %v8783_v18 = vrot.slane %v11920_v41, 10  ;;  %v9693_v57 = vld [vmem:[%s12898_s3 + $0x580] sm:$0xff] }
 0x52d   :  { %4653 = vst [vmem:[#allocation1 + $0x21] ss:$2 sm:$0xff] %v11910_v39  ;;  %v4707_v40 = vrot.slane %v4682_v6, 5  ;;  %v4871_v17 = vrot.slane %v4682_v6, 6 }
 0x52e   :  { %4655 = vst [vmem:[#allocation1 + $0x30] ss:$2 sm:$0xff] %v11920_v41  ;;  %v4711_v27 = vrot.slane %v4683_v13, 5  ;;  %v4875_v5 = vrot.slane %v4683_v13, 6  ;;  %v5061_v13 = vrot.slane %v5057_v37, 5 }
 0x52f   :  { %4614 = vst.msk [vmem:[#allocation3 + $0x51] sm:$0xf] %vm1699_vm13, %v4602_v35  ;;  %v11936_v59 = vld [vmem:[#allocation3 + $0x48] sm:$0x3f]  ;;  %v11978_v60 = vsel %vm10187_vm9, %v8730_v14, %v4707_v40  ;;  %v9689_v14 = vld [vmem:[%s12898_s3 + $0x560] sm:$0xff] }
 0x530   :  { %4657 = vst [vmem:[#allocation1 + $0x31] ss:$2 sm:$0xff] %v11936_v59  ;;  %v4684_v26 = vrot.slane %v11936_v59, 4  ;;  %v8732_v47 = vrot.slane %v11936_v59, 9  ;;  %v11984_v22 = vsel %vm10187_vm9, %v8731_v19, %v4711_v27  ;;  %v8784_v25 = vrot.slane %v11936_v59, 10 }
 0x531   :  { %v11946_v58 = vld.sshfl [vmem:[#allocation1] sm:$0xff pattern:$0x75316420]  ;;  %v12040_v62 = vsel %vm10200_vm12, %v8783_v18, %v4875_v5 }
 0x532   :  { %4970 = vst [vmem:[#allocation1] ss:$2 sm:$0xff] %v11840_v23  ;;  %v11963_v23 = vsel %vm10200_vm12, %v8780_v42, %v4863_v20  ;;  %v4715_v29 = vrot.slane %v4684_v26, 5  ;;  %v4879_v54 = vrot.slane %v4684_v26, 6  ;;  %v8837_v26 = vrot.slane %v11990_v28, 9 }
 0x533   :  { %4972 = vst [vmem:[#allocation1 + $0x1] ss:$2 sm:$0xff] %v11845_v53  ;;  %v4733_v55 = vld.sshfl [vmem:[#allocation1 + $0x10] sm:$0xff pattern:$0x75316420] }
 0x534   :  { %4885 = vst [vmem:[#allocation1 + $0x10] ss:$2 sm:$0xff] %v11956_v9  ;;  %v4660_v16 = vld.sshfl [vmem:[#allocation1 + $0x20] sm:$0xff pattern:$0x75316420]  ;;  %v4740_v2 = vpack.c.bf16 %v4733_v55, %v11896_v51  ;;  %v11994_v8 = vsel %vm10187_vm9, %v8732_v47, %v4715_v29  ;;  %v12045_v15 = vsel %vm10200_vm12, %v8784_v25, %v4879_v54  ;;  %v12066_v40 = vsel %vm10187_vm9, %v8837_v26, %v5061_v13 }
 0x535   :  { %4887 = vst [vmem:[#allocation1 + $0x11] ss:$2 sm:$0xff] %v11963_v23  ;;  %v4634_v18 = vld [vmem:[#allocation3 + $0x58] sm:$0x3f] }
 0x536   :  { %4725 = vst [vmem:[#allocation1 + $0x20] ss:$2 sm:$0xff] %v4704_v10  ;;  %8757 = vmatmul.msk.bf16.vlgmr.msrb.gmra.mxu2 %vm405_vm0, %v4740_v2  ;;  %v12072_v55 = vld [vmem:[#allocation3 + $0x50] sm:$0x3f]  ;;  %v5339_v12 = vrot.slane %v4634_v18, 4  ;;  %v8920_v13 = vrot.slane %v4634_v18, 9 }
 0x537   :  { %4727 = vst [vmem:[#allocation1 + $0x21] ss:$2 sm:$0xff] %v11978_v60  ;;  %v4661_v31 = vld.sshfl [vmem:[#allocation1 + $0x30] sm:$0xff pattern:$0x75316420]  ;;  %5511 = vmatpush.bf16.msrb.mxu2 %v9696_v61  ;;  %v5058_v29 = vrot.slane %v12072_v55, 4 }
 0x538   :  { %4729 = vst [vmem:[#allocation1 + $0x30] ss:$2 sm:$0xff] %v11984_v22  ;;  %v4667_v33 = vpack.c.bf16 %v4661_v31, %v4660_v16  ;;  %v5156_v16 = vrot.slane %v5057_v37, 6 }
 0x539   :  { %4731 = vst [vmem:[#allocation1 + $0x31] ss:$2 sm:$0xff] %v11994_v8  ;;  %v5065_v32 = vrot.slane %v5058_v29, 5  ;;  %v5160_v61 = vrot.slane %v5058_v29, 6 }
 0x53a   :  { %v4985_v43 = vld.sshfl [vmem:[#allocation1] sm:$0xff pattern:$0x75316420]  ;;  %v12087_v0 = vsel %vm10200_vm12, %v8865_v21, %v5156_v16 }
 0x53b   :  { %5067 = vst [vmem:[#allocation1] ss:$2 sm:$0xff] %v11870_v30  ;;  %v8782_v30 = vrot.slane %v11910_v39, 10  ;;  %5512 = vmatpush.bf16.msrb.mxu2 %v9695_v63 }
 0x53c   :  { %5069 = vst [vmem:[#allocation1 + $0x1] ss:$2 sm:$0xff] %v11907_v24  ;;  %v4897_v51 = vld.sshfl [vmem:[#allocation1 + $0x10] sm:$0xff pattern:$0x75316420]  ;;  %8776 = vmatmul.msk.bf16.gmra.mxu3 %vm405_vm0, %v4667_v33 }
 0x53d   :  { %4974 = vst [vmem:[#allocation1 + $0x10] ss:$2 sm:$0xff] %v11872_v36  ;;  %v4904_v7 = vpack.c.bf16 %v4897_v51, %v11946_v58  ;;  %v12034_v50 = vsel %vm10200_vm12, %v8782_v30, %v4871_v17  ;;  %v9690_v58 = vld [vmem:[%s12898_s3 + $0x568] sm:$0xff] }
 0x53e   :  { %4976 = vst [vmem:[#allocation1 + $0x11] ss:$2 sm:$0xff] %v11990_v28  ;;  %v4734_v35 = vld.sshfl [vmem:[#allocation1 + $0x20] sm:$0xff pattern:$0x75316420]  ;;  %5418 = vmatpush.bf16.msra.mxu1 %v9690_v58 }
 0x53f   :  { %4889 = vst [vmem:[#allocation1 + $0x20] ss:$2 sm:$0xff] %v4868_v4  ;;  %8809 = vmatmul.msk.bf16.vlgmr.msra.gmra.mxu0 %vm405_vm0, %v4904_v7  ;;  %v8866_v4 = vrot.slane %v12072_v55, 10 }
 0x540   :  { %4891 = vst [vmem:[#allocation1 + $0x21] ss:$2 sm:$0xff] %v12034_v50  ;;  %v4735_v6 = vld.sshfl [vmem:[#allocation1 + $0x30] sm:$0xff pattern:$0x75316420] }
 0x541   :  { %4893 = vst [vmem:[#allocation1 + $0x30] ss:$2 sm:$0xff] %v12040_v62  ;;  %v4741_v20 = vpack.c.bf16 %v4735_v6, %v4734_v35  ;;  %v8947_v35 = vrot.slane %v4628_v48, 10 }
 0x542   :  { %4895 = vst [vmem:[#allocation1 + $0x31] ss:$2 sm:$0xff] %v12045_v15  ;;  %5419 = vmatpush.bf16.msra.mxu1 %v9689_v14  ;;  %v5441_v14 = vrot.slane %v5339_v12, 6 }
 0x543   :  { %v5082_v49 = vld.sshfl [vmem:[#allocation1] sm:$0xff pattern:$0x75316420] }
 0x544   :  { %5162 = vst [vmem:[#allocation1] ss:$2 sm:$0xff] %v11901_v34 }
 0x545   :  { %5164 = vst [vmem:[#allocation1 + $0x1] ss:$2 sm:$0xff] %v11956_v9  ;;  %v4986_v42 = vld.sshfl [vmem:[#allocation1 + $0x10] sm:$0xff pattern:$0x75316420] }
 0x546   :  { %5071 = vst [vmem:[#allocation1 + $0x10] ss:$2 sm:$0xff] %v11917_v1  ;;  %8758 = vmatmul.msk.bf16.gmra.mxu2 %vm405_vm0, %v4741_v20  ;;  %v4993_v34 = vpack.c.bf16 %v4986_v42, %v4985_v43  ;;  %v5338_v43 = vrot.slane %v4628_v48, 4  ;;  %v5346_v20 = vrot.slane %v5339_v12, 5  ;;  %v8948_v42 = vrot.slane %v4634_v18, 10  ;;  %v9700_v12 = vld [vmem:[%s12898_s3 + $0x5b8] sm:$0xff] }
 0x547   :  { %5073 = vst [vmem:[#allocation1 + $0x11] ss:$2 sm:$0xff] %v12066_v40  ;;  %v4898_v10 = vld.sshfl [vmem:[#allocation1 + $0x20] sm:$0xff pattern:$0x75316420]  ;;  %5777 = vmatpush.bf16.msra.mxu0 %v9700_v12 }
 0x548   :  { %4978 = vst [vmem:[#allocation1 + $0x20] ss:$2 sm:$0xff] %v11910_v39  ;;  %8835 = vmatmul.msk.bf16.vlgmr.msrb.gmra.mxu1 %vm405_vm0, %v4993_v34  ;;  %v9694_v39 = vld [vmem:[%s12898_s3 + $0x588] sm:$0xff]  ;;  %v5437_v44 = vrot.slane %v5338_v43, 6  ;;  %v5347_v63 = vsel %vm10187_vm9, %v8920_v13, %v5346_v20 }
 0x549   :  { %4980 = vst [vmem:[#allocation1 + $0x21] ss:$2 sm:$0xff] %v11920_v41  ;;  %v4899_v27 = vld.sshfl [vmem:[#allocation1 + $0x30] sm:$0xff pattern:$0x75316420]  ;;  %5513 = vmatpush.bf16.msrb.mxu2 %v9694_v39 }
 0x54a   :  { %4982 = vst [vmem:[#allocation1 + $0x30] ss:$2 sm:$0xff] %v11936_v59  ;;  %v4905_v2 = vpack.c.bf16 %v4899_v27, %v4898_v10  ;;  %v5438_v52 = vsel %vm10200_vm12, %v8947_v35, %v5437_v44  ;;  %v12145_v27 = vld [vmem:[#allocation3 + $0x30] sm:$0x3f]  ;;  %v12215_v12 = vld [vmem:[#allocation3 + $0x21] sm:$0xf] }
 0x54b   :  { %4984 = vst [vmem:[#allocation1 + $0x31] ss:$2 sm:$0xff] %v12072_v55 }
 0x54c   :  { %v5177_v19 = vld.sshfl [vmem:[#allocation1] sm:$0xff pattern:$0x75316420] }
 0x54d   :  { %5251 = vst [vmem:[#allocation1] ss:$2 sm:$0xff] %v11845_v53  ;;  %v8838_v53 = vrot.slane %v12072_v55, 9  ;;  %5514 = vmatpush.bf16.msrb.mxu2 %v9693_v57 }
 0x54e   :  { %v5083_v11 = vld.sshfl [vmem:[#allocation1 + $0x10] sm:$0xff pattern:$0x75316420]  ;;  %5253 = vst [vmem:[#allocation1 + $0x1] ss:$2 sm:$0xff] %v11872_v36 }
 0x54f   :  { %5166 = vst [vmem:[#allocation1 + $0x10] ss:$2 sm:$0xff] %v11963_v23  ;;  %8810 = vmatmul.msk.bf16.gmra.mxu0 %vm405_vm0, %v4905_v2  ;;  %v12097_v31 = vsel %vm10187_vm9, %v8838_v53, %v5065_v32  ;;  %v5090_v38 = vpack.c.bf16 %v5083_v11, %v5082_v49 }
 0x550   :  { %5168 = vst [vmem:[#allocation1 + $0x11] ss:$2 sm:$0xff] %v12087_v0  ;;  %v4987_v47 = vld.sshfl [vmem:[#allocation1 + $0x20] sm:$0xff pattern:$0x75316420] }
 0x551   :  { %5075 = vst [vmem:[#allocation1 + $0x20] ss:$2 sm:$0xff] %v11978_v60 }
 0x552   :  { %5077 = vst [vmem:[#allocation1 + $0x21] ss:$2 sm:$0xff] %v11984_v22  ;;  %v4988_v36 = vld.sshfl [vmem:[#allocation1 + $0x30] sm:$0xff pattern:$0x75316420] }
 0x553   :  { %5079 = vst [vmem:[#allocation1 + $0x30] ss:$2 sm:$0xff] %v11994_v8  ;;  %v4994_v33 = vpack.c.bf16 %v4988_v36, %v4987_v47 }
 0x554   :  { %5081 = vst [vmem:[#allocation1 + $0x31] ss:$2 sm:$0xff] %v12097_v31 }
 0x555   :  { %v5266_v60 = vld.sshfl [vmem:[#allocation1] sm:$0xff pattern:$0x75316420] }
 0x556   :  { %8863 = vmatmul.msk.bf16.vlgmr.msra.gmra.mxu2 %vm405_vm0, %v5090_v38  ;;  %5348 = vst [vmem:[#allocation1] ss:$2 sm:$0xff] %v11907_v24  ;;  %v5342_v24 = vrot.slane %v5338_v43, 5 }
 0x557   :  { %v5178_v46 = vld.sshfl [vmem:[#allocation1 + $0x10] sm:$0xff pattern:$0x75316420]  ;;  %5350 = vst [vmem:[#allocation1 + $0x1] ss:$2 sm:$0xff] %v11917_v1  ;;  %v5161_v1 = vsel %vm10200_vm12, %v8866_v4, %v5160_v61 }
 0x558   :  { %8836 = vmatmul.msk.bf16.gmra.mxu1 %vm405_vm0, %v4994_v33  ;;  %v5185_v37 = vpack.c.bf16 %v5178_v46, %v5177_v19  ;;  %5255 = vst [vmem:[#allocation1 + $0x10] ss:$2 sm:$0xff] %v11990_v28  ;;  %v5343_v5 = vsel %vm10187_vm9, %v8919_v45, %v5342_v24 }
 0x559   :  { %5257 = vst [vmem:[#allocation1 + $0x11] ss:$2 sm:$0xff] %v4628_v48  ;;  %v5084_v17 = vld.sshfl [vmem:[#allocation1 + $0x20] sm:$0xff pattern:$0x75316420] }
 0x55a   :  { %8891 = vmatmul.msk.bf16.vlgmr.msra.gmra.mxu3 %vm405_vm0, %v5185_v37  ;;  %5170 = vst [vmem:[#allocation1 + $0x20] ss:$2 sm:$0xff] %v12034_v50 }
 0x55b   :  { %v5085_v51 = vld.sshfl [vmem:[#allocation1 + $0x30] sm:$0xff pattern:$0x75316420]  ;;  %5172 = vst [vmem:[#allocation1 + $0x21] ss:$2 sm:$0xff] %v12040_v62 }
 0x55c   :  { %5174 = vst [vmem:[#allocation1 + $0x30] ss:$2 sm:$0xff] %v12045_v15  ;;  %v5091_v50 = vpack.c.bf16 %v5085_v51, %v5084_v17 }
 0x55d   :  { %5176 = vst [vmem:[#allocation1 + $0x31] ss:$2 sm:$0xff] %v5161_v1 }
 0x55e   :  { %v5363_v28 = vld.sshfl [vmem:[#allocation1] sm:$0xff pattern:$0x75316420] }
 0x55f   :  { %5443 = vst [vmem:[#allocation1] ss:$2 sm:$0xff] %v11956_v9  ;;  %v12124_v9 = vld [vmem:[#allocation3] sm:$0x3f] }
 0x560   :  { %v5267_v30 = vld.sshfl [vmem:[#allocation1 + $0x10] sm:$0xff pattern:$0x75316420]  ;;  %5445 = vst [vmem:[#allocation1 + $0x1] ss:$2 sm:$0xff] %v11963_v23 }
 0x561   :  { %v5274_v54 = vpack.c.bf16 %v5267_v30, %v5266_v60  ;;  %5352 = vst [vmem:[#allocation1 + $0x10] ss:$2 sm:$0xff] %v12066_v40 }
 0x562   :  { %5354 = vst [vmem:[#allocation1 + $0x11] ss:$2 sm:$0xff] %v5343_v5  ;;  %v5179_v7 = vld.sshfl [vmem:[#allocation1 + $0x20] sm:$0xff pattern:$0x75316420] }
 0x563   :  { %8917 = vmatmul.msk.bf16.vlgmr.msrb.gmra.mxu0 %vm405_vm0, %v5274_v54  ;;  %5259 = vst [vmem:[#allocation1 + $0x20] ss:$2 sm:$0xff] %v11920_v41 }
 0x564   :  { %v5180_v25 = vld.sshfl [vmem:[#allocation1 + $0x30] sm:$0xff pattern:$0x75316420]  ;;  %5261 = vst [vmem:[#allocation1 + $0x21] ss:$2 sm:$0xff] %v11936_v59 }
 0x565   :  { %5263 = vst [vmem:[#allocation1 + $0x30] ss:$2 sm:$0xff] %v12072_v55  ;;  %v5186_v23 = vpack.c.bf16 %v5180_v25, %v5179_v7  ;;  %v5442_v55 = vsel %vm10200_vm12, %v8948_v42, %v5441_v14  ;;  %v8975_v7 = vld [vmem:[%s12899_s4 + $0x8] sm:$0x3] }
 0x566   :  { %8864 = vmatmul.msk.bf16.gmra.mxu2 %vm405_vm0, %v5091_v50  ;;  %5265 = vst [vmem:[#allocation1 + $0x31] ss:$2 sm:$0xff] %v4634_v18  ;;  %v9698_v14 = vld [vmem:[%s12898_s3 + $0x5a8] sm:$0xff] }
 0x567   :  { %v5458_v6 = vld.sshfl [vmem:[#allocation1] sm:$0xff pattern:$0x75316420] }
 0x568   :  { %5586 = vst [vmem:[#allocation1] ss:$2 sm:$0xff] %v12124_v9 }
 0x569   :  { %v5364_v41 = vld.sshfl [vmem:[#allocation1 + $0x10] sm:$0xff pattern:$0x75316420] }
 0x56a   :  { %8892 = vmatmul.msk.bf16.gmra.mxu3 %vm405_vm0, %v5186_v23  ;;  %v5371_v59 = vpack.c.bf16 %v5364_v41, %v5363_v28  ;;  %5447 = vst [vmem:[#allocation1 + $0x10] ss:$2 sm:$0xff] %v12087_v0  ;;  %v9699_v41 = vld [vmem:[%s12898_s3 + $0x5b0] sm:$0xff] }
 0x56b   :  { %5449 = vst [vmem:[#allocation1 + $0x11] ss:$2 sm:$0xff] %v5438_v52  ;;  %v5268_v49 = vld.sshfl [vmem:[#allocation1 + $0x20] sm:$0xff pattern:$0x75316420]  ;;  %v9704_v52 = vld [vmem:[%s12898_s3 + $0x5d8] sm:$0xff]  ;;  %5778 = vmatpush.bf16.msra.mxu0 %v9699_v41 }
 0x56c   :  { %8945 = vmatmul.msk.bf16.vlgmr.msra.gmra.mxu1 %vm405_vm0, %v5371_v59  ;;  %5356 = vst [vmem:[#allocation1 + $0x20] ss:$2 sm:$0xff] %v11984_v22  ;;  %5728 = vmatpush.bf16.msrb.mxu3 %v9704_v52 }
 0x56d   :  { %v5269_v58 = vld.sshfl [vmem:[#allocation1 + $0x30] sm:$0xff pattern:$0x75316420]  ;;  %5358 = vst [vmem:[#allocation1 + $0x21] ss:$2 sm:$0xff] %v11994_v8 }
 0x56e   :  { %5360 = vst [vmem:[#allocation1 + $0x30] ss:$2 sm:$0xff] %v12097_v31  ;;  %v5275_v26 = vpack.c.bf16 %v5269_v58, %v5268_v49 }
 0x56f   :  { %5362 = vst [vmem:[#allocation1 + $0x31] ss:$2 sm:$0xff] %v5347_v63  ;;  %v12164_v63 = vperm.slane %v8975_v7, 1  ;;  %5779 = vmatpush.bf16.msra.mxu0 %v9698_v14 }
 0x572   :  { %v5459_v40 = vld.sshfl [vmem:[#allocation1 + $0x10] sm:$0xff pattern:$0x75316420] }
 0x573   :  { %8918 = vmatmul.msk.bf16.gmra.mxu0 %vm405_vm0, %v5275_v26  ;;  %v5466_v10 = vpack.c.bf16 %v5459_v40, %v5458_v6  ;;  %v12156_v6 = vperm.slane %v8975_v7, 0  ;;  %v9716_v7 = vld [vmem:[%s12898_s3 + $0x638] sm:$0xff] }
 0x574   :  { %v5365_v34 = vld.sshfl [vmem:[#allocation1 + $0x20] sm:$0xff pattern:$0x75316420] }
 0x575   :  { %5451 = vst [vmem:[#allocation1 + $0x20] ss:$2 sm:$0xff] %v12040_v62 }
 0x576   :  { %v5366_v22 = vld.sshfl [vmem:[#allocation1 + $0x30] sm:$0xff pattern:$0x75316420]  ;;  %5453 = vst [vmem:[#allocation1 + $0x21] ss:$2 sm:$0xff] %v12045_v15  ;;  %8973 = vmatmul.msk.bf16.vlgmr.msrb.gmra.mxu2 %vm405_vm0, %v5466_v10 }
 0x577   :  { %5455 = vst [vmem:[#allocation1 + $0x30] ss:$2 sm:$0xff] %v5161_v1  ;;  %v5372_v8 = vpack.c.bf16 %v5366_v22, %v5365_v34 }
 0x578   :  { %5457 = vst [vmem:[#allocation1 + $0x31] ss:$2 sm:$0xff] %v5442_v55 }
 0x57c   :  { %8946 = vmatmul.msk.bf16.gmra.mxu1 %vm405_vm0, %v5372_v8 }
 0x57d   :  { %v5460_v16 = vld.sshfl [vmem:[#allocation1 + $0x20] sm:$0xff pattern:$0x75316420] }
 0x57e   :  { %5594 = vst [vmem:[#allocation1 + $0x20] ss:$2 sm:$0xff] %v12145_v27 }
 0x57f   :  { %v5461_v29 = vld.sshfl [vmem:[#allocation1 + $0x30] sm:$0xff pattern:$0x75316420] }
 0x580   :  { %v5467_v2 = vpack.c.bf16 %v5461_v29, %v5460_v16  ;;  %v12171_v29 = vld [vmem:[#allocation3 + $0x9] sm:$0xf] }
 0x586   :  { %8974 = vmatmul.msk.bf16.gmra.mxu2 %vm405_vm0, %v5467_v2 }
 0x5af   :  { %v4839_v39 = vpop.f32.mrf.mxu3 }
 0x5b7   :  { %v4841_v0 = vpop.f32.mrf.mxu3 }
 0x5b9   :  { %v4790_v62 = vpop.f32.mrf.mxu2 }
 0x5ba   :  { %v4840_v46 = vadd.f32 %v4839_v39, %v4790_v62  ;;  %v9703_v62 = vld [vmem:[%s12898_s3 + $0x5d0] sm:$0xff] }
 0x5bb   :  { %5729 = vmatpush.bf16.msrb.mxu3 %v9703_v62  ;;  %v9715_v62 = vld [vmem:[%s12898_s3 + $0x630] sm:$0xff] }
 0x5bc   :  { %v4954_v15 = vpop.f32.mrf.mxu0 }
 0x5bd   :  { %v4964_v37 = vadd.f32 %v4954_v15, %v4840_v46  ;;  %v8984_v46 = vrot.slane %v12124_v9, 9 }
 0x5bf   :  { %v4844_v36 = vpop.f32.mrf.mxu3 }
 0x5c1   :  { %v4792_v19 = vpop.f32.mrf.mxu2 }
 0x5c2   :  { %v4842_v4 = vadd.f32 %v4841_v0, %v4792_v19  ;;  %v9697_v19 = vld [vmem:[%s12898_s3 + $0x5a0] sm:$0xff] }
 0x5c3   :  { %5780 = vmatpush.bf16.msra.mxu0 %v9697_v19  ;;  %v9710_v19 = vld [vmem:[%s12898_s3 + $0x608] sm:$0xff] }
 0x5c4   :  { %v4956_v32 = vpop.f32.mrf.mxu0 }
 0x5c5   :  { %v5043_v21 = vpop.f32.mrf.mxu1  ;;  %v4965_v5 = vadd.f32 %v4956_v32, %v4842_v4  ;;  %v9701_v4 = vld [vmem:[%s12898_s3 + $0x5c0] sm:$0xff] }
 0x5c6   :  { %v5053_v45 = vadd.f32 %v5043_v21, %v4964_v37 }
 0x5c7   :  { %v4846_v60 = vpop.f32.mrf.mxu3 }
 0x5c9   :  { %v4795_v11 = vpop.f32.mrf.mxu2 }
 0x5ca   :  { %v4845_v50 = vadd.f32 %v4844_v36, %v4795_v11  ;;  %v12180_v11 = vld [vmem:[#allocation3 + $0x11] sm:$0xf] }
 0x5cc   :  { %v4959_v57 = vpop.f32.mrf.mxu0 }
 0x5cd   :  { %v5045_v47 = vpop.f32.mrf.mxu1  ;;  %v4966_v58 = vadd.f32 %v4959_v57, %v4845_v50  ;;  %v9708_v57 = vld [vmem:[%s12898_s3 + $0x5f8] sm:$0xff] }
 0x5ce   :  { %v5054_v18 = vadd.f32 %v5045_v47, %v4965_v5  ;;  %5892 = vmatpush.bf16.msrb.mxu1 %v9708_v57 }
 0x5d1   :  { %v4797_v53 = vpop.f32.mrf.mxu2 }
 0x5d2   :  { %v4847_v40 = vadd.f32 %v4846_v60, %v4797_v53 }
 0x5d4   :  { %v4961_v48 = vpop.f32.mrf.mxu0 }
 0x5d5   :  { %v5048_v33 = vpop.f32.mrf.mxu1  ;;  %v4967_v39 = vadd.f32 %v4961_v48, %v4847_v40 }
 0x5d6   :  { %v5055_v42 = vadd.f32 %v5048_v33, %v4966_v58  ;;  %v5620_v33 = vrot.slane %v12124_v9, 4 }
 0x5d9   :  { %v5140_v31 = vpop.f32.mrf.mxu2 }
 0x5da   :  { %v5150_v24 = vadd.f32 %v5140_v31, %v5053_v45  ;;  %v9702_v31 = vld [vmem:[%s12898_s3 + $0x5c8] sm:$0xff] }
 0x5db   :  { %5730 = vmatpush.bf16.msrb.mxu3 %v9702_v31  ;;  %v12268_v31 = vld [vmem:[#allocation3 + $0x49] sm:$0xf] }
 0x5dd   :  { %v5050_v43 = vpop.f32.mrf.mxu1  ;;  %v5235_v17 = vpop.f32.mrf.mxu3 }
 0x5de   :  { %v5245_v30 = vadd.f32 %v5235_v17, %v5150_v24  ;;  %v5056_v53 = vadd.f32 %v5050_v43, %v4967_v39  ;;  %v9707_v24 = vld [vmem:[%s12898_s3 + $0x5f0] sm:$0xff] }
 0x5df   :  { %5731 = vmatpush.bf16.msrb.mxu3 %v9701_v4  ;;  %5893 = vmatpush.bf16.msrb.mxu1 %v9707_v24  ;;  %v9720_v24 = vld [vmem:[%s12898_s3 + $0x658] sm:$0xff] }
 0x5e0   :  { %v5324_v51 = vpop.f32.mrf.mxu0  ;;  %6173 = vmatpush.bf16.msrb.mxu0 %v9720_v24  ;;  %v9722_v24 = vld [vmem:[%s12898_s3 + $0x668] sm:$0xff] }
 0x5e1   :  { %v5142_v38 = vpop.f32.mrf.mxu2  ;;  %v5334_v35 = vadd.f32 %v5324_v51, %v5245_v30  ;;  %v5630_v51 = vrot.slane %v5620_v33, 5 }
 0x5e2   :  { %v5151_v44 = vadd.f32 %v5142_v38, %v5054_v18 }
 0x5e3   :  { %6078 = vmatpush.bf16.msra.mxu3 %v9716_v7  ;;  %v5631_v52 = vsel %vm10187_vm9, %v8984_v46, %v5630_v51 }
 0x5e5   :  { %v5237_v54 = vpop.f32.mrf.mxu3 }
 0x5e6   :  { %v5246_v59 = vadd.f32 %v5237_v54, %v5151_v44  ;;  %v9712_v54 = vld [vmem:[%s12898_s3 + $0x618] sm:$0xff] }
 0x5e7   :  { %5981 = vmatpush.bf16.msra.mxu2 %v9712_v54  ;;  %6079 = vmatpush.bf16.msra.mxu3 %v9715_v62  ;;  %v9719_v54 = vld [vmem:[%s12898_s3 + $0x650] sm:$0xff]  ;;  %v9040_v62 = vrot.slane %v12145_v27, 10 }
 0x5e8   :  { %v5326_v25 = vpop.f32.mrf.mxu0  ;;  %6174 = vmatpush.bf16.msrb.mxu0 %v9719_v54 }
 0x5e9   :  { %v5145_v61 = vpop.f32.mrf.mxu2  ;;  %v5421_v1 = vpop.f32.mrf.mxu1  ;;  %v5335_v34 = vadd.f32 %v5326_v25, %v5246_v59  ;;  %v9705_v59 = vld [vmem:[%s12898_s3 + $0x5e0] sm:$0xff] }
 0x5ea   :  { %v5431_v23 = vadd.f32 %v5421_v1, %v5334_v35  ;;  %v5152_v55 = vadd.f32 %v5145_v61, %v5055_v42  ;;  %v12203_v1 = vld [vmem:[#allocation3 + $0x19] sm:$0xf] }
 0x5ed   :  { %v5240_v22 = vpop.f32.mrf.mxu3 }
 0x5ee   :  { %v5247_v0 = vadd.f32 %v5240_v22, %v5152_v55  ;;  %v12238_v55 = vld [vmem:[#allocation3 + $0x39] sm:$0xf] }
 0x5f0   :  { %v5329_v32 = vpop.f32.mrf.mxu0 }
 0x5f1   :  { %v5147_v28 = vpop.f32.mrf.mxu2  ;;  %v5423_v13 = vpop.f32.mrf.mxu1  ;;  %v5336_v48 = vadd.f32 %v5329_v32, %v5247_v0 }
 0x5f2   :  { %v5432_v8 = vadd.f32 %v5423_v13, %v5335_v34  ;;  %v5153_v38 = vadd.f32 %v5147_v28, %v5056_v53  ;;  %v9711_v13 = vld [vmem:[%s12898_s3 + $0x610] sm:$0xff]  ;;  %v5624_v53 = vrot.slane %v12145_v27, 4 }
 0x5f3   :  { %5982 = vmatpush.bf16.msra.mxu2 %v9711_v13 }
 0x5f5   :  { %v5242_v61 = vpop.f32.mrf.mxu3 }
 0x5f6   :  { %v5248_v28 = vadd.f32 %v5242_v61, %v5153_v38  ;;  %v8988_v61 = vrot.slane %v12145_v27, 9 }
 0x5f7   :  { %5983 = vmatpush.bf16.msra.mxu2 %v9710_v19 }
 0x5f8   :  { %v5331_v35 = vpop.f32.mrf.mxu0 }
 0x5f9   :  { %v5516_v20 = vpop.f32.mrf.mxu2  ;;  %v5426_v47 = vpop.f32.mrf.mxu1 }
 0x5fa   :  { %v5526_v49 = vadd.f32 %v5516_v20, %v5431_v23  ;;  %v5433_v37 = vadd.f32 %v5426_v47, %v5336_v48  ;;  %v9706_v23 = vld [vmem:[%s12898_s3 + $0x5e8] sm:$0xff]  ;;  %v5337_v20 = vadd.f32 %v5331_v35, %v5248_v28  ;;  %v12297_v28 = vld [vmem:[#allocation3 + $0x51] sm:$0xf] }
 0x5fb   :  { %5894 = vmatpush.bf16.msrb.mxu1 %v9706_v23 }
 0x5fc   :  { %v5533_v26 = vmul.f32 %v12156_v6, %v5526_v49 }
 0x5fe   :  { %v5538_v10 = vadd.f32 %v12164_v63, %v5533_v26 }
 0x5ff   :  { %5895 = vmatpush.bf16.msrb.mxu1 %v9705_v59  ;;  %v9713_v59 = vld [vmem:[%s12898_s3 + $0x620] sm:$0xff] }
 0x600   :  { %v5542_v16 = vmax.f32 %v5538_v10, 0.0 }
 0x601   :  { %v5518_v2 = vpop.f32.mrf.mxu2  ;;  %v5428_v50 = vpop.f32.mrf.mxu1 }
 0x602   :  { %v5550_v15 = vrot.slane %v5542_v16, 4  ;;  %5558 = vst.msk [vmem:[#allocation3 + $0x9] sm:$0xf] %vm1699_vm13, %v5542_v16  ;;  %v5527_v21 = vadd.f32 %v5518_v2, %v5432_v8  ;;  %v5434_v49 = vadd.f32 %v5428_v50, %v5337_v20  ;;  %v12242_v16 = vld [vmem:[#allocation3 + $0x41] sm:$0xf] }
 0x604   :  { %5559 = vst.msk [vmem:[#allocation3 + $0x11] sm:$0xf] %vm1699_vm13, %v5550_v15  ;;  %v5534_v36 = vmul.f32 %v12156_v6, %v5527_v21 }
 0x606   :  { %v5539_v60 = vadd.f32 %v12164_v63, %v5534_v36  ;;  %v9036_v36 = vrot.slane %v12124_v9, 10  ;;  %v9714_v9 = vld [vmem:[%s12898_s3 + $0x628] sm:$0xff] }
 0x607   :  { %6080 = vmatpush.bf16.msra.mxu3 %v9714_v9 }
 0x608   :  { %v5543_v43 = vmax.f32 %v5539_v60, 0.0 }
 0x609   :  { %v12193_v17 = vld [vmem:[#allocation3 + $0x8] sm:$0x3f]  ;;  %v5521_v45 = vpop.f32.mrf.mxu2 }
 0x60a   :  { %5588 = vst [vmem:[#allocation1 + $0x1] ss:$2 sm:$0xff] %v12193_v17  ;;  %v5551_v5 = vrot.slane %v5543_v43, 4  ;;  %v5528_v18 = vadd.f32 %v5521_v45, %v5433_v37  ;;  %v5621_v44 = vrot.slane %v12193_v17, 4  ;;  %v8985_v22 = vrot.slane %v12193_v17, 9 }
 0x60b   :  { %v12206_v30 = vld [vmem:[#allocation3 + $0x10] sm:$0x3f]  ;;  %5560 = vst.msk [vmem:[#allocation3 + $0x19] sm:$0xf] %vm1699_vm13, %v5543_v43  ;;  %v9037_v7 = vrot.slane %v12193_v17, 10  ;;  %6081 = vmatpush.bf16.msra.mxu3 %v9713_v59 }
 0x60c   :  { %5590 = vst [vmem:[#allocation1 + $0x10] ss:$2 sm:$0xff] %v12206_v30  ;;  %v5535_v25 = vmul.f32 %v12156_v6, %v5528_v18  ;;  %v5634_v58 = vrot.slane %v5621_v44, 5  ;;  %v5622_v40 = vrot.slane %v12206_v30, 4  ;;  %v8986_v32 = vrot.slane %v12206_v30, 9 }
 0x60d   :  { %5561 = vst.msk [vmem:[#allocation3 + $0x21] sm:$0xf] %vm1699_vm13, %v5551_v5  ;;  %v5798_v5 = vrot.slane %v5621_v44, 6 }
 0x60e   :  { %v5540_v41 = vadd.f32 %v12164_v63, %v5535_v25  ;;  %v12254_v39 = vsel %vm10187_vm9, %v8985_v22, %v5634_v58  ;;  %v5638_v15 = vrot.slane %v5622_v40, 5  ;;  %v5802_v13 = vrot.slane %v5622_v40, 6  ;;  %v9724_v58 = vld [vmem:[%s12898_s3 + $0x678] sm:$0xff] }
 0x60f   :  { %v12318_v23 = vsel %vm10200_vm12, %v9037_v7, %v5798_v5  ;;  %6262 = vmatpush.bf16.msra.mxu1 %v9724_v58  ;;  %v9728_v22 = vld [vmem:[%s12898_s3 + $0x698] sm:$0xff] }
 0x610   :  { %v5544_v26 = vmax.f32 %v5540_v41, 0.0  ;;  %v12274_v57 = vsel %vm10187_vm9, %v8986_v32, %v5638_v15 }
 0x611   :  { %v5523_v42 = vpop.f32.mrf.mxu2  ;;  %v5601_v14 = vld.sshfl [vmem:[#allocation1] sm:$0xff pattern:$0x75316420] }
 0x612   :  { %v12236_v34 = vld [vmem:[#allocation3 + $0x18] sm:$0x3f]  ;;  %v5529_v10 = vadd.f32 %v5523_v42, %v5434_v49  ;;  %5660 = vst [vmem:[#allocation1] ss:$2 sm:$0xff] %v5631_v52  ;;  %v5552_v8 = vrot.slane %v5544_v26, 4  ;;  %v9718_v49 = vld [vmem:[%s12898_s3 + $0x648] sm:$0xff] }
 0x613   :  { %5592 = vst [vmem:[#allocation1 + $0x11] ss:$2 sm:$0xff] %v12236_v34  ;;  %v5623_v0 = vrot.slane %v12236_v34, 4  ;;  %v8987_v45 = vrot.slane %v12236_v34, 9  ;;  %6175 = vmatpush.bf16.msrb.mxu0 %v9718_v49 }
 0x614   :  { %5562 = vst.msk [vmem:[#allocation3 + $0x39] sm:$0xf] %vm1699_vm13, %v5544_v26  ;;  %v5536_v2 = vmul.f32 %v12156_v6, %v5529_v10  ;;  %v9709_v6 = vld [vmem:[%s12898_s3 + $0x600] sm:$0xff]  ;;  %v9723_v10 = vld [vmem:[%s12898_s3 + $0x670] sm:$0xff] }
 0x615   :  { %5563 = vst.msk [vmem:[#allocation3 + $0x41] sm:$0xf] %vm1699_vm13, %v5552_v8  ;;  %5984 = vmatpush.bf16.msra.mxu2 %v9709_v6  ;;  %v5642_v60 = vrot.slane %v5623_v0, 5  ;;  %v5806_v26 = vrot.slane %v5623_v0, 6  ;;  %v9039_v8 = vrot.slane %v12236_v34, 10  ;;  %v9717_v6 = vld [vmem:[%s12898_s3 + $0x640] sm:$0xff]  ;;  %6263 = vmatpush.bf16.msra.mxu1 %v9723_v10 }
 0x616   :  { %v5541_v21 = vadd.f32 %v12164_v63, %v5536_v2  ;;  %5662 = vst [vmem:[#allocation1 + $0x1] ss:$2 sm:$0xff] %v12254_v39  ;;  %v5794_v63 = vrot.slane %v5620_v33, 6  ;;  %v5646_v33 = vrot.slane %v5624_v53, 5  ;;  %v5810_v0 = vrot.slane %v5624_v53, 6 }
 0x617   :  { %v12304_v18 = vsel %vm10187_vm9, %v8987_v45, %v5642_v60  ;;  %v12361_v32 = vsel %vm10200_vm12, %v9039_v8, %v5806_v26  ;;  %6176 = vmatpush.bf16.msrb.mxu0 %v9717_v6  ;;  %v12383_v45 = vld [vmem:[#allocation3 + $0x20] sm:$0x3f] }
 0x618   :  { %v5545_v47 = vmax.f32 %v5541_v21, 0.0  ;;  %v5795_v51 = vsel %vm10200_vm12, %v9036_v36, %v5794_v63  ;;  %v5647_v44 = vsel %vm10187_vm9, %v8988_v61, %v5646_v33  ;;  %v5811_v61 = vsel %vm10200_vm12, %v9040_v62, %v5810_v0 }
 0x619   :  { %6359 = vmatpush.bf16.msrb.mxu2 %v9728_v22  ;;  %6264 = vmatpush.bf16.msra.mxu1 %v9722_v24  ;;  %v9096_v10 = vrot.slane %v12383_v45, 9  ;;  %v9726_v22 = vld [vmem:[%s12898_s3 + $0x688] sm:$0xff] }
 0x61a   :  { %5564 = vst.msk [vmem:[#allocation3 + $0x49] sm:$0xf] %vm1699_vm13, %v5545_v47  ;;  %v5602_v38 = vld.sshfl [vmem:[#allocation1 + $0x10] sm:$0xff pattern:$0x75316420]  ;;  %v5553_v43 = vrot.slane %v5545_v47, 4 }
 0x61b   :  { %v12277_v48 = vld [vmem:[#allocation3 + $0x38] sm:$0x3f]  ;;  %v5609_v46 = vpack.c.bf16 %v5602_v38, %v5601_v14  ;;  %5664 = vst [vmem:[#allocation1 + $0x10] ss:$2 sm:$0xff] %v12274_v57  ;;  %v9038_v14 = vrot.slane %v12206_v30, 10 }
 0x61c   :  { %v12281_v37 = vld [vmem:[#allocation3 + $0x40] sm:$0x3f]  ;;  %v5625_v4 = vrot.slane %v12277_v48, 4  ;;  %5596 = vst [vmem:[#allocation1 + $0x21] ss:$2 sm:$0xff] %v12277_v48  ;;  %v8989_v52 = vrot.slane %v12277_v48, 9 }
 0x61d   :  { %9034 = vmatmul.msk.bf16.vlgmr.msra.gmra.mxu0 %vm405_vm0, %v5609_v46  ;;  %5598 = vst [vmem:[#allocation1 + $0x30] ss:$2 sm:$0xff] %v12281_v37  ;;  %v5675_v35 = vld.sshfl [vmem:[#allocation1] sm:$0xff pattern:$0x75316420]  ;;  %v5626_v20 = vrot.slane %v12281_v37, 4  ;;  %v12352_v19 = vsel %vm10200_vm12, %v9038_v14, %v5802_v13 }
 0x61e   :  { %5565 = vst.msk [vmem:[#allocation3 + $0x51] sm:$0xf] %vm1699_vm13, %v5553_v43  ;;  %v5650_v50 = vrot.slane %v5625_v4, 5  ;;  %v8990_v47 = vrot.slane %v12281_v37, 9  ;;  %v5814_v60 = vrot.slane %v5625_v4, 6  ;;  %v9041_v9 = vrot.slane %v12277_v48, 10 }
 0x61f   :  { %5666 = vst [vmem:[#allocation1 + $0x11] ss:$2 sm:$0xff] %v12304_v18  ;;  %v5654_v2 = vrot.slane %v5626_v20, 5  ;;  %v9732_v4 = vld [vmem:[%s12898_s3 + $0x6b8] sm:$0xff]  ;;  %v5818_v5 = vrot.slane %v5626_v20, 6  ;;  %v6000_v13 = vrot.slane %v12383_v45, 4 }
 0x620   :  { %5824 = vst [vmem:[#allocation1] ss:$2 sm:$0xff] %v5795_v51  ;;  %v12339_v40 = vsel %vm10187_vm9, %v8989_v52, %v5650_v50  ;;  %v12394_v51 = vsel %vm10200_vm12, %v9041_v9, %v5814_v60  ;;  %v9731_v14 = vld [vmem:[%s12898_s3 + $0x6b0] sm:$0xff] }
 0x621   :  { %v12314_v25 = vld [vmem:[#allocation3 + $0x48] sm:$0x3f]  ;;  %5826 = vst [vmem:[#allocation1 + $0x1] ss:$2 sm:$0xff] %v12318_v23  ;;  %v12369_v38 = vsel %vm10187_vm9, %v8990_v47, %v5654_v2  ;;  %v6004_v58 = vrot.slane %v6000_v13, 5  ;;  %v6099_v0 = vrot.slane %v6000_v13, 6 }
 0x622   :  { %5600 = vst [vmem:[#allocation1 + $0x31] ss:$2 sm:$0xff] %v12314_v25  ;;  %v5627_v41 = vrot.slane %v12314_v25, 4  ;;  %v8991_v63 = vrot.slane %v12314_v25, 9  ;;  %v9043_v20 = vrot.slane %v12314_v25, 10 }
 0x623   :  { %v5603_v42 = vld.sshfl [vmem:[#allocation1 + $0x20] sm:$0xff pattern:$0x75316420] }
 0x624   :  { %5668 = vst [vmem:[#allocation1 + $0x20] ss:$2 sm:$0xff] %v5647_v44  ;;  %v5658_v15 = vrot.slane %v5627_v41, 5  ;;  %v5822_v54 = vrot.slane %v5627_v41, 6  ;;  %v9042_v44 = vrot.slane %v12281_v37, 10 }
 0x625   :  { %5670 = vst [vmem:[#allocation1 + $0x21] ss:$2 sm:$0xff] %v12339_v40  ;;  %v12439_v62 = vld [vmem:[#allocation3 + $0x50] sm:$0x3f] }
 0x626   :  { %v5676_v21 = vld.sshfl [vmem:[#allocation1 + $0x10] sm:$0xff pattern:$0x75316420]  ;;  %v12374_v43 = vsel %vm10187_vm9, %v8991_v63, %v5658_v15  ;;  %v12410_v52 = vsel %vm10200_vm12, %v9042_v44, %v5818_v5  ;;  %v12415_v59 = vsel %vm10200_vm12, %v9043_v20, %v5822_v54  ;;  %v9730_v63 = vld [vmem:[%s12898_s3 + $0x6a8] sm:$0xff] }
 0x627   :  { %v5683_v36 = vpack.c.bf16 %v5676_v21, %v5675_v35  ;;  %5828 = vst [vmem:[#allocation1 + $0x10] ss:$2 sm:$0xff] %v12352_v19  ;;  %v9721_v35 = vld [vmem:[%s12898_s3 + $0x660] sm:$0xff]  ;;  %v6001_v21 = vrot.slane %v12439_v62, 4 }
 0x628   :  { %5830 = vst [vmem:[#allocation1 + $0x11] ss:$2 sm:$0xff] %v12361_v32  ;;  %v5839_v53 = vld.sshfl [vmem:[#allocation1] sm:$0xff pattern:$0x75316420]  ;;  %6265 = vmatpush.bf16.msra.mxu1 %v9721_v35 }
 0x629   :  { %9016 = vmatmul.msk.bf16.vlgmr.msrb.gmra.mxu3 %vm405_vm0, %v5683_v36  ;;  %v5604_v27 = vld.sshfl [vmem:[#allocation1 + $0x30] sm:$0xff pattern:$0x75316420]  ;;  %5913 = vst [vmem:[#allocation1] ss:$2 sm:$0xff] %v12193_v17 }
 0x62a   :  { %v5610_v46 = vpack.c.bf16 %v5604_v27, %v5603_v42  ;;  %5672 = vst [vmem:[#allocation1 + $0x30] ss:$2 sm:$0xff] %v12369_v38  ;;  %v9727_v17 = vld [vmem:[%s12898_s3 + $0x690] sm:$0xff]  ;;  %6454 = vmatpush.bf16.msrb.mxu3 %v9732_v4  ;;  %v9124_v27 = vrot.slane %v12383_v45, 10 }
 0x62b   :  { %5674 = vst [vmem:[#allocation1 + $0x31] ss:$2 sm:$0xff] %v12374_v43  ;;  %6360 = vmatpush.bf16.msrb.mxu2 %v9727_v17  ;;  %v5571_v4 = vld [vmem:[#allocation3 + $0x28] sm:$0x3f] }
 0x62c   :  { %v5677_v33 = vld.sshfl [vmem:[#allocation1 + $0x20] sm:$0xff pattern:$0x75316420]  ;;  %5915 = vst [vmem:[#allocation1 + $0x1] ss:$2 sm:$0xff] %v12206_v30  ;;  %v6281_v17 = vrot.slane %v5571_v4, 4 }
 0x62d   :  { %9035 = vmatmul.msk.bf16.gmra.mxu0 %vm405_vm0, %v5610_v46  ;;  %5832 = vst [vmem:[#allocation1 + $0x20] ss:$2 sm:$0xff] %v5811_v61  ;;  %v12456_v46 = vsel %vm10200_vm12, %v9124_v27, %v6099_v0 }
 0x62e   :  { %5834 = vst [vmem:[#allocation1 + $0x21] ss:$2 sm:$0xff] %v12394_v51  ;;  %6455 = vmatpush.bf16.msrb.mxu3 %v9731_v14  ;;  %v6285_v13 = vrot.slane %v6281_v17, 5  ;;  %v9206_v14 = vrot.slane %v5571_v4, 10 }
 0x62f   :  { %v5840_v7 = vld.sshfl [vmem:[#allocation1 + $0x10] sm:$0xff pattern:$0x75316420]  ;;  %6361 = vmatpush.bf16.msrb.mxu2 %v9726_v22 }
 0x630   :  { %v5847_v50 = vpack.c.bf16 %v5840_v7, %v5839_v53  ;;  %5917 = vst [vmem:[#allocation1 + $0x10] ss:$2 sm:$0xff] %v12236_v34  ;;  %v6008_v53 = vrot.slane %v6001_v21, 5  ;;  %v6103_v7 = vrot.slane %v6001_v21, 6 }
 0x631   :  { %5919 = vst [vmem:[#allocation1 + $0x11] ss:$2 sm:$0xff] %v12383_v45 }
 0x632   :  { %9068 = vmatmul.msk.bf16.vlgmr.msrb.gmra.mxu1 %vm405_vm0, %v5847_v50  ;;  %v5678_v41 = vld.sshfl [vmem:[#allocation1 + $0x30] sm:$0xff pattern:$0x75316420]  ;;  %6456 = vmatpush.bf16.msrb.mxu3 %v9730_v63  ;;  %v9178_v50 = vrot.slane %v5571_v4, 9 }
 0x633   :  { %5836 = vst [vmem:[#allocation1 + $0x30] ss:$2 sm:$0xff] %v12410_v52  ;;  %v5928_v49 = vld.sshfl [vmem:[#allocation1] sm:$0xff pattern:$0x75316420]  ;;  %v5684_v26 = vpack.c.bf16 %v5678_v41, %v5677_v33 }
 0x634   :  { %5838 = vst [vmem:[#allocation1 + $0x31] ss:$2 sm:$0xff] %v12415_v59  ;;  %v9729_v33 = vld [vmem:[%s12898_s3 + $0x6a0] sm:$0xff]  ;;  %v6286_v41 = vsel %vm10187_vm9, %v9178_v50, %v6285_v13 }
 0x635   :  { %6010 = vst [vmem:[#allocation1] ss:$2 sm:$0xff] %v12254_v39  ;;  %v5841_v42 = vld.sshfl [vmem:[#allocation1 + $0x20] sm:$0xff pattern:$0x75316420]  ;;  %v12432_v39 = vsel %vm10187_vm9, %v9096_v10, %v6004_v58 }
 0x636   :  { %6012 = vst [vmem:[#allocation1 + $0x1] ss:$2 sm:$0xff] %v12274_v57  ;;  %6457 = vmatpush.bf16.msrb.mxu3 %v9729_v33 }
 0x637   :  { %5921 = vst [vmem:[#allocation1 + $0x20] ss:$2 sm:$0xff] %v12277_v48  ;;  %v9725_v48 = vld [vmem:[%s12898_s3 + $0x680] sm:$0xff]  ;;  %s9857_s3 = smov 128  }
 0x638   :  { %v5929_v8 = vld.sshfl [vmem:[#allocation1 + $0x10] sm:$0xff pattern:$0x75316420]  ;;  %5923 = vst [vmem:[#allocation1 + $0x21] ss:$2 sm:$0xff] %v12281_v37  ;;  %6362 = vmatpush.bf16.msrb.mxu2 %v9725_v48 }
 0x639   :  { %9017 = vmatmul.msk.bf16.gmra.mxu3 %vm405_vm0, %v5684_v26  ;;  %v5936_v2 = vpack.c.bf16 %v5929_v8, %v5928_v49  ;;  %6014 = vst [vmem:[#allocation1 + $0x10] ss:$2 sm:$0xff] %v12304_v18  ;;  %v5577_v26 = vld [vmem:[#allocation3 + $0x58] sm:$0x3f] }
 0x63a   :  { %6016 = vst [vmem:[#allocation1 + $0x11] ss:$2 sm:$0xff] %v12432_v39 }
 0x63b   :  { %9094 = vmatmul.msk.bf16.vlgmr.msra.gmra.mxu2 %vm405_vm0, %v5936_v2  ;;  %v5842_v15 = vld.sshfl [vmem:[#allocation1 + $0x30] sm:$0xff pattern:$0x75316420] }
 0x63c   :  { %5925 = vst [vmem:[#allocation1 + $0x30] ss:$2 sm:$0xff] %v12314_v25  ;;  %v5848_v47 = vpack.c.bf16 %v5842_v15, %v5841_v42  ;;  %v6282_v42 = vrot.slane %v5577_v26, 4 }
 0x63d   :  { %5927 = vst [vmem:[#allocation1 + $0x31] ss:$2 sm:$0xff] %v12439_v62  ;;  %v6025_v6 = vld.sshfl [vmem:[#allocation1] sm:$0xff pattern:$0x75316420] }
 0x63e   :  { %6105 = vst [vmem:[#allocation1] ss:$2 sm:$0xff] %v12318_v23  ;;  %v9097_v23 = vrot.slane %v12439_v62, 9  ;;  %v6289_v8 = vrot.slane %v6282_v42, 5 }
 0x63f   :  { %v5930_v36 = vld.sshfl [vmem:[#allocation1 + $0x20] sm:$0xff pattern:$0x75316420]  ;;  %6107 = vst [vmem:[#allocation1 + $0x1] ss:$2 sm:$0xff] %v12352_v19 }
 0x640   :  { %6018 = vst [vmem:[#allocation1 + $0x20] ss:$2 sm:$0xff] %v12339_v40  ;;  %v12464_v40 = vsel %vm10187_vm9, %v9097_v23, %v6008_v53 }
 0x641   :  { %6020 = vst [vmem:[#allocation1 + $0x21] ss:$2 sm:$0xff] %v12369_v38  ;;  %v6026_v60 = vld.sshfl [vmem:[#allocation1 + $0x10] sm:$0xff pattern:$0x75316420] }
 0x642   :  { %9069 = vmatmul.msk.bf16.gmra.mxu1 %vm405_vm0, %v5848_v47  ;;  %6109 = vst [vmem:[#allocation1 + $0x10] ss:$2 sm:$0xff] %v12361_v32  ;;  %v6033_v5 = vpack.c.bf16 %v6026_v60, %v6025_v6 }
 0x643   :  { %6111 = vst [vmem:[#allocation1 + $0x11] ss:$2 sm:$0xff] %v12456_v46 }
 0x644   :  { %v5931_v61 = vld.sshfl [vmem:[#allocation1 + $0x30] sm:$0xff pattern:$0x75316420] }
 0x645   :  { %6022 = vst [vmem:[#allocation1 + $0x30] ss:$2 sm:$0xff] %v12374_v43  ;;  %v5937_v24 = vpack.c.bf16 %v5931_v61, %v5930_v36 }
 0x646   :  { %6024 = vst [vmem:[#allocation1 + $0x31] ss:$2 sm:$0xff] %v12464_v40  ;;  %v6120_v9 = vld.sshfl [vmem:[#allocation1] sm:$0xff pattern:$0x75316420] }
 0x647   :  { %6194 = vst [vmem:[#allocation1] ss:$2 sm:$0xff] %v12206_v30  ;;  %v9125_v30 = vrot.slane %v12439_v62, 10 }
 0x648   :  { %6196 = vst [vmem:[#allocation1 + $0x1] ss:$2 sm:$0xff] %v12236_v34  ;;  %v6027_v54 = vld.sshfl [vmem:[#allocation1 + $0x20] sm:$0xff pattern:$0x75316420] }
 0x649   :  { %9122 = vmatmul.msk.bf16.vlgmr.msra.gmra.mxu3 %vm405_vm0, %v6033_v5  ;;  %6113 = vst [vmem:[#allocation1 + $0x20] ss:$2 sm:$0xff] %v12394_v51  ;;  %v6104_v51 = vsel %vm10200_vm12, %v9125_v30, %v6103_v7 }
 0x64a   :  { %v6121_v35 = vld.sshfl [vmem:[#allocation1 + $0x10] sm:$0xff pattern:$0x75316420]  ;;  %6115 = vst [vmem:[#allocation1 + $0x21] ss:$2 sm:$0xff] %v12410_v52 }
 0x64b   :  { %9095 = vmatmul.msk.bf16.gmra.mxu2 %vm405_vm0, %v5937_v24  ;;  %v6128_v44 = vpack.c.bf16 %v6121_v35, %v6120_v9  ;;  %6198 = vst [vmem:[#allocation1 + $0x10] ss:$2 sm:$0xff] %v12383_v45 }
 0x64c   :  { %6200 = vst [vmem:[#allocation1 + $0x11] ss:$2 sm:$0xff] %v5571_v4 }
 0x64d   :  { %9150 = vmatmul.msk.bf16.vlgmr.msrb.gmra.mxu0 %vm405_vm0, %v6128_v44  ;;  %v6028_v34 = vld.sshfl [vmem:[#allocation1 + $0x30] sm:$0xff pattern:$0x75316420] }
 0x64e   :  { %6117 = vst [vmem:[#allocation1 + $0x30] ss:$2 sm:$0xff] %v12415_v59  ;;  %v6034_v10 = vpack.c.bf16 %v6028_v34, %v6027_v54 }
 0x64f   :  { %v6209_v20 = vld.sshfl [vmem:[#allocation1] sm:$0xff pattern:$0x75316420]  ;;  %6119 = vst [vmem:[#allocation1 + $0x31] ss:$2 sm:$0xff] %v6104_v51 }
 0x650   :  { %6291 = vst [vmem:[#allocation1] ss:$2 sm:$0xff] %v12274_v57 }
 0x651   :  { %6293 = vst [vmem:[#allocation1 + $0x1] ss:$2 sm:$0xff] %v12304_v18  ;;  %v6122_v45 = vld.sshfl [vmem:[#allocation1 + $0x20] sm:$0xff pattern:$0x75316420]  ;;  %v6380_v18 = vrot.slane %v6281_v17, 6 }
 0x652   :  { %6202 = vst [vmem:[#allocation1 + $0x20] ss:$2 sm:$0xff] %v12281_v37  ;;  %v9179_v37 = vrot.slane %v5577_v26, 9 }
 0x653   :  { %v6210_v49 = vld.sshfl [vmem:[#allocation1 + $0x10] sm:$0xff pattern:$0x75316420]  ;;  %6204 = vst [vmem:[#allocation1 + $0x21] ss:$2 sm:$0xff] %v12314_v25  ;;  %v6381_v2 = vsel %vm10200_vm12, %v9206_v14, %v6380_v18 }
 0x654   :  { %v6217_v58 = vpack.c.bf16 %v6210_v49, %v6209_v20  ;;  %6295 = vst [vmem:[#allocation1 + $0x10] ss:$2 sm:$0xff] %v12432_v39 }
 0x655   :  { %6297 = vst [vmem:[#allocation1 + $0x11] ss:$2 sm:$0xff] %v6286_v41 }
 0x656   :  { %9176 = vmatmul.msk.bf16.vlgmr.msra.gmra.mxu1 %vm405_vm0, %v6217_v58  ;;  %v6123_v57 = vld.sshfl [vmem:[#allocation1 + $0x30] sm:$0xff pattern:$0x75316420]  ;;  %v9234_v58 = vld [vmem:[%s12899_s4 + $0xa] sm:$0x3]  ;;  %s9859_s4 = smov [#allocation4]  }
 0x657   :  { %6206 = vst [vmem:[#allocation1 + $0x30] ss:$2 sm:$0xff] %v12439_v62  ;;  %v6129_v25 = vpack.c.bf16 %v6123_v57, %v6122_v45  ;;  %s7513_s28 = sshll.u32 %s9859_s4, 4  ;;  %s7514_s28 = int_to_ptr.vmem [resolvable:$true] %s7513_s28 }
 0x658   :  { %6208 = vst [vmem:[#allocation1 + $0x31] ss:$2 sm:$0xff] %v5577_v26  ;;  %v6306_v22 = vld.sshfl [vmem:[#allocation1] sm:$0xff pattern:$0x75316420] }
 0x659   :  { %9123 = vmatmul.msk.bf16.gmra.mxu3 %vm405_vm0, %v6034_v10  ;;  %6386 = vst [vmem:[#allocation1] ss:$2 sm:$0xff] %v12352_v19  ;;  %v6290_v19 = vsel %vm10187_vm9, %v9179_v37, %v6289_v8  ;;  %v12524_v10 = vperm.slane %v9234_v58, 0  ;;  %7521 = dma.vmem_to_hbm [thread:$0]  %s7514_s28, 2048, %s7516_s10, [#allocation5], %s9857_s3, %s9857_s3, %s9858_s1  }
 0x65a   :  { %6388 = vst [vmem:[#allocation1 + $0x1] ss:$2 sm:$0xff] %v12361_v32  ;;  %v6211_v39 = vld.sshfl [vmem:[#allocation1 + $0x20] sm:$0xff pattern:$0x75316420] }
 0x65b   :  { %6299 = vst [vmem:[#allocation1 + $0x20] ss:$2 sm:$0xff] %v12369_v38  ;;  %v9207_v38 = vrot.slane %v5577_v26, 10 }
 0x65c   :  { %v6307_v48 = vld.sshfl [vmem:[#allocation1 + $0x10] sm:$0xff pattern:$0x75316420]  ;;  %6301 = vst [vmem:[#allocation1 + $0x21] ss:$2 sm:$0xff] %v12374_v43  ;;  %v6384_v43 = vrot.slane %v6282_v42, 6 }
 0x65d   :  { %9151 = vmatmul.msk.bf16.gmra.mxu0 %vm405_vm0, %v6129_v25  ;;  %v6314_v62 = vpack.c.bf16 %v6307_v48, %v6306_v22  ;;  %6390 = vst [vmem:[#allocation1 + $0x10] ss:$2 sm:$0xff] %v12456_v46 }
 0x65e   :  { %6392 = vst [vmem:[#allocation1 + $0x11] ss:$2 sm:$0xff] %v6381_v2  ;;  %v6385_v47 = vsel %vm10200_vm12, %v9207_v38, %v6384_v43  ;;  %v12526_v2 = vperm.slane %v9234_v58, 1 }
 0x65f   :  { %9204 = vmatmul.msk.bf16.vlgmr.msrb.gmra.mxu2 %vm405_vm0, %v6314_v62  ;;  %v6212_v32 = vld.sshfl [vmem:[#allocation1 + $0x30] sm:$0xff pattern:$0x75316420] }
 0x660   :  { %6303 = vst [vmem:[#allocation1 + $0x30] ss:$2 sm:$0xff] %v12464_v40  ;;  %v6218_v21 = vpack.c.bf16 %v6212_v32, %v6211_v39 }
 0x661   :  { %6305 = vst [vmem:[#allocation1 + $0x31] ss:$2 sm:$0xff] %v6290_v19  ;;  %v6401_v15 = vld.sshfl [vmem:[#allocation1] sm:$0xff pattern:$0x75316420] }
 0x662   :  { %6493 = vst [vmem:[#allocation1] ss:$2 sm:$0xff] %v12171_v29 }
 0x663   :  { %v6308_v6 = vld.sshfl [vmem:[#allocation1 + $0x20] sm:$0xff pattern:$0x75316420]  ;;  %6495 = vst [vmem:[#allocation1 + $0x1] ss:$2 sm:$0xff] %v12180_v11 }
 0x664   :  { %6394 = vst [vmem:[#allocation1 + $0x20] ss:$2 sm:$0xff] %v12410_v52 }
 0x665   :  { %6396 = vst [vmem:[#allocation1 + $0x21] ss:$2 sm:$0xff] %v12415_v59  ;;  %v6402_v0 = vld.sshfl [vmem:[#allocation1 + $0x10] sm:$0xff pattern:$0x75316420] }
 0x666   :  { %9177 = vmatmul.msk.bf16.gmra.mxu1 %vm405_vm0, %v6218_v21  ;;  %6497 = vst [vmem:[#allocation1 + $0x10] ss:$2 sm:$0xff] %v12203_v1  ;;  %v6409_v36 = vpack.c.bf16 %v6402_v0, %v6401_v15 }
 0x667   :  { %6499 = vst [vmem:[#allocation1 + $0x11] ss:$2 sm:$0xff] %v12215_v12 }
 0x668   :  { %v6309_v29 = vld.sshfl [vmem:[#allocation1 + $0x30] sm:$0xff pattern:$0x75316420] }
 0x669   :  { %6398 = vst [vmem:[#allocation1 + $0x30] ss:$2 sm:$0xff] %v6104_v51  ;;  %9232 = vmatmul.msk.bf16.vlgmr.msrb.gmra.mxu3 %vm405_vm0, %v6409_v36  ;;  %v6315_v11 = vpack.c.bf16 %v6309_v29, %v6308_v6 }
 0x66a   :  { %6400 = vst [vmem:[#allocation1 + $0x31] ss:$2 sm:$0xff] %v6385_v47  ;;  %v6508_v43 = vld.sshfl [vmem:[#allocation1] sm:$0xff pattern:$0x75316420] }
 0x66c   :  { %v6403_v52 = vld.sshfl [vmem:[#allocation1 + $0x20] sm:$0xff pattern:$0x75316420] }
 0x66d   :  { %6501 = vst [vmem:[#allocation1 + $0x20] ss:$2 sm:$0xff] %v12238_v55 }
 0x66e   :  { %6503 = vst [vmem:[#allocation1 + $0x21] ss:$2 sm:$0xff] %v12242_v16 }
 0x66f   :  { %9205 = vmatmul.msk.bf16.gmra.mxu2 %vm405_vm0, %v6315_v11 }
 0x671   :  { %v6404_v1 = vld.sshfl [vmem:[#allocation1 + $0x30] sm:$0xff pattern:$0x75316420] }
 0x672   :  { %6505 = vst [vmem:[#allocation1 + $0x30] ss:$2 sm:$0xff] %v12268_v31  ;;  %v6410_v59 = vpack.c.bf16 %v6404_v1, %v6403_v52 }
 0x673   :  { %6507 = vst [vmem:[#allocation1 + $0x31] ss:$2 sm:$0xff] %v12297_v28 }
 0x679   :  { %9233 = vmatmul.msk.bf16.gmra.mxu3 %vm405_vm0, %v6410_v59 }
 0x69a   :  { %v5782_v27 = vpop.f32.mrf.mxu0 }
 0x6a2   :  { %v5784_v23 = vpop.f32.mrf.mxu0 }
 0x6aa   :  { %v5787_v40 = vpop.f32.mrf.mxu0 }
 0x6ac   :  { %v5733_v12 = vpop.f32.mrf.mxu3 }
 0x6ad   :  { %v5783_v54 = vadd.f32 %v5782_v27, %v5733_v12  ;;  %v9736_v12 = vld [vmem:[%s12900_s5 + $0x18] sm:$0xff] }
 0x6ae   :  { %6797 = vmatpush.bf16.msrb.mxu1 %v9736_v12 }
 0x6af   :  { %v5897_v53 = vpop.f32.mrf.mxu1 }
 0x6b0   :  { %v5907_v7 = vadd.f32 %v5897_v53, %v5783_v54  ;;  %v9734_v54 = vld [vmem:[%s12900_s5 + $0x8] sm:$0xff] }
 0x6b2   :  { %v5789_v24 = vpop.f32.mrf.mxu0 }
 0x6b4   :  { %v5735_v63 = vpop.f32.mrf.mxu3 }
 0x6b5   :  { %v5785_v30 = vadd.f32 %v5784_v23, %v5735_v63 }
 0x6b7   :  { %v5899_v55 = vpop.f32.mrf.mxu1 }
 0x6b8   :  { %v5908_v20 = vadd.f32 %v5899_v55, %v5785_v30  ;;  %v6509_v55 = vld.sshfl [vmem:[#allocation1 + $0x10] sm:$0xff pattern:$0x75316420] }
 0x6bc   :  { %v5738_v60 = vpop.f32.mrf.mxu3 }
 0x6bd   :  { %v5788_v26 = vadd.f32 %v5787_v40, %v5738_v60 }
 0x6be   :  { %v5986_v46 = vpop.f32.mrf.mxu2 }
 0x6bf   :  { %v5902_v33 = vpop.f32.mrf.mxu1  ;;  %v5996_v44 = vadd.f32 %v5986_v46, %v5907_v7 }
 0x6c0   :  { %v5909_v25 = vadd.f32 %v5902_v33, %v5788_v26 }
 0x6c4   :  { %v5740_v61 = vpop.f32.mrf.mxu3 }
 0x6c5   :  { %v5790_v19 = vadd.f32 %v5789_v24, %v5740_v61  ;;  %v9740_v61 = vld [vmem:[%s12900_s5 + $0x38] sm:$0xff] }
 0x6c6   :  { %v5988_v16 = vpop.f32.mrf.mxu2  ;;  %6748 = vmatpush.bf16.msra.mxu0 %v9740_v61 }
 0x6c7   :  { %v5904_v28 = vpop.f32.mrf.mxu1  ;;  %v5997_v41 = vadd.f32 %v5988_v16, %v5908_v20  ;;  %v9735_v16 = vld [vmem:[%s12900_s5 + $0x10] sm:$0xff] }
 0x6c8   :  { %v5910_v36 = vadd.f32 %v5904_v28, %v5790_v19  ;;  %6798 = vmatpush.bf16.msrb.mxu1 %v9735_v16 }
 0x6ca   :  { %v6178_v35 = vpop.f32.mrf.mxu0 }
 0x6cc   :  { %v6083_v9 = vpop.f32.mrf.mxu3  ;;  %6799 = vmatpush.bf16.msrb.mxu1 %v9734_v54 }
 0x6cd   :  { %v6093_v34 = vadd.f32 %v6083_v9, %v5996_v44 }
 0x6ce   :  { %v5991_v4 = vpop.f32.mrf.mxu2 }
 0x6cf   :  { %v6188_v45 = vadd.f32 %v6178_v35, %v6093_v34  ;;  %v5998_v48 = vadd.f32 %v5991_v4, %v5909_v25 }
 0x6d2   :  { %v6180_v49 = vpop.f32.mrf.mxu0 }
 0x6d3   :  { %v6267_v50 = vpop.f32.mrf.mxu1 }
 0x6d4   :  { %v6085_v31 = vpop.f32.mrf.mxu3  ;;  %v6277_v42 = vadd.f32 %v6267_v50, %v6188_v45  ;;  %v6510_v45 = vld.sshfl [vmem:[#allocation1 + $0x20] sm:$0xff pattern:$0x75316420] }
 0x6d5   :  { %v6094_v57 = vadd.f32 %v6085_v31, %v5997_v41  ;;  %v9744_v41 = vld [vmem:[%s12900_s5 + $0x58] sm:$0xff] }
 0x6d6   :  { %v5993_v5 = vpop.f32.mrf.mxu2  ;;  %6912 = vmatpush.bf16.msra.mxu2 %v9744_v41  ;;  %v9755_v41 = vld [vmem:[%s12900_s5 + $0xb0] sm:$0xff] }
 0x6d7   :  { %v6189_v8 = vadd.f32 %v6180_v49, %v6094_v57  ;;  %v5999_v63 = vadd.f32 %v5993_v5, %v5910_v36  ;;  %v9748_v49 = vld [vmem:[%s12900_s5 + $0x78] sm:$0xff]  ;;  %v9741_v36 = vld [vmem:[%s12900_s5 + $0x40] sm:$0xff] }
 0x6d8   :  { %7001 = vmatpush.bf16.msra.mxu3 %v9748_v49 }
 0x6da   :  { %v6183_v21 = vpop.f32.mrf.mxu0 }
 0x6db   :  { %v6269_v14 = vpop.f32.mrf.mxu1 }
 0x6dc   :  { %v6088_v17 = vpop.f32.mrf.mxu3  ;;  %v6278_v32 = vadd.f32 %v6269_v14, %v6189_v8  ;;  %v9743_v14 = vld [vmem:[%s12900_s5 + $0x50] sm:$0xff] }
 0x6dd   :  { %v6095_v15 = vadd.f32 %v6088_v17, %v5998_v48  ;;  %v9737_v48 = vld [vmem:[%s12900_s5 + $0x20] sm:$0xff]  ;;  %6913 = vmatpush.bf16.msra.mxu2 %v9743_v14 }
 0x6df   :  { %v6190_v29 = vadd.f32 %v6183_v21, %v6095_v15  ;;  %v9747_v21 = vld [vmem:[%s12900_s5 + $0x70] sm:$0xff] }
 0x6e0   :  { %7002 = vmatpush.bf16.msra.mxu3 %v9747_v21 }
 0x6e2   :  { %v6364_v13 = vpop.f32.mrf.mxu2  ;;  %v6185_v33 = vpop.f32.mrf.mxu0 }
 0x6e3   :  { %v6374_v18 = vadd.f32 %v6364_v13, %v6277_v42  ;;  %v6272_v1 = vpop.f32.mrf.mxu1  ;;  %v9739_v13 = vld [vmem:[%s12900_s5 + $0x30] sm:$0xff]  ;;  %v9738_v42 = vld [vmem:[%s12900_s5 + $0x28] sm:$0xff] }
 0x6e4   :  { %v6090_v51 = vpop.f32.mrf.mxu3  ;;  %v6279_v60 = vadd.f32 %v6272_v1, %v6190_v29  ;;  %6749 = vmatpush.bf16.msra.mxu0 %v9739_v13 }
 0x6e5   :  { %v6096_v46 = vadd.f32 %v6090_v51, %v5999_v63  ;;  %v9733_v51 = vld [vmem:[%s12900_s5] sm:$0xff]  ;;  %v9746_v63 = vld [vmem:[%s12900_s5 + $0x68] sm:$0xff] }
 0x6e6   :  { %6800 = vmatpush.bf16.msrb.mxu1 %v9733_v51  ;;  %7003 = vmatpush.bf16.msra.mxu3 %v9746_v63 }
 0x6e7   :  { %v6191_v31 = vadd.f32 %v6185_v33, %v6096_v46 }
 0x6e8   :  { %6750 = vmatpush.bf16.msra.mxu0 %v9738_v42 }
 0x6ea   :  { %v6366_v22 = vpop.f32.mrf.mxu2 }
 0x6eb   :  { %v6375_v6 = vadd.f32 %v6366_v22, %v6278_v32  ;;  %v6274_v7 = vpop.f32.mrf.mxu1  ;;  %v6511_v32 = vld.sshfl [vmem:[#allocation1 + $0x30] sm:$0xff pattern:$0x75316420] }
 0x6ec   :  { %v6459_v37 = vpop.f32.mrf.mxu3  ;;  %v6280_v34 = vadd.f32 %v6274_v7, %v6191_v31  ;;  %6751 = vmatpush.bf16.msra.mxu0 %v9737_v48  ;;  %v9745_v31 = vld [vmem:[%s12900_s5 + $0x60] sm:$0xff]  ;;  %v9756_v7 = vld [vmem:[%s12900_s5 + $0xb8] sm:$0xff] }
 0x6ed   :  { %v6469_v39 = vadd.f32 %v6459_v37, %v6374_v18  ;;  %v12568_v18 = vld [vmem:[#allocation3] sm:$0x3f]  ;;  %7004 = vmatpush.bf16.msra.mxu3 %v9745_v31  ;;  %7193 = vmatpush.bf16.msra.mxu1 %v9756_v7  ;;  %v9764_v48 = vld [vmem:[%s12900_s5 + $0xf8] sm:$0xff] }
 0x6ee   :  { %v6640_v22 = vrot.slane %v12568_v18, 4 }
 0x6ef   :  { %v6476_v62 = vmul.f32 %v12524_v10, %v6469_v39 }
 0x6f1   :  { %v6481_v38 = vadd.f32 %v12526_v2, %v6476_v62  ;;  %7194 = vmatpush.bf16.msra.mxu1 %v9755_v41  ;;  %7379 = vmatpush.bf16.msrb.mxu3 %v9764_v48 }
 0x6f2   :  { %v6369_v59 = vpop.f32.mrf.mxu2 }
 0x6f3   :  { %v6516_v0 = vadd.f32 %v6508_v43, %v6481_v38  ;;  %v6376_v40 = vadd.f32 %v6369_v59, %v6279_v60  ;;  %v9235_v43 = vrot.slane %v12568_v18, 9  ;;  %v9751_v60 = vld [vmem:[%s12900_s5 + $0x90] sm:$0xff] }
 0x6f4   :  { %v6461_v47 = vpop.f32.mrf.mxu3 }
 0x6f5   :  { %v6520_v11 = vmax.f32 %v6516_v0, 0.0  ;;  %v6470_v52 = vadd.f32 %v6461_v47, %v6375_v6  ;;  %v6650_v6 = vrot.slane %v6640_v22, 5  ;;  %v9742_v0 = vld [vmem:[%s12900_s5 + $0x48] sm:$0xff] }
 0x6f6   :  { %6914 = vmatpush.bf16.msra.mxu2 %v9742_v0 }
 0x6f7   :  { %v6528_v27 = vrot.slane %v6520_v11, 4  ;;  %6536 = vst.msk [vmem:[#allocation3 + $0x9] sm:$0xf] %vm1699_vm13, %v6520_v11  ;;  %v6477_v53 = vmul.f32 %v12524_v10, %v6470_v52  ;;  %v6651_v11 = vsel %vm10187_vm9, %v9235_v43, %v6650_v6 }
 0x6f9   :  { %6537 = vst.msk [vmem:[#allocation3 + $0x11] sm:$0xf] %vm1699_vm13, %v6528_v27  ;;  %v6482_v23 = vadd.f32 %v12526_v2, %v6477_v53 }
 0x6fa   :  { %v6371_v44 = vpop.f32.mrf.mxu2  ;;  %6915 = vmatpush.bf16.msra.mxu2 %v9741_v36 }
 0x6fb   :  { %v6517_v9 = vadd.f32 %v6509_v55, %v6482_v23  ;;  %v6377_v20 = vadd.f32 %v6371_v44, %v6280_v34 }
 0x6fc   :  { %v6464_v4 = vpop.f32.mrf.mxu3 }
 0x6fd   :  { %v6521_v24 = vmax.f32 %v6517_v9, 0.0  ;;  %v6471_v28 = vadd.f32 %v6464_v4, %v6376_v40 }
 0x6fe   :  { %v6544_v5 = vld [vmem:[#allocation3 + $0x9] sm:$0xf] }
 0x6ff   :  { %6560 = vst [vmem:[#allocation1] ss:$2 sm:$0xff] %v6544_v5  ;;  %v6529_v17 = vrot.slane %v6521_v24, 4  ;;  %v6478_v30 = vmul.f32 %v12524_v10, %v6471_v28  ;;  %v12577_v15 = vld [vmem:[#allocation3 + $0x8] sm:$0x3f]  ;;  %v9287_v28 = vrot.slane %v12568_v18, 10 }
 0x700   :  { %v6545_v35 = vld [vmem:[#allocation3 + $0x11] sm:$0xf]  ;;  %6538 = vst.msk [vmem:[#allocation3 + $0x19] sm:$0xf] %vm1699_vm13, %v6521_v24  ;;  %v6641_v1 = vrot.slane %v12577_v15, 4  ;;  %v9236_v40 = vrot.slane %v12577_v15, 9 }
 0x701   :  { %6562 = vst [vmem:[#allocation1 + $0x1] ss:$2 sm:$0xff] %v6545_v35  ;;  %v6483_v50 = vadd.f32 %v12526_v2, %v6478_v30  ;;  %v12602_v52 = vld [vmem:[#allocation3 + $0x10] sm:$0x3f]  ;;  %v6814_v5 = vrot.slane %v6640_v22, 6 }
 0x702   :  { %6539 = vst.msk [vmem:[#allocation3 + $0x21] sm:$0xf] %vm1699_vm13, %v6529_v17  ;;  %v6642_v23 = vrot.slane %v12602_v52, 4  ;;  %v6654_v55 = vrot.slane %v6641_v1, 5  ;;  %v9237_v54 = vrot.slane %v12602_v52, 9  ;;  %v9750_v17 = vld [vmem:[%s12900_s5 + $0x88] sm:$0xff] }
 0x703   :  { %v6518_v58 = vadd.f32 %v6510_v45, %v6483_v50  ;;  %v12637_v35 = vld [vmem:[#allocation3 + $0x30] sm:$0x3f]  ;;  %v6818_v13 = vrot.slane %v6641_v1, 6  ;;  %v6815_v49 = vsel %vm10200_vm12, %v9287_v28, %v6814_v5  ;;  %v9289_v21 = vrot.slane %v12602_v52, 10  ;;  %v9763_v5 = vld [vmem:[%s12900_s5 + $0xf0] sm:$0xff] }
 0x704   :  { %v6466_v26 = vpop.f32.mrf.mxu3  ;;  %v12621_v33 = vsel %vm10187_vm9, %v9236_v40, %v6654_v55  ;;  %v6658_v4 = vrot.slane %v6642_v23, 5  ;;  %v9760_v30 = vld [vmem:[%s12900_s5 + $0xd8] sm:$0xff]  ;;  %v6644_v34 = vrot.slane %v12637_v35, 4  ;;  %v6822_v22 = vrot.slane %v6642_v23, 6  ;;  %7380 = vmatpush.bf16.msrb.mxu3 %v9763_v5 }
 0x705   :  { %v6472_v57 = vadd.f32 %v6466_v26, %v6377_v20  ;;  %v6522_v25 = vmax.f32 %v6518_v58, 0.0  ;;  %7282 = vmatpush.bf16.msrb.mxu2 %v9760_v30 }
 0x706   :  { %v12646_v50 = vsel %vm10187_vm9, %v9237_v54, %v6658_v4  ;;  %v12698_v0 = vsel %vm10200_vm12, %v9289_v21, %v6822_v22  ;;  %v6830_v40 = vrot.slane %v6644_v34, 6  ;;  %v9768_v54 = vld [vmem:[%s12900_s5 + $0x118] sm:$0xff]  ;;  %v9761_v21 = vld [vmem:[%s12900_s5 + $0xe0] sm:$0xff] }
 0x707   :  { %v6546_v37 = vld [vmem:[#allocation3 + $0x19] sm:$0xf]  ;;  %v6479_v8 = vmul.f32 %v12524_v10, %v6472_v57  ;;  %v6530_v10 = vrot.slane %v6522_v25, 4  ;;  %6540 = vst.msk [vmem:[#allocation3 + $0x39] sm:$0xf] %vm1699_vm13, %v6522_v25  ;;  %v9288_v57 = vrot.slane %v12577_v15, 10 }
 0x708   :  { %v6575_v39 = vld.sshfl [vmem:[#allocation1] sm:$0xff pattern:$0x75316420]  ;;  %6564 = vst [vmem:[#allocation1 + $0x10] ss:$2 sm:$0xff] %v6546_v37 }
 0x709   :  { %6583 = vst.msk [vmem:[#allocation6] sm:$0xff] %vm405_vm0, %v6575_v39  ;;  %v6547_v62 = vld [vmem:[#allocation3 + $0x21] sm:$0xf]  ;;  %v6484_v19 = vadd.f32 %v12526_v2, %v6479_v8  ;;  %v9752_v2 = vld [vmem:[%s12900_s5 + $0x98] sm:$0xff]  ;;  %v12608_v27 = vld [vmem:[#allocation3 + $0x18] sm:$0x3f]  ;;  %v12671_v25 = vsel %vm10200_vm12, %v9288_v57, %v6818_v13 }
 0x70a   :  { %6607 = vst [vmem:[#allocation1] ss:$2 sm:$0xff] %v12568_v18  ;;  %7098 = vmatpush.bf16.msrb.mxu0 %v9752_v2  ;;  %v6643_v61 = vrot.slane %v12608_v27, 4  ;;  %v9238_v44 = vrot.slane %v12608_v27, 9  ;;  %v9749_v39 = vld [vmem:[%s12900_s5 + $0x80] sm:$0xff]  ;;  %v9290_v6 = vrot.slane %v12608_v27, 10 }
 0x70b   :  { %6609 = vst [vmem:[#allocation1 + $0x1] ss:$2 sm:$0xff] %v12577_v15  ;;  %v6519_v38 = vadd.f32 %v6511_v32, %v6484_v19  ;;  %v9239_v19 = vrot.slane %v12637_v35, 9  ;;  %v6666_v32 = vrot.slane %v6644_v34, 5  ;;  %v12730_v31 = vld [vmem:[#allocation3 + $0x20] sm:$0x3f] }
 0x70c   :  { %6566 = vst [vmem:[#allocation1 + $0x11] ss:$2 sm:$0xff] %v6547_v62  ;;  %v6662_v24 = vrot.slane %v6643_v61, 5  ;;  %v9754_v62 = vld [vmem:[%s12900_s5 + $0xa8] sm:$0xff]  ;;  %v9757_v13 = vld [vmem:[%s12900_s5 + $0xc0] sm:$0xff] }
 0x70d   :  { %v6523_v47 = vmax.f32 %v6519_v38, 0.0  ;;  %6541 = vst.msk [vmem:[#allocation3 + $0x41] sm:$0xf] %vm1699_vm13, %v6530_v10  ;;  %v6826_v10 = vrot.slane %v6643_v61, 6  ;;  %v9759_v38 = vld [vmem:[%s12900_s5 + $0xd0] sm:$0xff]  ;;  %7195 = vmatpush.bf16.msra.mxu1 %v9754_v62  ;;  %v9291_v61 = vrot.slane %v12637_v35, 10 }
 0x70e   :  { %v6548_v53 = vld [vmem:[#allocation3 + $0x39] sm:$0xf]  ;;  %7099 = vmatpush.bf16.msrb.mxu0 %v9751_v60  ;;  %v12650_v20 = vsel %vm10187_vm9, %v9238_v44, %v6662_v24  ;;  %7283 = vmatpush.bf16.msrb.mxu2 %v9759_v38  ;;  %v9762_v62 = vld [vmem:[%s12900_s5 + $0xe8] sm:$0xff] }
 0x70f   :  { %v6531_v29 = vrot.slane %v6523_v47, 4  ;;  %6542 = vst.msk [vmem:[#allocation3 + $0x49] sm:$0xf] %vm1699_vm13, %v6523_v47  ;;  %v12658_v58 = vld [vmem:[#allocation3 + $0x38] sm:$0x3f]  ;;  %v12708_v1 = vsel %vm10200_vm12, %v9290_v6, %v6826_v10  ;;  %7381 = vmatpush.bf16.msrb.mxu3 %v9762_v62 }
 0x710   :  { %6568 = vst [vmem:[#allocation1 + $0x20] ss:$2 sm:$0xff] %v6548_v53  ;;  %v6645_v8 = vrot.slane %v12658_v58, 4  ;;  %v9292_v30 = vrot.slane %v12658_v58, 10 }
 0x711   :  { %6543 = vst.msk [vmem:[#allocation3 + $0x51] sm:$0xf] %vm1699_vm13, %v6531_v29  ;;  %v9753_v29 = vld [vmem:[%s12900_s5 + $0xa0] sm:$0xff] }
 0x712   :  { %v6622_v59 = vld.sshfl [vmem:[#allocation1] sm:$0xff pattern:$0x75316420]  ;;  %7100 = vmatpush.bf16.msrb.mxu0 %v9750_v17  ;;  %v6670_v47 = vrot.slane %v6645_v8, 5  ;;  %7196 = vmatpush.bf16.msra.mxu1 %v9753_v29  ;;  %v6834_v17 = vrot.slane %v6645_v8, 6 }
 0x713   :  { %v6576_v12 = vld.sshfl [vmem:[#allocation1 + $0x10] sm:$0xff pattern:$0x75316420]  ;;  %6680 = vst [vmem:[#allocation1] ss:$2 sm:$0xff] %v6651_v11  ;;  %v6667_v11 = vsel %vm10187_vm9, %v9239_v19, %v6666_v32  ;;  %v9347_v32 = vrot.slane %v12730_v31, 9  ;;  %7382 = vmatpush.bf16.msrb.mxu3 %v9761_v21 }
 0x714   :  { %6584 = vst.msk [vmem:[#allocation6 + $0x8] sm:$0xff] %vm405_vm0, %v6576_v12  ;;  %v6549_v46 = vld [vmem:[#allocation3 + $0x41] sm:$0xf]  ;;  %v9767_v19 = vld [vmem:[%s12900_s5 + $0x110] sm:$0xff] }
 0x715   :  { %6611 = vst [vmem:[#allocation1 + $0x10] ss:$2 sm:$0xff] %v12602_v52  ;;  %v12660_v26 = vld [vmem:[#allocation3 + $0x40] sm:$0x3f] }
 0x716   :  { %6613 = vst [vmem:[#allocation1 + $0x11] ss:$2 sm:$0xff] %v12608_v27  ;;  %v6550_v16 = vld [vmem:[#allocation3 + $0x49] sm:$0xf]  ;;  %v6646_v43 = vrot.slane %v12660_v26, 4  ;;  %7101 = vmatpush.bf16.msrb.mxu0 %v9749_v39  ;;  %v9241_v23 = vrot.slane %v12660_v26, 9 }
 0x717   :  { %6570 = vst [vmem:[#allocation1 + $0x21] ss:$2 sm:$0xff] %v6549_v46  ;;  %v12664_v14 = vld [vmem:[#allocation3 + $0x48] sm:$0x3f] }
 0x718   :  { %v6551_v9 = vld [vmem:[#allocation3 + $0x51] sm:$0xf]  ;;  %6572 = vst [vmem:[#allocation1 + $0x30] ss:$2 sm:$0xff] %v6550_v16  ;;  %v6647_v2 = vrot.slane %v12664_v14, 4  ;;  %v6674_v63 = vrot.slane %v6646_v43, 5 }
 0x719   :  { %6574 = vst [vmem:[#allocation1 + $0x31] ss:$2 sm:$0xff] %v6551_v9  ;;  %v9242_v16 = vrot.slane %v12664_v14, 9  ;;  %v6838_v34 = vrot.slane %v6646_v43, 6  ;;  %v9294_v57 = vrot.slane %v12664_v14, 10 }
 0x71a   :  { %6682 = vst [vmem:[#allocation1 + $0x1] ss:$2 sm:$0xff] %v12621_v33  ;;  %v6678_v60 = vrot.slane %v6647_v2, 5  ;;  %v12727_v9 = vsel %vm10187_vm9, %v9241_v23, %v6674_v63  ;;  %v12796_v6 = vld [vmem:[#allocation3 + $0x50] sm:$0x3f] }
 0x71c   :  { %v12734_v24 = vsel %vm10187_vm9, %v9242_v16, %v6678_v60 }
 0x71d   :  { %v6623_v51 = vld.sshfl [vmem:[#allocation1 + $0x10] sm:$0xff pattern:$0x75316420] }
 0x71e   :  { %6684 = vst [vmem:[#allocation1 + $0x10] ss:$2 sm:$0xff] %v12646_v50  ;;  %v6577_v45 = vld.sshfl [vmem:[#allocation1 + $0x20] sm:$0xff pattern:$0x75316420]  ;;  %v6630_v42 = vpack.c.bf16 %v6623_v51, %v6622_v59  ;;  %v9240_v59 = vrot.slane %v12658_v58, 9 }
 0x71f   :  { %6686 = vst [vmem:[#allocation1 + $0x11] ss:$2 sm:$0xff] %v12650_v20  ;;  %v7020_v51 = vrot.slane %v12730_v31, 4 }
 0x720   :  { %v6578_v18 = vld.sshfl [vmem:[#allocation1 + $0x30] sm:$0xff pattern:$0x75316420]  ;;  %6615 = vst [vmem:[#allocation1 + $0x20] ss:$2 sm:$0xff] %v12637_v35  ;;  %9285 = vmatmul.msk.bf16.vlgmr.msrb.gmra.mxu1 %vm405_vm0, %v6630_v42  ;;  %v12717_v46 = vsel %vm10187_vm9, %v9240_v59, %v6670_v47  ;;  %v6831_v35 = vsel %vm10200_vm12, %v9291_v61, %v6830_v40  ;;  %v9293_v42 = vrot.slane %v12660_v26, 10 }
 0x721   :  { %v6695_v37 = vld.sshfl [vmem:[#allocation1] sm:$0xff pattern:$0x75316420]  ;;  %6617 = vst [vmem:[#allocation1 + $0x21] ss:$2 sm:$0xff] %v12658_v58  ;;  %v7119_v47 = vrot.slane %v7020_v51, 6 }
 0x722   :  { %6844 = vst [vmem:[#allocation1] ss:$2 sm:$0xff] %v6815_v49  ;;  %v12761_v49 = vsel %vm10200_vm12, %v9292_v30, %v6834_v17  ;;  %v9766_v59 = vld [vmem:[%s12900_s5 + $0x108] sm:$0xff]  ;;  %v9765_v61 = vld [vmem:[%s12900_s5 + $0x100] sm:$0xff] }
 0x723   :  { %6846 = vst [vmem:[#allocation1 + $0x1] ss:$2 sm:$0xff] %v12671_v25 }
 0x724   :  { %6619 = vst [vmem:[#allocation1 + $0x30] ss:$2 sm:$0xff] %v12660_v26 }
 0x725   :  { %6621 = vst [vmem:[#allocation1 + $0x31] ss:$2 sm:$0xff] %v12664_v14 }
 0x726   :  { %v6696_v36 = vld.sshfl [vmem:[#allocation1 + $0x10] sm:$0xff pattern:$0x75316420]  ;;  %6585 = vst.msk [vmem:[#allocation6 + $0x10] sm:$0xff] %vm405_vm0, %v6577_v45  ;;  %v6842_v45 = vrot.slane %v6647_v2, 6 }
 0x727   :  { %v6703_v12 = vpack.c.bf16 %v6696_v36, %v6695_v37  ;;  %6848 = vst [vmem:[#allocation1 + $0x10] ss:$2 sm:$0xff] %v12698_v0  ;;  %v7024_v37 = vrot.slane %v7020_v51, 5  ;;  %v7021_v36 = vrot.slane %v12796_v6, 4 }
 0x728   :  { %6850 = vst [vmem:[#allocation1 + $0x11] ss:$2 sm:$0xff] %v12708_v1  ;;  %v6624_v53 = vld.sshfl [vmem:[#allocation1 + $0x20] sm:$0xff pattern:$0x75316420]  ;;  %v12772_v8 = vsel %vm10200_vm12, %v9294_v57, %v6842_v45 }
 0x729   :  { %9267 = vmatmul.msk.bf16.vlgmr.msra.gmra.mxu0 %vm405_vm0, %v6703_v12  ;;  %6586 = vst.msk [vmem:[#allocation6 + $0x18] sm:$0xff] %vm405_vm0, %v6578_v18  ;;  %v12768_v18 = vsel %vm10200_vm12, %v9293_v42, %v6838_v34  ;;  %v12791_v43 = vsel %vm10187_vm9, %v9347_v32, %v7024_v37  ;;  %v9375_v12 = vrot.slane %v12730_v31, 10 }
 0x72a   :  { %6688 = vst [vmem:[#allocation1 + $0x20] ss:$2 sm:$0xff] %v6667_v11  ;;  %v6859_v55 = vld.sshfl [vmem:[#allocation1] sm:$0xff pattern:$0x75316420]  ;;  %7474 = vmatpush.bf16.msra.mxu0 %v9768_v54 }
 0x72b   :  { %6690 = vst [vmem:[#allocation1 + $0x21] ss:$2 sm:$0xff] %v12717_v46  ;;  %v12812_v63 = vsel %vm10200_vm12, %v9375_v12, %v7119_v47  ;;  %7534 = dma.vmem_to_hbm [thread:$0]  %s7527_s27, 512, %s7529_s25, [#allocation7], %s9857_s3, %s9857_s3, %s9858_s1  }
 0x72c   :  { %v6625_v4 = vld.sshfl [vmem:[#allocation1 + $0x30] sm:$0xff pattern:$0x75316420]  ;;  %6933 = vst [vmem:[#allocation1] ss:$2 sm:$0xff] %v12577_v15  ;;  %v9758_v15 = vld [vmem:[%s12900_s5 + $0xc8] sm:$0xff] }
 0x72d   :  { %v6631_v28 = vpack.c.bf16 %v6625_v4, %v6624_v53  ;;  %6692 = vst [vmem:[#allocation1 + $0x30] ss:$2 sm:$0xff] %v12727_v9  ;;  %7284 = vmatpush.bf16.msrb.mxu2 %v9758_v15  ;;  %v7028_v53 = vrot.slane %v7021_v36, 5  ;;  %v6592_v4 = vld [vmem:[#allocation3 + $0x28] sm:$0x3f]  ;;  %v7123_v15 = vrot.slane %v7021_v36, 6 }
 0x72e   :  { %6694 = vst [vmem:[#allocation1 + $0x31] ss:$2 sm:$0xff] %v12734_v24  ;;  %7475 = vmatpush.bf16.msra.mxu0 %v9767_v19 }
 0x72f   :  { %v6860_v7 = vld.sshfl [vmem:[#allocation1 + $0x10] sm:$0xff pattern:$0x75316420]  ;;  %6935 = vst [vmem:[#allocation1 + $0x1] ss:$2 sm:$0xff] %v12602_v52 }
 0x730   :  { %v6867_v44 = vpack.c.bf16 %v6860_v7, %v6859_v55  ;;  %6937 = vst [vmem:[#allocation1 + $0x10] ss:$2 sm:$0xff] %v12608_v27  ;;  %9286 = vmatmul.msk.bf16.gmra.mxu1 %vm405_vm0, %v6631_v28  ;;  %v7301_v28 = vrot.slane %v6592_v4, 4  ;;  %v9429_v7 = vrot.slane %v6592_v4, 9 }
 0x731   :  { %6939 = vst [vmem:[#allocation1 + $0x11] ss:$2 sm:$0xff] %v12730_v31  ;;  %7285 = vmatpush.bf16.msrb.mxu2 %v9757_v13 }
 0x732   :  { %9319 = vmatmul.msk.bf16.vlgmr.msra.gmra.mxu2 %vm405_vm0, %v6867_v44  ;;  %v6697_v41 = vld.sshfl [vmem:[#allocation1 + $0x20] sm:$0xff pattern:$0x75316420]  ;;  %7476 = vmatpush.bf16.msra.mxu0 %v9766_v59  ;;  %v7400_v42 = vrot.slane %v7301_v28, 6 }
 0x733   :  { %6852 = vst [vmem:[#allocation1 + $0x20] ss:$2 sm:$0xff] %v6831_v35  ;;  %v7305_v35 = vrot.slane %v7301_v28, 5 }
 0x734   :  { %6854 = vst [vmem:[#allocation1 + $0x21] ss:$2 sm:$0xff] %v12761_v49 }
 0x735   :  { %v6698_v22 = vld.sshfl [vmem:[#allocation1 + $0x30] sm:$0xff pattern:$0x75316420]  ;;  %v7306_v30 = vsel %vm10187_vm9, %v9429_v7, %v7305_v35 }
 0x736   :  { %v6704_v39 = vpack.c.bf16 %v6698_v22, %v6697_v41  ;;  %6856 = vst [vmem:[#allocation1 + $0x30] ss:$2 sm:$0xff] %v12768_v18  ;;  %v6948_v48 = vld.sshfl [vmem:[#allocation1] sm:$0xff pattern:$0x75316420]  ;;  %7477 = vmatpush.bf16.msra.mxu0 %v9765_v61 }
 0x737   :  { %6858 = vst [vmem:[#allocation1 + $0x31] ss:$2 sm:$0xff] %v12772_v8  ;;  %v6598_v41 = vld [vmem:[#allocation3 + $0x58] sm:$0x3f] }
 0x738   :  { %v6949_v10 = vld.sshfl [vmem:[#allocation1 + $0x10] sm:$0xff pattern:$0x75316420]  ;;  %7030 = vst [vmem:[#allocation1] ss:$2 sm:$0xff] %v12621_v33  ;;  %v7302_v57 = vrot.slane %v6598_v41, 4 }
 0x739   :  { %9268 = vmatmul.msk.bf16.gmra.mxu0 %vm405_vm0, %v6704_v39  ;;  %v6956_v38 = vpack.c.bf16 %v6949_v10, %v6948_v48  ;;  %7032 = vst [vmem:[#allocation1 + $0x1] ss:$2 sm:$0xff] %v12646_v50  ;;  %v9430_v37 = vrot.slane %v6598_v41, 9 }
 0x73a   :  { %7034 = vst [vmem:[#allocation1 + $0x10] ss:$2 sm:$0xff] %v12650_v20  ;;  %v7404_v10 = vrot.slane %v7302_v57, 6 }
 0x73b   :  { %9345 = vmatmul.msk.bf16.vlgmr.msra.gmra.mxu3 %vm405_vm0, %v6956_v38  ;;  %7036 = vst [vmem:[#allocation1 + $0x11] ss:$2 sm:$0xff] %v12791_v43  ;;  %v6861_v33 = vld.sshfl [vmem:[#allocation1 + $0x20] sm:$0xff pattern:$0x75316420] }
 0x73c   :  { %6941 = vst [vmem:[#allocation1 + $0x20] ss:$2 sm:$0xff] %v12658_v58 }
 0x73d   :  { %6943 = vst [vmem:[#allocation1 + $0x21] ss:$2 sm:$0xff] %v12660_v26 }
 0x73e   :  { %v6862_v2 = vld.sshfl [vmem:[#allocation1 + $0x30] sm:$0xff pattern:$0x75316420] }
 0x73f   :  { %v6868_v29 = vpack.c.bf16 %v6862_v2, %v6861_v33  ;;  %6945 = vst [vmem:[#allocation1 + $0x30] ss:$2 sm:$0xff] %v12664_v14 }
 0x740   :  { %6947 = vst [vmem:[#allocation1 + $0x31] ss:$2 sm:$0xff] %v12796_v6  ;;  %v7045_v11 = vld.sshfl [vmem:[#allocation1] sm:$0xff pattern:$0x75316420] }
 0x741   :  { %7125 = vst [vmem:[#allocation1] ss:$2 sm:$0xff] %v12671_v25  ;;  %v9348_v25 = vrot.slane %v12796_v6, 9 }
 0x742   :  { %9320 = vmatmul.msk.bf16.gmra.mxu2 %vm405_vm0, %v6868_v29  ;;  %v7046_v58 = vld.sshfl [vmem:[#allocation1 + $0x10] sm:$0xff pattern:$0x75316420]  ;;  %7127 = vst [vmem:[#allocation1 + $0x1] ss:$2 sm:$0xff] %v12698_v0 }
 0x743   :  { %7129 = vst [vmem:[#allocation1 + $0x10] ss:$2 sm:$0xff] %v12708_v1  ;;  %v7053_v55 = vpack.c.bf16 %v7046_v58, %v7045_v11  ;;  %v12824_v16 = vsel %vm10187_vm9, %v9348_v25, %v7028_v53 }
 0x744   :  { %v6950_v60 = vld.sshfl [vmem:[#allocation1 + $0x20] sm:$0xff pattern:$0x75316420]  ;;  %7131 = vst [vmem:[#allocation1 + $0x11] ss:$2 sm:$0xff] %v12812_v63 }
 0x745   :  { %7038 = vst [vmem:[#allocation1 + $0x20] ss:$2 sm:$0xff] %v12717_v46 }
 0x746   :  { %7040 = vst [vmem:[#allocation1 + $0x21] ss:$2 sm:$0xff] %v12727_v9 }
 0x747   :  { %v6951_v23 = vld.sshfl [vmem:[#allocation1 + $0x30] sm:$0xff pattern:$0x75316420] }
 0x748   :  { %v6957_v40 = vpack.c.bf16 %v6951_v23, %v6950_v60  ;;  %7042 = vst [vmem:[#allocation1 + $0x30] ss:$2 sm:$0xff] %v12734_v24 }
 0x749   :  { %7044 = vst [vmem:[#allocation1 + $0x31] ss:$2 sm:$0xff] %v12824_v16  ;;  %9373 = vmatmul.msk.bf16.vlgmr.msrb.gmra.mxu0 %vm405_vm0, %v7053_v55  ;;  %v7140_v46 = vld.sshfl [vmem:[#allocation1] sm:$0xff pattern:$0x75316420] }
 0x74a   :  { %7214 = vst [vmem:[#allocation1] ss:$2 sm:$0xff] %v12602_v52  ;;  %v9376_v52 = vrot.slane %v12796_v6, 10 }
 0x74b   :  { %9346 = vmatmul.msk.bf16.gmra.mxu3 %vm405_vm0, %v6957_v40  ;;  %v7141_v5 = vld.sshfl [vmem:[#allocation1 + $0x10] sm:$0xff pattern:$0x75316420]  ;;  %7216 = vst [vmem:[#allocation1 + $0x1] ss:$2 sm:$0xff] %v12608_v27 }
 0x74c   :  { %v7148_v54 = vpack.c.bf16 %v7141_v5, %v7140_v46  ;;  %7218 = vst [vmem:[#allocation1 + $0x10] ss:$2 sm:$0xff] %v12730_v31  ;;  %v7124_v27 = vsel %vm10200_vm12, %v9376_v52, %v7123_v15 }
 0x74d   :  { %7220 = vst [vmem:[#allocation1 + $0x11] ss:$2 sm:$0xff] %v6592_v4  ;;  %v7047_v17 = vld.sshfl [vmem:[#allocation1 + $0x20] sm:$0xff pattern:$0x75316420] }
 0x74e   :  { %9401 = vmatmul.msk.bf16.vlgmr.msra.gmra.mxu1 %vm405_vm0, %v7148_v54  ;;  %7133 = vst [vmem:[#allocation1 + $0x20] ss:$2 sm:$0xff] %v12761_v49  ;;  %v9457_v49 = vrot.slane %v6592_v4, 10 }
 0x74f   :  { %7135 = vst [vmem:[#allocation1 + $0x21] ss:$2 sm:$0xff] %v12768_v18 }
 0x750   :  { %v7048_v44 = vld.sshfl [vmem:[#allocation1 + $0x30] sm:$0xff pattern:$0x75316420]  ;;  %v7401_v39 = vsel %vm10200_vm12, %v9457_v49, %v7400_v42 }
 0x751   :  { %7137 = vst [vmem:[#allocation1 + $0x30] ss:$2 sm:$0xff] %v12772_v8  ;;  %v7054_v45 = vpack.c.bf16 %v7048_v44, %v7047_v17 }
 0x752   :  { %v7229_v31 = vld.sshfl [vmem:[#allocation1] sm:$0xff pattern:$0x75316420]  ;;  %7139 = vst [vmem:[#allocation1 + $0x31] ss:$2 sm:$0xff] %v7124_v27 }
 0x753   :  { %7311 = vst [vmem:[#allocation1] ss:$2 sm:$0xff] %v12646_v50 }
 0x754   :  { %v7230_v34 = vld.sshfl [vmem:[#allocation1 + $0x10] sm:$0xff pattern:$0x75316420]  ;;  %7313 = vst [vmem:[#allocation1 + $0x1] ss:$2 sm:$0xff] %v12650_v20 }
 0x755   :  { %v7237_v13 = vpack.c.bf16 %v7230_v34, %v7229_v31  ;;  %7315 = vst [vmem:[#allocation1 + $0x10] ss:$2 sm:$0xff] %v12791_v43 }
 0x756   :  { %7317 = vst [vmem:[#allocation1 + $0x11] ss:$2 sm:$0xff] %v7306_v30  ;;  %v7142_v51 = vld.sshfl [vmem:[#allocation1 + $0x20] sm:$0xff pattern:$0x75316420] }
 0x757   :  { %9427 = vmatmul.msk.bf16.vlgmr.msrb.gmra.mxu2 %vm405_vm0, %v7237_v13  ;;  %7222 = vst [vmem:[#allocation1 + $0x20] ss:$2 sm:$0xff] %v12660_v26  ;;  %v7309_v26 = vrot.slane %v7302_v57, 5 }
 0x758   :  { %7224 = vst [vmem:[#allocation1 + $0x21] ss:$2 sm:$0xff] %v12664_v14 }
 0x759   :  { %9374 = vmatmul.msk.bf16.gmra.mxu0 %vm405_vm0, %v7054_v45  ;;  %v7143_v50 = vld.sshfl [vmem:[#allocation1 + $0x30] sm:$0xff pattern:$0x75316420]  ;;  %v7310_v19 = vsel %vm10187_vm9, %v9430_v37, %v7309_v26 }
 0x75a   :  { %v7149_v20 = vpack.c.bf16 %v7143_v50, %v7142_v51  ;;  %7226 = vst [vmem:[#allocation1 + $0x30] ss:$2 sm:$0xff] %v12796_v6 }
 0x75b   :  { %7228 = vst [vmem:[#allocation1 + $0x31] ss:$2 sm:$0xff] %v6598_v41  ;;  %v7326_v22 = vld.sshfl [vmem:[#allocation1] sm:$0xff pattern:$0x75316420] }
 0x75c   :  { %7406 = vst [vmem:[#allocation1] ss:$2 sm:$0xff] %v12698_v0 }
 0x75d   :  { %v7327_v48 = vld.sshfl [vmem:[#allocation1 + $0x10] sm:$0xff pattern:$0x75316420]  ;;  %7408 = vst [vmem:[#allocation1 + $0x1] ss:$2 sm:$0xff] %v12708_v1  ;;  %v9458_v1 = vrot.slane %v6598_v41, 10 }
 0x75e   :  { %9402 = vmatmul.msk.bf16.gmra.mxu1 %vm405_vm0, %v7149_v20  ;;  %v7334_v14 = vpack.c.bf16 %v7327_v48, %v7326_v22  ;;  %7410 = vst [vmem:[#allocation1 + $0x10] ss:$2 sm:$0xff] %v12812_v63 }
 0x75f   :  { %7412 = vst [vmem:[#allocation1 + $0x11] ss:$2 sm:$0xff] %v7401_v39  ;;  %v7231_v62 = vld.sshfl [vmem:[#allocation1 + $0x20] sm:$0xff pattern:$0x75316420]  ;;  %v7405_v56 = vsel %vm10200_vm12, %v9458_v1, %v7404_v10 }
 0x760   :  { %9455 = vmatmul.msk.bf16.vlgmr.msrb.gmra.mxu3 %vm405_vm0, %v7334_v14  ;;  %7319 = vst [vmem:[#allocation1 + $0x20] ss:$2 sm:$0xff] %v12727_v9 }
 0x761   :  { %7321 = vst [vmem:[#allocation1 + $0x21] ss:$2 sm:$0xff] %v12734_v24 }
 0x762   :  { %v7232_v0 = vld.sshfl [vmem:[#allocation1 + $0x30] sm:$0xff pattern:$0x75316420] }
 0x763   :  { %v7238_v32 = vpack.c.bf16 %v7232_v0, %v7231_v62  ;;  %7323 = vst [vmem:[#allocation1 + $0x30] ss:$2 sm:$0xff] %v12824_v16 }
 0x764   :  { %7325 = vst [vmem:[#allocation1 + $0x31] ss:$2 sm:$0xff] %v7310_v19  ;;  %v7421_v38 = vld.sshfl [vmem:[#allocation1] sm:$0xff pattern:$0x75316420] }
 0x766   :  { %v7422_v21 = vld.sshfl [vmem:[#allocation1 + $0x10] sm:$0xff pattern:$0x75316420] }
 0x767   :  { %9428 = vmatmul.msk.bf16.gmra.mxu2 %vm405_vm0, %v7238_v32  ;;  %v7429_v43 = vpack.c.bf16 %v7422_v21, %v7421_v38 }
 0x768   :  { %v7328_v33 = vld.sshfl [vmem:[#allocation1 + $0x20] sm:$0xff pattern:$0x75316420] }
 0x769   :  { %7414 = vst [vmem:[#allocation1 + $0x20] ss:$2 sm:$0xff] %v12768_v18  ;;  %9483 = vmatmul.msk.bf16.vlgmr.msra.gmra.mxu0 %vm405_vm0, %v7429_v43 }
 0x76a   :  { %7416 = vst [vmem:[#allocation1 + $0x21] ss:$2 sm:$0xff] %v12772_v8 }
 0x76b   :  { %v7329_v9 = vld.sshfl [vmem:[#allocation1 + $0x30] sm:$0xff pattern:$0x75316420] }
 0x76c   :  { %v7335_v24 = vpack.c.bf16 %v7329_v9, %v7328_v33  ;;  %7418 = vst [vmem:[#allocation1 + $0x30] ss:$2 sm:$0xff] %v7124_v27  ;;  %v7493_v27 = vld [vmem:[%s12901_s6] sm:$0x3]  ;;  %s9860_s6 = smov [#allocation8]  }
 0x76d   :  { %7420 = vst [vmem:[#allocation1 + $0x31] ss:$2 sm:$0xff] %v7405_v56  ;;  %v7494_v49 = vperm.slane %v7493_v27, 0  ;;  %v7499_v20 = vperm.slane %v7493_v27, 1  ;;  %s7539_s11 = sshll.u32 %s9860_s6, 4  ;;  %s7540_s11 = int_to_ptr.vmem [resolvable:$true] %s7539_s11 }
 0x770   :  { %9456 = vmatmul.msk.bf16.gmra.mxu3 %vm405_vm0, %v7335_v24 }
 0x771   :  { %v7423_v2 = vld.sshfl [vmem:[#allocation1 + $0x20] sm:$0xff pattern:$0x75316420] }
 0x774   :  { %v7424_v6 = vld.sshfl [vmem:[#allocation1 + $0x30] sm:$0xff pattern:$0x75316420] }
 0x775   :  { %v7430_v47 = vpack.c.bf16 %v7424_v6, %v7423_v2 }
 0x779   :  { %9484 = vmatmul.msk.bf16.gmra.mxu0 %vm405_vm0, %v7430_v47 }
 0x79d   :  { %v6802_v8 = vpop.f32.mrf.mxu1 }
 0x7a5   :  { %v6804_v11 = vpop.f32.mrf.mxu1 }
 0x7a6   :  { %v6753_v3 = vpop.f32.mrf.mxu0 }
 0x7a7   :  { %v6803_v46 = vadd.f32 %v6802_v8, %v6753_v3 }
 0x7ad   :  { %v6807_v25 = vpop.f32.mrf.mxu1 }
 0x7ae   :  { %v6755_v18 = vpop.f32.mrf.mxu0 }
 0x7af   :  { %v6805_v35 = vadd.f32 %v6804_v11, %v6755_v18 }
 0x7b5   :  { %v6917_v36 = vpop.f32.mrf.mxu2  ;;  %v6809_v16 = vpop.f32.mrf.mxu1 }
 0x7b6   :  { %v6758_v29 = vpop.f32.mrf.mxu0  ;;  %v6927_v4 = vadd.f32 %v6917_v36, %v6803_v46 }
 0x7b7   :  { %v6808_v57 = vadd.f32 %v6807_v25, %v6758_v29 }
 0x7bd   :  { %v6919_v59 = vpop.f32.mrf.mxu2 }
 0x7be   :  { %v7006_v12 = vpop.f32.mrf.mxu3  ;;  %v6760_v58 = vpop.f32.mrf.mxu0  ;;  %v6928_v52 = vadd.f32 %v6919_v59, %v6805_v35 }
 0x7bf   :  { %v7016_v15 = vadd.f32 %v7006_v12, %v6927_v4  ;;  %v6810_v38 = vadd.f32 %v6809_v16, %v6760_v58 }
 0x7c5   :  { %v6922_v63 = vpop.f32.mrf.mxu2 }
 0x7c6   :  { %v7008_v53 = vpop.f32.mrf.mxu3  ;;  %v7103_v60 = vpop.f32.mrf.mxu0  ;;  %v6929_v22 = vadd.f32 %v6922_v63, %v6808_v57 }
 0x7c7   :  { %v7113_v17 = vadd.f32 %v7103_v60, %v7016_v15  ;;  %v7017_v31 = vadd.f32 %v7008_v53, %v6928_v52 }
 0x7cb   :  { %v7198_v28 = vpop.f32.mrf.mxu1 }
 0x7cc   :  { %v7208_v44 = vadd.f32 %v7198_v28, %v7113_v17 }
 0x7cd   :  { %v6924_v61 = vpop.f32.mrf.mxu2 }
 0x7ce   :  { %v7105_v23 = vpop.f32.mrf.mxu0  ;;  %v7011_v55 = vpop.f32.mrf.mxu3  ;;  %v6930_v43 = vadd.f32 %v6924_v61, %v6810_v38 }
 0x7cf   :  { %v7114_v45 = vadd.f32 %v7105_v23, %v7017_v31  ;;  %v7018_v26 = vadd.f32 %v7011_v55, %v6929_v22 }
 0x7d3   :  { %v7200_v30 = vpop.f32.mrf.mxu1 }
 0x7d4   :  { %v7209_v37 = vadd.f32 %v7200_v30, %v7114_v45 }
 0x7d6   :  { %v7108_v40 = vpop.f32.mrf.mxu0  ;;  %v7013_v5 = vpop.f32.mrf.mxu3 }
 0x7d7   :  { %v7115_v19 = vadd.f32 %v7108_v40, %v7018_v26  ;;  %v7019_v9 = vadd.f32 %v7013_v5, %v6930_v43 }
 0x7da   :  { %v7287_v54 = vpop.f32.mrf.mxu2 }
 0x7db   :  { %v7297_v34 = vadd.f32 %v7287_v54, %v7208_v44  ;;  %v7203_v0 = vpop.f32.mrf.mxu1 }
 0x7dc   :  { %v7210_v33 = vadd.f32 %v7203_v0, %v7115_v19 }
 0x7de   :  { %v7110_v7 = vpop.f32.mrf.mxu0 }
 0x7df   :  { %v7116_v47 = vadd.f32 %v7110_v7, %v7019_v9 }
 0x7e2   :  { %v7289_v51 = vpop.f32.mrf.mxu2 }
 0x7e3   :  { %v7384_v13 = vpop.f32.mrf.mxu3  ;;  %v7298_v48 = vadd.f32 %v7289_v51, %v7209_v37  ;;  %v7205_v36 = vpop.f32.mrf.mxu1 }
 0x7e4   :  { %v7394_v41 = vadd.f32 %v7384_v13, %v7297_v34  ;;  %v7211_v11 = vadd.f32 %v7205_v36, %v7116_v47 }
 0x7e6   :  { %v7479_v42 = vpop.f32.mrf.mxu0 }
 0x7e7   :  { %v7489_v50 = vadd.f32 %v7479_v42, %v7394_v41 }
 0x7e9   :  { %v7495_v39 = vmul.f32 %v7494_v49, %v7489_v50 }
 0x7ea   :  { %v7292_v1 = vpop.f32.mrf.mxu2 }
 0x7eb   :  { %v7386_v14 = vpop.f32.mrf.mxu3  ;;  %v7500_v62 = vadd.f32 %v7499_v20, %v7495_v39  ;;  %v7299_v24 = vadd.f32 %v7292_v1, %v7210_v33 }
 0x7ec   :  { %v7395_v32 = vadd.f32 %v7386_v14, %v7298_v48 }
 0x7ed   :  { %7505 = vst.msk [vmem:[#allocation8] sm:$0xff] %vm7504_vm14, %v7500_v62 }
 0x7ee   :  { %v7481_v10 = vpop.f32.mrf.mxu0 }
 0x7ef   :  { %v7490_v21 = vadd.f32 %v7481_v10, %v7395_v32 }
 0x7f1   :  { %v7496_v56 = vmul.f32 %v7494_v49, %v7490_v21 }
 0x7f2   :  { %v7294_v29 = vpop.f32.mrf.mxu2 }
 0x7f3   :  { %v7389_v6 = vpop.f32.mrf.mxu3  ;;  %v7501_v2 = vadd.f32 %v7499_v20, %v7496_v56  ;;  %v7300_v12 = vadd.f32 %v7294_v29, %v7211_v11 }
 0x7f4   :  { %v7396_v3 = vadd.f32 %v7389_v6, %v7299_v24 }
 0x7f5   :  { %7506 = vst.msk [vmem:[#allocation8 + $0x8] sm:$0xff] %vm7504_vm14, %v7501_v2 }
 0x7f6   :  { %v7484_v18 = vpop.f32.mrf.mxu0 }
 0x7f7   :  { %v7491_v8 = vadd.f32 %v7484_v18, %v7396_v3 }
 0x7f9   :  { %v7497_v59 = vmul.f32 %v7494_v49, %v7491_v8 }
 0x7fb   :  { %v7391_v58 = vpop.f32.mrf.mxu3  ;;  %v7502_v63 = vadd.f32 %v7499_v20, %v7497_v59 }
 0x7fc   :  { %v7397_v53 = vadd.f32 %v7391_v58, %v7300_v12 }
 0x7fd   :  { %7507 = vst.msk [vmem:[#allocation8 + $0x10] sm:$0xff] %vm7504_vm14, %v7502_v63 }
 0x7fe   :  { %v7486_v60 = vpop.f32.mrf.mxu0 }
 0x7ff   :  { %v7492_v25 = vadd.f32 %v7486_v60, %v7397_v53 }
 0x801   :  { %v7498_v23 = vmul.f32 %v7494_v49, %v7492_v25 }
 0x803   :  { %v7503_v55 = vadd.f32 %v7499_v20, %v7498_v23 }
 0x805   :  { %7508 = vst.msk [vmem:[#allocation8 + $0x18] sm:$0xff] %vm7504_vm14, %v7503_v55 }
 0x806   :  { %7547 = dma.vmem_to_hbm [thread:$0]  %s7540_s11, 512, %s7542_s14, [#allocation7], %s9857_s3, %s9857_s3, %s9858_s1  }
 0x807   :  { %9851 = dma.done.wait [#allocation5], 2048  }
 0x808   :  { %9852 = vsyncadd [#allocation5], 4294965248 }
 0x809   :  { %9853 = dma.done.wait [#allocation7], 1024  }
 0x80a   :  { %9854 = vsyncadd [#allocation7], 4294966272 }
 0x80b   :  { %7560 = vsyncpa [#allocation5], 1 }
 0x80c   :  { %7561 = vsyncpa [#allocation7], 1 }

</bundles_post_ra>
